<compile_context>
chip_gen: v5e
topology: v5e:2x2
jax: 0.10.0
libtpu: 0.0.40
codegen_flags: <defaults>
</compile_context>

<pallas_src>
import functools
import inspect
import math

import jax
import jax.numpy as jnp
import numpy as np
from jax.experimental import pallas as pl
from jax.experimental.pallas import tpu as pltpu

LN_EPS = 1e-5  # nn.LayerNorm default

# Row indices inside the packed (8, M) vector operand.
_LN_G, _LN_B, _BQ, _BK, _BV, _BOT = range(6)


def _attn_time_kernel(x_ref, vec_ref, wqkv_ref, wot_ref, o_ref,
                      *, num_heads, head_dim, seq_t, n_blk):
    """One grid step: n_blk temporal sequences == (n_blk*seq_t, M) rows."""
    M = num_heads * head_dim
    vecs = vec_ref[...]                                      # (8, M) f32

    # ---- layer_norm1 (2-D rows) -------------------------------------------
    x = x_ref[...].astype(jnp.float32)                       # (rows, M)
    mu = jnp.mean(x, axis=-1, keepdims=True)
    var = jnp.mean(jnp.square(x - mu), axis=-1, keepdims=True)
    xn = (x - mu) * jax.lax.rsqrt(var + LN_EPS)
    xn = xn * vecs[_LN_G:_LN_G + 1, :] + vecs[_LN_B:_LN_B + 1, :]

    # ---- fused q/k/v projection: ONE (rows, M) @ (M, 3M) MXU matmul --------
    # (wq, bq pre-scaled by head_dim**-0.5 on the host; bf16 inputs, f32 acc.)
    qkv = jnp.dot(xn.astype(jnp.bfloat16), wqkv_ref[...],
                  preferred_element_type=jnp.float32)        # (rows, 3M) f32

    # f32, sublane-aligned reshape to the per-sequence view (attention only).
    q = (qkv[:, 0 * M:1 * M] + vecs[_BQ:_BQ + 1, :]).reshape(n_blk, seq_t, M)
    k = (qkv[:, 1 * M:2 * M] + vecs[_BK:_BK + 1, :]).reshape(n_blk, seq_t, M)
    v = (qkv[:, 2 * M:3 * M] + vecs[_BV:_BV + 1, :]).reshape(n_blk, seq_t, M)
    q = q.astype(jnp.bfloat16)
    k = k.astype(jnp.bfloat16)
    v = v.astype(jnp.bfloat16)

    # ---- multi-head attention over the temporal axis (tiny T x T scores) ---
    # TODO(synk): audit the sub-128-lane head slices / final lane concat in a bundle
    # dump (XLU pressure); the attention FLOPs are negligible vs the projections.
    heads = []
    for h in range(num_heads):
        lo = h * head_dim
        qh = q[..., lo:lo + head_dim]
        kh = k[..., lo:lo + head_dim]
        vh = v[..., lo:lo + head_dim]
        s = jnp.einsum('ntd,nsd->nts', qh, kh,
                       preferred_element_type=jnp.float32)   # (n, T, T)
        s = s - jnp.max(s, axis=-1, keepdims=True)
        p = jnp.exp(s)
        p = p * pl.reciprocal(jnp.sum(p, axis=-1, keepdims=True), approx=True)
        heads.append(jnp.einsum('nts,nsd->ntd', p.astype(jnp.bfloat16), vh,
                                preferred_element_type=jnp.float32))
    attn = jnp.concatenate(heads, axis=-1)                    # (n, T, M) f32
    attn = attn.reshape(n_blk * seq_t, M).astype(jnp.bfloat16)

    # ---- folded out_proj . temporal_fc: ONE (rows, M) @ (M, M) matmul ------
    y = jnp.dot(attn, wot_ref[...],
                preferred_element_type=jnp.float32) + vecs[_BOT:_BOT + 1, :]

    # ---- residual: re-read the VMEM-resident input block (no long f32 live range).
    # proj_drop(p=0) / DropPath are identities in the inference forward pass.
    o_ref[...] = (x_ref[...].astype(jnp.float32) + y).astype(o_ref.dtype)


def _tpu_tuning():
    """(target rows per block, min grid steps, vmem_limit_bytes) per TPU generation."""
    kind = ""
    try:
        kind = jax.devices()[0].device_kind.lower()
    except Exception:
        pass
    if "v7" in kind:
        # 64 MiB VMEM / 2 TensorCores: smaller blocks, >=2 grid steps per core for
        # prefetch/writeback overlap, headroom below the physical VMEM cap.
        return 256, 4, 50 * 1024 * 1024
    if "v6" in kind or "v5" in kind:
        # 128 MiB VMEM, single TC: bigger blocks amortize per-grid-step overhead.
        return 512, 2, 96 * 1024 * 1024
    return 256, 2, None


def _pick_n_blk(N, T, target_rows, min_grid):
    """Sequences per grid step: ~target_rows rows per block, >= min_grid steps,
    with n_blk*T a multiple of 8 (f32 sublane tile)."""
    mult = 8 // math.gcd(T, 8)
    n_blk = max(1, target_rows // T)
    if pl.cdiv(N, n_blk) < min_grid:          # small problems: spread over min_grid steps
        n_blk = max(1, pl.cdiv(N, min_grid))
    n_blk = max(mult, (n_blk // mult) * mult)
    return n_blk


def _supports_single_buffered_weights():
    """Explicit capability probe for BlockSpec(..., pipeline_mode=pl.Buffered(1))."""
    if not hasattr(pl, "Buffered"):
        return False
    try:
        return "pipeline_mode" in inspect.signature(pl.BlockSpec).parameters
    except (TypeError, ValueError):
        return False


def _concrete_all_zero(a):
    """True iff `a` is a concrete (non-traced) array that is exactly zero."""
    try:
        return not bool(jnp.any(a))
    except Exception:   # traced / abstract value: cannot decide, take the kernel path
        return False


def clip_layer_attn_time(hidden_states, params, *, T, num_heads,
                         n_blk=None, use_fast_path=True):
    """Pallas implementation of CLIPLayer_AttnTime.forward (eval mode, masks None)."""
    B, L, M = hidden_states.shape
    P = (L - 1) // T
    N = B * P
    head_dim = M // num_heads
    out_dtype = hidden_states.dtype

    cls_tok = hidden_states[:, :1, :]                         # init_cls_token
    x2 = hidden_states[:, 1:, :].reshape(N * T, M)            # (b*p*t, m) rows

    # ---- host-side weight prep (all folds in f32, cast to bf16 last) -------
    scale = head_dim ** -0.5
    # out_proj . temporal_fc fold: (a @ wo + bo) @ wt + bt == a @ w_ot + b_ot
    w_ot_f32 = params['wo'] @ params['wt']
    b_ot = params['bo'] @ params['wt'] + params['bt']         # (1, M) f32

    if use_fast_path and _concrete_all_zero(params['wt']):
        # Faithful zero-init temporal_fc: the attention contribution is multiplied
        # away, so skip the kernel entirely (output = x + b_ot on the patch tokens).
        y = (x2.astype(jnp.float32) + b_ot).astype(out_dtype).reshape(B, P * T, M)
        return jnp.concatenate([cls_tok, y], axis=1)

    # TODO(synk): optional int8 (v5e) / fp8 (v7x) weight quantization with
    # per-output-channel scales; needs an end-to-end CLIP-logit accuracy check first.
    w_qkv = jnp.concatenate([params['wq'] * scale, params['wk'], params['wv']],
                            axis=1).astype(jnp.bfloat16)      # (M, 3M)
    w_ot = w_ot_f32.astype(jnp.bfloat16)                      # (M, M)
    # Pack the 6 LayerNorm/bias vectors (+2 pad rows) into one (8, M) f32 operand.
    vecs = jnp.concatenate(
        [params['ln_g'], params['ln_b'], params['bq'] * scale, params['bk'],
         params['bv'], b_ot, jnp.zeros((2, M), jnp.float32)], axis=0)

    # ---- per-generation tiling; pad N instead of exact-divisor search ------
    target_rows, min_grid, vmem_limit = _tpu_tuning()
    if n_blk is None:
        n_blk = _pick_n_blk(N, T, target_rows, min_grid)
    grid = pl.cdiv(N, n_blk)
    rows, rows_blk = N * T, n_blk * T
    rows_pad = grid * rows_blk
    if rows_pad != rows:
        x2 = jnp.pad(x2, ((0, rows_pad - rows), (0, 0)))

    kernel = functools.partial(_attn_time_kernel, num_heads=num_heads,
                               head_dim=head_dim, seq_t=T, n_blk=n_blk)

    def call(weight_kwargs):
        x_spec = pl.BlockSpec((rows_blk, M), lambda i: (i, 0))
        vec_spec = pl.BlockSpec((8, M), lambda i: (0, 0), **weight_kwargs)
        wqkv_spec = pl.BlockSpec((M, 3 * M), lambda i: (0, 0), **weight_kwargs)
        wot_spec = pl.BlockSpec((M, M), lambda i: (0, 0), **weight_kwargs)
        cp = dict(dimension_semantics=("parallel",))
        if vmem_limit is not None:
            cp["vmem_limit_bytes"] = vmem_limit
        return pl.pallas_call(
            kernel,
            out_shape=jax.ShapeDtypeStruct((rows_pad, M), out_dtype),
            grid_spec=pltpu.PrefetchScalarGridSpec(
                num_scalar_prefetch=0,
                grid=(grid,),
                in_specs=[x_spec, vec_spec, wqkv_spec, wot_spec],
                out_specs=x_spec),
            compiler_params=pltpu.CompilerParams(**cp),
        )(x2, vecs, w_qkv, w_ot)

    if _supports_single_buffered_weights():
        # Constant index_map -> single-buffering the resident weights halves their
        # VMEM footprint (matters most on v7x's 64 MiB VMEM).
        try:
            out = call({"pipeline_mode": pl.Buffered(1)})
        except Exception as e:  # loud, configuration-specific fallback
            print(f"[clip_layer_attn_time] single-buffered weight blocks rejected "
                  f"({type(e).__name__}: {e}); retrying with default buffering")
            out = call({})
    else:
        out = call({})

    out = out[:rows].reshape(B, P * T, M)
    return jnp.concatenate([cls_tok, out], axis=1)            # prepend CLS token


def reference(hidden_states, params, *, T, num_heads):
    """Pure-JAX f32 reference replicating the PyTorch forward (eval mode, no masks)."""
    B, L, M = hidden_states.shape
    P = (L - 1) // T
    N = B * P
    head_dim = M // num_heads
    cls_tok = hidden_states[:, :1, :]
    x = hidden_states[:, 1:, :].reshape(N, T, M)

    mu = x.mean(-1, keepdims=True)
    var = ((x - mu) ** 2).mean(-1, keepdims=True)
    xn = (x - mu) / jnp.sqrt(var + LN_EPS) * params['ln_g'] + params['ln_b']

    scale = head_dim ** -0.5
    q = (xn @ params['wq'] + params['bq']) * scale
    k = xn @ params['wk'] + params['bk']
    v = xn @ params['wv'] + params['bv']
    q = q.reshape(N, T, num_heads, head_dim).transpose(0, 2, 1, 3)
    k = k.reshape(N, T, num_heads, head_dim).transpose(0, 2, 1, 3)
    v = v.reshape(N, T, num_heads, head_dim).transpose(0, 2, 1, 3)
    s = jnp.einsum('nhtd,nhsd->nhts', q, k)
    p = jax.nn.softmax(s, axis=-1)
    a = jnp.einsum('nhts,nhsd->nhtd', p, v).transpose(0, 2, 1, 3).reshape(N, T, M)
    y = a @ params['wo'] + params['bo']
    y = y @ params['wt'] + params['bt']
    y = (x + y).reshape(B, P * T, M)
    return jnp.concatenate([cls_tok, y], axis=1)


def init_params(key, M, *, zero_temporal_fc=True):
    """Deterministic parameter init. Weights are stored as (in, out) — the transpose
    of torch.nn.Linear's (out, in) — so the kernel can do x @ W."""
    ks = jax.random.split(key, 9)
    s = 0.02

    def mat(k):
        return jax.random.normal(k, (M, M), jnp.float32) * s

    def vec(k):
        return jax.random.normal(k, (1, M), jnp.float32) * s

    params = dict(
        ln_g=jnp.ones((1, M), jnp.float32),
        ln_b=jnp.zeros((1, M), jnp.float32),
        wq=mat(ks[0]), bq=vec(ks[1]),
        wk=mat(ks[2]), bk=vec(ks[3]),
        wv=mat(ks[4]), bv=vec(ks[5]),
        wo=mat(ks[6]), bo=vec(ks[7]),
    )
    if zero_temporal_fc:
        # Faithful to the module: constant_init(self.temporal_fc, val=0, bias=0)
        params['wt'] = jnp.zeros((M, M), jnp.float32)
        params['bt'] = jnp.zeros((1, M), jnp.float32)
    else:
        params['wt'] = mat(ks[8])
        params['bt'] = jnp.zeros((1, M), jnp.float32)
    return params


if __name__ == "__main__":
    # Small shapes consistent with the module: B=2 videos, T=8 frames,
    # P=16 spatial patches, hidden M=32, 4 attention heads.
    B, T, P, M, H = 2, 8, 16, 32, 4
    key = jax.random.PRNGKey(0)
    kx, kp = jax.random.split(key)
    hidden_states = jax.random.normal(kx, (B, 1 + P * T, M), jnp.float32)

    def check(hs, params, tag, *, use_fast_path=True, rtol=1e-2, atol=1e-2):
        out = jax.block_until_ready(clip_layer_attn_time(
            hs, params, T=T, num_heads=H, use_fast_path=use_fast_path))
        ref = reference(hs.astype(jnp.float32), params, T=T, num_heads=H)
        assert out.shape == hs.shape
        o = np.asarray(out).astype(np.float32)
        r = np.asarray(ref).astype(np.float32)
        if not np.allclose(o, r, rtol=rtol, atol=atol):
            diff = float(np.max(np.abs(o - r)))
            raise SystemExit(f"Pallas output mismatch ({tag}); max abs diff = {diff}")

    p_zero = init_params(kp, M, zero_temporal_fc=True)
    p_full = init_params(kp, M, zero_temporal_fc=False)

    # 1) Faithful config (zero-init temporal_fc): wrapper fast path, no kernel launch.
    check(hidden_states, p_zero, "zero temporal_fc / fast path")
    # 2) Same config, but force the Pallas kernel to run.
    check(hidden_states, p_zero, "zero temporal_fc / kernel", use_fast_path=False)
    # 3) Non-zero temporal_fc: numerically exercises the full attention path.
    check(hidden_states, p_full, "nonzero temporal_fc")
    # 4) bf16 activations in/out (LN, softmax and the residual stay f32 in-kernel).
    check(hidden_states.astype(jnp.bfloat16), p_full, "bf16 activations",
          rtol=2e-2, atol=5e-2)

    print("KERNEL_OK")
</pallas_src>

<mosaic_0001>
module attributes {stable_mosaic.version = 11 : i64} {
  func.func @_attn_time_kernel(%arg0: i32, %arg1: memref<128x32xf32, #tpu.memory_space<vmem>>, %arg2: memref<8x32xf32, #tpu.memory_space<vmem>>, %arg3: memref<32x96xbf16, #tpu.memory_space<vmem>>, %arg4: memref<32x32xbf16, #tpu.memory_space<vmem>>, %arg5: memref<128x32xf32, #tpu.memory_space<vmem>>) attributes {dimension_semantics = [#tpu.dimension_semantics<parallel>], iteration_bounds = array<i64: 2>, scalar_prefetch = 0 : i64, scratch_operands = 0 : i64, tpu.core_type = #tpu.core_type<tc>, window_params = [{transform_indices = @transform_0, window_bounds = array<i64: 128, 32>}, {pipeline_mode = #tpu.pipeline_mode<synchronous>, transform_indices = @transform_1, window_bounds = array<i64: 8, 32>}, {pipeline_mode = #tpu.pipeline_mode<synchronous>, transform_indices = @transform_2, window_bounds = array<i64: 32, 96>}, {pipeline_mode = #tpu.pipeline_mode<synchronous>, transform_indices = @transform_3, window_bounds = array<i64: 32, 32>}, {transform_indices = @transform_4, window_bounds = array<i64: 128, 32>}]} {
    %c0 = arith.constant 0 : index
    %c0_0 = arith.constant 0 : index
    %0 = vector.load %arg2[%c0, %c0_0] : memref<8x32xf32, #tpu.memory_space<vmem>>, vector<8x32xf32>
    %c0_1 = arith.constant 0 : index
    %c0_2 = arith.constant 0 : index
    %1 = vector.load %arg1[%c0_1, %c0_2] : memref<128x32xf32, #tpu.memory_space<vmem>>, vector<128x32xf32>
    %cst = arith.constant dense<0.000000e+00> : vector<128xf32>
    %2 = vector.multi_reduction <add>, %1, %cst [1] : vector<128x32xf32> to vector<128xf32>
    %3 = vector.shape_cast %2 : vector<128xf32> to vector<128x1xf32>
    %cst_3 = arith.constant 3.200000e+01 : f32
    %4 = vector.broadcast %cst_3 : f32 to vector<128x1xf32>
    %5 = arith.divf %3, %4 : vector<128x1xf32>
    %6 = vector.broadcast %5 : vector<128x1xf32> to vector<128x32xf32>
    %7 = arith.subf %1, %6 : vector<128x32xf32>
    %8 = arith.mulf %7, %7 : vector<128x32xf32>
    %cst_4 = arith.constant dense<0.000000e+00> : vector<128xf32>
    %9 = vector.multi_reduction <add>, %8, %cst_4 [1] : vector<128x32xf32> to vector<128xf32>
    %10 = vector.shape_cast %9 : vector<128xf32> to vector<128x1xf32>
    %cst_5 = arith.constant 3.200000e+01 : f32
    %11 = vector.broadcast %cst_5 : f32 to vector<128x1xf32>
    %12 = arith.divf %10, %11 : vector<128x1xf32>
    %13 = vector.broadcast %5 : vector<128x1xf32> to vector<128x32xf32>
    %14 = arith.subf %1, %13 : vector<128x32xf32>
    %cst_6 = arith.constant 9.99999974E-6 : f32
    %15 = vector.broadcast %cst_6 : f32 to vector<128x1xf32>
    %16 = arith.addf %12, %15 : vector<128x1xf32>
    %17 = math.rsqrt %16 : vector<128x1xf32>
    %18 = vector.broadcast %17 : vector<128x1xf32> to vector<128x32xf32>
    %19 = arith.mulf %14, %18 : vector<128x32xf32>
    %20 = vector.extract_strided_slice %0 {offsets = [0, 0], sizes = [1, 32], strides = [1, 1]} : vector<8x32xf32> to vector<1x32xf32>
    %21 = vector.broadcast %20 : vector<1x32xf32> to vector<128x32xf32>
    %22 = arith.mulf %19, %21 : vector<128x32xf32>
    %23 = vector.extract_strided_slice %0 {offsets = [1, 0], sizes = [1, 32], strides = [1, 1]} : vector<8x32xf32> to vector<1x32xf32>
    %24 = vector.broadcast %23 : vector<1x32xf32> to vector<128x32xf32>
    %25 = arith.addf %22, %24 : vector<128x32xf32>
    %26 = arith.truncf %25 : vector<128x32xf32> to vector<128x32xbf16>
    %c0_7 = arith.constant 0 : index
    %c0_8 = arith.constant 0 : index
    %27 = vector.load %arg3[%c0_7, %c0_8] : memref<32x96xbf16, #tpu.memory_space<vmem>>, vector<32x96xbf16>
    %cst_9 = arith.constant dense<0.000000e+00> : vector<128x96xf32>
    %28 = tpu.matmul %26, %27, %cst_9 {dimension_numbers = #tpu.dot_dimension_numbers<[1], [0], [0], [1], [0, 0, 1, 1], [], []>} : vector<128x32xbf16>, vector<32x96xbf16>, vector<128x96xf32> -> vector<128x96xf32>
    %29 = vector.extract_strided_slice %28 {offsets = [0, 0], sizes = [128, 32], strides = [1, 1]} : vector<128x96xf32> to vector<128x32xf32>
    %30 = vector.extract_strided_slice %0 {offsets = [2, 0], sizes = [1, 32], strides = [1, 1]} : vector<8x32xf32> to vector<1x32xf32>
    %31 = vector.broadcast %30 : vector<1x32xf32> to vector<128x32xf32>
    %32 = arith.addf %29, %31 : vector<128x32xf32>
    %33 = vector.shape_cast %32 : vector<128x32xf32> to vector<16x8x32xf32>
    %34 = vector.extract_strided_slice %28 {offsets = [0, 32], sizes = [128, 32], strides = [1, 1]} : vector<128x96xf32> to vector<128x32xf32>
    %35 = vector.extract_strided_slice %0 {offsets = [3, 0], sizes = [1, 32], strides = [1, 1]} : vector<8x32xf32> to vector<1x32xf32>
    %36 = vector.broadcast %35 : vector<1x32xf32> to vector<128x32xf32>
    %37 = arith.addf %34, %36 : vector<128x32xf32>
    %38 = vector.shape_cast %37 : vector<128x32xf32> to vector<16x8x32xf32>
    %39 = vector.extract_strided_slice %28 {offsets = [0, 64], sizes = [128, 32], strides = [1, 1]} : vector<128x96xf32> to vector<128x32xf32>
    %40 = vector.extract_strided_slice %0 {offsets = [4, 0], sizes = [1, 32], strides = [1, 1]} : vector<8x32xf32> to vector<1x32xf32>
    %41 = vector.broadcast %40 : vector<1x32xf32> to vector<128x32xf32>
    %42 = arith.addf %39, %41 : vector<128x32xf32>
    %43 = vector.shape_cast %42 : vector<128x32xf32> to vector<16x8x32xf32>
    %44 = arith.truncf %33 : vector<16x8x32xf32> to vector<16x8x32xbf16>
    %45 = arith.truncf %38 : vector<16x8x32xf32> to vector<16x8x32xbf16>
    %46 = arith.truncf %43 : vector<16x8x32xf32> to vector<16x8x32xbf16>
    %47 = vector.extract_strided_slice %44 {offsets = [0, 0, 0], sizes = [16, 8, 8], strides = [1, 1, 1]} : vector<16x8x32xbf16> to vector<16x8x8xbf16>
    %48 = vector.extract_strided_slice %45 {offsets = [0, 0, 0], sizes = [16, 8, 8], strides = [1, 1, 1]} : vector<16x8x32xbf16> to vector<16x8x8xbf16>
    %49 = vector.extract_strided_slice %46 {offsets = [0, 0, 0], sizes = [16, 8, 8], strides = [1, 1, 1]} : vector<16x8x32xbf16> to vector<16x8x8xbf16>
    "tpu.trace_start"() <{level = 10 : i32, message = "ntd,nsd->nts"}> : () -> ()
    %cst_10 = arith.constant dense<0.000000e+00> : vector<16x8x8xf32>
    %50 = tpu.matmul %47, %48, %cst_10 {dimension_numbers = #tpu.dot_dimension_numbers<[2], [2], [1], [1], [0, 0, 0, 1, 1, 1], [0], [0]>} : vector<16x8x8xbf16>, vector<16x8x8xbf16>, vector<16x8x8xf32> -> vector<16x8x8xf32>
    "tpu.trace_stop"() : () -> ()
    %cst_11 = arith.constant dense<0xFF800000> : vector<16x8xf32>
    %51 = vector.multi_reduction <maximumf>, %50, %cst_11 [2] : vector<16x8x8xf32> to vector<16x8xf32>
    %52 = vector.shape_cast %51 : vector<16x8xf32> to vector<16x8x1xf32>
    %53 = vector.broadcast %52 : vector<16x8x1xf32> to vector<16x8x8xf32>
    %54 = arith.subf %50, %53 : vector<16x8x8xf32>
    %55 = math.exp %54 : vector<16x8x8xf32>
    %cst_12 = arith.constant dense<0.000000e+00> : vector<16x8xf32>
    %56 = vector.multi_reduction <add>, %55, %cst_12 [2] : vector<16x8x8xf32> to vector<16x8xf32>
    %57 = vector.shape_cast %56 : vector<16x8xf32> to vector<16x8x1xf32>
    %58 = tpu.reciprocal %57 {approx = true} : vector<16x8x1xf32> -> vector<16x8x1xf32>
    %59 = vector.broadcast %58 : vector<16x8x1xf32> to vector<16x8x8xf32>
    %60 = arith.mulf %55, %59 : vector<16x8x8xf32>
    %61 = arith.truncf %60 : vector<16x8x8xf32> to vector<16x8x8xbf16>
    "tpu.trace_start"() <{level = 10 : i32, message = "nts,nsd->ntd"}> : () -> ()
    %cst_13 = arith.constant dense<0.000000e+00> : vector<16x8x8xf32>
    %62 = tpu.matmul %61, %49, %cst_13 {dimension_numbers = #tpu.dot_dimension_numbers<[2], [1], [1], [2], [0, 0, 0, 1, 1, 2], [0], [0]>} : vector<16x8x8xbf16>, vector<16x8x8xbf16>, vector<16x8x8xf32> -> vector<16x8x8xf32>
    "tpu.trace_stop"() : () -> ()
    %63 = vector.extract_strided_slice %44 {offsets = [0, 0, 8], sizes = [16, 8, 8], strides = [1, 1, 1]} : vector<16x8x32xbf16> to vector<16x8x8xbf16>
    %64 = vector.extract_strided_slice %45 {offsets = [0, 0, 8], sizes = [16, 8, 8], strides = [1, 1, 1]} : vector<16x8x32xbf16> to vector<16x8x8xbf16>
    %65 = vector.extract_strided_slice %46 {offsets = [0, 0, 8], sizes = [16, 8, 8], strides = [1, 1, 1]} : vector<16x8x32xbf16> to vector<16x8x8xbf16>
    "tpu.trace_start"() <{level = 10 : i32, message = "ntd,nsd->nts"}> : () -> ()
    %cst_14 = arith.constant dense<0.000000e+00> : vector<16x8x8xf32>
    %66 = tpu.matmul %63, %64, %cst_14 {dimension_numbers = #tpu.dot_dimension_numbers<[2], [2], [1], [1], [0, 0, 0, 1, 1, 1], [0], [0]>} : vector<16x8x8xbf16>, vector<16x8x8xbf16>, vector<16x8x8xf32> -> vector<16x8x8xf32>
    "tpu.trace_stop"() : () -> ()
    %cst_15 = arith.constant dense<0xFF800000> : vector<16x8xf32>
    %67 = vector.multi_reduction <maximumf>, %66, %cst_15 [2] : vector<16x8x8xf32> to vector<16x8xf32>
    %68 = vector.shape_cast %67 : vector<16x8xf32> to vector<16x8x1xf32>
    %69 = vector.broadcast %68 : vector<16x8x1xf32> to vector<16x8x8xf32>
    %70 = arith.subf %66, %69 : vector<16x8x8xf32>
    %71 = math.exp %70 : vector<16x8x8xf32>
    %cst_16 = arith.constant dense<0.000000e+00> : vector<16x8xf32>
    %72 = vector.multi_reduction <add>, %71, %cst_16 [2] : vector<16x8x8xf32> to vector<16x8xf32>
    %73 = vector.shape_cast %72 : vector<16x8xf32> to vector<16x8x1xf32>
    %74 = tpu.reciprocal %73 {approx = true} : vector<16x8x1xf32> -> vector<16x8x1xf32>
    %75 = vector.broadcast %74 : vector<16x8x1xf32> to vector<16x8x8xf32>
    %76 = arith.mulf %71, %75 : vector<16x8x8xf32>
    %77 = arith.truncf %76 : vector<16x8x8xf32> to vector<16x8x8xbf16>
    "tpu.trace_start"() <{level = 10 : i32, message = "nts,nsd->ntd"}> : () -> ()
    %cst_17 = arith.constant dense<0.000000e+00> : vector<16x8x8xf32>
    %78 = tpu.matmul %77, %65, %cst_17 {dimension_numbers = #tpu.dot_dimension_numbers<[2], [1], [1], [2], [0, 0, 0, 1, 1, 2], [0], [0]>} : vector<16x8x8xbf16>, vector<16x8x8xbf16>, vector<16x8x8xf32> -> vector<16x8x8xf32>
    "tpu.trace_stop"() : () -> ()
    %79 = vector.extract_strided_slice %44 {offsets = [0, 0, 16], sizes = [16, 8, 8], strides = [1, 1, 1]} : vector<16x8x32xbf16> to vector<16x8x8xbf16>
    %80 = vector.extract_strided_slice %45 {offsets = [0, 0, 16], sizes = [16, 8, 8], strides = [1, 1, 1]} : vector<16x8x32xbf16> to vector<16x8x8xbf16>
    %81 = vector.extract_strided_slice %46 {offsets = [0, 0, 16], sizes = [16, 8, 8], strides = [1, 1, 1]} : vector<16x8x32xbf16> to vector<16x8x8xbf16>
    "tpu.trace_start"() <{level = 10 : i32, message = "ntd,nsd->nts"}> : () -> ()
    %cst_18 = arith.constant dense<0.000000e+00> : vector<16x8x8xf32>
    %82 = tpu.matmul %79, %80, %cst_18 {dimension_numbers = #tpu.dot_dimension_numbers<[2], [2], [1], [1], [0, 0, 0, 1, 1, 1], [0], [0]>} : vector<16x8x8xbf16>, vector<16x8x8xbf16>, vector<16x8x8xf32> -> vector<16x8x8xf32>
    "tpu.trace_stop"() : () -> ()
    %cst_19 = arith.constant dense<0xFF800000> : vector<16x8xf32>
    %83 = vector.multi_reduction <maximumf>, %82, %cst_19 [2] : vector<16x8x8xf32> to vector<16x8xf32>
    %84 = vector.shape_cast %83 : vector<16x8xf32> to vector<16x8x1xf32>
    %85 = vector.broadcast %84 : vector<16x8x1xf32> to vector<16x8x8xf32>
    %86 = arith.subf %82, %85 : vector<16x8x8xf32>
    %87 = math.exp %86 : vector<16x8x8xf32>
    %cst_20 = arith.constant dense<0.000000e+00> : vector<16x8xf32>
    %88 = vector.multi_reduction <add>, %87, %cst_20 [2] : vector<16x8x8xf32> to vector<16x8xf32>
    %89 = vector.shape_cast %88 : vector<16x8xf32> to vector<16x8x1xf32>
    %90 = tpu.reciprocal %89 {approx = true} : vector<16x8x1xf32> -> vector<16x8x1xf32>
    %91 = vector.broadcast %90 : vector<16x8x1xf32> to vector<16x8x8xf32>
    %92 = arith.mulf %87, %91 : vector<16x8x8xf32>
    %93 = arith.truncf %92 : vector<16x8x8xf32> to vector<16x8x8xbf16>
    "tpu.trace_start"() <{level = 10 : i32, message = "nts,nsd->ntd"}> : () -> ()
    %cst_21 = arith.constant dense<0.000000e+00> : vector<16x8x8xf32>
    %94 = tpu.matmul %93, %81, %cst_21 {dimension_numbers = #tpu.dot_dimension_numbers<[2], [1], [1], [2], [0, 0, 0, 1, 1, 2], [0], [0]>} : vector<16x8x8xbf16>, vector<16x8x8xbf16>, vector<16x8x8xf32> -> vector<16x8x8xf32>
    "tpu.trace_stop"() : () -> ()
    %95 = vector.extract_strided_slice %44 {offsets = [0, 0, 24], sizes = [16, 8, 8], strides = [1, 1, 1]} : vector<16x8x32xbf16> to vector<16x8x8xbf16>
    %96 = vector.extract_strided_slice %45 {offsets = [0, 0, 24], sizes = [16, 8, 8], strides = [1, 1, 1]} : vector<16x8x32xbf16> to vector<16x8x8xbf16>
    %97 = vector.extract_strided_slice %46 {offsets = [0, 0, 24], sizes = [16, 8, 8], strides = [1, 1, 1]} : vector<16x8x32xbf16> to vector<16x8x8xbf16>
    "tpu.trace_start"() <{level = 10 : i32, message = "ntd,nsd->nts"}> : () -> ()
    %cst_22 = arith.constant dense<0.000000e+00> : vector<16x8x8xf32>
    %98 = tpu.matmul %95, %96, %cst_22 {dimension_numbers = #tpu.dot_dimension_numbers<[2], [2], [1], [1], [0, 0, 0, 1, 1, 1], [0], [0]>} : vector<16x8x8xbf16>, vector<16x8x8xbf16>, vector<16x8x8xf32> -> vector<16x8x8xf32>
    "tpu.trace_stop"() : () -> ()
    %cst_23 = arith.constant dense<0xFF800000> : vector<16x8xf32>
    %99 = vector.multi_reduction <maximumf>, %98, %cst_23 [2] : vector<16x8x8xf32> to vector<16x8xf32>
    %100 = vector.shape_cast %99 : vector<16x8xf32> to vector<16x8x1xf32>
    %101 = vector.broadcast %100 : vector<16x8x1xf32> to vector<16x8x8xf32>
    %102 = arith.subf %98, %101 : vector<16x8x8xf32>
    %103 = math.exp %102 : vector<16x8x8xf32>
    %cst_24 = arith.constant dense<0.000000e+00> : vector<16x8xf32>
    %104 = vector.multi_reduction <add>, %103, %cst_24 [2] : vector<16x8x8xf32> to vector<16x8xf32>
    %105 = vector.shape_cast %104 : vector<16x8xf32> to vector<16x8x1xf32>
    %106 = tpu.reciprocal %105 {approx = true} : vector<16x8x1xf32> -> vector<16x8x1xf32>
    %107 = vector.broadcast %106 : vector<16x8x1xf32> to vector<16x8x8xf32>
    %108 = arith.mulf %103, %107 : vector<16x8x8xf32>
    %109 = arith.truncf %108 : vector<16x8x8xf32> to vector<16x8x8xbf16>
    "tpu.trace_start"() <{level = 10 : i32, message = "nts,nsd->ntd"}> : () -> ()
    %cst_25 = arith.constant dense<0.000000e+00> : vector<16x8x8xf32>
    %110 = tpu.matmul %109, %97, %cst_25 {dimension_numbers = #tpu.dot_dimension_numbers<[2], [1], [1], [2], [0, 0, 0, 1, 1, 2], [0], [0]>} : vector<16x8x8xbf16>, vector<16x8x8xbf16>, vector<16x8x8xf32> -> vector<16x8x8xf32>
    "tpu.trace_stop"() : () -> ()
    %111 = tpu.concatenate %62, %78, %94, %110 in 2 : vector<16x8x8xf32>, vector<16x8x8xf32>, vector<16x8x8xf32>, vector<16x8x8xf32> -> vector<16x8x32xf32>
    %112 = vector.shape_cast %111 : vector<16x8x32xf32> to vector<128x32xf32>
    %113 = arith.truncf %112 : vector<128x32xf32> to vector<128x32xbf16>
    %c0_26 = arith.constant 0 : index
    %c0_27 = arith.constant 0 : index
    %114 = vector.load %arg4[%c0_26, %c0_27] : memref<32x32xbf16, #tpu.memory_space<vmem>>, vector<32x32xbf16>
    %cst_28 = arith.constant dense<0.000000e+00> : vector<128x32xf32>
    %115 = tpu.matmul %113, %114, %cst_28 {dimension_numbers = #tpu.dot_dimension_numbers<[1], [0], [0], [1], [0, 0, 1, 1], [], []>} : vector<128x32xbf16>, vector<32x32xbf16>, vector<128x32xf32> -> vector<128x32xf32>
    %116 = vector.extract_strided_slice %0 {offsets = [5, 0], sizes = [1, 32], strides = [1, 1]} : vector<8x32xf32> to vector<1x32xf32>
    %117 = vector.broadcast %116 : vector<1x32xf32> to vector<128x32xf32>
    %118 = arith.addf %115, %117 : vector<128x32xf32>
    %c0_29 = arith.constant 0 : index
    %c0_30 = arith.constant 0 : index
    %119 = vector.load %arg1[%c0_29, %c0_30] : memref<128x32xf32, #tpu.memory_space<vmem>>, vector<128x32xf32>
    %120 = arith.addf %119, %118 : vector<128x32xf32>
    %c0_31 = arith.constant 0 : index
    %c0_32 = arith.constant 0 : index
    %121 = vector.load %arg5[%c0_31, %c0_32] : memref<128x32xf32, #tpu.memory_space<vmem>>, vector<128x32xf32>
    tpu.vector_store %arg5[%c0_31, %c0_32], %120 {strides = array<i32>} : memref<128x32xf32, #tpu.memory_space<vmem>>, vector<128x32xf32>,
    return
  }
  func.func @transform_0(%arg0: i32) -> (i32, i32) {
    %c0_i32 = arith.constant 0 : i32
    %c0_i32_0 = arith.constant 0 : i32
    return %arg0, %c0_i32 : i32, i32
  }
  func.func @transform_1(%arg0: i32) -> (i32, i32) {
    %c0_i32 = arith.constant 0 : i32
    %c0_i32_0 = arith.constant 0 : i32
    %c0_i32_1 = arith.constant 0 : i32
    return %c0_i32, %c0_i32_0 : i32, i32
  }
  func.func @transform_2(%arg0: i32) -> (i32, i32) {
    %c0_i32 = arith.constant 0 : i32
    %c0_i32_0 = arith.constant 0 : i32
    %c0_i32_1 = arith.constant 0 : i32
    return %c0_i32, %c0_i32_0 : i32, i32
  }
  func.func @transform_3(%arg0: i32) -> (i32, i32) {
    %c0_i32 = arith.constant 0 : i32
    %c0_i32_0 = arith.constant 0 : i32
    %c0_i32_1 = arith.constant 0 : i32
    return %c0_i32, %c0_i32_0 : i32, i32
  }
  func.func @transform_4(%arg0: i32) -> (i32, i32) {
    %c0_i32 = arith.constant 0 : i32
    %c0_i32_0 = arith.constant 0 : i32
    return %arg0, %c0_i32 : i32, i32
  }
}

module attributes {stable_mosaic.version = 11 : i64} {
  func.func @_attn_time_kernel(%arg0: i32, %arg1: memref<128x32xf32, #tpu.memory_space<vmem>>, %arg2: memref<8x32xf32, #tpu.memory_space<vmem>>, %arg3: memref<32x96xbf16, #tpu.memory_space<vmem>>, %arg4: memref<32x32xbf16, #tpu.memory_space<vmem>>, %arg5: memref<128x32xf32, #tpu.memory_space<vmem>>) attributes {dimension_semantics = [#tpu.dimension_semantics<parallel>], iteration_bounds = array<i64: 2>, scalar_prefetch = 0 : i64, scratch_operands = 0 : i64, tpu.core_type = #tpu.core_type<tc>, window_params = [{transform_indices = @transform_0, window_bounds = array<i64: 128, 32>}, {pipeline_mode = #tpu.pipeline_mode<synchronous>, transform_indices = @transform_1, window_bounds = array<i64: 8, 32>}, {pipeline_mode = #tpu.pipeline_mode<synchronous>, transform_indices = @transform_2, window_bounds = array<i64: 32, 96>}, {pipeline_mode = #tpu.pipeline_mode<synchronous>, transform_indices = @transform_3, window_bounds = array<i64: 32, 32>}, {transform_indices = @transform_4, window_bounds = array<i64: 128, 32>}]} {
    %c0 = arith.constant 0 : index
    %c0_0 = arith.constant 0 : index
    %0 = vector.load %arg2[%c0, %c0_0] : memref<8x32xf32, #tpu.memory_space<vmem>>, vector<8x32xf32>
    %c0_1 = arith.constant 0 : index
    %c0_2 = arith.constant 0 : index
    %1 = vector.load %arg1[%c0_1, %c0_2] : memref<128x32xf32, #tpu.memory_space<vmem>>, vector<128x32xf32>
    %cst = arith.constant dense<0.000000e+00> : vector<128xf32>
    %2 = vector.multi_reduction <add>, %1, %cst [1] : vector<128x32xf32> to vector<128xf32>
    %3 = vector.shape_cast %2 : vector<128xf32> to vector<128x1xf32>
    %cst_3 = arith.constant 3.200000e+01 : f32
    %4 = vector.broadcast %cst_3 : f32 to vector<128x1xf32>
    %5 = arith.divf %3, %4 : vector<128x1xf32>
    %6 = vector.broadcast %5 : vector<128x1xf32> to vector<128x32xf32>
    %7 = arith.subf %1, %6 : vector<128x32xf32>
    %8 = arith.mulf %7, %7 : vector<128x32xf32>
    %cst_4 = arith.constant dense<0.000000e+00> : vector<128xf32>
    %9 = vector.multi_reduction <add>, %8, %cst_4 [1] : vector<128x32xf32> to vector<128xf32>
    %10 = vector.shape_cast %9 : vector<128xf32> to vector<128x1xf32>
    %cst_5 = arith.constant 3.200000e+01 : f32
    %11 = vector.broadcast %cst_5 : f32 to vector<128x1xf32>
    %12 = arith.divf %10, %11 : vector<128x1xf32>
    %13 = vector.broadcast %5 : vector<128x1xf32> to vector<128x32xf32>
    %14 = arith.subf %1, %13 : vector<128x32xf32>
    %cst_6 = arith.constant 9.99999974E-6 : f32
    %15 = vector.broadcast %cst_6 : f32 to vector<128x1xf32>
    %16 = arith.addf %12, %15 : vector<128x1xf32>
    %17 = math.rsqrt %16 : vector<128x1xf32>
    %18 = vector.broadcast %17 : vector<128x1xf32> to vector<128x32xf32>
    %19 = arith.mulf %14, %18 : vector<128x32xf32>
    %20 = vector.extract_strided_slice %0 {offsets = [0, 0], sizes = [1, 32], strides = [1, 1]} : vector<8x32xf32> to vector<1x32xf32>
    %21 = vector.broadcast %20 : vector<1x32xf32> to vector<128x32xf32>
    %22 = arith.mulf %19, %21 : vector<128x32xf32>
    %23 = vector.extract_strided_slice %0 {offsets = [1, 0], sizes = [1, 32], strides = [1, 1]} : vector<8x32xf32> to vector<1x32xf32>
    %24 = vector.broadcast %23 : vector<1x32xf32> to vector<128x32xf32>
    %25 = arith.addf %22, %24 : vector<128x32xf32>
    %26 = arith.truncf %25 : vector<128x32xf32> to vector<128x32xbf16>
    %c0_7 = arith.constant 0 : index
    %c0_8 = arith.constant 0 : index
    %27 = vector.load %arg3[%c0_7, %c0_8] : memref<32x96xbf16, #tpu.memory_space<vmem>>, vector<32x96xbf16>
    %cst_9 = arith.constant dense<0.000000e+00> : vector<128x96xf32>
    %28 = tpu.matmul %26, %27, %cst_9 {dimension_numbers = #tpu.dot_dimension_numbers<[1], [0], [0], [1], [0, 0, 1, 1], [], []>} : vector<128x32xbf16>, vector<32x96xbf16>, vector<128x96xf32> -> vector<128x96xf32>
    %29 = vector.extract_strided_slice %28 {offsets = [0, 0], sizes = [128, 32], strides = [1, 1]} : vector<128x96xf32> to vector<128x32xf32>
    %30 = vector.extract_strided_slice %0 {offsets = [2, 0], sizes = [1, 32], strides = [1, 1]} : vector<8x32xf32> to vector<1x32xf32>
    %31 = vector.broadcast %30 : vector<1x32xf32> to vector<128x32xf32>
    %32 = arith.addf %29, %31 : vector<128x32xf32>
    %33 = vector.shape_cast %32 : vector<128x32xf32> to vector<16x8x32xf32>
    %34 = vector.extract_strided_slice %28 {offsets = [0, 32], sizes = [128, 32], strides = [1, 1]} : vector<128x96xf32> to vector<128x32xf32>
    %35 = vector.extract_strided_slice %0 {offsets = [3, 0], sizes = [1, 32], strides = [1, 1]} : vector<8x32xf32> to vector<1x32xf32>
    %36 = vector.broadcast %35 : vector<1x32xf32> to vector<128x32xf32>
    %37 = arith.addf %34, %36 : vector<128x32xf32>
    %38 = vector.shape_cast %37 : vector<128x32xf32> to vector<16x8x32xf32>
    %39 = vector.extract_strided_slice %28 {offsets = [0, 64], sizes = [128, 32], strides = [1, 1]} : vector<128x96xf32> to vector<128x32xf32>
    %40 = vector.extract_strided_slice %0 {offsets = [4, 0], sizes = [1, 32], strides = [1, 1]} : vector<8x32xf32> to vector<1x32xf32>
    %41 = vector.broadcast %40 : vector<1x32xf32> to vector<128x32xf32>
    %42 = arith.addf %39, %41 : vector<128x32xf32>
    %43 = vector.shape_cast %42 : vector<128x32xf32> to vector<16x8x32xf32>
    %44 = arith.truncf %33 : vector<16x8x32xf32> to vector<16x8x32xbf16>
    %45 = arith.truncf %38 : vector<16x8x32xf32> to vector<16x8x32xbf16>
    %46 = arith.truncf %43 : vector<16x8x32xf32> to vector<16x8x32xbf16>
    %47 = vector.extract_strided_slice %44 {offsets = [0, 0, 0], sizes = [16, 8, 8], strides = [1, 1, 1]} : vector<16x8x32xbf16> to vector<16x8x8xbf16>
    %48 = vector.extract_strided_slice %45 {offsets = [0, 0, 0], sizes = [16, 8, 8], strides = [1, 1, 1]} : vector<16x8x32xbf16> to vector<16x8x8xbf16>
    %49 = vector.extract_strided_slice %46 {offsets = [0, 0, 0], sizes = [16, 8, 8], strides = [1, 1, 1]} : vector<16x8x32xbf16> to vector<16x8x8xbf16>
    "tpu.trace_start"() <{level = 10 : i32, message = "ntd,nsd->nts"}> : () -> ()
    %cst_10 = arith.constant dense<0.000000e+00> : vector<16x8x8xf32>
    %50 = tpu.matmul %47, %48, %cst_10 {dimension_numbers = #tpu.dot_dimension_numbers<[2], [2], [1], [1], [0, 0, 0, 1, 1, 1], [0], [0]>} : vector<16x8x8xbf16>, vector<16x8x8xbf16>, vector<16x8x8xf32> -> vector<16x8x8xf32>
    "tpu.trace_stop"() : () -> ()
    %cst_11 = arith.constant dense<0xFF800000> : vector<16x8xf32>
    %51 = vector.multi_reduction <maximumf>, %50, %cst_11 [2] : vector<16x8x8xf32> to vector<16x8xf32>
    %52 = vector.shape_cast %51 : vector<16x8xf32> to vector<16x8x1xf32>
    %53 = vector.broadcast %52 : vector<16x8x1xf32> to vector<16x8x8xf32>
    %54 = arith.subf %50, %53 : vector<16x8x8xf32>
    %55 = math.exp %54 : vector<16x8x8xf32>
    %cst_12 = arith.constant dense<0.000000e+00> : vector<16x8xf32>
    %56 = vector.multi_reduction <add>, %55, %cst_12 [2] : vector<16x8x8xf32> to vector<16x8xf32>
    %57 = vector.shape_cast %56 : vector<16x8xf32> to vector<16x8x1xf32>
    %58 = tpu.reciprocal %57 {approx = true} : vector<16x8x1xf32> -> vector<16x8x1xf32>
    %59 = vector.broadcast %58 : vector<16x8x1xf32> to vector<16x8x8xf32>
    %60 = arith.mulf %55, %59 : vector<16x8x8xf32>
    %61 = arith.truncf %60 : vector<16x8x8xf32> to vector<16x8x8xbf16>
    "tpu.trace_start"() <{level = 10 : i32, message = "nts,nsd->ntd"}> : () -> ()
    %cst_13 = arith.constant dense<0.000000e+00> : vector<16x8x8xf32>
    %62 = tpu.matmul %61, %49, %cst_13 {dimension_numbers = #tpu.dot_dimension_numbers<[2], [1], [1], [2], [0, 0, 0, 1, 1, 2], [0], [0]>} : vector<16x8x8xbf16>, vector<16x8x8xbf16>, vector<16x8x8xf32> -> vector<16x8x8xf32>
    "tpu.trace_stop"() : () -> ()
    %63 = vector.extract_strided_slice %44 {offsets = [0, 0, 8], sizes = [16, 8, 8], strides = [1, 1, 1]} : vector<16x8x32xbf16> to vector<16x8x8xbf16>
    %64 = vector.extract_strided_slice %45 {offsets = [0, 0, 8], sizes = [16, 8, 8], strides = [1, 1, 1]} : vector<16x8x32xbf16> to vector<16x8x8xbf16>
    %65 = vector.extract_strided_slice %46 {offsets = [0, 0, 8], sizes = [16, 8, 8], strides = [1, 1, 1]} : vector<16x8x32xbf16> to vector<16x8x8xbf16>
    "tpu.trace_start"() <{level = 10 : i32, message = "ntd,nsd->nts"}> : () -> ()
    %cst_14 = arith.constant dense<0.000000e+00> : vector<16x8x8xf32>
    %66 = tpu.matmul %63, %64, %cst_14 {dimension_numbers = #tpu.dot_dimension_numbers<[2], [2], [1], [1], [0, 0, 0, 1, 1, 1], [0], [0]>} : vector<16x8x8xbf16>, vector<16x8x8xbf16>, vector<16x8x8xf32> -> vector<16x8x8xf32>
    "tpu.trace_stop"() : () -> ()
    %cst_15 = arith.constant dense<0xFF800000> : vector<16x8xf32>
    %67 = vector.multi_reduction <maximumf>, %66, %cst_15 [2] : vector<16x8x8xf32> to vector<16x8xf32>
    %68 = vector.shape_cast %67 : vector<16x8xf32> to vector<16x8x1xf32>
    %69 = vector.broadcast %68 : vector<16x8x1xf32> to vector<16x8x8xf32>
    %70 = arith.subf %66, %69 : vector<16x8x8xf32>
    %71 = math.exp %70 : vector<16x8x8xf32>
    %cst_16 = arith.constant dense<0.000000e+00> : vector<16x8xf32>
    %72 = vector.multi_reduction <add>, %71, %cst_16 [2] : vector<16x8x8xf32> to vector<16x8xf32>
    %73 = vector.shape_cast %72 : vector<16x8xf32> to vector<16x8x1xf32>
    %74 = tpu.reciprocal %73 {approx = true} : vector<16x8x1xf32> -> vector<16x8x1xf32>
    %75 = vector.broadcast %74 : vector<16x8x1xf32> to vector<16x8x8xf32>
    %76 = arith.mulf %71, %75 : vector<16x8x8xf32>
    %77 = arith.truncf %76 : vector<16x8x8xf32> to vector<16x8x8xbf16>
    "tpu.trace_start"() <{level = 10 : i32, message = "nts,nsd->ntd"}> : () -> ()
    %cst_17 = arith.constant dense<0.000000e+00> : vector<16x8x8xf32>
    %78 = tpu.matmul %77, %65, %cst_17 {dimension_numbers = #tpu.dot_dimension_numbers<[2], [1], [1], [2], [0, 0, 0, 1, 1, 2], [0], [0]>} : vector<16x8x8xbf16>, vector<16x8x8xbf16>, vector<16x8x8xf32> -> vector<16x8x8xf32>
    "tpu.trace_stop"() : () -> ()
    %79 = vector.extract_strided_slice %44 {offsets = [0, 0, 16], sizes = [16, 8, 8], strides = [1, 1, 1]} : vector<16x8x32xbf16> to vector<16x8x8xbf16>
    %80 = vector.extract_strided_slice %45 {offsets = [0, 0, 16], sizes = [16, 8, 8], strides = [1, 1, 1]} : vector<16x8x32xbf16> to vector<16x8x8xbf16>
    %81 = vector.extract_strided_slice %46 {offsets = [0, 0, 16], sizes = [16, 8, 8], strides = [1, 1, 1]} : vector<16x8x32xbf16> to vector<16x8x8xbf16>
    "tpu.trace_start"() <{level = 10 : i32, message = "ntd,nsd->nts"}> : () -> ()
    %cst_18 = arith.constant dense<0.000000e+00> : vector<16x8x8xf32>
    %82 = tpu.matmul %79, %80, %cst_18 {dimension_numbers = #tpu.dot_dimension_numbers<[2], [2], [1], [1], [0, 0, 0, 1, 1, 1], [0], [0]>} : vector<16x8x8xbf16>, vector<16x8x8xbf16>, vector<16x8x8xf32> -> vector<16x8x8xf32>
    "tpu.trace_stop"() : () -> ()
    %cst_19 = arith.constant dense<0xFF800000> : vector<16x8xf32>
    %83 = vector.multi_reduction <maximumf>, %82, %cst_19 [2] : vector<16x8x8xf32> to vector<16x8xf32>
    %84 = vector.shape_cast %83 : vector<16x8xf32> to vector<16x8x1xf32>
    %85 = vector.broadcast %84 : vector<16x8x1xf32> to vector<16x8x8xf32>
    %86 = arith.subf %82, %85 : vector<16x8x8xf32>
    %87 = math.exp %86 : vector<16x8x8xf32>
    %cst_20 = arith.constant dense<0.000000e+00> : vector<16x8xf32>
    %88 = vector.multi_reduction <add>, %87, %cst_20 [2] : vector<16x8x8xf32> to vector<16x8xf32>
    %89 = vector.shape_cast %88 : vector<16x8xf32> to vector<16x8x1xf32>
    %90 = tpu.reciprocal %89 {approx = true} : vector<16x8x1xf32> -> vector<16x8x1xf32>
    %91 = vector.broadcast %90 : vector<16x8x1xf32> to vector<16x8x8xf32>
    %92 = arith.mulf %87, %91 : vector<16x8x8xf32>
    %93 = arith.truncf %92 : vector<16x8x8xf32> to vector<16x8x8xbf16>
    "tpu.trace_start"() <{level = 10 : i32, message = "nts,nsd->ntd"}> : () -> ()
    %cst_21 = arith.constant dense<0.000000e+00> : vector<16x8x8xf32>
    %94 = tpu.matmul %93, %81, %cst_21 {dimension_numbers = #tpu.dot_dimension_numbers<[2], [1], [1], [2], [0, 0, 0, 1, 1, 2], [0], [0]>} : vector<16x8x8xbf16>, vector<16x8x8xbf16>, vector<16x8x8xf32> -> vector<16x8x8xf32>
    "tpu.trace_stop"() : () -> ()
    %95 = vector.extract_strided_slice %44 {offsets = [0, 0, 24], sizes = [16, 8, 8], strides = [1, 1, 1]} : vector<16x8x32xbf16> to vector<16x8x8xbf16>
    %96 = vector.extract_strided_slice %45 {offsets = [0, 0, 24], sizes = [16, 8, 8], strides = [1, 1, 1]} : vector<16x8x32xbf16> to vector<16x8x8xbf16>
    %97 = vector.extract_strided_slice %46 {offsets = [0, 0, 24], sizes = [16, 8, 8], strides = [1, 1, 1]} : vector<16x8x32xbf16> to vector<16x8x8xbf16>
    "tpu.trace_start"() <{level = 10 : i32, message = "ntd,nsd->nts"}> : () -> ()
    %cst_22 = arith.constant dense<0.000000e+00> : vector<16x8x8xf32>
    %98 = tpu.matmul %95, %96, %cst_22 {dimension_numbers = #tpu.dot_dimension_numbers<[2], [2], [1], [1], [0, 0, 0, 1, 1, 1], [0], [0]>} : vector<16x8x8xbf16>, vector<16x8x8xbf16>, vector<16x8x8xf32> -> vector<16x8x8xf32>
    "tpu.trace_stop"() : () -> ()
    %cst_23 = arith.constant dense<0xFF800000> : vector<16x8xf32>
    %99 = vector.multi_reduction <maximumf>, %98, %cst_23 [2] : vector<16x8x8xf32> to vector<16x8xf32>
    %100 = vector.shape_cast %99 : vector<16x8xf32> to vector<16x8x1xf32>
    %101 = vector.broadcast %100 : vector<16x8x1xf32> to vector<16x8x8xf32>
    %102 = arith.subf %98, %101 : vector<16x8x8xf32>
    %103 = math.exp %102 : vector<16x8x8xf32>
    %cst_24 = arith.constant dense<0.000000e+00> : vector<16x8xf32>
    %104 = vector.multi_reduction <add>, %103, %cst_24 [2] : vector<16x8x8xf32> to vector<16x8xf32>
    %105 = vector.shape_cast %104 : vector<16x8xf32> to vector<16x8x1xf32>
    %106 = tpu.reciprocal %105 {approx = true} : vector<16x8x1xf32> -> vector<16x8x1xf32>
    %107 = vector.broadcast %106 : vector<16x8x1xf32> to vector<16x8x8xf32>
    %108 = arith.mulf %103, %107 : vector<16x8x8xf32>
    %109 = arith.truncf %108 : vector<16x8x8xf32> to vector<16x8x8xbf16>
    "tpu.trace_start"() <{level = 10 : i32, message = "nts,nsd->ntd"}> : () -> ()
    %cst_25 = arith.constant dense<0.000000e+00> : vector<16x8x8xf32>
    %110 = tpu.matmul %109, %97, %cst_25 {dimension_numbers = #tpu.dot_dimension_numbers<[2], [1], [1], [2], [0, 0, 0, 1, 1, 2], [0], [0]>} : vector<16x8x8xbf16>, vector<16x8x8xbf16>, vector<16x8x8xf32> -> vector<16x8x8xf32>
    "tpu.trace_stop"() : () -> ()
    %111 = tpu.concatenate %62, %78, %94, %110 in 2 : vector<16x8x8xf32>, vector<16x8x8xf32>, vector<16x8x8xf32>, vector<16x8x8xf32> -> vector<16x8x32xf32>
    %112 = vector.shape_cast %111 : vector<16x8x32xf32> to vector<128x32xf32>
    %113 = arith.truncf %112 : vector<128x32xf32> to vector<128x32xbf16>
    %c0_26 = arith.constant 0 : index
    %c0_27 = arith.constant 0 : index
    %114 = vector.load %arg4[%c0_26, %c0_27] : memref<32x32xbf16, #tpu.memory_space<vmem>>, vector<32x32xbf16>
    %cst_28 = arith.constant dense<0.000000e+00> : vector<128x32xf32>
    %115 = tpu.matmul %113, %114, %cst_28 {dimension_numbers = #tpu.dot_dimension_numbers<[1], [0], [0], [1], [0, 0, 1, 1], [], []>} : vector<128x32xbf16>, vector<32x32xbf16>, vector<128x32xf32> -> vector<128x32xf32>
    %116 = vector.extract_strided_slice %0 {offsets = [5, 0], sizes = [1, 32], strides = [1, 1]} : vector<8x32xf32> to vector<1x32xf32>
    %117 = vector.broadcast %116 : vector<1x32xf32> to vector<128x32xf32>
    %118 = arith.addf %115, %117 : vector<128x32xf32>
    %c0_29 = arith.constant 0 : index
    %c0_30 = arith.constant 0 : index
    %119 = vector.load %arg1[%c0_29, %c0_30] : memref<128x32xf32, #tpu.memory_space<vmem>>, vector<128x32xf32>
    %120 = arith.addf %119, %118 : vector<128x32xf32>
    %c0_31 = arith.constant 0 : index
    %c0_32 = arith.constant 0 : index
    %121 = vector.load %arg5[%c0_31, %c0_32] : memref<128x32xf32, #tpu.memory_space<vmem>>, vector<128x32xf32>
    tpu.vector_store %arg5[%c0_31, %c0_32], %120 {strides = array<i32>} : memref<128x32xf32, #tpu.memory_space<vmem>>, vector<128x32xf32>,
    return
  }
  func.func @transform_0(%arg0: i32) -> (i32, i32) {
    %c0_i32 = arith.constant 0 : i32
    %c0_i32_0 = arith.constant 0 : i32
    return %arg0, %c0_i32 : i32, i32
  }
  func.func @transform_1(%arg0: i32) -> (i32, i32) {
    %c0_i32 = arith.constant 0 : i32
    %c0_i32_0 = arith.constant 0 : i32
    %c0_i32_1 = arith.constant 0 : i32
    return %c0_i32, %c0_i32_0 : i32, i32
  }
  func.func @transform_2(%arg0: i32) -> (i32, i32) {
    %c0_i32 = arith.constant 0 : i32
    %c0_i32_0 = arith.constant 0 : i32
    %c0_i32_1 = arith.constant 0 : i32
    return %c0_i32, %c0_i32_0 : i32, i32
  }
  func.func @transform_3(%arg0: i32) -> (i32, i32) {
    %c0_i32 = arith.constant 0 : i32
    %c0_i32_0 = arith.constant 0 : i32
    %c0_i32_1 = arith.constant 0 : i32
    return %c0_i32, %c0_i32_0 : i32, i32
  }
  func.func @transform_4(%arg0: i32) -> (i32, i32) {
    %c0_i32 = arith.constant 0 : i32
    %c0_i32_0 = arith.constant 0 : i32
    return %arg0, %c0_i32 : i32, i32
  }
}

</mosaic_0001>

<bundles_post_ra>
// kernel: tpu_custom_call.1
= control target key start
LH: loop header
LB: loop body
LE: loop exit
PB: predicated region body
PF: predicated region fallthrough
CT: control target
= control target key end

     0   :  { %s5624_s15 = smov 0   ;;  %s8221_s0 = inlined_call_operand.vmem [shape: f32[256,32], index: 0, kind: input, shape index: {}]   ;;  %s8222_s1 = inlined_call_operand.vmem [shape: f32[8,32], index: 1, kind: input, shape index: {}]   ;;  %s8223_s2 = inlined_call_operand.vmem [shape: bf16[32,96], index: 2, kind: input, shape index: {}]   ;;  %s8224_s3 = inlined_call_operand.vmem [shape: bf16[32,32], index: 3, kind: input, shape index: {}]   ;;  %s8225_s4 = inlined_call_operand.vmem [shape: f32[256,32], index: 4, kind: output, shape index: {}]  }
   0x1 LB: > { %s4959_s16 = sadd.s32 4294967295, %s5581_s15   ;;  %p4963_p0 = scmp.ge.s32.totalorder %s5581_s15, 1  ;;  %s5581_s15 = sphi %s5624_s15, %s14_s15  }
   0x2   : > { %p163_p1 = scmp.lt.s32.totalorder %s5581_s15, 3 }
   0x4   : > { %p164_p2 = pnand %p4963_p0, %p163_p1 }
   0x6   : > { %167 = sbr.rel (%p164_p2) target bundleno = 3489 (0xda1), region = 36 }
   0xb   : > { %s4964_s17 = sshll.u32 %s4959_s16, 4  ;;  %vm219_vm0 = vcmask 261120   ;;  %v5583_v30 = vmov 32.0   ;;  %s5584_s28 = smov 32  }
   0xc   : > { %p190_p3 = scmp.lt.s32.totalorder %s4964_s17, 31  ;;  %5284 = vrcp.f32 %v5583_v30  ;;  %s5585_s29 = smov 96  }
   0xd   : > { %s5586_s30 = smov 64   ;;  %s5587_s5 = smov 88  }
   0xe   : > { %s8520_s17 = smov (!%p190_p3, %s4964_s17), 31  ;;  %s5588_s6 = smov 120  }
   0xf   : > { %s4965_s18 = sshll.u32 %s8520_s17, 3  ;;  %s5589_s7 = smov 56  }
  0x10   : > { %s5640_s21 = scalar_lea.vmem %s8221_s0, %s4965_s18  ;;  %s5590_s8 = smov 80  }
  0x11   : > { %v207_v0 = vld [vmem:[%s5640_s21 + $0x20] sm:$0xff]  ;;  %v5647_v4 = vld [vmem:[%s5640_s21 + $0x10] sm:$0xff]  ;;  %v5652_v6 = vld [vmem:[%s5640_s21 + $0x28] sm:$0xff]  ;;  %s5591_s9 = smov 112   ;;  %s5592_s10 = smov 48  }
  0x12   : > { %v203_v1 = vld [vmem:[%s5640_s21] sm:$0xff]  ;;  %v232_v2 = vsel %vm219_vm0, %v207_v0, 0.0  ;;  %v226_v5 = vsel %vm219_vm0, %v5647_v4, 0.0  ;;  %v5655_v7 = vld [vmem:[%s5640_s21 + $0x8] sm:$0xff]  ;;  %v5658_v8 = vld [vmem:[%s5640_s21 + $0x18] sm:$0xff]  ;;  %v235_v9 = vsel %vm219_vm0, %v5652_v6, 0.0  ;;  %v5285_v31 = vpop.eup %5284 }
  0x13   : > { %v220_v3 = vsel %vm219_vm0, %v203_v1, 0.0  ;;  %233 = vadd.xlane.f32.xlu2 %v232_v2  ;;  %227 = vadd.xlane.f32.xlu1 %v226_v5  ;;  %v223_v10 = vsel %vm219_vm0, %v5655_v7, 0.0  ;;  %v229_v11 = vsel %vm219_vm0, %v5658_v8, 0.0  ;;  %v5667_v12 = vld [vmem:[%s5640_s21 + $0x30] sm:$0xff]  ;;  %v5670_v13 = vld [vmem:[%s5640_s21 + $0x40] sm:$0xff]  ;;  %v5673_v14 = vld [vmem:[%s5640_s21 + $0x48] sm:$0xff]  ;;  %vm273_vm1 = vweird.f32 %v5285_v31 }
  0x14   : > { %221 = vadd.xlane.f32.xlu0 %v220_v3  ;;  %v238_v15 = vsel %vm219_vm0, %v5667_v12, 0.0  ;;  %v244_v16 = vsel %vm219_vm0, %v5670_v13, 0.0  ;;  %v247_v17 = vsel %vm219_vm0, %v5673_v14, 0.0  ;;  %v5682_v18 = vld [vmem:[%s5640_s21 + $0x38] sm:$0xff]  ;;  %v5685_v19 = vld [vmem:[%s5640_s21 + $0x60] sm:$0xff]  ;;  %v5692_v22 = vld [vmem:[%s5640_s21 + $0x50] sm:$0xff] }
  0x15   : > { %v241_v20 = vsel %vm219_vm0, %v5682_v18, 0.0  ;;  %v256_v21 = vsel %vm219_vm0, %v5685_v19, 0.0  ;;  %v250_v23 = vsel %vm219_vm0, %v5692_v22, 0.0  ;;  %v5697_v24 = vld [vmem:[%s5640_s21 + $0x68] sm:$0xff]  ;;  %v5702_v26 = vld [vmem:[%s5640_s21 + $0x78] sm:$0xff]  ;;  %v5707_v28 = vld [vmem:[%s5640_s21 + $0x70] sm:$0xff] }
  0x16   : > { %v259_v25 = vsel %vm219_vm0, %v5697_v24, 0.0  ;;  %v265_v27 = vsel %vm219_vm0, %v5702_v26, 0.0  ;;  %v262_v29 = vsel %vm219_vm0, %v5707_v28, 0.0  ;;  %v269_v32 = vmul.f32 32.0, %v5285_v31  ;;  %v5729_v54 = vld [vmem:[%s5640_s21 + $0x58] sm:$0xff]  ;;  %s5593_s11 = smov 72  }
  0x17   : > { %v253_v57 = vsel %vm219_vm0, %v5729_v54, 0.0  ;;  %s5594_s12 = smov 104   ;;  %s5595_s13 = smov 40  }
  0x18   : > { %v270_v33 = vsub.f32 1.0, %v269_v32  ;;  %s5596_s14 = smov 8   ;;  %s5597_s16 = smov 16  }
  0x19   : > { %s5598_s19 = smov 24  }
  0x1a   : > { %v271_v34 = vmul.f32 %v5285_v31, %v270_v33 }
  0x1b   : > { %236 = vadd.xlane.f32.xlu2 %v235_v9  ;;  %230 = vadd.xlane.f32.xlu1 %v229_v11 }
  0x1c   : > { %224 = vadd.xlane.f32.xlu0 %v223_v10  ;;  %v272_v35 = vadd.f32 %v5285_v31, %v271_v34 }
  0x1e   : > { %v5711_v36 = vsel %vm273_vm1, %v5285_v31, %v272_v35 }
  0x23   : > { %239 = vadd.xlane.f32.xlu2 %v238_v15  ;;  %248 = vadd.xlane.f32.xlu1 %v247_v17 }
  0x24   : > { %245 = vadd.xlane.f32.xlu0 %v244_v16 }
  0x2b   : > { %257 = vadd.xlane.f32.xlu2 %v256_v21 }
  0x2c   : > { %242 = vadd.xlane.f32.xlu0 %v241_v20 }
  0x33   : > { %263 = vadd.xlane.f32.xlu2 %v262_v29 }
  0x34   : > { %251 = vadd.xlane.f32.xlu0 %v250_v23 }
  0x3c   : > { %260 = vadd.xlane.f32.xlu0 %v259_v25 }
  0x44   : > { %266 = vadd.xlane.f32.xlu0 %v265_v27 }
  0x86   : > { %v234_v37 = vpop.xlane.xlu2 %233  ;;  %v228_v41 = vpop.xlane.xlu1 %227 }
  0x87   : > { %v222_v38 = vpop.xlane.xlu0 %221  ;;  %v279_v39 = vmul.f32 %v5711_v36, %v234_v37  ;;  %v277_v50 = vmul.f32 %v5711_v36, %v228_v41 }
  0x88   : > { %v275_v40 = vmul.f32 %v5711_v36, %v222_v38 }
  0x89   : > { %v5715_v42 = vsub.f32 %v207_v0, %v279_v39  ;;  %v5735_v56 = vsub.f32 %v5647_v4, %v277_v50 }
  0x8a   : > { %v5717_v43 = vsub.f32 %v203_v1, %v275_v40 }
  0x8b   : > { %v311_v44 = vmul.f32 %v5715_v42, %v5715_v42  ;;  %v309_v2 = vmul.f32 %v5735_v56, %v5735_v56 }
  0x8c   : > { %v307_v45 = vmul.f32 %v5717_v43, %v5717_v43 }
  0x8d   : > { %v335_v46 = vsel %vm219_vm0, %v311_v44, 0.0  ;;  %v329_v9 = vsel %vm219_vm0, %v309_v2, 0.0 }
  0x8e   : > { %v323_v47 = vsel %vm219_vm0, %v307_v45, 0.0  ;;  %v237_v48 = vpop.xlane.xlu2 %236  ;;  %336 = vadd.xlane.f32.xlu0 %v335_v46  ;;  %v231_v52 = vpop.xlane.xlu1 %230 }
  0x8f   : > { %324 = vadd.xlane.f32.xlu1 %v323_v47  ;;  %v225_v49 = vpop.xlane.xlu0 %224  ;;  %v278_v53 = vmul.f32 %v5711_v36, %v231_v52  ;;  %v280_v63 = vmul.f32 %v5711_v36, %v237_v48 }
  0x90   : > { %v276_v51 = vmul.f32 %v5711_v36, %v225_v49 }
  0x91   : > { %v5742_v59 = vsub.f32 %v5658_v8, %v278_v53  ;;  %v5131_v53 = vld [vmem:[%s8223_s2 + $0x8] sm:$0xff] }
  0x92   : > { %v5732_v55 = vsub.f32 %v5655_v7, %v276_v51  ;;  %v5756_v7 = vsub.f32 %v5652_v6, %v280_v63  ;;  %667 = vmatpush.bf16.msra.mxu0 %v5131_v53  ;;  %5134 = vmatpush.bf16.msra.mxu1 %v5131_v53 }
  0x93   : > { %v310_v4 = vmul.f32 %v5742_v59, %v5742_v59  ;;  %5135 = vmatpush.bf16.msra.mxu2 %v5131_v53  ;;  %5136 = vmatpush.bf16.msra.mxu3 %v5131_v53 }
  0x94   : > { %v308_v58 = vmul.f32 %v5732_v55, %v5732_v55  ;;  %v312_v6 = vmul.f32 %v5756_v7, %v5756_v7 }
  0x95   : > { %v332_v11 = vsel %vm219_vm0, %v310_v4, 0.0 }
  0x96   : > { %v326_v60 = vsel %vm219_vm0, %v308_v58, 0.0  ;;  %v240_v61 = vpop.xlane.xlu2 %239  ;;  %v249_v1 = vpop.xlane.xlu1 %248  ;;  %v338_v20 = vsel %vm219_vm0, %v312_v6, 0.0 }
  0x97   : > { %254 = vadd.xlane.f32.xlu1 %v253_v57  ;;  %327 = vadd.xlane.f32.xlu2 %v326_v60  ;;  %v246_v62 = vpop.xlane.xlu0 %245  ;;  %v281_v0 = vmul.f32 %v5711_v36, %v240_v61  ;;  %v284_v3 = vmul.f32 %v5711_v36, %v249_v1  ;;  %v5130_v60 = vld [vmem:[%s8223_s2] sm:$0xff] }
  0x98   : > { %v283_v17 = vmul.f32 %v5711_v36, %v246_v62  ;;  %668 = vmatpush.bf16.msra.mxu0 %v5130_v60  ;;  %5137 = vmatpush.bf16.msra.mxu1 %v5130_v60 }
  0x99   : > { %v5753_v5 = vsub.f32 %v5667_v12, %v281_v0  ;;  %v5762_v10 = vsub.f32 %v5673_v14, %v284_v3  ;;  %5138 = vmatpush.bf16.msra.mxu2 %v5130_v60  ;;  %5139 = vmatpush.bf16.msra.mxu3 %v5130_v60 }
  0x9a   : > { %v5774_v21 = vsub.f32 %v5670_v13, %v283_v17 }
  0x9b   : > { %v313_v8 = vmul.f32 %v5753_v5, %v5753_v5  ;;  %v316_v12 = vmul.f32 %v5762_v10, %v5762_v10 }
  0x9c   : > { %v315_v30 = vmul.f32 %v5774_v21, %v5774_v21 }
  0x9d   : > { %v341_v15 = vsel %vm219_vm0, %v313_v8, 0.0  ;;  %v350_v14 = vsel %vm219_vm0, %v316_v12, 0.0 }
  0x9e   : > { %342 = vadd.xlane.f32.xlu0 %v341_v15  ;;  %v258_v32 = vpop.xlane.xlu2 %257  ;;  %v347_v33 = vsel %vm219_vm0, %v315_v30, 0.0 }
  0x9f   : > { %330 = vadd.xlane.f32.xlu1 %v329_v9  ;;  %v243_v16 = vpop.xlane.xlu0 %242  ;;  %333 = vadd.xlane.f32.xlu2 %v332_v11  ;;  %v287_v37 = vmul.f32 %v5711_v36, %v258_v32 }
  0xa0   : > { %v282_v27 = vmul.f32 %v5711_v36, %v243_v16 }
  0xa2   : > { %v5786_v13 = vsub.f32 %v5682_v18, %v282_v27  ;;  %v5798_v18 = vsub.f32 %v5685_v19, %v287_v37 }
  0xa4   : > { %v314_v39 = vmul.f32 %v5786_v13, %v5786_v13 }
  0xa6   : > { %v344_v41 = vsel %vm219_vm0, %v314_v39, 0.0  ;;  %v264_v50 = vpop.xlane.xlu2 %263 }
  0xa7   : > { %339 = vadd.xlane.f32.xlu1 %v338_v20  ;;  %v252_v23 = vpop.xlane.xlu0 %251  ;;  %351 = vadd.xlane.f32.xlu2 %v350_v14  ;;  %v289_v8 = vmul.f32 %v5711_v36, %v264_v50 }
  0xa8   : > { %v285_v25 = vmul.f32 %v5711_v36, %v252_v23 }
  0xa9   : > { %v5836_v6 = vsub.f32 %v5707_v28, %v289_v8 }
  0xaa   : > { %v5779_v29 = vsub.f32 %v5692_v22, %v285_v25 }
  0xac   : > { %v317_v31 = vmul.f32 %v5779_v29, %v5779_v29 }
  0xae   : > { %v353_v34 = vsel %vm219_vm0, %v317_v31, 0.0 }
  0xaf   : > { %348 = vadd.xlane.f32.xlu1 %v347_v33  ;;  %v261_v35 = vpop.xlane.xlu0 %260  ;;  %354 = vadd.xlane.f32.xlu2 %v353_v34 }
  0xb0   : > { %v288_v22 = vmul.f32 %v5711_v36, %v261_v35  ;;  %v321_v35 = vmul.f32 %v5836_v6, %v5836_v6 }
  0xb2   : > { %v5793_v38 = vsub.f32 %v5697_v24, %v288_v22  ;;  %v319_v24 = vmul.f32 %v5798_v18, %v5798_v18 }
  0xb4   : > { %v320_v40 = vmul.f32 %v5793_v38, %v5793_v38  ;;  %v359_v47 = vsel %vm219_vm0, %v319_v24, 0.0 }
  0xb6   : > { %v362_v44 = vsel %vm219_vm0, %v320_v40, 0.0 }
  0xb7   : > { %345 = vadd.xlane.f32.xlu1 %v344_v41  ;;  %v267_v45 = vpop.xlane.xlu0 %266  ;;  %363 = vadd.xlane.f32.xlu2 %v362_v44  ;;  %v365_v44 = vsel %vm219_vm0, %v321_v35, 0.0 }
  0xb8   : > { %v290_v46 = vmul.f32 %v5711_v36, %v267_v45 }
  0xba   : > { %v5809_v19 = vsub.f32 %v5702_v26, %v290_v46 }
  0xbc   : > { %v322_v48 = vmul.f32 %v5809_v19, %v5809_v19 }
  0xbe   : > { %v368_v49 = vsel %vm219_vm0, %v322_v48, 0.0 }
  0xbf   : > { %360 = vadd.xlane.f32.xlu1 %v359_v47 }
  0xc7   : > { %369 = vadd.xlane.f32.xlu1 %v368_v49 }
 0x101   : > { %v337_v52 = vpop.xlane.xlu0 %336 }
 0x102   : > { %v325_v51 = vpop.xlane.xlu1 %324  ;;  %v375_v58 = vmul.f32 %v337_v52, %v5711_v36 }
 0x103   : > { %v371_v57 = vmul.f32 %v325_v51, %v5711_v36 }
 0x104   : > { %v5822_v61 = vadd.f32 1e-05, %v375_v58 }
 0x105   : > { %v387_v26 = vadd.f32 1e-05, %v371_v57  ;;  %v5872_v57 = vld [vmem:[%s8222_s1] sm:$0xff] }
 0x106   : > { %v5887_v8 = vperm.slane %v5872_v57, 0  ;;  %vm449_vm8 = vweird.f32 %v5822_v61 }
 0x107   : > { %5286 = vrsqrt.f32 %v387_v26  ;;  %vm409_vm3 = vweird.f32 %v387_v26 }
 0x108   : > { %5288 = vrsqrt.f32 %v5822_v61 }
 0x10a   : > { %v255_v62 = vpop.xlane.xlu1 %254  ;;  %v328_v63 = vpop.xlane.xlu2 %327 }
 0x10b   : > { %v286_v0 = vmul.f32 %v5711_v36, %v255_v62  ;;  %v372_v1 = vmul.f32 %v328_v63, %v5711_v36 }
 0x10d   : > { %v5287_v2 = vpop.eup %5286  ;;  %v5828_v3 = vsub.f32 %v5729_v54, %v286_v0  ;;  %v388_v4 = vadd.f32 1e-05, %v372_v1 }
 0x10e   : > { %v404_v9 = vmul.f32 %v5287_v2, %v387_v26  ;;  %v5833_v16 = vpop.eup %5288  ;;  %vm410_vm2 = vweird.f32 %v5287_v2 }
 0x10f   : > { %5290 = vrsqrt.f32 %v388_v4  ;;  %v318_v15 = vmul.f32 %v5828_v3, %v5828_v3  ;;  %v444_v32 = vmul.f32 %v5833_v16, %v5822_v61  ;;  %vm419_vm4 = vweird.f32 %v388_v4  ;;  %vm5857_vm5 = vmor %vm409_vm3, %vm410_vm2 }
 0x110   : > { %v405_v11 = vmul.f32 %v5287_v2, %v404_v9  ;;  %vm450_vm9 = vweird.f32 %v5833_v16 }
 0x111   : > { %v356_v17 = vsel %vm219_vm0, %v318_v15, 0.0  ;;  %v343_v54 = vpop.xlane.xlu0 %342  ;;  %v445_v40 = vmul.f32 %v5833_v16, %v444_v32  ;;  %vm5913_vm10 = vmor %vm449_vm8, %vm450_vm9 }
 0x112   : > { %v406_v12 = vmul.f32 0.5, %v405_v11  ;;  %v331_v20 = vpop.xlane.xlu1 %330  ;;  %357 = vadd.xlane.f32.xlu0 %v356_v17  ;;  %v334_v23 = vpop.xlane.xlu2 %333  ;;  %v377_v27 = vmul.f32 %v343_v54, %v5711_v36 }
 0x113   : > { %v373_v14 = vmul.f32 %v331_v20, %v5711_v36  ;;  %v374_v25 = vmul.f32 %v334_v23, %v5711_v36  ;;  %v446_v52 = vmul.f32 0.5, %v445_v40 }
 0x114   : > { %v407_v31 = vsub.f32 1.5, %v406_v12  ;;  %v5852_v37 = vadd.f32 1e-05, %v377_v27 }
 0x115   : > { %v5291_v30 = vpop.eup %5290  ;;  %v5844_v28 = vadd.f32 1e-05, %v373_v14  ;;  %v5846_v34 = vadd.f32 1e-05, %v374_v25  ;;  %v447_v9 = vsub.f32 1.5, %v446_v52 }
 0x116   : > { %v414_v33 = vmul.f32 %v5291_v30, %v388_v4  ;;  %v408_v39 = vmul.f32 %v5287_v2, %v407_v31  ;;  %vm420_vm6 = vweird.f32 %v5291_v30  ;;  %vm469_vm8 = vweird.f32 %v5852_v37 }
 0x117   : > { %5292 = vrsqrt.f32 %v5844_v28  ;;  %vm421_vm7 = vmor %vm419_vm4, %vm420_vm6  ;;  %vm439_vm12 = vweird.f32 %v5846_v34  ;;  %vm429_vm14 = vweird.f32 %v5844_v28 }
 0x118   : > { %v415_v22 = vmul.f32 %v5291_v30, %v414_v33  ;;  %5294 = vrsqrt.f32 %v5846_v34  ;;  %v412_v51 = vsel %vm5857_vm5, %v5287_v2, %v408_v39 }
 0x119   : > { %5296 = vrsqrt.f32 %v5852_v37  ;;  %v563_v2 = vmul.f32 %v412_v51, %v5717_v43 }
 0x11a   : > { %v416_v41 = vmul.f32 0.5, %v415_v22  ;;  %v340_v45 = vpop.xlane.xlu1 %339  ;;  %366 = vadd.xlane.f32.xlu0 %v365_v44  ;;  %v352_v46 = vpop.xlane.xlu2 %351 }
 0x11b   : > { %v376_v24 = vmul.f32 %v340_v45, %v5711_v36  ;;  %v380_v49 = vmul.f32 %v352_v46, %v5711_v36  ;;  %v580_v25 = vmul.f32 %v5887_v8, %v563_v2  ;;  %v727_v2 = vperm.slane %v5872_v57, 3 }
 0x11c   : > { %v417_v48 = vsub.f32 1.5, %v416_v41 }
 0x11d   : > { %v5863_v50 = vpop.eup %5292  ;;  %v5867_v53 = vadd.f32 1e-05, %v376_v24  ;;  %v5878_v62 = vadd.f32 1e-05, %v380_v49  ;;  %729 = vrot.lane.b32.xlu2 %v727_v2, %s5584_s28 }
 0x11e   : > { %v5874_v58 = vpop.eup %5294  ;;  %v418_v26 = vmul.f32 %v5291_v30, %v417_v48  ;;  %v424_v60 = vmul.f32 %v5863_v50, %v5844_v28  ;;  %vm430_vm11 = vweird.f32 %v5863_v50 }
 0x11f   : > { %v434_v63 = vmul.f32 %v5874_v58, %v5846_v34  ;;  %5298 = vrsqrt.f32 %v5867_v53  ;;  %v5892_v15 = vpop.eup %5296  ;;  %vm440_vm13 = vweird.f32 %v5874_v58  ;;  %vm5936_vm15 = vmor %vm429_vm14, %vm430_vm11  ;;  %vm459_vm1 = vweird.f32 %v5867_v53 }
 0x120   : > { %v422_v0 = vsel %vm421_vm7, %v5291_v30, %v418_v26  ;;  %v425_v1 = vmul.f32 %v5863_v50, %v424_v60  ;;  %5300 = vrsqrt.f32 %v5878_v62  ;;  %v448_v30 = vmul.f32 %v5833_v16, %v447_v9  ;;  %vm5945_vm2 = vmor %vm439_vm12, %vm440_vm13 }
 0x121   : > { %v435_v11 = vmul.f32 %v5874_v58, %v434_v63  ;;  %v564_v4 = vmul.f32 %v422_v0, %v5732_v55  ;;  %v5902_v55 = vperm.slane %v5872_v57, 1  ;;  %v464_v32 = vmul.f32 %v5892_v15, %v5852_v37 }
 0x122   : > { %v426_v12 = vmul.f32 0.5, %v425_v1  ;;  %v349_v17 = vpop.xlane.xlu1 %348  ;;  %v5897_v54 = vpop.xlane.xlu2 %354  ;;  %v452_v46 = vsel %vm5913_vm10, %v5833_v16, %v448_v30  ;;  %vm499_vm4 = vweird.f32 %v5878_v62  ;;  %vm470_vm9 = vweird.f32 %v5892_v15 }
 0x123   : > { %v436_v20 = vmul.f32 0.5, %v435_v11  ;;  %v379_v43 = vmul.f32 %v349_v17, %v5711_v36  ;;  %v581_v14 = vmul.f32 %v5887_v8, %v564_v4  ;;  %v597_v24 = vadd.f32 %v5902_v55, %v580_v25  ;;  %vm5999_vm12 = vmor %vm469_vm8, %vm470_vm9 }
 0x124   : > { %v427_v23 = vsub.f32 1.5, %v426_v12  ;;  %v465_v34 = vmul.f32 %v5892_v15, %v464_v32 }
 0x125   : > { %v5904_v27 = vpop.eup %5298  ;;  %v437_v31 = vsub.f32 1.5, %v436_v20  ;;  %v5909_v33 = vadd.f32 1e-05, %v379_v43  ;;  %v598_v40 = vadd.f32 %v5902_v55, %v581_v14 }
 0x126   : > { %v428_v22 = vmul.f32 %v5863_v50, %v427_v23  ;;  %v454_v39 = vmul.f32 %v5904_v27, %v5867_v53  ;;  %v5922_v41 = vpop.eup %5300  ;;  %vm460_vm3 = vweird.f32 %v5904_v27  ;;  %v466_v11 = vmul.f32 0.5, %v465_v34 }
 0x127   : > { %v438_v44 = vmul.f32 %v5874_v58, %v437_v31  ;;  %5302 = vrsqrt.f32 %v5909_v33  ;;  %v494_v45 = vmul.f32 %v5922_v41, %v5878_v62  ;;  %v613_v16 = vpack.c.bf16 %v598_v40, %v597_v24  ;;  %vm461_vm6 = vmor %vm459_vm1, %vm460_vm3 }
 0x128   : > { %v455_v61 = vmul.f32 %v5904_v27, %v454_v39  ;;  %v432_v28 = vsel %vm5936_vm15, %v5863_v50, %v428_v22  ;;  %vm500_vm5 = vweird.f32 %v5922_v41  ;;  %v467_v31 = vsub.f32 1.5, %v466_v11 }
 0x129   : > { %v495_v51 = vmul.f32 %v5922_v41, %v494_v45  ;;  %v442_v26 = vsel %vm5945_vm2, %v5874_v58, %v438_v44  ;;  %4976 = vmatmul.msk.bf16.vlgmr.msra.gmra.mxu0 %vm219_vm0, %v613_v16  ;;  %v565_v4 = vmul.f32 %v432_v28, %v5735_v56  ;;  %v567_v56 = vmul.f32 %v452_v46, %v5715_v42  ;;  %vm5980_vm7 = vmor %vm499_vm4, %vm500_vm5 }
 0x12a   : > { %v456_v49 = vmul.f32 0.5, %v455_v61  ;;  %v346_v52 = vpop.xlane.xlu1 %345  ;;  %v364_v50 = vpop.xlane.xlu2 %363  ;;  %v566_v43 = vmul.f32 %v442_v26, %v5742_v59  ;;  %vm489_vm11 = vweird.f32 %v5909_v33 }
 0x12b   : > { %v378_v60 = vmul.f32 %v346_v52, %v5711_v36  ;;  %v496_v0 = vmul.f32 0.5, %v495_v51  ;;  %v384_v1 = vmul.f32 %v364_v50, %v5711_v36  ;;  %v582_v53 = vmul.f32 %v5887_v8, %v565_v4 }
 0x12c   : > { %v457_v63 = vsub.f32 1.5, %v456_v49  ;;  %v583_v35 = vmul.f32 %v5887_v8, %v566_v43  ;;  %v584_v39 = vmul.f32 %v5887_v8, %v567_v56 }
 0x12d   : > { %v5303_v9 = vpop.eup %5302  ;;  %v5960_v58 = vadd.f32 1e-05, %v378_v60  ;;  %v497_v17 = vsub.f32 1.5, %v496_v0  ;;  %v5971_v14 = vadd.f32 1e-05, %v384_v1  ;;  %v599_v47 = vadd.f32 %v5902_v55, %v582_v53 }
 0x12e   : > { %v458_v12 = vmul.f32 %v5904_v27, %v457_v63  ;;  %v484_v20 = vmul.f32 %v5303_v9, %v5909_v33  ;;  %vm490_vm10 = vweird.f32 %v5303_v9  ;;  %v600_v34 = vadd.f32 %v5902_v55, %v583_v35 }
 0x12f   : > { %5304 = vrsqrt.f32 %v5960_v58  ;;  %v498_v25 = vmul.f32 %v5922_v41, %v497_v17  ;;  %vm491_vm13 = vmor %vm489_vm11, %vm490_vm10  ;;  %v601_v48 = vadd.f32 %v5902_v55, %v584_v39  ;;  %vm479_vm15 = vweird.f32 %v5960_v58 }
 0x130   : > { %v462_v23 = vsel %vm461_vm6, %v5904_v27, %v458_v12  ;;  %v485_v30 = vmul.f32 %v5303_v9, %v484_v20  ;;  %5306 = vrsqrt.f32 %v5971_v14  ;;  %v614_v0 = vpack.c.bf16 %v600_v34, %v599_v47 }
 0x131   : > { %v502_v42 = vsel %vm5980_vm7, %v5922_v41, %v498_v25  ;;  %v568_v22 = vmul.f32 %v462_v23, %v5756_v7  ;;  %v468_v41 = vmul.f32 %v5892_v15, %v467_v31  ;;  %vm539_vm1 = vweird.f32 %v5971_v14 }
 0x132   : > { %v486_v27 = vmul.f32 0.5, %v485_v30  ;;  %v361_v32 = vpop.xlane.xlu1 %360  ;;  %v572_v7 = vmul.f32 %v502_v42, %v5762_v10 }
 0x133   : > { %v383_v62 = vmul.f32 %v361_v32, %v5711_v36  ;;  %v585_v44 = vmul.f32 %v5887_v8, %v568_v22  ;;  %v472_v16 = vsel %vm5999_vm12, %v5892_v15, %v468_v41 }
 0x134   : > { %v487_v40 = vsub.f32 1.5, %v486_v27  ;;  %v589_v60 = vmul.f32 %v5887_v8, %v572_v7  ;;  %v569_v11 = vmul.f32 %v472_v16, %v5753_v5 }
 0x135   : > { %v5305_v61 = vpop.eup %5304  ;;  %v399_v45 = vadd.f32 1e-05, %v383_v62  ;;  %v602_v33 = vadd.f32 %v5902_v55, %v585_v44 }
 0x136   : > { %v488_v24 = vmul.f32 %v5303_v9, %v487_v40  ;;  %v474_v46 = vmul.f32 %v5305_v61, %v5960_v58  ;;  %v5307_v28 = vpop.eup %5306  ;;  %vm480_vm14 = vweird.f32 %v5305_v61  ;;  %v606_v4 = vadd.f32 %v5902_v55, %v589_v60 }
 0x137   : > { %5308 = vrsqrt.f32 %v399_v45  ;;  %v534_v51 = vmul.f32 %v5307_v28, %v5971_v14  ;;  %v615_v52 = vpack.c.bf16 %v602_v33, %v601_v48  ;;  %vm540_vm2 = vweird.f32 %v5307_v28  ;;  %vm481_vm3 = vmor %vm479_vm15, %vm480_vm14 }
 0x138   : > { %v492_v49 = vsel %vm491_vm13, %v5303_v9, %v488_v24  ;;  %v475_v10 = vmul.f32 %v5305_v61, %v474_v46  ;;  %vm541_vm4 = vmor %vm539_vm1, %vm540_vm2  ;;  %v586_v58 = vmul.f32 %v5887_v8, %v569_v11  ;;  %vm529_vm6 = vweird.f32 %v399_v45 }
 0x139   : > { %v571_v26 = vmul.f32 %v492_v49, %v5774_v21  ;;  %v535_v63 = vmul.f32 %v5307_v28, %v534_v51  ;;  %4978 = vmatmul.msk.bf16.vlgmr.msra.gmra.mxu1 %vm219_vm0, %v615_v52  ;;  %4977 = vmatmul.msk.bf16.gmra.mxu0 %vm219_vm0, %v614_v0 }
 0x13a   : > { %v476_v50 = vmul.f32 0.5, %v475_v10  ;;  %v603_v53 = vadd.f32 %v5902_v55, %v586_v58 }
 0x13b   : > { %v588_v1 = vmul.f32 %v5887_v8, %v571_v26  ;;  %v536_v9 = vmul.f32 0.5, %v535_v63 }
 0x13c   : > { %v477_v2 = vsub.f32 1.5, %v476_v50 }
 0x13d   : > { %v5309_v15 = vpop.eup %5308  ;;  %v605_v21 = vadd.f32 %v5902_v55, %v588_v1  ;;  %v537_v17 = vsub.f32 1.5, %v536_v9 }
 0x13e   : > { %v478_v12 = vmul.f32 %v5305_v61, %v477_v2  ;;  %v524_v20 = vmul.f32 %v5309_v15, %v399_v45  ;;  %vm530_vm5 = vweird.f32 %v5309_v15  ;;  %v370_v45 = vpop.xlane.xlu1 %369 }
 0x13f   : > { %v617_v43 = vpack.c.bf16 %v606_v4, %v605_v21  ;;  %v538_v23 = vmul.f32 %v5307_v28, %v537_v17  ;;  %vm531_vm7 = vmor %vm529_vm6, %vm530_vm5  ;;  %vm822_vm5 = vcmask 64512   ;;  %vm1402_vm6 = vcmask 1043456  }
 0x140   : > { %v482_v56 = vsel %vm481_vm3, %v5305_v61, %v478_v12  ;;  %v525_v25 = vmul.f32 %v5309_v15, %v524_v20 }
 0x141   : > { %4980 = vmatmul.msk.bf16.vlgmr.msra.gmra.mxu2 %vm219_vm0, %v617_v43  ;;  %v570_v5 = vmul.f32 %v482_v56, %v5786_v13  ;;  %v542_v14 = vsel %vm541_vm4, %v5307_v28, %v538_v23 }
 0x142   : > { %v526_v30 = vmul.f32 0.5, %v525_v25  ;;  %v576_v27 = vmul.f32 %v542_v14, %v5793_v38  ;;  %v381_v38 = vmul.f32 %v5897_v54, %v5711_v36 }
 0x143   : > { %v587_v31 = vmul.f32 %v5887_v8, %v570_v5 }
 0x144   : > { %v527_v59 = vsub.f32 1.5, %v526_v30  ;;  %v593_v62 = vmul.f32 %v5887_v8, %v576_v27  ;;  %v397_v41 = vadd.f32 1e-05, %v381_v38 }
 0x145   : > { %v604_v42 = vadd.f32 %v5902_v55, %v587_v31 }
 0x146   : > { %v528_v32 = vmul.f32 %v5309_v15, %v527_v59  ;;  %v610_v44 = vadd.f32 %v5902_v55, %v593_v62  ;;  %5310 = vrsqrt.f32 %v397_v41  ;;  %vm509_vm8 = vweird.f32 %v397_v41 }
 0x147   : > { %v616_v35 = vpack.c.bf16 %v604_v42, %v603_v53 }
 0x148   : > { %v532_v22 = vsel %vm531_vm7, %v5309_v15, %v528_v32  ;;  %vm4723_vm7 = vcmask 130048  }
 0x149   : > { %v575_v13 = vmul.f32 %v532_v22, %v5798_v18  ;;  %4979 = vmatmul.msk.bf16.gmra.mxu1 %vm219_vm0, %v616_v35  ;;  %v386_v18 = vmul.f32 %v370_v45, %v5711_v36 }
 0x14b   : > { %v592_v39 = vmul.f32 %v5887_v8, %v575_v13  ;;  %v402_v7 = vadd.f32 1e-05, %v386_v18 }
 0x14c   : > { %v5311_v37 = vpop.eup %5310 }
 0x14d   : > { %v609_v40 = vadd.f32 %v5902_v55, %v592_v39  ;;  %5312 = vrsqrt.f32 %v402_v7  ;;  %v504_v24 = vmul.f32 %v5311_v37, %v397_v41  ;;  %vm510_vm9 = vweird.f32 %v5311_v37 }
 0x14e   : > { %vm511_vm10 = vmor %vm509_vm8, %vm510_vm9  ;;  %vm559_vm11 = vweird.f32 %v402_v7  ;;  %vm4740_vm8 = vcmask 195584  }
 0x14f   : > { %v619_v61 = vpack.c.bf16 %v610_v44, %v609_v40  ;;  %v505_v46 = vmul.f32 %v5311_v37, %v504_v24 }
 0x151   : > { %4982 = vmatmul.msk.bf16.vlgmr.msra.gmra.mxu3 %vm219_vm0, %v619_v61  ;;  %v506_v33 = vmul.f32 0.5, %v505_v46 }
 0x153   : > { %v5313_v34 = vpop.eup %5312  ;;  %v507_v10 = vsub.f32 1.5, %v506_v33 }
 0x154   : > { %v554_v49 = vmul.f32 %v5313_v34, %v402_v7  ;;  %vm560_vm12 = vweird.f32 %v5313_v34 }
 0x155   : > { %v508_v60 = vmul.f32 %v5311_v37, %v507_v10  ;;  %vm6042_vm14 = vmor %vm559_vm11, %vm560_vm12 }
 0x156   : > { %v555_v54 = vmul.f32 %v5313_v34, %v554_v49 }
 0x157   : > { %v512_v1 = vsel %vm511_vm10, %v5311_v37, %v508_v60 }
 0x158   : > { %v556_v50 = vmul.f32 0.5, %v555_v54 }
 0x15a   : > { %v557_v2 = vsub.f32 1.5, %v556_v50 }
 0x15c   : > { %v558_v21 = vmul.f32 %v5313_v34, %v557_v2 }
 0x15e   : > { %v562_v25 = vsel %vm6042_vm14, %v5313_v34, %v558_v21 }
 0x15f   : > { %v578_v31 = vmul.f32 %v562_v25, %v5809_v19 }
 0x161   : > { %v595_v27 = vmul.f32 %v5887_v8, %v578_v31 }
 0x163   : > { %v612_v19 = vadd.f32 %v5902_v55, %v595_v27 }
 0x177   : > { %v6057_v32 = vpop.permute.xlu2 %729 }
 0x185   : > { %v358_v47 = vpop.xlane.xlu0 %357 }
 0x186   : > { %v382_v28 = vmul.f32 %v358_v47, %v5711_v36 }
 0x188   : > { %v398_v48 = vadd.f32 1e-05, %v382_v28 }
 0x18a   : > { %5314 = vrsqrt.f32 %v398_v48  ;;  %vm519_vm15 = vweird.f32 %v398_v48 }
 0x18d   : > { %v367_v51 = vpop.xlane.xlu0 %366 }
 0x18e   : > { %v385_v16 = vmul.f32 %v367_v51, %v5711_v36  ;;  %v573_v36 = vmul.f32 %v512_v1, %v5779_v29 }
 0x190   : > { %v5315_v52 = vpop.eup %5314  ;;  %v401_v26 = vadd.f32 1e-05, %v385_v16  ;;  %v590_v23 = vmul.f32 %v5887_v8, %v573_v36 }
 0x191   : > { %v514_v63 = vmul.f32 %v5315_v52, %v398_v48  ;;  %vm520_vm13 = vweird.f32 %v5315_v52 }
 0x192   : > { %5316 = vrsqrt.f32 %v401_v26  ;;  %vm521_vm1 = vmor %vm519_vm15, %vm520_vm13  ;;  %v607_v14 = vadd.f32 %v5902_v55, %v590_v23  ;;  %vm549_vm3 = vweird.f32 %v401_v26 }
 0x193   : > { %v515_v0 = vmul.f32 %v5315_v52, %v514_v63  ;;  %v748_v63 = vperm.slane %v5872_v57, 4 }
 0x195   : > { %v516_v9 = vmul.f32 0.5, %v515_v0  ;;  %v6108_v0 = vperm.slane %v5872_v57, 2 }
 0x197   : > { %v517_v11 = vsub.f32 1.5, %v516_v9 }
 0x198   : > { %v5317_v15 = vpop.eup %5316 }
 0x199   : > { %v518_v12 = vmul.f32 %v5315_v52, %v517_v11  ;;  %v544_v17 = vmul.f32 %v5317_v15, %v401_v26  ;;  %vm550_vm2 = vweird.f32 %v5317_v15 }
 0x19a   : > { %vm551_vm4 = vmor %vm549_vm3, %vm550_vm2 }
 0x19b   : > { %v522_v20 = vsel %vm521_vm1, %v5315_v52, %v518_v12  ;;  %v545_v43 = vmul.f32 %v5317_v15, %v544_v17 }
 0x19c   : > { %v574_v56 = vmul.f32 %v522_v20, %v5828_v3 }
 0x19d   : > { %v546_v5 = vmul.f32 0.5, %v545_v43 }
 0x19e   : > { %v591_v29 = vmul.f32 %v5887_v8, %v574_v56 }
 0x19f   : > { %v547_v58 = vsub.f32 1.5, %v546_v5 }
 0x1a0   : > { %v608_v30 = vadd.f32 %v5902_v55, %v591_v29 }
 0x1a1   : > { %v548_v59 = vmul.f32 %v5317_v15, %v547_v58 }
 0x1a2   : > { %v618_v3 = vpack.c.bf16 %v608_v30, %v607_v14 }
 0x1a3   : > { %v552_v53 = vsel %vm551_vm4, %v5317_v15, %v548_v59 }
 0x1a4   : > { %4981 = vmatmul.msk.bf16.gmra.mxu2 %vm219_vm0, %v618_v3  ;;  %v577_v42 = vmul.f32 %v552_v53, %v5836_v6 }
 0x1a6   : > { %v594_v35 = vmul.f32 %v5887_v8, %v577_v42  ;;  %v6060_v22 = vpop.f32.mrf.mxu0 }
 0x1a7   : > { %v732_v62 = vadd.f32 %v6057_v32, %v6060_v22  ;;  %v711_v9 = vadd.f32 %v6108_v0, %v6060_v22 }
 0x1a8   : > { %v611_v13 = vadd.f32 %v5902_v55, %v594_v35 }
 0x1a9   : > { %v785_v40 = vpack.c.bf16 %v732_v62, %v732_v62  ;;  %v6113_v11 = vpack.c.bf16 %v711_v9, %v711_v9 }
 0x1aa   : > { %v620_v39 = vpack.c.bf16 %v612_v19, %v611_v13 }
 0x1ab   : > { %v818_v6 = vunpack.c.l.b16 %v785_v40 }
 0x1ac   : > { %4983 = vmatmul.msk.bf16.gmra.mxu3 %vm219_vm0, %v620_v39 }
 0x1ad   : > { %v6067_v44 = vpack.c.b16 %v818_v6, %v818_v6 }
 0x1ae   : > { %v672_v61 = vpop.f32.mrf.mxu0 }
 0x1af   : > { %8318 = vst [vmem:[#allocation2_spill] sm:$0xff] %v6067_v44  ;;  %v733_v38 = vadd.f32 %v6057_v32, %v672_v61  ;;  %820 = vrot.lane.b32.xlu0 %v6067_v44, %s5585_s29  ;;  %v712_v4 = vadd.f32 %v6108_v0, %v672_v61 }
 0x1b1   : > { %v786_v8 = vpack.c.bf16 %v733_v38, %v733_v38  ;;  %v6120_v12 = vpack.c.bf16 %v712_v4, %v712_v4 }
 0x1b3   : > { %v843_v41 = vunpack.c.l.b16 %v786_v8 }
 0x1b5   : > { %v6072_v55 = vpack.c.b16 %v843_v41, %v843_v41 }
 0x1b6   : > { %v680_v45 = vpop.f32.mrf.mxu1 }
 0x1b7   : > { %8319 = vst [vmem:[#allocation3_spill] sm:$0xff] %v6072_v55  ;;  %v736_v18 = vadd.f32 %v6057_v32, %v680_v45  ;;  %845 = vrot.lane.b32.xlu1 %v6072_v55, %s5585_s29  ;;  %v715_v17 = vadd.f32 %v6108_v0, %v680_v45 }
 0x1b9   : > { %v789_v7 = vpack.c.bf16 %v736_v18, %v736_v18  ;;  %v6125_v20 = vpack.c.bf16 %v715_v17, %v715_v17 }
 0x1bb   : > { %v915_v37 = vunpack.c.l.b16 %v789_v7 }
 0x1bd   : > { %v6077_v24 = vpack.c.b16 %v915_v37, %v915_v37 }
 0x1be   : > { %v6081_v46 = vpop.f32.mrf.mxu1 }
 0x1bf   : > { %8320 = vst [vmem:[#allocation4_spill] sm:$0xff] %v6077_v24  ;;  %917 = vrot.lane.b32.xlu2 %v6077_v24, %s5585_s29  ;;  %v737_v28 = vadd.f32 %v6057_v32, %v6081_v46 }
 0x1c1   : > { %v790_v49 = vpack.c.bf16 %v737_v28, %v737_v28 }
 0x1c3   : > { %v939_v54 = vunpack.c.l.b16 %v790_v49 }
 0x1c4   : > { %v6083_v47 = vpop.f32.mrf.mxu2 }
 0x1c5   : > { %v740_v34 = vadd.f32 %v6057_v32, %v6083_v47  ;;  %v6093_v51 = vpack.c.b16 %v939_v54, %v939_v54 }
 0x1c7   : > { %v793_v48 = vpack.c.bf16 %v740_v34, %v740_v34  ;;  %8322 = vst [vmem:[#allocation6_spill] sm:$0xff] %v6093_v51 }
 0x1c9   : > { %v1011_v33 = vunpack.c.l.b16 %v793_v48 }
 0x1cb   : > { %v6089_v10 = vpack.c.b16 %v1011_v33, %v1011_v33 }
 0x1cc   : > { %v6131_v56 = vpop.f32.mrf.mxu2 }
 0x1cd   : > { %8321 = vst [vmem:[#allocation5_spill] sm:$0xff] %v6089_v10  ;;  %1013 = vrot.lane.b32.xlu1 %v6089_v10, %s5585_s29  ;;  %v741_v58 = vadd.f32 %v6057_v32, %v6131_v56 }
 0x1cf   : > { %v794_v35 = vpack.c.bf16 %v741_v58, %v741_v58 }
 0x1d1   : > { %v1035_v38 = vunpack.c.l.b16 %v794_v35 }
 0x1d3   : > { %v6169_v37 = vpack.c.b16 %v1035_v38, %v1035_v38 }
 0x1d4   : > { %v6095_v16 = vpop.f32.mrf.mxu3 }
 0x1d5   : > { %v744_v52 = vadd.f32 %v6057_v32, %v6095_v16  ;;  %941 = vrot.lane.b32.xlu1 %v6093_v51, %s5585_s29  ;;  %8324 = vst [vmem:[#allocation8_spill] sm:$0xff] %v6169_v37 }
 0x1d7   : > { %v797_v26 = vpack.c.bf16 %v744_v52, %v744_v52  ;;  %v6177_v52 = vpop.f32.mrf.mxu0 }
 0x1d9   : > { %v1107_v60 = vunpack.c.l.b16 %v797_v26 }
 0x1db   : > { %v6101_v50 = vpack.c.b16 %v1107_v60, %v1107_v60 }
 0x1dc   : > { %v6153_v40 = vpop.f32.mrf.mxu3 }
 0x1dd   : > { %1109 = vrot.lane.b32.xlu0 %v6101_v50, %s5585_s29  ;;  %v745_v8 = vadd.f32 %v6057_v32, %v6153_v40 }
 0x1df   : > { %v798_v34 = vpack.c.bf16 %v745_v8, %v745_v8 }
 0x1e1   : > { %v1131_v60 = vunpack.c.l.b16 %v798_v34 }
 0x1e5   : > { %750 = vrot.lane.b32.xlu0 %v748_v63, %s5586_s30 }
 0x219   : > { %v918_v15 = vpop.permute.xlu2 %917 }
 0x21a   : > { %v923_v57 = vsel %vm822_vm5, %v918_v15, 0 }
 0x221   : > { %v821_v1 = vpop.permute.xlu0 %820 }
 0x222   : > { %v827_v2 = vsel %vm822_vm5, %v821_v1, 0 }
 0x223   : > { %836 = vmatpush.bf16.xpose.msrb.mxu1 %v827_v2  ;;  %v734_v2 = vadd.f32 %v6057_v32, %v6177_v52 }
 0x225   : > { %v787_v4 = vpack.c.bf16 %v734_v2, %v734_v2 }
 0x227   : > { %v6145_v13 = vpop.f32.mrf.mxu2 }
 0x229   : > { %v846_v36 = vpop.permute.xlu1 %845 }
 0x22a   : > { %4984 = vmatmul.msk.bf16.vlgmr.msrb.gmra.mxu1 %vm822_vm5, %v6113_v11  ;;  %v851_v21 = vsel %vm822_vm5, %v846_v36, 0  ;;  %v6191_v36 = vpack.c.b16 %v1131_v60, %v1131_v60 }
 0x22b   : > { %860 = vmatpush.bf16.xpose.msrb.mxu2 %v851_v21 }
 0x22c   : > { %8327 = vst [vmem:[#allocation11_spill] sm:$0xff] %v6191_v36 }
 0x22f   : > { %v6173_v33 = vpop.f32.mrf.mxu2 }
 0x230   : > { %v743_v63 = vadd.f32 %v6057_v32, %v6173_v33 }
 0x232   : > { %4985 = vmatmul.msk.bf16.vlgmr.msrb.gmra.mxu2 %vm822_vm5, %v6120_v12  ;;  %v796_v21 = vpack.c.bf16 %v743_v63, %v743_v63 }
 0x233   : > { %932 = vmatpush.bf16.xpose.msra.mxu2 %v923_v57 }
 0x242   : > { %4988 = vmatmul.msk.bf16.vlgmr.msra.gmra.mxu2 %vm822_vm5, %v6125_v20 }
 0x24f   : > { %v6129_v43 = vpop.permute.xlu0 %1109 }
 0x257   : > { %v6133_v23 = vpop.permute.xlu0 %750 }
 0x258   : > { %v757_v25 = vadd.f32 %v6133_v23, %v680_v45  ;;  %v754_v5 = vadd.f32 %v6133_v23, %v672_v61  ;;  %v753_v29 = vadd.f32 %v6133_v23, %v6060_v22  ;;  %v762_v59 = vadd.f32 %v6133_v23, %v6131_v56  ;;  %v6159_v61 = vpop.f32.mrf.mxu1 }
 0x259   : > { %v761_v3 = vadd.f32 %v6133_v23, %v6083_v47  ;;  %v759_v45 = vadd.f32 %v6133_v23, %v6159_v61  ;;  %v758_v7 = vadd.f32 %v6133_v23, %v6081_v46  ;;  %v738_v26 = vadd.f32 %v6057_v32, %v6159_v61 }
 0x25a   : > { %v805_v14 = vpack.c.bf16 %v757_v25, %v757_v25  ;;  %v802_v30 = vpack.c.bf16 %v754_v5, %v754_v5  ;;  %v801_v31 = vpack.c.bf16 %v753_v29, %v753_v29  ;;  %v810_v39 = vpack.c.bf16 %v762_v59, %v762_v59 }
 0x25b   : > { %v809_v6 = vpack.c.bf16 %v761_v3, %v761_v3  ;;  %v807_v48 = vpack.c.bf16 %v759_v45, %v759_v45  ;;  %v806_v54 = vpack.c.bf16 %v758_v7, %v758_v7  ;;  %v791_v15 = vpack.c.bf16 %v738_v26, %v738_v26 }
 0x25c   : > { %v1492_v53 = vunpack.c.l.b16 %v805_v14  ;;  %v1420_v42 = vunpack.c.l.b16 %v802_v30  ;;  %v1395_v27 = vunpack.c.l.b16 %v801_v31  ;;  %v1612_v41 = vunpack.c.l.b16 %v810_v39  ;;  %v6209_v31 = vpop.f32.mrf.mxu3 }
 0x25d   : > { %v1588_v18 = vunpack.c.l.b16 %v809_v6  ;;  %v1540_v1 = vunpack.c.l.b16 %v807_v48  ;;  %v1516_v9 = vunpack.c.l.b16 %v806_v54  ;;  %v963_v25 = vunpack.c.l.b16 %v791_v15 }
 0x25e   : > { %v6147_v19 = vpack.c.b16 %v1492_v53, %v1492_v53  ;;  %v6149_v22 = vpack.c.b16 %v1420_v42, %v1420_v42  ;;  %v6151_v62 = vpack.c.b16 %v1395_v27, %v1395_v27  ;;  %v6171_v28 = vpack.c.b16 %v1612_v41, %v1612_v41 }
 0x25f   : > { %v6175_v49 = vpack.c.b16 %v1588_v18, %v1588_v18  ;;  %v6193_v57 = vpack.c.b16 %v1540_v1, %v1540_v1  ;;  %v6195_v17 = vpack.c.b16 %v1516_v9, %v1516_v9  ;;  %v1083_v5 = vunpack.c.l.b16 %v796_v21 }
 0x260   : > { %8323 = vst [vmem:[#allocation7_spill] sm:$0xff] %v6151_v62  ;;  %1494 = vrot.lane.b32.xlu0 %v6147_v19, %s5586_s30  ;;  %1422 = vrot.lane.b32.xlu1 %v6149_v22, %s5586_s30  ;;  %v755_v29 = vadd.f32 %v6133_v23, %v6177_v52  ;;  %v765_v58 = vadd.f32 %v6133_v23, %v6095_v16  ;;  %v867_v14 = vunpack.c.l.b16 %v787_v4  ;;  %v6235_v26 = vpop.f32.mrf.mxu1 }
 0x261   : > { %1397 = vrot.lane.b32.xlu2 %v6151_v62, %s5586_s30  ;;  %8325 = vst [vmem:[#allocation9_spill] sm:$0xff] %v6171_v28  ;;  %v742_v30 = vadd.f32 %v6057_v32, %v6145_v13  ;;  %v6211_v59 = vpack.c.b16 %v963_v25, %v963_v25  ;;  %v6213_v3 = vpack.c.b16 %v1083_v5, %v1083_v5  ;;  %v677_v25 = vpop.f32.mrf.mxu0 }
 0x262   : > { %8326 = vst [vmem:[#allocation10_spill] sm:$0xff] %v6175_v49  ;;  %v803_v53 = vpack.c.bf16 %v755_v29, %v755_v29  ;;  %v813_v42 = vpack.c.bf16 %v765_v58, %v765_v58  ;;  %v6215_v27 = vpack.c.b16 %v867_v14, %v867_v14  ;;  %v763_v38 = vadd.f32 %v6133_v23, %v6145_v13 }
 0x263   : > { %8328 = vst [vmem:[#allocation12_spill] sm:$0xff] %v6195_v17  ;;  %v795_v35 = vpack.c.bf16 %v742_v30, %v742_v30  ;;  %v746_v41 = vadd.f32 %v6057_v32, %v6209_v31  ;;  %v767_v1 = vadd.f32 %v6133_v23, %v6209_v31  ;;  %v739_v2 = vadd.f32 %v6057_v32, %v6235_v26 }
 0x264   : > { %8329 = vst [vmem:[#allocation13_spill] sm:$0xff] %v6211_v59  ;;  %v1444_v39 = vunpack.c.l.b16 %v803_v53  ;;  %v1684_v6 = vunpack.c.l.b16 %v813_v42  ;;  %v811_v7 = vpack.c.bf16 %v763_v38, %v763_v38  ;;  %v6233_v54 = vpop.f32.mrf.mxu3  ;;  %v735_v58 = vadd.f32 %v6057_v32, %v677_v25 }
 0x265   : > { %8330 = vst [vmem:[#allocation14_spill] sm:$0xff] %v6213_v3  ;;  %v1059_v8 = vunpack.c.l.b16 %v795_v35  ;;  %v799_v48 = vpack.c.bf16 %v746_v41, %v746_v41  ;;  %v747_v60 = vadd.f32 %v6057_v32, %v6233_v54  ;;  %v815_v4 = vpack.c.bf16 %v767_v1, %v767_v1 }
 0x266   : > { %8331 = vst [vmem:[#allocation15_spill] sm:$0xff] %v6215_v27  ;;  %v6227_v45 = vpack.c.b16 %v1444_v39, %v1444_v39  ;;  %v6229_v18 = vpack.c.b16 %v1684_v6, %v1684_v6  ;;  %v1636_v63 = vunpack.c.l.b16 %v811_v7  ;;  %v792_v5 = vpack.c.bf16 %v739_v2, %v739_v2 }
 0x267   : > { %v6231_v34 = vpack.c.b16 %v1059_v8, %v1059_v8  ;;  %v1155_v9 = vunpack.c.l.b16 %v799_v48  ;;  %v800_v15 = vpack.c.bf16 %v747_v60, %v747_v60  ;;  %v1732_v30 = vunpack.c.l.b16 %v815_v4 }
 0x268   : > { %1037 = vrot.lane.b32.xlu0 %v6169_v37, %s5585_s29  ;;  %1614 = vrot.lane.b32.xlu1 %v6171_v28, %s5586_s30  ;;  %8332 = vst [vmem:[#allocation16_spill] sm:$0xff] %v6229_v18  ;;  %v6249_v21 = vpack.c.b16 %v1636_v63, %v1636_v63  ;;  %v987_v53 = vunpack.c.l.b16 %v792_v5  ;;  %v788_v42 = vpack.c.bf16 %v735_v58, %v735_v58  ;;  %v1780_v38 = vunpack.c.l.b16 %v6113_v11 }
 0x269   : > { %1590 = vrot.lane.b32.xlu2 %v6175_v49, %s5586_s30  ;;  %8333 = vst [vmem:[#allocation17_spill] sm:$0xff] %v6231_v34  ;;  %v6251_v29 = vpack.c.b16 %v1155_v9, %v1155_v9  ;;  %v1179_v14 = vunpack.c.l.b16 %v800_v15  ;;  %v6262_v39 = vpack.c.b16 %v1732_v30, %v1732_v30  ;;  %v756_v8 = vadd.f32 %v6133_v23, %v677_v25 }
 0x26a   : > { %8334 = vst [vmem:[#allocation18_spill] sm:$0xff] %v6249_v21  ;;  %v6264_v6 = vpack.c.b16 %v987_v53, %v987_v53  ;;  %v891_v32 = vunpack.c.l.b16 %v788_v42  ;;  %v714_v41 = vadd.f32 %v6108_v0, %v677_v25  ;;  %v6277_v48 = vpack.c.b16 %v1780_v38, %v1780_v38 }
 0x26b   : > { %8335 = vst [vmem:[#allocation19_spill] sm:$0xff] %v6251_v29  ;;  %v6260_v35 = vpack.c.b16 %v1179_v14, %v1179_v14  ;;  %v804_v60 = vpack.c.bf16 %v756_v8, %v756_v8  ;;  %v717_v11 = vadd.f32 %v6108_v0, %v6159_v61  ;;  %v760_v2 = vadd.f32 %v6133_v23, %v6235_v26 }
 0x26c   : > { %8336 = vst [vmem:[#allocation20_spill] sm:$0xff] %v6262_v39  ;;  %v6275_v7 = vpack.c.b16 %v891_v32, %v891_v32  ;;  %v6279_v63 = vpack.c.bf16 %v714_v41, %v714_v41  ;;  %v766_v14 = vadd.f32 %v6133_v23, %v6153_v40  ;;  %v764_v30 = vadd.f32 %v6133_v23, %v6173_v33 }
 0x26d   : > { %8337 = vst [vmem:[#allocation21_spill] sm:$0xff] %v6264_v6  ;;  %v1468_v1 = vunpack.c.l.b16 %v804_v60  ;;  %v6292_v15 = vpack.c.bf16 %v717_v11, %v717_v11  ;;  %v808_v25 = vpack.c.bf16 %v760_v2, %v760_v2 }
 0x26e   : > { %8338 = vst [vmem:[#allocation22_spill] sm:$0xff] %v6275_v7  ;;  %v1858_v9 = vunpack.c.l.b16 %v6279_v63  ;;  %v814_v32 = vpack.c.bf16 %v766_v14, %v766_v14  ;;  %v812_v38 = vpack.c.bf16 %v764_v30, %v764_v30 }
 0x26f   : > { %8339 = vst [vmem:[#allocation23_spill] sm:$0xff] %v6277_v48  ;;  %v6294_v4 = vpack.c.b16 %v1468_v1, %v1468_v1  ;;  %v1564_v61 = vunpack.c.l.b16 %v808_v25  ;;  %v1936_v58 = vunpack.c.l.b16 %v6292_v15 }
 0x270   : > { %1133 = vrot.lane.b32.xlu0 %v6191_v36, %s5585_s29  ;;  %1542 = vrot.lane.b32.xlu1 %v6193_v57, %s5586_s30  ;;  %v6296_v5 = vpack.c.b16 %v1858_v9, %v1858_v9  ;;  %v1708_v41 = vunpack.c.l.b16 %v814_v32  ;;  %v1660_v60 = vunpack.c.l.b16 %v812_v38  ;;  %v1884_v9 = vunpack.c.l.b16 %v6125_v20  ;;  %v1014_v32 = vpop.permute.xlu1 %1013 }
 0x271   : > { %1518 = vrot.lane.b32.xlu2 %v6195_v17, %s5586_s30  ;;  %v6309_v53 = vpack.c.b16 %v1564_v61, %v1564_v61  ;;  %v6311_v42 = vpack.c.b16 %v1936_v58, %v1936_v58  ;;  %v713_v58 = vadd.f32 %v6108_v0, %v6177_v52 }
 0x272   : > { %8340 = vst [vmem:[#allocation24_spill] sm:$0xff] %v6296_v5  ;;  %v6321_v11 = vpack.c.b16 %v1708_v41, %v1708_v41  ;;  %v6323_v1 = vpack.c.b16 %v1660_v60, %v1660_v60  ;;  %v6332_v25 = vpack.c.b16 %v1884_v9, %v1884_v9 }
 0x273   : > { %8341 = vst [vmem:[#allocation25_spill] sm:$0xff] %v6311_v42  ;;  %v771_v30 = vpack.c.bf16 %v713_v58, %v713_v58  ;;  %v1806_v58 = vunpack.c.l.b16 %v6120_v12 }
 0x274   : > { %8342 = vst [vmem:[#allocation26_spill] sm:$0xff] %v6321_v11 }
 0x275   : > { %8343 = vst [vmem:[#allocation27_spill] sm:$0xff] %v6323_v1  ;;  %v1832_v20 = vunpack.c.l.b16 %v771_v30 }
 0x276   : > { %8344 = vst [vmem:[#allocation28_spill] sm:$0xff] %v6332_v25 }
 0x278   : > { %965 = vrot.lane.b32.xlu0 %v6211_v59, %s5585_s29  ;;  %1085 = vrot.lane.b32.xlu1 %v6213_v3, %s5585_s29  ;;  %v942_v52 = vpop.permute.xlu1 %941 }
 0x279   : > { %869 = vrot.lane.b32.xlu2 %v6215_v27, %s5585_s29  ;;  %v947_v12 = vsel %vm822_vm5, %v942_v52, 0 }
 0x280   : > { %1446 = vrot.lane.b32.xlu0 %v6227_v45, %s5586_s30  ;;  %1686 = vrot.lane.b32.xlu1 %v6229_v18, %s5586_s30 }
 0x281   : > { %1061 = vrot.lane.b32.xlu2 %v6231_v34, %s5585_s29 }
 0x288   : > { %1638 = vrot.lane.b32.xlu0 %v6249_v21, %s5586_s30  ;;  %1810 = vrot.lane.b32.xlu1 %v6072_v55, %s5587_s5 }
 0x289   : > { %1157 = vrot.lane.b32.xlu2 %v6251_v29, %s5585_s29 }
 0x290   : > { %1734 = vrot.lane.b32.xlu0 %v6262_v39, %s5586_s30  ;;  %1181 = vrot.lane.b32.xlu1 %v6260_v35, %s5585_s29 }
 0x291   : > { %989 = vrot.lane.b32.xlu2 %v6264_v6, %s5585_s29 }
 0x298   : > { %893 = vrot.lane.b32.xlu0 %v6275_v7, %s5585_s29  ;;  %1782 = vrot.lane.b32.xlu1 %v6277_v48, %s5588_s6  ;;  %s8127_s29 = scalar_lea.vmem %s8225_s4, %s4965_s18 }
 0x299   : > { %1836 = vrot.lane.b32.xlu2 %v6215_v27, %s5587_s5 }
 0x2a0   : > { %1470 = vrot.lane.b32.xlu0 %v6294_v4, %s5586_s30  ;;  %1966 = vrot.lane.b32.xlu1 %v6264_v6, %s5587_s5 }
 0x2a1   : > { %1860 = vrot.lane.b32.xlu2 %v6296_v5, %s5588_s6 }
 0x2a7   : > { %v6319_v8 = vpop.f32.mrf.mxu1 }
 0x2a8   : > { %1566 = vrot.lane.b32.xlu0 %v6309_v53, %s5586_s30  ;;  %1938 = vrot.lane.b32.xlu1 %v6311_v42, %s5588_s6 }
 0x2a9   : > { %1940 = vrot.lane.b32.xlu2 %v6211_v59, %s5587_s5 }
 0x2af   : > { %v840_v2 = vpop.f32.mrf.mxu1 }
 0x2b0   : > { %1710 = vrot.lane.b32.xlu0 %v6321_v11, %s5586_s30  ;;  %1662 = vrot.lane.b32.xlu1 %v6323_v1, %s5586_s30  ;;  %v6347_v2 = vpack.c.b16 %v1832_v20, %v1832_v20  ;;  %v718_v20 = vadd.f32 %v6108_v0, %v6235_v26 }
 0x2b1   : > { %1914 = vrot.lane.b32.xlu2 %v6093_v51, %s5587_s5 }
 0x2b2   : > { %8345 = vst [vmem:[#allocation29_spill] sm:$0xff] %v6347_v2  ;;  %v776_v6 = vpack.c.bf16 %v718_v20, %v718_v20 }
 0x2b4   : > { %v1962_v5 = vunpack.c.l.b16 %v776_v6 }
 0x2b5   : > { %v6334_v61 = vpop.f32.mrf.mxu2 }
 0x2b6   : > { %v6380_v52 = vpack.c.b16 %v1962_v5, %v1962_v5 }
 0x2b8   : > { %1862 = vrot.lane.b32.xlu0 %v6275_v7, %s5587_s5  ;;  %8347 = vst [vmem:[#allocation31_spill] sm:$0xff] %v6380_v52 }
 0x2b9   : > { %1886 = vrot.lane.b32.xlu2 %v6332_v25, %s5588_s6  ;;  %v6356_v25 = vpack.c.b16 %v1806_v58, %v1806_v58 }
 0x2bb   : > { %v6342_v14 = vpop.permute.xlu2 %1397  ;;  %8346 = vst [vmem:[#allocation30_spill] sm:$0xff] %v6356_v25 }
 0x2bd   : > { %v864_v38 = vpop.f32.mrf.mxu2 }
 0x2c0   : > { %1784 = vrot.lane.b32.xlu0 %v6067_v44, %s5587_s5 }
 0x2c3   : > { %v1591_v41 = vpop.permute.xlu2 %1590 }
 0x2c4   : > { %v1596_v60 = vsel %vm1402_vm6, %v1591_v41, 0 }
 0x2c5   : > { %1605 = vmatpush.bf16.msrb.mxu0 %v1596_v60  ;;  %v6349_v9 = vpop.f32.mrf.mxu2 }
 0x2c8   : > { %1834 = vrot.lane.b32.xlu0 %v6347_v2, %s5588_s6 }
 0x2cb   : > { %v6354_v38 = vpop.permute.xlu2 %1518 }
 0x2cd   : > { %v936_v51 = vpop.f32.mrf.mxu2 }
 0x2ce   : > { %v1205_v51 = vsel %vm822_vm5, %v6334_v61, -inf }
 0x2d0   : > { %1808 = vrot.lane.b32.xlu0 %v6356_v25, %s5588_s6 }
 0x2d2   : > { %v6362_v41 = vpop.permute.xlu0 %1494  ;;  %v6364_v60 = vpop.permute.xlu1 %1422 }
 0x2d3   : > { %v870_v59 = vpop.permute.xlu2 %869 }
 0x2d4   : > { %v875_v42 = vsel %vm822_vm5, %v870_v59, 0  ;;  %v768_v59 = vadd.f32 %v6133_v23, %v6233_v54 }
 0x2d5   : > { %884 = vmatpush.bf16.xpose.msrb.mxu3 %v875_v42  ;;  %v1019_v42 = vsel %vm822_vm5, %v1014_v32, 0  ;;  %v716_v32 = vadd.f32 %v6108_v0, %v6081_v46 }
 0x2d6   : > { %v816_v20 = vpack.c.bf16 %v768_v59, %v768_v59 }
 0x2d7   : > { %v774_v5 = vpack.c.bf16 %v716_v32, %v716_v32 }
 0x2d8   : > { %1888 = vrot.lane.b32.xlu0 %v6077_v24, %s5587_s5  ;;  %v1756_v23 = vunpack.c.l.b16 %v816_v20 }
 0x2d9   : > { %v1910_v46 = vunpack.c.l.b16 %v774_v5 }
 0x2da   : > { %v6372_v58 = vpop.permute.xlu0 %1037  ;;  %1206 = vmax.xlane.f32.xlu1 %v1205_v51  ;;  %v6374_v26 = vpop.permute.xlu1 %1614 }
 0x2db   : > { %v1062_v25 = vpop.permute.xlu2 %1061 }
 0x2dc   : > { %4986 = vmatmul.msk.bf16.vlgmr.msrb.gmra.mxu3 %vm822_vm5, %v771_v30  ;;  %v6390_v30 = vpack.c.b16 %v1756_v23, %v1756_v23  ;;  %v1067_v20 = vsel %vm822_vm5, %v1062_v25, 0  ;;  %v6400_v23 = vpack.c.b16 %v1910_v46, %v1910_v46  ;;  %v719_v25 = vadd.f32 %v6108_v0, %v6083_v47 }
 0x2dd   : > { %956 = vmatpush.bf16.xpose.msra.mxu3 %v947_v12  ;;  %v1202_v12 = vsel %vm822_vm5, %v6319_v8, -inf  ;;  %v1404_v47 = vsel %vm1402_vm6, %v6342_v14, 0  ;;  %v724_v14 = vadd.f32 %v6108_v0, %v6153_v40 }
 0x2de   : > { %8348 = vst [vmem:[#allocation32_spill] sm:$0xff] %v6390_v30 }
 0x2df   : > { %8349 = vst [vmem:[#allocation33_spill] sm:$0xff] %v6400_v23 }
 0x2e0   : > { %1964 = vrot.lane.b32.xlu0 %v6380_v52, %s5588_s6 }
 0x2e2   : > { %1203 = vmax.xlane.f32.xlu2 %v1202_v12  ;;  %v1134_v51 = vpop.permute.xlu0 %1133  ;;  %v6386_v24 = vpop.permute.xlu1 %1542 }
 0x2e3   : > { %v1158_v48 = vpop.permute.xlu2 %1157 }
 0x2e5   : > { %1028 = vmatpush.bf16.xpose.msrb.mxu3 %v1019_v42 }
 0x2e8   : > { %1758 = vrot.lane.b32.xlu0 %v6390_v30, %s5586_s30 }
 0x2ea   : > { %v966_v59 = vpop.permute.xlu0 %965  ;;  %v1086_v42 = vpop.permute.xlu1 %1085 }
 0x2eb   : > { %v1091_v52 = vsel %vm822_vm5, %v1086_v42, 0  ;;  %v990_v2 = vpop.permute.xlu2 %989 }
 0x2ec   : > { %v995_v12 = vsel %vm822_vm5, %v990_v2, 0  ;;  %4989 = vmatmul.msk.bf16.vlgmr.msra.gmra.mxu3 %vm822_vm5, %v774_v5  ;;  %v1139_v2 = vsel %vm822_vm5, %v1134_v51, 0 }
 0x2ed   : > { %1004 = vmatpush.bf16.xpose.msrb.mxu2 %v995_v12  ;;  %1100 = vmatpush.bf16.xpose.msra.mxu3 %v1091_v52  ;;  %v6409_v52 = vpack.c.bf16 %v719_v25, %v719_v25 }
 0x2f0   : > { %2044 = vrot.lane.b32.xlu0 %v6231_v34, %s5587_s5 }
 0x2f2   : > { %v1447_v32 = vpop.permute.xlu0 %1446  ;;  %v1687_v55 = vpop.permute.xlu1 %1686 }
 0x2f3   : > { %v1692_v42 = vsel %vm1402_vm6, %v1687_v55, 0  ;;  %1912 = vrot.lane.b32.xlu1 %v6400_v23, %s5588_s6  ;;  %v1163_v55 = vsel %vm822_vm5, %v1158_v48, 0  ;;  %v722_v48 = vadd.f32 %v6108_v0, %v6173_v33  ;;  %v6440_v33 = vpack.c.bf16 %v724_v14, %v724_v14  ;;  %v6491_v14 = vpop.permute.xlu2 %1836 }
 0x2f4   : > { %4991 = vmatmul.msk.bf16.vlgmr.msrb.gmra.mxu2 %vm822_vm5, %v776_v6  ;;  %1701 = vmatpush.bf16.msra.mxu0 %v1692_v42  ;;  %v721_v6 = vadd.f32 %v6108_v0, %v6145_v13  ;;  %v1428_v13 = vsel %vm1402_vm6, %v6364_v60, 0  ;;  %v725_v60 = vadd.f32 %v6108_v0, %v6209_v31  ;;  %8351 = vst [vmem:[#allocation35_spill] sm:$0xff] %v6491_v14 }
 0x2f5   : > { %1076 = vmatpush.bf16.xpose.msra.mxu2 %v1067_v20  ;;  %v6430_v20 = vpack.c.bf16 %v722_v48, %v722_v48 }
 0x2f6   : > { %v6420_v51 = vpack.c.bf16 %v721_v6, %v721_v6  ;;  %v6451_v40 = vpack.c.bf16 %v725_v60, %v725_v60 }
 0x2fa   : > { %2070 = vrot.lane.b32.xlu2 %v6213_v3, %s5587_s5  ;;  %v6413_v5 = vpop.permute.xlu0 %1638  ;;  %v6463_v31 = vpop.permute.xlu1 %1810 }
 0x2fb   : > { %8350 = vst [vmem:[#allocation34_spill] sm:$0xff] %v6463_v31 }
 0x2fc   : > { %4992 = vmatmul.msk.bf16.vlgmr.msrb.gmra.mxu3 %vm822_vm5, %v6409_v52 }
 0x2fd   : > { %1148 = vmatpush.bf16.xpose.msrb.mxu2 %v1139_v2  ;;  %1172 = vmatpush.bf16.xpose.msrb.mxu3 %v1163_v55  ;;  %v971_v2 = vsel %vm822_vm5, %v966_v59, 0  ;;  %v1043_v55 = vsel %vm822_vm5, %v6372_v58, 0  ;;  %v1500_v59 = vsel %vm1402_vm6, %v6362_v41, 0  ;;  %v1115_v58 = vsel %vm822_vm5, %v6129_v43, 0 }
 0x2fe   : > { %v720_v41 = vadd.f32 %v6108_v0, %v6131_v56  ;;  %v723_v43 = vadd.f32 %v6108_v0, %v6095_v16  ;;  %v726_v56 = vadd.f32 %v6108_v0, %v6233_v54 }
 0x300   : > { %v6467_v48 = vpack.c.bf16 %v720_v41, %v720_v41 }
 0x302   : > { %v6422_v12 = vpop.permute.xlu0 %1734 }
 0x304   : > { %4994 = vmatmul.msk.bf16.vlgmr.msra.gmra.mxu2 %vm822_vm5, %v6420_v51 }
 0x305   : > { %1413 = vmatpush.bf16.msra.mxu2 %v1404_v47  ;;  %v1182_v47 = vpop.permute.xlu1 %1181 }
 0x30a   : > { %v894_v46 = vpop.permute.xlu0 %893 }
 0x30b   : > { %v899_v42 = vsel %vm822_vm5, %v894_v46, 0  ;;  %v1187_v46 = vsel %vm822_vm5, %v1182_v47, 0 }
 0x30c   : > { %4995 = vmatmul.msk.bf16.vlgmr.msra.gmra.mxu3 %vm822_vm5, %v6430_v20  ;;  %908 = vmatpush.bf16.xpose.msra.mxu1 %v899_v42  ;;  %v6474_v42 = vpack.c.bf16 %v723_v43, %v723_v43 }
 0x30d   : > { %1437 = vmatpush.bf16.msra.mxu3 %v1428_v13  ;;  %v6481_v13 = vpack.c.bf16 %v726_v56, %v726_v56 }
 0x312   : > { %v1471_v25 = vpop.permute.xlu0 %1470 }
 0x313   : > { %v1476_v6 = vsel %vm1402_vm6, %v1471_v25, 0  ;;  %4987 = vmatmul.msk.bf16.vlgmr.msra.gmra.mxu1 %vm822_vm5, %v6279_v63  ;;  %v1214_v63 = vsel %vm822_vm5, %v6349_v9, -inf }
 0x314   : > { %980 = vmatpush.bf16.xpose.msrb.mxu1 %v971_v2  ;;  %4997 = vmatmul.msk.bf16.vlgmr.msrb.gmra.mxu2 %vm822_vm5, %v6440_v33  ;;  %v1524_v2 = vsel %vm1402_vm6, %v6354_v38, 0  ;;  %v6499_v38 = vpop.permute.xlu1 %1782 }
 0x315   : > { %1485 = vmatpush.bf16.msrb.mxu2 %v1476_v6  ;;  %8354 = vst [vmem:[#allocation38_spill] sm:$0xff] %v6499_v38 }
 0x31c   : > { %1052 = vmatpush.bf16.xpose.msra.mxu1 %v1043_v55  ;;  %4998 = vmatmul.msk.bf16.vlgmr.msrb.gmra.mxu3 %vm822_vm5, %v6451_v40  ;;  %v6493_v55 = vpop.permute.xlu2 %1860 }
 0x31d   : > { %1509 = vmatpush.bf16.msrb.mxu3 %v1500_v59  ;;  %8352 = vst [vmem:[#allocation36_spill] sm:$0xff] %v6493_v55 }
 0x323   : > { %1215 = vmax.xlane.f32.xlu2 %v1214_v63  ;;  %4990 = vmatmul.msk.bf16.vlgmr.msrb.gmra.mxu1 %vm822_vm5, %v6292_v15  ;;  %v1452_v15 = vsel %vm1402_vm6, %v1447_v32, 0 }
 0x324   : > { %1124 = vmatpush.bf16.xpose.msrb.mxu1 %v1115_v58  ;;  %v6497_v54 = vpop.permute.xlu2 %1940 }
 0x325   : > { %8353 = vst [vmem:[#allocation37_spill] sm:$0xff] %v6497_v54  ;;  %v6542_v54 = vpop.permute.xlu0 %1566 }
 0x32c   : > { %v6509_v47 = vpop.permute.xlu2 %1914 }
 0x32d   : > { %8355 = vst [vmem:[#allocation39_spill] sm:$0xff] %v6509_v47 }
 0x333   : > { %4993 = vmatmul.msk.bf16.vlgmr.msra.gmra.mxu1 %vm822_vm5, %v6467_v48 }
 0x334   : > { %1196 = vmatpush.bf16.xpose.msra.mxu1 %v1187_v46  ;;  %v6511_v46 = vpop.permute.xlu1 %1966  ;;  %v6515_v56 = vpop.permute.xlu2 %1886 }
 0x335   : > { %8356 = vst [vmem:[#allocation40_spill] sm:$0xff] %v6511_v46 }
 0x336   : > { %8357 = vst [vmem:[#allocation41_spill] sm:$0xff] %v6515_v56 }
 0x343   : > { %4996 = vmatmul.msk.bf16.vlgmr.msrb.gmra.mxu1 %vm822_vm5, %v6474_v42 }
 0x344   : > { %1461 = vmatpush.bf16.msrb.mxu1 %v1452_v15 }
 0x353   : > { %4999 = vmatmul.msk.bf16.vlgmr.msra.gmra.mxu1 %vm822_vm5, %v6481_v13 }
 0x354   : > { %1533 = vmatpush.bf16.msra.mxu1 %v1524_v2  ;;  %v6517_v2 = vpop.permute.xlu1 %1938 }
 0x355   : > { %8358 = vst [vmem:[#allocation42_spill] sm:$0xff] %v6517_v2 }
 0x35f   : > { %v6487_v16 = vpop.f32.mrf.mxu3 }
 0x360   : > { %v1208_v32 = vsel %vm822_vm5, %v6487_v16, -inf }
 0x361   : > { %1209 = vmax.xlane.f32.xlu1 %v1208_v32 }
 0x367   : > { %v888_v25 = vpop.f32.mrf.mxu3 }
 0x36f   : > { %v6495_v0 = vpop.f32.mrf.mxu3 }
 0x377   : > { %v960_v6 = vpop.f32.mrf.mxu3  ;;  %v6501_v60 = vpop.f32.mrf.mxu2 }
 0x378   : > { %v1223_v59 = vsel %vm822_vm5, %v6501_v60, -inf }
 0x379   : > { %1224 = vmax.xlane.f32.xlu1 %v1223_v59 }
 0x37f   : > { %v1008_v63 = vpop.f32.mrf.mxu2  ;;  %v6505_v58 = vpop.f32.mrf.mxu3 }
 0x380   : > { %v1226_v41 = vsel %vm822_vm5, %v6505_v58, -inf }
 0x381   : > { %1227 = vmax.xlane.f32.xlu1 %v1226_v41  ;;  %v1204_v41 = vpop.xlane.xlu2 %1203 }
 0x387   : > { %v1032_v43 = vpop.f32.mrf.mxu3  ;;  %v6513_v15 = vpop.f32.mrf.mxu2 }
 0x388   : > { %v6527_v43 = vpop.permute.xlu1 %1662 }
 0x389   : > { %v6533_v2 = vpop.permute.xlu2 %2070 }
 0x38a   : > { %8360 = vst [vmem:[#allocation44_spill] sm:$0xff] %v6533_v2 }
 0x38f   : > { %v1080_v32 = vpop.f32.mrf.mxu2  ;;  %v6519_v25 = vpop.f32.mrf.mxu3 }
 0x390   : > { %v6521_v6 = vpop.f32.mrf.mxu1  ;;  %v1235_v59 = vsel %vm822_vm5, %v6519_v25, -inf  ;;  %v1217_v32 = vsel %vm822_vm5, %v6495_v0, -inf  ;;  %v1207_v55 = vpop.xlane.xlu1 %1206 }
 0x391   : > { %1236 = vmax.xlane.f32.xlu1 %v1235_v59  ;;  %v1211_v63 = vsel %vm822_vm5, %v6521_v6, -inf  ;;  %v1251_v47 = vsub.f32 %v6334_v61, %v1207_v55  ;;  %v6547_v55 = vpop.permute.xlu0 %1710 }
 0x392   : > { %1212 = vmax.xlane.f32.xlu0 %v1211_v63 }
 0x396   : > { %v1216_v14 = vpop.xlane.xlu2 %1215 }
 0x397   : > { %v1104_v3 = vpop.f32.mrf.mxu3  ;;  %v6529_v23 = vpop.f32.mrf.mxu2 }
 0x398   : > { %8359 = vst [vmem:[#allocation43_spill] sm:$0xff] %v6529_v23  ;;  %v912_v34 = vpop.f32.mrf.mxu1 }
 0x399   : > { %v1268_v34 = vmul.f32 1.442695, %v1251_v47 }
 0x39a   : > { %1218 = vmax.xlane.f32.xlu0 %v1217_v32  ;;  %v1254_v32 = vsub.f32 %v6349_v9, %v1216_v14  ;;  %v6559_v14 = vpop.permute.xlu0 %1862 }
 0x39b   : > { %5318 = vpow2.f32 %v1268_v34  ;;  %8362 = vst [vmem:[#allocation46_spill] sm:$0xff] %v6559_v14  ;;  %v1241_v34 = vsel %vm822_vm5, %v6529_v23, -inf }
 0x39c   : > { %v1274_v61 = vmul.f32 1.442695, %v1254_v32 }
 0x39e   : > { %5320 = vpow2.f32 %v1274_v61 }
 0x39f   : > { %v1152_v46 = vpop.f32.mrf.mxu2  ;;  %v6535_v59 = vpop.f32.mrf.mxu3 }
 0x3a0   : > { %8361 = vst [vmem:[#allocation45_spill] sm:$0xff] %v6535_v59  ;;  %v6538_v63 = vpop.f32.mrf.mxu1  ;;  %v1232_v46 = vsel %vm822_vm5, %v6513_v15, -inf }
 0x3a1   : > { %v1220_v3 = vsel %vm822_vm5, %v6538_v63, -inf  ;;  %v6549_v31 = vpop.eup %5318 }
 0x3a2   : > { %1221 = vmax.xlane.f32.xlu2 %v1220_v3  ;;  %v6567_v61 = vpop.permute.xlu0 %1784 }
 0x3a4   : > { %v6557_v9 = vpop.eup %5320 }
 0x3a5   : > { %v1310_v32 = vsel %vm822_vm5, %v6557_v9, 0.0 }
 0x3a7   : > { %v1176_v56 = vpop.f32.mrf.mxu3 }
 0x3a8   : > { %v984_v2 = vpop.f32.mrf.mxu1  ;;  %v1301_v56 = vsel %vm822_vm5, %v6549_v31, 0.0 }
 0x3aa   : > { %1233 = vmax.xlane.f32.xlu2 %v1232_v46  ;;  %v6574_v38 = vpop.permute.xlu0 %1834 }
 0x3ab   : > { %8363 = vst [vmem:[#allocation47_spill] sm:$0xff] %v6574_v38 }
 0x3b0   : > { %v6551_v3 = vpop.f32.mrf.mxu1 }
 0x3b1   : > { %v1229_v47 = vsel %vm822_vm5, %v6551_v3, -inf }
 0x3b2   : > { %1230 = vmax.xlane.f32.xlu0 %v1229_v47  ;;  %1302 = vadd.xlane.f32.xlu2 %v1301_v56  ;;  %v1244_v56 = vsel %vm822_vm5, %v6535_v59, -inf  ;;  %v6582_v27 = vpop.permute.xlu0 %1808 }
 0x3b3   : > { %8366 = vst [vmem:[#allocation50_spill] sm:$0xff] %v6582_v27 }
 0x3b8   : > { %v1056_v2 = vpop.f32.mrf.mxu1 }
 0x3b9   : > { %v1250_v2 = vsub.f32 %v6319_v8, %v1204_v41 }
 0x3ba   : > { %1242 = vmax.xlane.f32.xlu0 %v1241_v34  ;;  %1311 = vadd.xlane.f32.xlu2 %v1310_v32  ;;  %v6576_v34 = vpop.permute.xlu1 %1912 }
 0x3bb   : > { %v1266_v14 = vmul.f32 1.442695, %v1250_v2  ;;  %8364 = vst [vmem:[#allocation48_spill] sm:$0xff] %v6576_v34  ;;  %v6591_v2 = vpop.permute.xlu0 %1888 }
 0x3bc   : > { %8367 = vst [vmem:[#allocation51_spill] sm:$0xff] %v6591_v2 }
 0x3bd   : > { %5322 = vpow2.f32 %v1266_v14 }
 0x3c0   : > { %v6565_v46 = vpop.f32.mrf.mxu1 }
 0x3c1   : > { %v1238_v47 = vsel %vm822_vm5, %v6565_v46, -inf }
 0x3c2   : > { %1239 = vmax.xlane.f32.xlu1 %v1238_v47  ;;  %1245 = vmax.xlane.f32.xlu0 %v1244_v56 }
 0x3c3   : > { %v6585_v56 = vpop.eup %5322  ;;  %v6595_v34 = vpop.permute.xlu0 %1964 }
 0x3c4   : > { %v1298_v41 = vsel %vm822_vm5, %v6585_v56, 0.0  ;;  %8368 = vst [vmem:[#allocation52_spill] sm:$0xff] %v6595_v34 }
 0x3c8   : > { %v1128_v23 = vpop.f32.mrf.mxu1 }
 0x3d0   : > { %v6578_v32 = vpop.f32.mrf.mxu1 }
 0x3d1   : > { %8365 = vst [vmem:[#allocation49_spill] sm:$0xff] %v6578_v32  ;;  %v1247_v7 = vsel %vm822_vm5, %v6578_v32, -inf }
 0x3d2   : > { %1248 = vmax.xlane.f32.xlu0 %v1247_v7 }
 0x3d4   : > { %v1210_v18 = vpop.xlane.xlu1 %1209 }
 0x3d5   : > { %v1252_v47 = vsub.f32 %v6487_v16, %v1210_v18 }
 0x3d7   : > { %v1270_v8 = vmul.f32 1.442695, %v1252_v47 }
 0x3d8   : > { %v1200_v23 = vpop.f32.mrf.mxu1 }
 0x3d9   : > { %5324 = vpow2.f32 %v1270_v8  ;;  %v6598_v8 = vpop.permute.xlu0 %1758 }
 0x3da   : > { %1299 = vadd.xlane.f32.xlu0 %v1298_v41 }
 0x3df   : > { %v6589_v14 = vpop.eup %5324 }
 0x3e0   : > { %v1304_v7 = vsel %vm822_vm5, %v6589_v14, 0.0 }
 0x3e2   : > { %1305 = vadd.xlane.f32.xlu0 %v1304_v7  ;;  %v6605_v7 = vpop.permute.xlu0 %2044 }
 0x3e3   : > { %8369 = vst [vmem:[#allocation53_spill] sm:$0xff] %v6605_v7 }
 0x3ec   : > { %v1225_v18 = vpop.xlane.xlu1 %1224 }
 0x3ed   : > { %v1257_v16 = vsub.f32 %v6501_v60, %v1225_v18 }
 0x3ef   : > { %v1280_v47 = vmul.f32 1.442695, %v1257_v16 }
 0x3f1   : > { %5326 = vpow2.f32 %v1280_v47 }
 0x3f4   : > { %v1228_v23 = vpop.xlane.xlu1 %1227 }
 0x3f5   : > { %v1258_v41 = vsub.f32 %v6505_v58, %v1228_v23 }
 0x3f7   : > { %v6601_v27 = vpop.eup %5326  ;;  %v1282_v38 = vmul.f32 1.442695, %v1258_v41 }
 0x3f8   : > { %v1319_v32 = vsel %vm822_vm5, %v6601_v27, 0.0 }
 0x3f9   : > { %5328 = vpow2.f32 %v1282_v38  ;;  %1320 = vadd.xlane.f32.xlu1 %v1319_v32 }
 0x3ff   : > { %v6607_v34 = vpop.eup %5328 }
 0x400   : > { %v1322_v60 = vsel %vm822_vm5, %v6607_v34, 0.0 }
 0x401   : > { %1323 = vadd.xlane.f32.xlu1 %v1322_v60 }
 0x405   : > { %v1213_v18 = vpop.xlane.xlu0 %1212 }
 0x406   : > { %v1253_v16 = vsub.f32 %v6521_v6, %v1213_v18 }
 0x408   : > { %v1272_v58 = vmul.f32 1.442695, %v1253_v16 }
 0x40a   : > { %5330 = vpow2.f32 %v1272_v58 }
 0x40d   : > { %v1219_v47 = vpop.xlane.xlu0 %1218 }
 0x40e   : > { %v1255_v23 = vsub.f32 %v6495_v0, %v1219_v47 }
 0x410   : > { %v6613_v41 = vpop.eup %5330  ;;  %v1276_v38 = vmul.f32 1.442695, %v1255_v23 }
 0x411   : > { %v1307_v32 = vsel %vm822_vm5, %v6613_v41, 0.0 }
 0x412   : > { %5332 = vpow2.f32 %v1276_v38  ;;  %1308 = vadd.xlane.f32.xlu0 %v1307_v32  ;;  %v1572_v38 = vsel %vm1402_vm6, %v6542_v54, 0 }
 0x415   : > { %v1222_v7 = vpop.xlane.xlu2 %1221 }
 0x416   : > { %v1256_v59 = vsub.f32 %v6538_v63, %v1222_v7  ;;  %v1237_v7 = vpop.xlane.xlu1 %1236 }
 0x418   : > { %v6618_v60 = vpop.eup %5332  ;;  %v1278_v2 = vmul.f32 1.442695, %v1256_v59 }
 0x419   : > { %v1313_v6 = vsel %vm822_vm5, %v6618_v60, 0.0 }
 0x41a   : > { %5334 = vpow2.f32 %v1278_v2  ;;  %1992 = vrot.lane.b32.xlu1 %v6089_v10, %s5587_s5  ;;  %1314 = vadd.xlane.f32.xlu2 %v1313_v6  ;;  %v2040_v6 = vunpack.c.l.b16 %v6420_v51  ;;  %v1668_v51 = vsel %vm1402_vm6, %v6527_v43, 0 }
 0x41c   : > { %v6638_v1 = vpack.c.b16 %v2040_v6, %v2040_v6 }
 0x41d   : > { %v1234_v0 = vpop.xlane.xlu2 %1233 }
 0x420   : > { %v6624_v18 = vpop.eup %5334 }
 0x421   : > { %v1316_v16 = vsel %vm822_vm5, %v6624_v18, 0.0 }
 0x422   : > { %1317 = vadd.xlane.f32.xlu2 %v1316_v16 }
 0x425   : > { %v1303_v58 = vpop.xlane.xlu2 %1302  ;;  %v1231_v59 = vpop.xlane.xlu0 %1230 }
 0x426   : > { %5336 = vrcp.f32 %v1303_v58  ;;  %2018 = vrot.lane.b32.xlu0 %v6169_v37, %s5587_s5  ;;  %v1259_v43 = vsub.f32 %v6551_v3, %v1231_v59 }
 0x42c   : > { %v5337_v63 = vpop.eup %5336 }
 0x42d   : > { %v1363_v2 = vmul.f32 %v5337_v63, %v6549_v31  ;;  %v1312_v23 = vpop.xlane.xlu2 %1311  ;;  %v6634_v32 = vpop.xlane.xlu0 %1242  ;;  %v1261_v63 = vsub.f32 %v6519_v25, %v1237_v7 }
 0x42e   : > { %5338 = vrcp.f32 %v1312_v23 }
 0x42f   : > { %v1379_v47 = vpack.c.bf16 %v1363_v2, %v1363_v2 }
 0x431   : > { %5001 = vmatmul.msk.bf16.vlgmr.msra.gmra.mxu3 %vm822_vm5, %v1379_v47 }
 0x432   : > { %1581 = vmatpush.bf16.msra.mxu3 %v1572_v38  ;;  %v1284_v38 = vmul.f32 1.442695, %v1259_v43 }
 0x434   : > { %v5339_v10 = vpop.eup %5338 }
 0x435   : > { %v1240_v16 = vpop.xlane.xlu1 %1239  ;;  %v1366_v31 = vmul.f32 %v5339_v10, %v6557_v9  ;;  %v6643_v54 = vpop.xlane.xlu0 %1245 }
 0x436   : > { %v1262_v58 = vsub.f32 %v6565_v46, %v1240_v16  ;;  %v1288_v46 = vmul.f32 1.442695, %v1261_v63  ;;  %v1548_v63 = vsel %vm1402_vm6, %v6386_v24, 0 }
 0x437   : > { %v1382_v2 = vpack.c.bf16 %v1366_v31, %v1366_v31  ;;  %v2066_v31 = vunpack.c.l.b16 %v6430_v20  ;;  %v1988_v20 = vunpack.c.l.b16 %v6409_v52 }
 0x438   : > { %v1290_v37 = vmul.f32 1.442695, %v1262_v58 }
 0x43a   : > { %5340 = vpow2.f32 %v1290_v37  ;;  %2042 = vrot.lane.b32.xlu2 %v6638_v1, %s5588_s6 }
 0x43b   : > { %5342 = vpow2.f32 %v1288_v46  ;;  %v6679_v46 = vpack.c.b16 %v1988_v20, %v1988_v20 }
 0x43d   : > { %8371 = vst [vmem:[#allocation55_spill] sm:$0xff] %v6679_v46 }
 0x440   : > { %v6646_v47 = vpop.eup %5340 }
 0x441   : > { %5004 = vmatmul.msk.bf16.vlgmr.msrb.gmra.mxu3 %vm822_vm5, %v1382_v2  ;;  %v1334_v37 = vsel %vm822_vm5, %v6646_v47, 0.0  ;;  %v6655_v10 = vpop.eup %5342  ;;  %v1260_v2 = vsub.f32 %v6513_v15, %v1234_v0  ;;  %v1620_v15 = vsel %vm1402_vm6, %v6374_v26, 0 }
 0x442   : > { %1677 = vmatpush.bf16.msrb.mxu3 %v1668_v51  ;;  %v1331_v9 = vsel %vm822_vm5, %v6655_v10, 0.0  ;;  %v6666_v51 = vpack.c.b16 %v2066_v31, %v2066_v31 }
 0x443   : > { %v1286_v59 = vmul.f32 1.442695, %v1260_v2 }
 0x444   : > { %1335 = vadd.xlane.f32.xlu1 %v1334_v37  ;;  %8370 = vst [vmem:[#allocation54_spill] sm:$0xff] %v6666_v51 }
 0x445   : > { %v6653_v23 = vpop.xlane.xlu0 %1248 }
 0x44d   : > { %v1300_v25 = vpop.xlane.xlu0 %1299 }
 0x44e   : > { %5344 = vrcp.f32 %v1300_v25  ;;  %v2144_v25 = vunpack.c.l.b16 %v6451_v40  ;;  %v2118_v40 = vunpack.c.l.b16 %v6440_v33  ;;  %v2014_v33 = vunpack.c.l.b16 %v6467_v48 }
 0x450   : > { %1332 = vadd.xlane.f32.xlu0 %v1331_v9  ;;  %v2092_v9 = vunpack.c.l.b16 %v6474_v42  ;;  %v6695_v43 = vpack.c.b16 %v2144_v25, %v2144_v25  ;;  %v1764_v42 = vsel %vm1402_vm6, %v6598_v8, 0  ;;  %v6708_v31 = vpack.c.b16 %v2118_v40, %v2118_v40 }
 0x451   : > { %v1790_v8 = vsel %vm822_vm5, %v6567_v61, 0 }
 0x452   : > { %8373 = vst [vmem:[#allocation57_spill] sm:$0xff] %v6708_v31 }
 0x454   : > { %v5345_v7 = vpop.eup %5344 }
 0x455   : > { %v1362_v6 = vmul.f32 %v5345_v7, %v6585_v56  ;;  %v1306_v16 = vpop.xlane.xlu0 %1305 }
 0x456   : > { %5346 = vrcp.f32 %v1306_v16 }
 0x457   : > { %v1378_v58 = vpack.c.bf16 %v1362_v6, %v1362_v6  ;;  %5348 = vpow2.f32 %v1284_v38  ;;  %v6697_v38 = vpack.c.b16 %v2092_v9, %v2092_v9  ;;  %v1740_v9 = vsel %vm1402_vm6, %v6422_v12, 0 }
 0x458   : > { %5350 = vpow2.f32 %v1286_v59 }
 0x459   : > { %5000 = vmatmul.msk.bf16.vlgmr.msra.gmra.mxu2 %vm822_vm5, %v1378_v58  ;;  %8372 = vst [vmem:[#allocation56_spill] sm:$0xff] %v6697_v38 }
 0x45a   : > { %1557 = vmatpush.bf16.msra.mxu2 %v1548_v63 }
 0x45c   : > { %v5347_v3 = vpop.eup %5346 }
 0x45d   : > { %v1364_v56 = vmul.f32 %v5347_v3, %v6589_v14  ;;  %2068 = vrot.lane.b32.xlu1 %v6666_v51, %s5588_s6  ;;  %v6672_v37 = vpop.eup %5348  ;;  %v6719_v3 = vpack.c.b16 %v2014_v33, %v2014_v33  ;;  %v8378_v33 = vld [vmem:[#allocation51_spill] sm:$0xff] }
 0x45e   : > { %v1325_v0 = vsel %vm822_vm5, %v6672_v37, 0.0  ;;  %v6685_v52 = vpop.eup %5350 }
 0x45f   : > { %v1380_v24 = vpack.c.bf16 %v1364_v56, %v1364_v56  ;;  %v1328_v26 = vsel %vm822_vm5, %v6685_v52, 0.0  ;;  %v2170_v56 = vunpack.c.l.b16 %v6481_v13 }
 0x461   : > { %5002 = vmatmul.msk.bf16.vlgmr.msrb.gmra.mxu1 %vm822_vm5, %v1380_v24  ;;  %v1644_v24 = vsel %vm1402_vm6, %v6413_v5, 0 }
 0x462   : > { %1629 = vmatpush.bf16.msrb.mxu1 %v1620_v15  ;;  %v6738_v15 = vpack.c.b16 %v2170_v56, %v2170_v56  ;;  %v8381_v56 = vld [vmem:[#allocation45_spill] sm:$0xff] }
 0x463   : > { %1326 = vadd.xlane.f32.xlu2 %v1325_v0 }
 0x464   : > { %1990 = vrot.lane.b32.xlu0 %v6679_v46, %s5588_s6 }
 0x465   : > { %2148 = vrot.lane.b32.xlu1 %v6251_v29, %s5587_s5 }
 0x46b   : > { %1329 = vadd.xlane.f32.xlu2 %v1328_v26  ;;  %v1716_v26 = vsel %vm1402_vm6, %v6547_v55, 0  ;;  %v8374_v55 = vld [vmem:[#allocation27_spill] sm:$0xff] }
 0x46c   : > { %v1321_v14 = vpop.xlane.xlu1 %1320  ;;  %2174 = vrot.lane.b32.xlu0 %v6260_v35, %s5587_s5 }
 0x46d   : > { %5352 = vrcp.f32 %v1321_v14  ;;  %2122 = vrot.lane.b32.xlu1 %v6191_v36, %s5587_s5 }
 0x473   : > { %v5353_v7 = vpop.eup %5352 }
 0x474   : > { %v1369_v6 = vmul.f32 %v5353_v7, %v6601_v27  ;;  %v1324_v16 = vpop.xlane.xlu1 %1323  ;;  %2146 = vrot.lane.b32.xlu0 %v6695_v43, %s5588_s6 }
 0x475   : > { %5354 = vrcp.f32 %v1324_v16  ;;  %2094 = vrot.lane.b32.xlu1 %v6697_v38, %s5588_s6 }
 0x476   : > { %v1385_v58 = vpack.c.bf16 %v1369_v6, %v1369_v6 }
 0x478   : > { %5007 = vmatmul.msk.bf16.vlgmr.msra.gmra.mxu3 %vm822_vm5, %v1385_v58  ;;  %v8377_v58 = vld [vmem:[#allocation16_spill] sm:$0xff] }
 0x479   : > { %1773 = vmatpush.bf16.msra.mxu3 %v1764_v42 }
 0x47b   : > { %v5355_v27 = vpop.eup %5354 }
 0x47c   : > { %2120 = vrot.lane.b32.xlu0 %v6708_v31, %s5588_s6  ;;  %v1370_v63 = vmul.f32 %v5355_v27, %v6607_v34 }
 0x47d   : > { %2387 = vrot.lane.b32.xlu1 %v6151_v62, %s5589_s7 }
 0x47e   : > { %v1386_v2 = vpack.c.bf16 %v1370_v63, %v1370_v63 }
 0x480   : > { %5008 = vmatmul.msk.bf16.vlgmr.msrb.gmra.mxu0 %vm822_vm5, %v1386_v2  ;;  %v1894_v2 = vsel %vm822_vm5, %v8378_v33, 0 }
 0x481   : > { %1799 = vmatpush.bf16.xpose.msrb.mxu0 %v1790_v8 }
 0x483   : > { %2016 = vrot.lane.b32.xlu2 %v6719_v3, %s5588_s6 }
 0x484   : > { %2429 = vrot.lane.b32.xlu0 %v6227_v45, %s5589_s7 }
 0x485   : > { %2534 = vrot.lane.b32.xlu1 %v6309_v53, %s5589_s7  ;;  %v1309_v34 = vpop.xlane.xlu0 %1308 }
 0x486   : > { %5356 = vrcp.f32 %v1309_v34  ;;  %v8379_v34 = vld [vmem:[#allocation22_spill] sm:$0xff] }
 0x48b   : > { %2096 = vrot.lane.b32.xlu2 %v6101_v50, %s5587_s5 }
 0x48c   : > { %v5357_v48 = vpop.eup %5356  ;;  %2408 = vrot.lane.b32.xlu0 %v6149_v22, %s5589_s7  ;;  %v1993_v12 = vpop.permute.xlu1 %1992 }
 0x48d   : > { %v1365_v61 = vmul.f32 %v5357_v48, %v6613_v41  ;;  %2597 = vrot.lane.b32.xlu1 %v6249_v21, %s5589_s7  ;;  %v1315_v59 = vpop.xlane.xlu2 %1314 }
 0x48e   : > { %5358 = vrcp.f32 %v1315_v59 }
 0x48f   : > { %v1381_v20 = vpack.c.bf16 %v1365_v61, %v1365_v61 }
 0x491   : > { %5003 = vmatmul.msk.bf16.vlgmr.msrb.gmra.mxu2 %vm822_vm5, %v1381_v20 }
 0x492   : > { %1653 = vmatpush.bf16.msrb.mxu2 %v1644_v24 }
 0x493   : > { %2172 = vrot.lane.b32.xlu2 %v6738_v15, %s5588_s6 }
 0x494   : > { %v5359_v41 = vpop.eup %5358  ;;  %2471 = vrot.lane.b32.xlu0 %v6147_v19, %s5589_s7 }
 0x495   : > { %v1367_v0 = vmul.f32 %v5359_v41, %v6618_v60  ;;  %2576 = vrot.lane.b32.xlu1 %v6171_v28, %s5589_s7  ;;  %v1318_v13 = vpop.xlane.xlu2 %1317 }
 0x496   : > { %5360 = vrcp.f32 %v1318_v13 }
 0x497   : > { %v1383_v5 = vpack.c.bf16 %v1367_v0, %v1367_v0  ;;  %v8382_v0 = vld [vmem:[#allocation46_spill] sm:$0xff] }
 0x498   : > { %v6776_v16 = vpop.permute.xlu0 %2018  ;;  %v1868_v13 = vsel %vm822_vm5, %v8382_v0, 0 }
 0x499   : > { %5005 = vmatmul.msk.bf16.vlgmr.msra.gmra.mxu1 %vm822_vm5, %v1383_v5 }
 0x49a   : > { %1725 = vmatpush.bf16.msra.mxu1 %v1716_v26 }
 0x49b   : > { %2450 = vrot.lane.b32.xlu2 %v6294_v4, %s5589_s7 }
 0x49c   : > { %v5361_v14 = vpop.eup %5360  ;;  %2555 = vrot.lane.b32.xlu0 %v6175_v49, %s5589_s7 }
 0x49d   : > { %v1368_v60 = vmul.f32 %v5361_v14, %v6624_v18  ;;  %2702 = vrot.lane.b32.xlu1 %v6390_v30, %s5589_s7  ;;  %v8375_v18 = vld [vmem:[#allocation15_spill] sm:$0xff]  ;;  %v6791_v41 = vpop.permute.xlu2 %2042  ;;  %v1998_v14 = vsel %vm822_vm5, %v1993_v12, 0 }
 0x49f   : > { %v1384_v25 = vpack.c.bf16 %v1368_v60, %v1368_v60  ;;  %v8383_v60 = vld [vmem:[#allocation38_spill] sm:$0xff] }
 0x4a1   : > { %5006 = vmatmul.msk.bf16.vlgmr.msra.gmra.mxu2 %vm822_vm5, %v1384_v25 }
 0x4a2   : > { %1749 = vmatpush.bf16.msra.mxu2 %v1740_v9 }
 0x4a3   : > { %2513 = vrot.lane.b32.xlu2 %v6193_v57, %s5589_s7 }
 0x4a4   : > { %2681 = vrot.lane.b32.xlu0 %v6262_v39, %s5589_s7 }
 0x4a5   : > { %2725 = vrot.lane.b32.xlu1 %v6067_v44, %s5590_s8 }
 0x4ab   : > { %2492 = vrot.lane.b32.xlu2 %v6195_v17, %s5589_s7 }
 0x4ac   : > { %2660 = vrot.lane.b32.xlu0 %v6321_v11, %s5589_s7 }
 0x4b3   : > { %2618 = vrot.lane.b32.xlu2 %v8374_v55, %s5589_s7 }
 0x4b4   : > { %2771 = vrot.lane.b32.xlu0 %v8375_v18, %s5590_s8  ;;  %v6774_v7 = vpop.f32.mrf.mxu3 }
 0x4b5   : > { %8376 = vst [vmem:[#allocation58_spill] sm:$0xff] %v6774_v7 }
 0x4b7   : > { %v1336_v6 = vpop.xlane.xlu1 %1335 }
 0x4b8   : > { %5362 = vrcp.f32 %v1336_v6  ;;  %v8384_v6 = vld [vmem:[#allocation43_spill] sm:$0xff] }
 0x4bb   : > { %2639 = vrot.lane.b32.xlu2 %v8377_v58, %s5589_s7 }
 0x4bc   : > { %v1441_v40 = vpop.f32.mrf.mxu3 }
 0x4bd   : > { %v1263_v40 = vsub.f32 %v8384_v6, %v6634_v32  ;;  %v8387_v32 = vld [vmem:[#allocation34_spill] sm:$0xff] }
 0x4be   : > { %v5363_v42 = vpop.eup %5362 }
 0x4bf   : > { %v1374_v27 = vmul.f32 %v5363_v42, %v6646_v47  ;;  %v1264_v47 = vsub.f32 %v8381_v56, %v6643_v54 }
 0x4c1   : > { %v1390_v63 = vpack.c.bf16 %v1374_v27, %v1374_v27  ;;  %v1294_v26 = vmul.f32 1.442695, %v1264_v47  ;;  %v1816_v47 = vsel %vm822_vm5, %v8387_v32, 0 }
 0x4c3   : > { %5012 = vmatmul.msk.bf16.vlgmr.msra.gmra.mxu0 %vm822_vm5, %v1390_v63  ;;  %v1333_v8 = vpop.xlane.xlu0 %1332  ;;  %2794 = vrot.lane.b32.xlu2 %v8379_v34, %s5590_s8  ;;  %v1292_v63 = vmul.f32 1.442695, %v1263_v40 }
 0x4c4   : > { %1903 = vmatpush.bf16.xpose.msra.mxu0 %v1894_v2  ;;  %5364 = vrcp.f32 %v1333_v8  ;;  %v6786_v48 = vpop.f32.mrf.mxu3 }
 0x4c5   : > { %8380 = vst [vmem:[#allocation51_spill] sm:$0xff] %v6786_v48  ;;  %5366 = vpow2.f32 %v1294_v26 }
 0x4ca   : > { %v5365_v61 = vpop.eup %5364 }
 0x4cb   : > { %v1373_v59 = vmul.f32 %v5365_v61, %v6655_v10  ;;  %v6803_v9 = vpop.eup %5366 }
 0x4cc   : > { %v1513_v20 = vpop.f32.mrf.mxu3  ;;  %v1340_v12 = vsel %vm822_vm5, %v6803_v9, 0.0 }
 0x4cd   : > { %v1389_v24 = vpack.c.bf16 %v1373_v59, %v1373_v59  ;;  %v8388_v20 = vld [vmem:[#allocation49_spill] sm:$0xff] }
 0x4cf   : > { %v6795_v5 = vpop.permute.xlu1 %2068  ;;  %5011 = vmatmul.msk.bf16.vlgmr.msrb.gmra.mxu3 %vm822_vm5, %v1389_v24  ;;  %v1265_v24 = vsub.f32 %v8388_v20, %v6653_v23  ;;  %v8391_v20 = vld [vmem:[#allocation3_spill] sm:$0xff] }
 0x4d0   : > { %1877 = vmatpush.bf16.xpose.msrb.mxu3 %v1868_v13 }
 0x4d1   : > { %v1296_v26 = vmul.f32 1.442695, %v1265_v24 }
 0x4d3   : > { %5016 = vmatmul.msk.bf16.vlgmr.msrb.gmra.mxu0 %vm822_vm5, %v8383_v60 }
 0x4d4   : > { %2007 = vmatpush.bf16.xpose.msrb.mxu0 %v1998_v14 }
 0x4d6   : > { %v1991_v54 = vpop.permute.xlu0 %1990  ;;  %v1327_v10 = vpop.xlane.xlu2 %1326 }
 0x4d7   : > { %v6801_v25 = vpop.permute.xlu1 %2148  ;;  %5368 = vrcp.f32 %v1327_v10 }
 0x4dc   : > { %v6807_v42 = vpop.f32.mrf.mxu2 }
 0x4dd   : > { %8385 = vst [vmem:[#allocation45_spill] sm:$0xff] %v6807_v42  ;;  %v5369_v27 = vpop.eup %5368 }
 0x4de   : > { %v1371_v33 = vmul.f32 %v5369_v27, %v6672_v37  ;;  %1341 = vadd.xlane.f32.xlu0 %v1340_v12  ;;  %v6812_v2 = vpop.f32.mrf.mxu1  ;;  %v6814_v8 = vpop.permute.xlu0 %2174  ;;  %v8389_v37 = vld [vmem:[#allocation41_spill] sm:$0xff]  ;;  %v8390_v12 = vld [vmem:[#allocation35_spill] sm:$0xff] }
 0x4df   : > { %8386 = vst [vmem:[#allocation46_spill] sm:$0xff] %v6812_v2  ;;  %v6816_v61 = vpop.permute.xlu1 %2122  ;;  %v1330_v59 = vpop.xlane.xlu2 %1329 }
 0x4e0   : > { %v1387_v56 = vpack.c.bf16 %v1371_v33, %v1371_v33  ;;  %5370 = vrcp.f32 %v1330_v59 }
 0x4e1   : > { %5372 = vpow2.f32 %v1292_v63  ;;  %v1842_v63 = vsel %vm822_vm5, %v8390_v12, 0 }
 0x4e2   : > { %5009 = vmatmul.msk.bf16.vlgmr.msrb.gmra.mxu1 %vm822_vm5, %v1387_v56  ;;  %5374 = vpow2.f32 %v1296_v26 }
 0x4e3   : > { %1825 = vmatpush.bf16.xpose.msrb.mxu1 %v1816_v47  ;;  %5020 = vmatmul.msk.bf16.vlgmr.msra.gmra.mxu0 %vm822_vm5, %v8389_v37 }
 0x4e4   : > { %v1417_v0 = vpop.f32.mrf.mxu2 }
 0x4e6   : > { %v5371_v13 = vpop.eup %5370  ;;  %v1465_v14 = vpop.f32.mrf.mxu1 }
 0x4e7   : > { %v6825_v60 = vpop.permute.xlu0 %2146  ;;  %v1372_v10 = vmul.f32 %v5371_v13, %v6685_v52  ;;  %v2095_v6 = vpop.permute.xlu1 %2094 }
 0x4e8   : > { %v6828_v40 = vpop.permute.xlu2 %2016  ;;  %v6830_v27 = vpop.eup %5372 }
 0x4e9   : > { %v1388_v23 = vpack.c.bf16 %v1372_v10, %v1372_v10  ;;  %v1337_v33 = vsel %vm822_vm5, %v6830_v27, 0.0  ;;  %v6839_v56 = vpop.eup %5374 }
 0x4ea   : > { %v1343_v37 = vsel %vm822_vm5, %v6839_v56, 0.0 }
 0x4eb   : > { %5010 = vmatmul.msk.bf16.vlgmr.msrb.gmra.mxu2 %vm822_vm5, %v1388_v23 }
 0x4ec   : > { %1851 = vmatpush.bf16.xpose.msrb.mxu2 %v1842_v63  ;;  %1338 = vadd.xlane.f32.xlu2 %v1337_v33  ;;  %v8394_v63 = vld [vmem:[#allocation29_spill] sm:$0xff] }
 0x4ef   : > { %v6837_v59 = vpop.permute.xlu0 %2120  ;;  %v2388_v32 = vpop.permute.xlu1 %2387 }
 0x4f0   : > { %v2097_v52 = vpop.permute.xlu2 %2096  ;;  %v2393_v24 = vsel %vm1402_vm6, %v2388_v32, 0 }
 0x4f1   : > { %v2102_v47 = vsel %vm822_vm5, %v2097_v52, 0 }
 0x4f2   : > { %2111 = vmatpush.bf16.xpose.msra.mxu0 %v2102_v47  ;;  %2748 = vrot.lane.b32.xlu0 %v8391_v20, %s5590_s8  ;;  %v8401_v20 = vld [vmem:[#allocation37_spill] sm:$0xff] }
 0x4f3   : > { %5024 = vmatmul.msk.bf16.vlgmr.msrb.gmra.mxu0 %vm822_vm5, %v1991_v54  ;;  %v1946_v18 = vsel %vm822_vm5, %v8401_v20, 0 }
 0x4f4   : > { %1344 = vadd.xlane.f32.xlu2 %v1343_v37 }
 0x4f7   : > { %v6848_v0 = vpop.permute.xlu0 %2429 }
 0x4f8   : > { %v6864_v32 = vpop.permute.xlu2 %2172 }
 0x4fa   : > { %2402 = vmatpush.bf16.msrb.mxu0 %v2393_v24 }
 0x4fb   : > { %v6850_v13 = vpop.f32.mrf.mxu3 }
 0x4fc   : > { %8392 = vst [vmem:[#allocation38_spill] sm:$0xff] %v6850_v13 }
 0x4fd   : > { %v6852_v26 = vpop.f32.mrf.mxu0 }
 0x4fe   : > { %8393 = vst [vmem:[#allocation43_spill] sm:$0xff] %v6852_v26 }
 0x4ff   : > { %v6854_v14 = vpop.permute.xlu0 %2408 }
 0x503   : > { %v1585_v10 = vpop.f32.mrf.mxu3  ;;  %5028 = vmatmul.msk.bf16.vlgmr.msra.gmra.mxu0 %vm822_vm5, %v2095_v6  ;;  %v6868_v6 = vpop.permute.xlu2 %2450 }
 0x505   : > { %v1609_v23 = vpop.f32.mrf.mxu0 }
 0x507   : > { %v2472_v12 = vpop.permute.xlu0 %2471 }
 0x508   : > { %v2477_v54 = vsel %vm1402_vm6, %v2472_v12, 0 }
 0x509   : > { %2486 = vmatpush.bf16.msra.mxu0 %v2477_v54 }
 0x50b   : > { %v6872_v12 = vpop.permute.xlu2 %2513 }
 0x50c   : > { %2769 = vrot.lane.b32.xlu2 %v8394_v63, %s5591_s9 }
 0x50f   : > { %v6870_v10 = vpop.permute.xlu0 %2555 }
 0x513   : > { %v6876_v26 = vpop.permute.xlu2 %2492 }
 0x514   : > { %v6860_v33 = vpop.f32.mrf.mxu2 }
 0x515   : > { %8395 = vst [vmem:[#allocation34_spill] sm:$0xff] %v6860_v33 }
 0x516   : > { %v6862_v52 = vpop.f32.mrf.mxu1 }
 0x517   : > { %8396 = vst [vmem:[#allocation49_spill] sm:$0xff] %v6862_v52  ;;  %v6874_v54 = vpop.permute.xlu0 %2681 }
 0x51b   : > { %v6882_v52 = vpop.permute.xlu2 %2618 }
 0x51c   : > { %v1489_v47 = vpop.f32.mrf.mxu2 }
 0x51e   : > { %v1537_v24 = vpop.f32.mrf.mxu1 }
 0x51f   : > { %v6878_v13 = vpop.permute.xlu0 %2660 }
 0x524   : > { %v6866_v37 = vpop.f32.mrf.mxu2 }
 0x525   : > { %8397 = vst [vmem:[#allocation41_spill] sm:$0xff] %v6866_v37  ;;  %v6886_v37 = vpop.permute.xlu2 %2639 }
 0x527   : > { %v6884_v24 = vpop.permute.xlu0 %2771 }
 0x52c   : > { %v1561_v23 = vpop.f32.mrf.mxu2 }
 0x52d   : > { %v6894_v7 = vpop.permute.xlu2 %2794 }
 0x52e   : > { %8400 = vst [vmem:[#allocation60_spill] sm:$0xff] %v6894_v7 }
 0x540   : > { %v6880_v48 = vpop.f32.mrf.mxu0 }
 0x541   : > { %8398 = vst [vmem:[#allocation35_spill] sm:$0xff] %v6880_v48 }
 0x548   : > { %v1705_v47 = vpop.f32.mrf.mxu0 }
 0x550   : > { %v6888_v2 = vpop.f32.mrf.mxu0 }
 0x551   : > { %v2195_v23 = vsel %vm822_vm5, %v6888_v2, -inf  ;;  %v1342_v33 = vpop.xlane.xlu0 %1341 }
 0x552   : > { %2196 = vmax.xlane.f32.xlu0 %v2195_v23  ;;  %5376 = vrcp.f32 %v1342_v33  ;;  %v6892_v42 = vpop.f32.mrf.mxu3 }
 0x553   : > { %8399 = vst [vmem:[#allocation59_spill] sm:$0xff] %v6892_v42 }
 0x558   : > { %v5377_v48 = vpop.eup %5376  ;;  %v1803_v63 = vpop.f32.mrf.mxu0 }
 0x559   : > { %v1376_v47 = vmul.f32 %v5377_v48, %v6803_v9  ;;  %v8403_v9 = vld [vmem:[#allocation39_spill] sm:$0xff] }
 0x55a   : > { %v1681_v34 = vpop.f32.mrf.mxu3  ;;  %v1920_v20 = vsel %vm822_vm5, %v8403_v9, 0  ;;  %v2024_v9 = vsel %vm822_vm5, %v6776_v16, 0 }
 0x55b   : > { %v1392_v44 = vpack.c.bf16 %v1376_v47, %v1376_v47  ;;  %v8405_v47 = vld [vmem:[#allocation47_spill] sm:$0xff] }
 0x55d   : > { %5014 = vmatmul.msk.bf16.vlgmr.msra.gmra.mxu2 %vm822_vm5, %v1392_v44  ;;  %v8404_v44 = vld [vmem:[#allocation53_spill] sm:$0xff] }
 0x55e   : > { %1955 = vmatpush.bf16.xpose.msra.mxu2 %v1946_v18  ;;  %v2050_v18 = vsel %vm822_vm5, %v8404_v44, 0  ;;  %v8409_v44 = vld [vmem:[#allocation42_spill] sm:$0xff] }
 0x55f   : > { %v6900_v30 = vpop.f32.mrf.mxu1  ;;  %v1339_v23 = vpop.xlane.xlu2 %1338 }
 0x560   : > { %8402 = vst [vmem:[#allocation37_spill] sm:$0xff] %v6900_v30  ;;  %v6902_v33 = vpop.f32.mrf.mxu0  ;;  %5378 = vrcp.f32 %v1339_v23 }
 0x566   : > { %v5379_v42 = vpop.eup %5378 }
 0x567   : > { %v1375_v39 = vmul.f32 %v5379_v42, %v6830_v27  ;;  %v1633_v63 = vpop.f32.mrf.mxu1  ;;  %v1345_v11 = vpop.xlane.xlu2 %1344  ;;  %v8407_v27 = vld [vmem:[#allocation40_spill] sm:$0xff] }
 0x568   : > { %v1907_v48 = vpop.f32.mrf.mxu0  ;;  %5380 = vrcp.f32 %v1345_v11  ;;  %v1972_v63 = vsel %vm822_vm5, %v8407_v27, 0  ;;  %v8412_v27 = vld [vmem:[#allocation48_spill] sm:$0xff] }
 0x569   : > { %v1391_v34 = vpack.c.bf16 %v1375_v39, %v1375_v39 }
 0x56b   : > { %5013 = vmatmul.msk.bf16.vlgmr.msra.gmra.mxu1 %vm822_vm5, %v1391_v34 }
 0x56c   : > { %1929 = vmatpush.bf16.xpose.msra.mxu1 %v1920_v20  ;;  %v8408_v20 = vld [vmem:[#allocation50_spill] sm:$0xff] }
 0x56d   : > { %5018 = vmatmul.msk.bf16.vlgmr.msrb.gmra.mxu2 %vm822_vm5, %v8405_v47  ;;  %v8410_v47 = vld [vmem:[#allocation44_spill] sm:$0xff] }
 0x56e   : > { %v5381_v23 = vpop.eup %5380  ;;  %v6912_v30 = vpop.f32.mrf.mxu2  ;;  %2059 = vmatpush.bf16.xpose.msrb.mxu2 %v2050_v18 }
 0x56f   : > { %8406 = vst [vmem:[#allocation39_spill] sm:$0xff] %v6912_v30  ;;  %v1377_v42 = vmul.f32 %v5381_v23, %v6839_v56  ;;  %v2154_v56 = vsel %vm822_vm5, %v6801_v25, 0  ;;  %v2076_v23 = vsel %vm822_vm5, %v8410_v47, 0  ;;  %v2435_v25 = vsel %vm1402_vm6, %v6848_v0, 0 }
 0x570   : > { %v6915_v11 = vpop.f32.mrf.mxu0  ;;  %v2519_v0 = vsel %vm1402_vm6, %v6872_v12, 0  ;;  %v2207_v47 = vsel %vm822_vm5, %v6902_v33, -inf }
 0x571   : > { %v1393_v39 = vpack.c.bf16 %v1377_v42, %v1377_v42  ;;  %v8411_v42 = vld [vmem:[#allocation36_spill] sm:$0xff] }
 0x573   : > { %5015 = vmatmul.msk.bf16.vlgmr.msra.gmra.mxu3 %vm822_vm5, %v1393_v39  ;;  %v2128_v39 = vsel %vm822_vm5, %v6816_v61, 0  ;;  %v2414_v61 = vsel %vm1402_vm6, %v6854_v14, 0 }
 0x574   : > { %1981 = vmatpush.bf16.xpose.msra.mxu3 %v1972_v63  ;;  %v2180_v63 = vsel %vm822_vm5, %v6814_v8, 0  ;;  %v2498_v8 = vsel %vm1402_vm6, %v6876_v26, 0 }
 0x576   : > { %v1657_v48 = vpop.f32.mrf.mxu2 }
 0x577   : > { %v8413_v48 = vld [vmem:[#allocation52_spill] sm:$0xff] }
 0x578   : > { %v2011_v34 = vpop.f32.mrf.mxu0 }
 0x57b   : > { %5017 = vmatmul.msk.bf16.vlgmr.msrb.gmra.mxu1 %vm822_vm5, %v8408_v20 }
 0x57c   : > { %2033 = vmatpush.bf16.xpose.msrb.mxu1 %v2024_v9 }
 0x57d   : > { %5022 = vmatmul.msk.bf16.vlgmr.msra.gmra.mxu2 %vm822_vm5, %v8409_v44 }
 0x57e   : > { %2163 = vmatpush.bf16.xpose.msra.mxu2 %v2154_v56 }
 0x580   : > { %v6928_v18 = vpop.f32.mrf.mxu0 }
 0x583   : > { %5019 = vmatmul.msk.bf16.vlgmr.msrb.gmra.mxu3 %vm822_vm5, %v8411_v42 }
 0x584   : > { %2085 = vmatpush.bf16.xpose.msrb.mxu3 %v2076_v23 }
 0x588   : > { %v2115_v16 = vpop.f32.mrf.mxu0 }
 0x58b   : > { %5021 = vmatmul.msk.bf16.vlgmr.msra.gmra.mxu1 %vm822_vm5, %v8412_v27 }
 0x58c   : > { %2137 = vmatpush.bf16.xpose.msra.mxu1 %v2128_v39 }
 0x58d   : > { %5026 = vmatmul.msk.bf16.vlgmr.msrb.gmra.mxu2 %vm822_vm5, %v6791_v41  ;;  %v2456_v41 = vsel %vm1402_vm6, %v6868_v6, 0 }
 0x58e   : > { %2444 = vmatpush.bf16.msrb.mxu2 %v2435_v25 }
 0x593   : > { %5023 = vmatmul.msk.bf16.vlgmr.msra.gmra.mxu3 %vm822_vm5, %v8413_v48 }
 0x594   : > { %2189 = vmatpush.bf16.xpose.msra.mxu3 %v2180_v63 }
 0x59b   : > { %5025 = vmatmul.msk.bf16.vlgmr.msrb.gmra.mxu1 %vm822_vm5, %v6828_v40  ;;  %v2535_v40 = vpop.permute.xlu1 %2534 }
 0x59c   : > { %2423 = vmatpush.bf16.msrb.mxu1 %v2414_v61  ;;  %v2540_v14 = vsel %vm1402_vm6, %v2535_v40, 0 }
 0x59d   : > { %5030 = vmatmul.msk.bf16.vlgmr.msra.gmra.mxu2 %vm822_vm5, %v6825_v60 }
 0x59e   : > { %2528 = vmatpush.bf16.msra.mxu2 %v2519_v0 }
 0x5a3   : > { %5027 = vmatmul.msk.bf16.vlgmr.msrb.gmra.mxu3 %vm822_vm5, %v6795_v5 }
 0x5a4   : > { %2465 = vmatpush.bf16.msrb.mxu3 %v2456_v41  ;;  %v2219_v41 = vsel %vm822_vm5, %v6915_v11, -inf }
 0x5ab   : > { %5029 = vmatmul.msk.bf16.vlgmr.msra.gmra.mxu1 %vm822_vm5, %v6837_v59 }
 0x5ac   : > { %2507 = vmatpush.bf16.msra.mxu1 %v2498_v8 }
 0x5b3   : > { %5031 = vmatmul.msk.bf16.vlgmr.msra.gmra.mxu3 %vm822_vm5, %v6864_v32 }
 0x5b4   : > { %2549 = vmatpush.bf16.msra.mxu3 %v2540_v14 }
 0x5e0   : > { %v6965_v60 = vpop.f32.mrf.mxu2 }
 0x5e1   : > { %8414 = vst [vmem:[#allocation53_spill] sm:$0xff] %v6965_v60 }
 0x5e8   : > { %v6967_v6 = vpop.f32.mrf.mxu1  ;;  %v1753_v5 = vpop.f32.mrf.mxu2 }
 0x5e9   : > { %8415 = vst [vmem:[#allocation47_spill] sm:$0xff] %v6967_v6 }
 0x5f0   : > { %v1729_v12 = vpop.f32.mrf.mxu1  ;;  %v6969_v34 = vpop.f32.mrf.mxu2 }
 0x5f1   : > { %v2201_v27 = vsel %vm822_vm5, %v6969_v34, -inf }
 0x5f6   : > { %v6971_v26 = vpop.f32.mrf.mxu3 }
 0x5f7   : > { %8416 = vst [vmem:[#allocation40_spill] sm:$0xff] %v6971_v26 }
 0x5f8   : > { %v6973_v9 = vpop.f32.mrf.mxu1  ;;  %v1855_v59 = vpop.f32.mrf.mxu2 }
 0x5f9   : > { %v2198_v20 = vsel %vm822_vm5, %v6973_v9, -inf }
 0x5fa   : > { %2199 = vmax.xlane.f32.xlu2 %v2198_v20 }
 0x5fe   : > { %v1777_v56 = vpop.f32.mrf.mxu3 }
 0x600   : > { %v1829_v32 = vpop.f32.mrf.mxu1  ;;  %v6977_v44 = vpop.f32.mrf.mxu2 }
 0x601   : > { %v2213_v12 = vsel %vm822_vm5, %v6977_v44, -inf  ;;  %v7007_v32 = vpop.permute.xlu0 %2748 }
 0x602   : > { %2208 = vmax.xlane.f32.xlu2 %v2207_v47 }
 0x606   : > { %v6981_v23 = vpop.f32.mrf.mxu3 }
 0x607   : > { %v2204_v42 = vsel %vm822_vm5, %v6981_v23, -inf }
 0x608   : > { %v6985_v16 = vpop.f32.mrf.mxu1  ;;  %v1959_v39 = vpop.f32.mrf.mxu2  ;;  %2205 = vmax.xlane.f32.xlu1 %v2204_v42  ;;  %v2231_v42 = vsel %vm822_vm5, %v6928_v18, -inf }
 0x609   : > { %v2210_v63 = vsel %vm822_vm5, %v6985_v16, -inf }
 0x60a   : > { %2202 = vmax.xlane.f32.xlu2 %v2201_v27 }
 0x60e   : > { %v1881_v25 = vpop.f32.mrf.mxu3 }
 0x610   : > { %v1933_v48 = vpop.f32.mrf.mxu1  ;;  %v6991_v61 = vpop.f32.mrf.mxu2  ;;  %2211 = vmax.xlane.f32.xlu1 %v2210_v63 }
 0x611   : > { %v2197_v63 = vpop.xlane.xlu0 %2196 }
 0x612   : > { %v2243_v48 = vsub.f32 %v6888_v2, %v2197_v63  ;;  %v8417_v63 = vld [vmem:[#allocation23_spill] sm:$0xff] }
 0x616   : > { %v6993_v0 = vpop.f32.mrf.mxu3 }
 0x617   : > { %v2216_v8 = vsel %vm822_vm5, %v6993_v0, -inf }
 0x618   : > { %v6999_v40 = vpop.f32.mrf.mxu1  ;;  %v2063_v14 = vpop.f32.mrf.mxu2  ;;  %2220 = vmax.xlane.f32.xlu1 %v2219_v41  ;;  %2217 = vmax.xlane.f32.xlu0 %v2216_v8  ;;  %v2225_v8 = vsel %vm822_vm5, %v6991_v61, -inf }
 0x619   : > { %v2222_v59 = vsel %vm822_vm5, %v6999_v40, -inf }
 0x61e   : > { %v1985_v5 = vpop.f32.mrf.mxu3 }
 0x620   : > { %v2037_v20 = vpop.f32.mrf.mxu1  ;;  %v7005_v56 = vpop.f32.mrf.mxu2  ;;  %2214 = vmax.xlane.f32.xlu1 %v2213_v12  ;;  %2223 = vmax.xlane.f32.xlu0 %v2222_v59  ;;  %v2259_v12 = vmul.f32 1.442695, %v2243_v48 }
 0x621   : > { %v2237_v20 = vsel %vm822_vm5, %v7005_v56, -inf  ;;  %v7034_v48 = vpop.permute.xlu1 %2597 }
 0x622   : > { %5382 = vpow2.f32 %v2259_v12 }
 0x626   : > { %v7009_v47 = vpop.f32.mrf.mxu3 }
 0x627   : > { %v2228_v39 = vsel %vm822_vm5, %v7009_v47, -inf }
 0x628   : > { %v7015_v27 = vpop.f32.mrf.mxu1  ;;  %v2167_v25 = vpop.f32.mrf.mxu2  ;;  %2232 = vmax.xlane.f32.xlu0 %v2231_v42  ;;  %2229 = vmax.xlane.f32.xlu2 %v2228_v39 }
 0x629   : > { %v2234_v14 = vsel %vm822_vm5, %v7015_v27, -inf  ;;  %v7028_v42 = vpop.eup %5382 }
 0x62a   : > { %v2291_v25 = vsel %vm822_vm5, %v7028_v42, 0.0 }
 0x62e   : > { %v2089_v41 = vpop.f32.mrf.mxu3 }
 0x62f   : > { %v8418_v41 = vld [vmem:[#allocation30_spill] sm:$0xff] }
 0x630   : > { %v2141_v5 = vpop.f32.mrf.mxu1  ;;  %2226 = vmax.xlane.f32.xlu0 %v2225_v8  ;;  %2235 = vmax.xlane.f32.xlu2 %v2234_v14  ;;  %v7038_v8 = vpop.permute.xlu1 %2576 }
 0x631   : > { %v7040_v14 = vpop.permute.xlu2 %2769 }
 0x632   : > { %8419 = vst [vmem:[#allocation50_spill] sm:$0xff] %v7040_v14 }
 0x636   : > { %v7022_v59 = vpop.f32.mrf.mxu3 }
 0x637   : > { %v2240_v2 = vsel %vm822_vm5, %v7022_v59, -inf }
 0x638   : > { %2238 = vmax.xlane.f32.xlu2 %v2237_v20  ;;  %2241 = vmax.xlane.f32.xlu1 %v2240_v2  ;;  %v7042_v5 = vpop.permute.xlu1 %2702 }
 0x63e   : > { %v2193_v39 = vpop.f32.mrf.mxu3 }
 0x640   : > { %2292 = vadd.xlane.f32.xlu2 %v2291_v25  ;;  %v7045_v39 = vpop.permute.xlu1 %2725 }
 0x644   : > { %2723 = vrot.lane.b32.xlu0 %v8417_v63, %s5591_s9 }
 0x658   : > { %2746 = vrot.lane.b32.xlu2 %v8418_v41, %s5591_s9 }
 0x66d   : > { %v2200_v12 = vpop.xlane.xlu2 %2199 }
 0x66e   : > { %v2244_v20 = vsub.f32 %v6973_v9, %v2200_v12 }
 0x670   : > { %v2261_v2 = vmul.f32 1.442695, %v2244_v20 }
 0x672   : > { %5384 = vpow2.f32 %v2261_v2 }
 0x675   : > { %v2209_v25 = vpop.xlane.xlu2 %2208 }
 0x676   : > { %v2247_v60 = vsub.f32 %v6902_v33, %v2209_v25 }
 0x678   : > { %v7048_v26 = vpop.eup %5384  ;;  %v2267_v6 = vmul.f32 1.442695, %v2247_v60 }
 0x679   : > { %v2294_v30 = vsel %vm822_vm5, %v7048_v26, 0.0 }
 0x67a   : > { %5386 = vpow2.f32 %v2267_v6  ;;  %2295 = vadd.xlane.f32.xlu1 %v2294_v30 }
 0x67b   : > { %v2206_v63 = vpop.xlane.xlu1 %2205 }
 0x67c   : > { %v2246_v41 = vsub.f32 %v6981_v23, %v2206_v63 }
 0x67d   : > { %v2203_v14 = vpop.xlane.xlu2 %2202 }
 0x67e   : > { %v2265_v9 = vmul.f32 1.442695, %v2246_v41  ;;  %v2245_v12 = vsub.f32 %v6969_v34, %v2203_v14 }
 0x680   : > { %v7054_v20 = vpop.eup %5386  ;;  %5388 = vpow2.f32 %v2265_v9  ;;  %v2263_v2 = vmul.f32 1.442695, %v2245_v12 }
 0x681   : > { %v2303_v33 = vsel %vm822_vm5, %v7054_v20, 0.0 }
 0x682   : > { %5390 = vpow2.f32 %v2263_v2  ;;  %2304 = vadd.xlane.f32.xlu1 %v2303_v33 }
 0x683   : > { %v2212_v60 = vpop.xlane.xlu1 %2211 }
 0x684   : > { %v2248_v6 = vsub.f32 %v6985_v16, %v2212_v60 }
 0x686   : > { %v7059_v30 = vpop.eup %5388  ;;  %v2269_v25 = vmul.f32 1.442695, %v2248_v6 }
 0x687   : > { %v2300_v23 = vsel %vm822_vm5, %v7059_v30, 0.0 }
 0x688   : > { %v7063_v63 = vpop.eup %5390  ;;  %5392 = vpow2.f32 %v2269_v25  ;;  %2301 = vadd.xlane.f32.xlu0 %v2300_v23 }
 0x689   : > { %v2297_v34 = vsel %vm822_vm5, %v7063_v63, 0.0 }
 0x68a   : > { %2298 = vadd.xlane.f32.xlu1 %v2297_v34 }
 0x68b   : > { %v2221_v41 = vpop.xlane.xlu1 %2220  ;;  %v2218_v14 = vpop.xlane.xlu0 %2217 }
 0x68c   : > { %v2251_v9 = vsub.f32 %v6915_v11, %v2221_v41  ;;  %v2250_v2 = vsub.f32 %v6993_v0, %v2218_v14 }
 0x68e   : > { %v7068_v12 = vpop.eup %5392  ;;  %v2275_v16 = vmul.f32 1.442695, %v2251_v9  ;;  %v2273_v60 = vmul.f32 1.442695, %v2250_v2 }
 0x68f   : > { %v2306_v33 = vsel %vm822_vm5, %v7068_v12, 0.0 }
 0x690   : > { %5394 = vpow2.f32 %v2275_v16  ;;  %2307 = vadd.xlane.f32.xlu0 %v2306_v33 }
 0x691   : > { %5396 = vpow2.f32 %v2273_v60 }
 0x693   : > { %v2215_v6 = vpop.xlane.xlu1 %2214  ;;  %v2224_v25 = vpop.xlane.xlu0 %2223 }
 0x694   : > { %v2249_v23 = vsub.f32 %v6977_v44, %v2215_v6  ;;  %v2252_v11 = vsub.f32 %v6999_v40, %v2224_v25 }
 0x696   : > { %v7074_v34 = vpop.eup %5394  ;;  %v2271_v7 = vmul.f32 1.442695, %v2249_v23  ;;  %v2277_v0 = vmul.f32 1.442695, %v2252_v11 }
 0x697   : > { %v2315_v41 = vsel %vm822_vm5, %v7074_v34, 0.0  ;;  %v7079_v16 = vpop.eup %5396 }
 0x698   : > { %5398 = vpow2.f32 %v2271_v7  ;;  %2316 = vadd.xlane.f32.xlu2 %v2315_v41  ;;  %v2312_v33 = vsel %vm822_vm5, %v7079_v16, 0.0  ;;  %v8420_v7 = vld [vmem:[#allocation24_spill] sm:$0xff] }
 0x699   : > { %5400 = vpow2.f32 %v2277_v0 }
 0x69b   : > { %v2233_v14 = vpop.xlane.xlu0 %2232  ;;  %v2230_v9 = vpop.xlane.xlu2 %2229 }
 0x69e   : > { %v7081_v2 = vpop.eup %5398 }
 0x69f   : > { %v2309_v44 = vsel %vm822_vm5, %v7081_v2, 0.0  ;;  %v7091_v6 = vpop.eup %5400 }
 0x6a0   : > { %2310 = vadd.xlane.f32.xlu0 %v2309_v44  ;;  %2313 = vadd.xlane.f32.xlu2 %v2312_v33  ;;  %v2318_v11 = vsel %vm822_vm5, %v7091_v6, 0.0 }
 0x6a3   : > { %v2227_v40 = vpop.xlane.xlu0 %2226  ;;  %2792 = vrot.lane.b32.xlu1 %v8420_v7, %s5591_s9  ;;  %v7089_v60 = vpop.xlane.xlu2 %2235  ;;  %v8421_v7 = vld [vmem:[#allocation4_spill] sm:$0xff] }
 0x6a4   : > { %v2253_v25 = vsub.f32 %v6991_v61, %v2227_v40  ;;  %v2255_v40 = vsub.f32 %v6928_v18, %v2233_v14 }
 0x6a6   : > { %v2279_v23 = vmul.f32 1.442695, %v2253_v25  ;;  %v2283_v55 = vmul.f32 1.442695, %v2255_v40 }
 0x6a8   : > { %5402 = vpow2.f32 %v2279_v23  ;;  %2319 = vadd.xlane.f32.xlu0 %v2318_v11  ;;  %v2561_v11 = vsel %vm1402_vm6, %v6870_v10, 0  ;;  %v8425_v10 = vld [vmem:[#allocation25_spill] sm:$0xff] }
 0x6ab   : > { %v7096_v41 = vpop.xlane.xlu2 %2238 }
 0x6ae   : > { %v7098_v0 = vpop.eup %5402 }
 0x6af   : > { %v2321_v44 = vsel %vm822_vm5, %v7098_v0, 0.0 }
 0x6b0   : > { %2322 = vadd.xlane.f32.xlu0 %v2321_v44  ;;  %v8422_v44 = vld [vmem:[#allocation31_spill] sm:$0xff] }
 0x6b3   : > { %v2293_v33 = vpop.xlane.xlu2 %2292 }
 0x6b4   : > { %5404 = vrcp.f32 %v2293_v33  ;;  %v2254_v33 = vsub.f32 %v7009_v47, %v2230_v9  ;;  %v8427_v9 = vld [vmem:[#allocation33_spill] sm:$0xff] }
 0x6b5   : > { %5406 = vpow2.f32 %v2283_v55  ;;  %v8426_v55 = vld [vmem:[#allocation8_spill] sm:$0xff] }
 0x6b6   : > { %v2281_v18 = vmul.f32 1.442695, %v2254_v33  ;;  %v8429_v33 = vld [vmem:[#allocation13_spill] sm:$0xff] }
 0x6b8   : > { %2817 = vrot.lane.b32.xlu2 %v8421_v7, %s5590_s8  ;;  %v8423_v7 = vld [vmem:[#allocation21_spill] sm:$0xff]  ;;  %5408 = vpow2.f32 %v2281_v18  ;;  %v7148_v18 = vpop.permute.xlu0 %2723 }
 0x6ba   : > { %v5405_v61 = vpop.eup %5404 }
 0x6bb   : > { %v2355_v25 = vmul.f32 %v5405_v61, %v7028_v42  ;;  %v8424_v42 = vld [vmem:[#allocation17_spill] sm:$0xff]  ;;  %v7116_v14 = vpop.eup %5406 }
 0x6bc   : > { %v2327_v61 = vsel %vm822_vm5, %v7116_v14, 0.0 }
 0x6bd   : > { %v2371_v23 = vpack.c.bf16 %v2355_v25, %v2355_v25  ;;  %v8428_v25 = vld [vmem:[#allocation5_spill] sm:$0xff] }
 0x6be   : > { %v7124_v47 = vpop.eup %5408 }
 0x6bf   : > { %5032 = vmatmul.msk.bf16.vlgmr.msrb.gmra.mxu0 %vm822_vm5, %v2371_v23  ;;  %v2324_v40 = vsel %vm822_vm5, %v7124_v47, 0.0  ;;  %v7138_v23 = vpop.xlane.xlu1 %2241 }
 0x6c0   : > { %2570 = vmatpush.bf16.msrb.mxu0 %v2561_v11  ;;  %2884 = vrot.lane.b32.xlu2 %v8422_v44, %s5591_s9 }
 0x6c4   : > { %2886 = vrot.lane.b32.xlu0 %v8423_v7, %s5590_s8 }
 0x6c8   : > { %2955 = vrot.lane.b32.xlu2 %v8424_v42, %s5590_s8 }
 0x6cc   : > { %2861 = vrot.lane.b32.xlu0 %v8425_v10, %s5591_s9 }
 0x6cd   : > { %2328 = vadd.xlane.f32.xlu1 %v2327_v61 }
 0x6d0   : > { %2932 = vrot.lane.b32.xlu2 %v8426_v55, %s5590_s8 }
 0x6d4   : > { %2838 = vrot.lane.b32.xlu0 %v8427_v9, %s5591_s9 }
 0x6d5   : > { %2325 = vadd.xlane.f32.xlu1 %v2324_v40 }
 0x6d8   : > { %2907 = vrot.lane.b32.xlu2 %v6679_v46, %s5591_s9 }
 0x6dc   : > { %2909 = vrot.lane.b32.xlu0 %v8428_v25, %s5590_s8 }
 0x6e0   : > { %3070 = vrot.lane.b32.xlu2 %v6260_v35, %s5590_s8 }
 0x6e4   : > { %2976 = vrot.lane.b32.xlu0 %v6666_v51, %s5591_s9 }
 0x6e8   : > { %3045 = vrot.lane.b32.xlu2 %v6695_v43, %s5591_s9 }
 0x6ec   : > { %3047 = vrot.lane.b32.xlu0 %v6251_v29, %s5590_s8  ;;  %v8430_v29 = vld [vmem:[#allocation6_spill] sm:$0xff] }
 0x6ed   : > { %v2296_v11 = vpop.xlane.xlu1 %2295 }
 0x6ee   : > { %5410 = vrcp.f32 %v2296_v11  ;;  %2863 = vrot.lane.b32.xlu1 %v8429_v33, %s5590_s8 }
 0x6f0   : > { %3022 = vrot.lane.b32.xlu2 %v6708_v31, %s5591_s9  ;;  %v2582_v31 = vsel %vm1402_vm6, %v7038_v8, 0  ;;  %v2645_v8 = vsel %vm1402_vm6, %v6886_v37, 0  ;;  %v2624_v37 = vsel %vm1402_vm6, %v6882_v52, 0  ;;  %v2666_v52 = vsel %vm1402_vm6, %v6878_v13, 0 }
 0x6f1   : > { %v2731_v13 = vsel %vm822_vm5, %v7045_v39, 0 }
 0x6f4   : > { %v5411_v61 = vpop.eup %5410  ;;  %3024 = vrot.lane.b32.xlu0 %v6191_v36, %s5590_s8 }
 0x6f5   : > { %v2356_v40 = vmul.f32 %v5411_v61, %v7048_v26  ;;  %v2305_v51 = vpop.xlane.xlu1 %2304  ;;  %v8431_v61 = vld [vmem:[#allocation28_spill] sm:$0xff] }
 0x6f6   : > { %5412 = vrcp.f32 %v2305_v51  ;;  %2840 = vrot.lane.b32.xlu1 %v8430_v29, %s5590_s8 }
 0x6f7   : > { %v2372_v11 = vpack.c.bf16 %v2356_v40, %v2356_v40 }
 0x6f8   : > { %3283 = vrot.lane.b32.xlu2 %v6151_v62, %s5592_s10 }
 0x6f9   : > { %5033 = vmatmul.msk.bf16.vlgmr.msrb.gmra.mxu1 %vm822_vm5, %v2372_v11  ;;  %v7168_v11 = vpop.permute.xlu2 %2746 }
 0x6fa   : > { %2591 = vmatpush.bf16.msrb.mxu1 %v2582_v31 }
 0x6fb   : > { %v2302_v46 = vpop.xlane.xlu0 %2301 }
 0x6fc   : > { %v5413_v36 = vpop.eup %5412  ;;  %5414 = vrcp.f32 %v2302_v46  ;;  %2999 = vrot.lane.b32.xlu0 %v6697_v38, %s5591_s9 }
 0x6fd   : > { %v2359_v51 = vmul.f32 %v5413_v36, %v7054_v20  ;;  %v2299_v26 = vpop.xlane.xlu1 %2298 }
 0x6fe   : > { %5416 = vrcp.f32 %v2299_v26  ;;  %2815 = vrot.lane.b32.xlu1 %v8431_v61, %s5591_s9  ;;  %v8432_v26 = vld [vmem:[#allocation14_spill] sm:$0xff] }
 0x6ff   : > { %v2375_v40 = vpack.c.bf16 %v2359_v51, %v2359_v51 }
 0x701   : > { %5036 = vmatmul.msk.bf16.vlgmr.msra.gmra.mxu0 %vm822_vm5, %v2375_v40  ;;  %v2603_v40 = vsel %vm1402_vm6, %v7034_v48, 0 }
 0x702   : > { %v5415_v31 = vpop.eup %5414  ;;  %2654 = vmatpush.bf16.msra.mxu0 %v2645_v8  ;;  %v2256_v8 = vsub.f32 %v7015_v27, %v7089_v60  ;;  %v2257_v60 = vsub.f32 %v7005_v56, %v7096_v41  ;;  %v2687_v56 = vsel %vm1402_vm6, %v6874_v54, 0 }
 0x703   : > { %v2358_v46 = vmul.f32 %v5415_v31, %v7059_v30  ;;  %v2308_v38 = vpop.xlane.xlu0 %2307 }
 0x704   : > { %v5417_v62 = vpop.eup %5416  ;;  %5418 = vrcp.f32 %v2308_v38  ;;  %v2285_v31 = vmul.f32 1.442695, %v2256_v8 }
 0x705   : > { %v2374_v36 = vpack.c.bf16 %v2358_v46, %v2358_v46  ;;  %v2357_v20 = vmul.f32 %v5417_v62, %v7063_v63 }
 0x706   : > { %2978 = vrot.lane.b32.xlu1 %v8432_v26, %s5590_s8 }
 0x707   : > { %v2373_v51 = vpack.c.bf16 %v2357_v20, %v2357_v20  ;;  %5035 = vmatmul.msk.bf16.vlgmr.msrb.gmra.mxu3 %vm822_vm5, %v2374_v36 }
 0x708   : > { %2633 = vmatpush.bf16.msrb.mxu3 %v2624_v37 }
 0x709   : > { %5034 = vmatmul.msk.bf16.vlgmr.msrb.gmra.mxu2 %vm822_vm5, %v2373_v51 }
 0x70a   : > { %v5419_v30 = vpop.eup %5418  ;;  %2612 = vmatpush.bf16.msrb.mxu2 %v2603_v40 }
 0x70b   : > { %v2360_v38 = vmul.f32 %v5419_v30, %v7068_v12  ;;  %v2317_v62 = vpop.xlane.xlu2 %2316  ;;  %v2258_v12 = vsub.f32 %v7022_v59, %v7138_v23  ;;  %v2287_v23 = vmul.f32 1.442695, %v2257_v60 }
 0x70c   : > { %5420 = vrcp.f32 %v2317_v62 }
 0x70d   : > { %v2376_v63 = vpack.c.bf16 %v2360_v38, %v2360_v38  ;;  %v2289_v27 = vmul.f32 1.442695, %v2258_v12 }
 0x70e   : > { %2953 = vrot.lane.b32.xlu1 %v6638_v1, %s5591_s9 }
 0x70f   : > { %5037 = vmatmul.msk.bf16.vlgmr.msra.gmra.mxu1 %vm822_vm5, %v2376_v63 }
 0x710   : > { %2675 = vmatpush.bf16.msra.mxu1 %v2666_v52 }
 0x712   : > { %v5421_v48 = vpop.eup %5420 }
 0x713   : > { %v2363_v46 = vmul.f32 %v5421_v48, %v7074_v34  ;;  %v2311_v36 = vpop.xlane.xlu0 %2310  ;;  %v2314_v20 = vpop.xlane.xlu2 %2313 }
 0x714   : > { %5422 = vrcp.f32 %v2311_v36 }
 0x715   : > { %v2379_v37 = vpack.c.bf16 %v2363_v46, %v2363_v46  ;;  %5424 = vrcp.f32 %v2314_v20  ;;  %v2777_v20 = vsel %vm822_vm5, %v6884_v24, 0 }
 0x716   : > { %2930 = vrot.lane.b32.xlu1 %v6719_v3, %s5591_s9  ;;  %5426 = vpow2.f32 %v2285_v31  ;;  %v2754_v31 = vsel %vm822_vm5, %v7007_v32, 0  ;;  %v7234_v32 = vpop.permute.xlu1 %2792 }
 0x717   : > { %5040 = vmatmul.msk.bf16.vlgmr.msrb.gmra.mxu0 %vm822_vm5, %v2379_v37  ;;  %5428 = vpow2.f32 %v2289_v27 }
 0x718   : > { %2740 = vmatpush.bf16.xpose.msrb.mxu0 %v2731_v13 }
 0x71a   : > { %v5423_v59 = vpop.eup %5422 }
 0x71b   : > { %v5425_v34 = vpop.eup %5424  ;;  %v2361_v51 = vmul.f32 %v5423_v59, %v7081_v2  ;;  %v2320_v40 = vpop.xlane.xlu0 %2319  ;;  %v2708_v2 = vsel %vm1402_vm6, %v7042_v5, 0 }
 0x71c   : > { %v2362_v30 = vmul.f32 %v5425_v34, %v7079_v16  ;;  %5430 = vrcp.f32 %v2320_v40  ;;  %v7200_v38 = vpop.eup %5426  ;;  %v2818_v13 = vpop.permute.xlu2 %2817 }
 0x71d   : > { %v2377_v39 = vpack.c.bf16 %v2361_v51, %v2361_v51  ;;  %5432 = vpow2.f32 %v2287_v23  ;;  %v2330_v16 = vsel %vm822_vm5, %v7200_v38, 0.0  ;;  %v7212_v41 = vpop.eup %5428 }
 0x71e   : > { %v2378_v62 = vpack.c.bf16 %v2362_v30, %v2362_v30  ;;  %3001 = vrot.lane.b32.xlu1 %v6101_v50, %s5590_s8  ;;  %v2336_v5 = vsel %vm822_vm5, %v7212_v41, 0.0  ;;  %v2823_v30 = vsel %vm822_vm5, %v2818_v13, 0 }
 0x71f   : > { %5038 = vmatmul.msk.bf16.vlgmr.msra.gmra.mxu2 %vm822_vm5, %v2377_v39 }
 0x720   : > { %5039 = vmatmul.msk.bf16.vlgmr.msra.gmra.mxu3 %vm822_vm5, %v2378_v62  ;;  %2696 = vmatpush.bf16.msra.mxu2 %v2687_v56 }
 0x721   : > { %2717 = vmatpush.bf16.msra.mxu3 %v2708_v2  ;;  %2331 = vadd.xlane.f32.xlu2 %v2330_v16  ;;  %v8434_v16 = vld [vmem:[#allocation27_spill] sm:$0xff] }
 0x722   : > { %v5431_v63 = vpop.eup %5430 }
 0x723   : > { %v2364_v52 = vmul.f32 %v5431_v63, %v7091_v6  ;;  %v2323_v54 = vpop.xlane.xlu0 %2322  ;;  %v7215_v8 = vpop.eup %5432  ;;  %v8435_v63 = vld [vmem:[#allocation60_spill] sm:$0xff] }
 0x724   : > { %5434 = vrcp.f32 %v2323_v54  ;;  %v2333_v6 = vsel %vm822_vm5, %v7215_v8, 0.0  ;;  %v7252_v34 = vpop.permute.xlu2 %2884 }
 0x725   : > { %v2380_v48 = vpack.c.bf16 %v2364_v52, %v2364_v52  ;;  %v2800_v52 = vsel %vm822_vm5, %v8435_v63, 0 }
 0x726   : > { %2337 = vadd.xlane.f32.xlu0 %v2336_v5  ;;  %3068 = vrot.lane.b32.xlu1 %v6738_v15, %s5591_s9 }
 0x727   : > { %5041 = vmatmul.msk.bf16.vlgmr.msrb.gmra.mxu1 %vm822_vm5, %v2380_v48  ;;  %v8436_v48 = vld [vmem:[#allocation26_spill] sm:$0xff] }
 0x728   : > { %2763 = vmatpush.bf16.xpose.msrb.mxu1 %v2754_v31 }
 0x729   : > { %2334 = vadd.xlane.f32.xlu2 %v2333_v6 }
 0x72a   : > { %v5435_v12 = vpop.eup %5434 }
 0x72b   : > { %v2365_v46 = vmul.f32 %v5435_v12, %v7098_v0  ;;  %v8438_v12 = vld [vmem:[#allocation32_spill] sm:$0xff] }
 0x72c   : > { %v7266_v56 = vpop.permute.xlu2 %2955 }
 0x72d   : > { %v2381_v36 = vpack.c.bf16 %v2365_v46, %v2365_v46 }
 0x72e   : > { %3304 = vrot.lane.b32.xlu1 %v6149_v22, %s5592_s10 }
 0x72f   : > { %5042 = vmatmul.msk.bf16.vlgmr.msrb.gmra.mxu2 %vm822_vm5, %v2381_v36 }
 0x730   : > { %2786 = vmatpush.bf16.xpose.msrb.mxu2 %v2777_v20 }
 0x734   : > { %v7279_v5 = vpop.permute.xlu2 %2932 }
 0x736   : > { %3367 = vrot.lane.b32.xlu1 %v6147_v19, %s5592_s10  ;;  %v7238_v37 = vpop.permute.xlu0 %2886 }
 0x73a   : > { %3325 = vrot.lane.b32.xlu0 %v6227_v45, %s5592_s10 }
 0x73c   : > { %v7240_v0 = vpop.f32.mrf.mxu0  ;;  %v2908_v46 = vpop.permute.xlu2 %2907 }
 0x73d   : > { %8433 = vst [vmem:[#allocation42_spill] sm:$0xff] %v7240_v0 }
 0x73e   : > { %3430 = vrot.lane.b32.xlu1 %v6309_v53, %s5592_s10  ;;  %v7248_v60 = vpop.permute.xlu0 %2861 }
 0x740   : > { %v2329_v24 = vpop.xlane.xlu1 %2328 }
 0x741   : > { %5436 = vrcp.f32 %v2329_v24  ;;  %3346 = vrot.lane.b32.xlu2 %v6294_v4, %s5592_s10 }
 0x742   : > { %3409 = vrot.lane.b32.xlu0 %v6193_v57, %s5592_s10 }
 0x744   : > { %v2406_v27 = vpop.f32.mrf.mxu0  ;;  %v7288_v20 = vpop.permute.xlu2 %3070 }
 0x746   : > { %3472 = vrot.lane.b32.xlu1 %v6171_v28, %s5592_s10  ;;  %v7263_v62 = vpop.permute.xlu0 %2838 }
 0x747   : > { %v5437_v59 = vpop.eup %5436 }
 0x748   : > { %v2367_v23 = vmul.f32 %v5437_v59, %v7116_v14  ;;  %v2326_v51 = vpop.xlane.xlu1 %2325 }
 0x749   : > { %5438 = vrcp.f32 %v2326_v51  ;;  %3388 = vrot.lane.b32.xlu2 %v6195_v17, %s5592_s10 }
 0x74a   : > { %v2383_v40 = vpack.c.bf16 %v2367_v23, %v2367_v23  ;;  %3451 = vrot.lane.b32.xlu0 %v6175_v49, %s5592_s10 }
 0x74c   : > { %5044 = vmatmul.msk.bf16.vlgmr.msra.gmra.mxu0 %vm822_vm5, %v2383_v40  ;;  %v7299_v23 = vpop.permute.xlu2 %3045 }
 0x74d   : > { %2832 = vmatpush.bf16.xpose.msra.mxu0 %v2823_v30 }
 0x74e   : > { %3535 = vrot.lane.b32.xlu1 %v8377_v58, %s5592_s10  ;;  %v2910_v54 = vpop.permute.xlu0 %2909 }
 0x74f   : > { %v5439_v39 = vpop.eup %5438  ;;  %v2915_v31 = vsel %vm822_vm5, %v2910_v54, 0 }
 0x750   : > { %v2366_v14 = vmul.f32 %v5439_v39, %v7124_v47  ;;  %v8437_v47 = vld [vmem:[#allocation20_spill] sm:$0xff] }
 0x751   : > { %3493 = vrot.lane.b32.xlu2 %v6249_v21, %s5592_s10 }
 0x752   : > { %v2382_v2 = vpack.c.bf16 %v2366_v14, %v2366_v14  ;;  %3514 = vrot.lane.b32.xlu0 %v8434_v16, %s5592_s10 }
 0x754   : > { %5043 = vmatmul.msk.bf16.vlgmr.msrb.gmra.mxu3 %vm822_vm5, %v2382_v2  ;;  %v7308_v14 = vpop.permute.xlu2 %3022 }
 0x755   : > { %2809 = vmatpush.bf16.xpose.msrb.mxu3 %v2800_v52 }
 0x756   : > { %v7291_v24 = vpop.permute.xlu0 %2976 }
 0x759   : > { %3556 = vrot.lane.b32.xlu2 %v8436_v48, %s5592_s10 }
 0x75a   : > { %3577 = vrot.lane.b32.xlu0 %v8437_v47, %s5592_s10 }
 0x75c   : > { %5048 = vmatmul.msk.bf16.vlgmr.msrb.gmra.mxu0 %vm822_vm5, %v7148_v18 }
 0x75d   : > { %2924 = vmatpush.bf16.xpose.msrb.mxu0 %v2915_v31 }
 0x75e   : > { %v7301_v51 = vpop.permute.xlu0 %3047 }
 0x760   : > { %v7284_v6 = vpop.permute.xlu1 %2863 }
 0x761   : > { %3598 = vrot.lane.b32.xlu2 %v8438_v12, %s5592_s10 }
 0x766   : > { %v7310_v63 = vpop.permute.xlu0 %3024 }
 0x768   : > { %v2841_v36 = vpop.permute.xlu1 %2840 }
 0x76e   : > { %v3000_v12 = vpop.permute.xlu0 %2999 }
 0x770   : > { %v2816_v13 = vpop.permute.xlu1 %2815 }
 0x771   : > { %5052 = vmatmul.msk.bf16.vlgmr.msra.gmra.mxu0 %vm822_vm5, %v2816_v13 }
 0x776   : > { %v7293_v27 = vpop.f32.mrf.mxu1 }
 0x777   : > { %8439 = vst [vmem:[#allocation44_spill] sm:$0xff] %v7293_v27 }
 0x778   : > { %v7297_v59 = vpop.permute.xlu1 %2978 }
 0x77e   : > { %v2427_v40 = vpop.f32.mrf.mxu1  ;;  %v7303_v30 = vpop.f32.mrf.mxu0 }
 0x77f   : > { %8440 = vst [vmem:[#allocation36_spill] sm:$0xff] %v7303_v30  ;;  %v3284_v40 = vpop.permute.xlu2 %3283 }
 0x780   : > { %v7305_v39 = vpop.permute.xlu1 %2953  ;;  %v3289_v0 = vsel %vm1402_vm6, %v3284_v40, 0 }
 0x781   : > { %5056 = vmatmul.msk.bf16.vlgmr.msrb.gmra.mxu0 %vm822_vm5, %v2908_v46 }
 0x786   : > { %v2490_v2 = vpop.f32.mrf.mxu0 }
 0x788   : > { %v7312_v52 = vpop.permute.xlu1 %2930 }
 0x78a   : > { %v7314_v54 = vpop.f32.mrf.mxu3 }
 0x78b   : > { %8441 = vst [vmem:[#allocation48_spill] sm:$0xff] %v7314_v54 }
 0x78c   : > { %v7316_v31 = vpop.f32.mrf.mxu2  ;;  %v7318_v13 = vpop.f32.mrf.mxu1 }
 0x78d   : > { %8442 = vst [vmem:[#allocation52_spill] sm:$0xff] %v7316_v31 }
 0x78e   : > { %8443 = vst [vmem:[#allocation31_spill] sm:$0xff] %v7318_v13 }
 0x790   : > { %v3002_v48 = vpop.permute.xlu1 %3001 }
 0x791   : > { %v3007_v2 = vsel %vm822_vm5, %v3002_v48, 0 }
 0x792   : > { %v2469_v27 = vpop.f32.mrf.mxu3  ;;  %3016 = vmatpush.bf16.xpose.msra.mxu0 %v3007_v2 }
 0x794   : > { %v2448_v47 = vpop.f32.mrf.mxu2  ;;  %v2511_v58 = vpop.f32.mrf.mxu1 }
 0x795   : > { %v7326_v16 = vpop.f32.mrf.mxu0  ;;  %v2332_v49 = vpop.xlane.xlu2 %2331  ;;  %v2846_v58 = vsel %vm822_vm5, %v2841_v36, 0 }
 0x796   : > { %8444 = vst [vmem:[#allocation21_spill] sm:$0xff] %v7326_v16  ;;  %5440 = vrcp.f32 %v2332_v49 }
 0x798   : > { %v7328_v21 = vpop.permute.xlu1 %3068 }
 0x799   : > { %v2338_v18 = vpop.xlane.xlu0 %2337  ;;  %5060 = vmatmul.msk.bf16.vlgmr.msra.gmra.mxu0 %vm822_vm5, %v3000_v12 }
 0x79a   : > { %3298 = vmatpush.bf16.msrb.mxu0 %v3289_v0  ;;  %5442 = vrcp.f32 %v2338_v18 }
 0x79c   : > { %v5441_v46 = vpop.eup %5440 }
 0x79d   : > { %v2368_v48 = vmul.f32 %v5441_v46, %v7200_v38  ;;  %v2574_v30 = vpop.f32.mrf.mxu0  ;;  %v2335_v40 = vpop.xlane.xlu2 %2334  ;;  %v2892_v46 = vsel %vm822_vm5, %v7238_v37, 0 }
 0x79e   : > { %5444 = vrcp.f32 %v2335_v40 }
 0x79f   : > { %v2384_v27 = vpack.c.bf16 %v2368_v48, %v2368_v48 }
 0x7a0   : > { %v5443_v0 = vpop.eup %5442  ;;  %v3305_v47 = vpop.permute.xlu1 %3304 }
 0x7a1   : > { %v2370_v2 = vmul.f32 %v5443_v0, %v7212_v41  ;;  %5045 = vmatmul.msk.bf16.vlgmr.msra.gmra.mxu1 %vm822_vm5, %v2384_v27  ;;  %v2869_v27 = vsel %vm822_vm5, %v7284_v6, 0  ;;  %v2984_v6 = vsel %vm822_vm5, %v7297_v59, 0  ;;  %v3076_v59 = vsel %vm822_vm5, %v7288_v20, 0 }
 0x7a2   : > { %2855 = vmatpush.bf16.xpose.msra.mxu1 %v2846_v58  ;;  %v7335_v49 = vpop.f32.mrf.mxu2 }
 0x7a3   : > { %8445 = vst [vmem:[#allocation17_spill] sm:$0xff] %v7335_v49  ;;  %v2386_v12 = vpack.c.bf16 %v2370_v2, %v2370_v2  ;;  %v7337_v18 = vpop.f32.mrf.mxu3 }
 0x7a4   : > { %8446 = vst [vmem:[#allocation25_spill] sm:$0xff] %v7337_v18  ;;  %v5445_v13 = vpop.eup %5444  ;;  %v7341_v30 = vpop.f32.mrf.mxu1 }
 0x7a5   : > { %8447 = vst [vmem:[#allocation8_spill] sm:$0xff] %v7341_v30  ;;  %v2369_v36 = vmul.f32 %v5445_v13, %v7215_v8  ;;  %5047 = vmatmul.msk.bf16.vlgmr.msra.gmra.mxu3 %vm822_vm5, %v2386_v12  ;;  %v2938_v13 = vsel %vm822_vm5, %v7279_v5, 0  ;;  %v2961_v12 = vsel %vm822_vm5, %v7266_v56, 0  ;;  %v3347_v20 = vpop.permute.xlu2 %3346 }
 0x7a6   : > { %2901 = vmatpush.bf16.xpose.msra.mxu3 %v2892_v46  ;;  %v8449_v46 = vld [vmem:[#allocation50_spill] sm:$0xff] }
 0x7a7   : > { %v2385_v48 = vpack.c.bf16 %v2369_v36, %v2369_v36 }
 0x7a8   : > { %v3368_v40 = vpop.permute.xlu1 %3367 }
 0x7a9   : > { %v3373_v0 = vsel %vm1402_vm6, %v3368_v40, 0  ;;  %5046 = vmatmul.msk.bf16.vlgmr.msra.gmra.mxu2 %vm822_vm5, %v2385_v48 }
 0x7aa   : > { %2878 = vmatpush.bf16.xpose.msra.mxu2 %v2869_v27  ;;  %v2532_v58 = vpop.f32.mrf.mxu2  ;;  %3382 = vmatpush.bf16.msra.mxu0 %v3373_v0 }
 0x7ab   : > { %v2553_v37 = vpop.f32.mrf.mxu3 }
 0x7ac   : > { %v2595_v8 = vpop.f32.mrf.mxu1 }
 0x7b0   : > { %v3431_v58 = vpop.permute.xlu1 %3430 }
 0x7b1   : > { %5049 = vmatmul.msk.bf16.vlgmr.msrb.gmra.mxu1 %vm822_vm5, %v7168_v11  ;;  %v3030_v11 = vsel %vm822_vm5, %v7310_v63, 0  ;;  %v3310_v63 = vsel %vm1402_vm6, %v3305_v47, 0  ;;  %v3436_v37 = vsel %vm1402_vm6, %v3431_v58, 0 }
 0x7b2   : > { %2947 = vmatpush.bf16.xpose.msrb.mxu1 %v2938_v13  ;;  %v7357_v2 = vpop.f32.mrf.mxu2 }
 0x7b3   : > { %8448 = vst [vmem:[#allocation33_spill] sm:$0xff] %v7357_v2 }
 0x7b5   : > { %5051 = vmatmul.msk.bf16.vlgmr.msrb.gmra.mxu3 %vm822_vm5, %v7234_v32  ;;  %v3053_v32 = vsel %vm822_vm5, %v7301_v51, 0  ;;  %v3326_v51 = vpop.permute.xlu0 %3325 }
 0x7b6   : > { %2993 = vmatpush.bf16.xpose.msrb.mxu3 %v2984_v6  ;;  %v3331_v47 = vsel %vm1402_vm6, %v3326_v51, 0 }
 0x7b9   : > { %5050 = vmatmul.msk.bf16.vlgmr.msrb.gmra.mxu2 %vm822_vm5, %v8449_v46 }
 0x7ba   : > { %2970 = vmatpush.bf16.xpose.msrb.mxu2 %v2961_v12  ;;  %v2616_v5 = vpop.f32.mrf.mxu2 }
 0x7c1   : > { %5053 = vmatmul.msk.bf16.vlgmr.msra.gmra.mxu1 %vm822_vm5, %v7263_v62 }
 0x7c2   : > { %3039 = vmatpush.bf16.xpose.msra.mxu1 %v3030_v11 }
 0x7c5   : > { %5055 = vmatmul.msk.bf16.vlgmr.msra.gmra.mxu3 %vm822_vm5, %v7252_v34  ;;  %v3352_v34 = vsel %vm1402_vm6, %v3347_v20, 0 }
 0x7c6   : > { %3085 = vmatpush.bf16.xpose.msra.mxu3 %v3076_v59 }
 0x7c9   : > { %5054 = vmatmul.msk.bf16.vlgmr.msra.gmra.mxu2 %vm822_vm5, %v7248_v60  ;;  %v7379_v56 = vpop.f32.mrf.mxu0 }
 0x7ca   : > { %8450 = vst [vmem:[#allocation5_spill] sm:$0xff] %v7379_v56  ;;  %3062 = vmatpush.bf16.xpose.msra.mxu2 %v3053_v32 }
 0x7d1   : > { %5057 = vmatmul.msk.bf16.vlgmr.msrb.gmra.mxu1 %vm822_vm5, %v7312_v52  ;;  %v2658_v62 = vpop.f32.mrf.mxu0 }
 0x7d2   : > { %3319 = vmatpush.bf16.msrb.mxu1 %v3310_v63 }
 0x7d5   : > { %5059 = vmatmul.msk.bf16.vlgmr.msrb.gmra.mxu3 %vm822_vm5, %v7291_v24  ;;  %v3389_v24 = vpop.permute.xlu2 %3388 }
 0x7d6   : > { %3361 = vmatpush.bf16.msrb.mxu3 %v3352_v34  ;;  %v3394_v27 = vsel %vm1402_vm6, %v3389_v24, 0 }
 0x7d7   : > { %v7387_v36 = vpop.f32.mrf.mxu3 }
 0x7d8   : > { %8451 = vst [vmem:[#allocation13_spill] sm:$0xff] %v7387_v36 }
 0x7d9   : > { %5058 = vmatmul.msk.bf16.vlgmr.msrb.gmra.mxu2 %vm822_vm5, %v7305_v39  ;;  %v7394_v52 = vpop.f32.mrf.mxu0  ;;  %v3410_v39 = vpop.permute.xlu0 %3409 }
 0x7da   : > { %3340 = vmatpush.bf16.msrb.mxu2 %v3331_v47  ;;  %v3091_v48 = vsel %vm822_vm5, %v7394_v52, -inf  ;;  %v3415_v8 = vsel %vm1402_vm6, %v3410_v39, 0 }
 0x7db   : > { %3092 = vmax.xlane.f32.xlu1 %v3091_v48 }
 0x7df   : > { %v2637_v40 = vpop.f32.mrf.mxu3 }
 0x7e1   : > { %5061 = vmatmul.msk.bf16.vlgmr.msra.gmra.mxu1 %vm822_vm5, %v7308_v14  ;;  %v2744_v0 = vpop.f32.mrf.mxu0 }
 0x7e2   : > { %3403 = vmatpush.bf16.msra.mxu1 %v3394_v27 }
 0x7e5   : > { %5063 = vmatmul.msk.bf16.vlgmr.msra.gmra.mxu3 %vm822_vm5, %v7328_v21 }
 0x7e6   : > { %3445 = vmatpush.bf16.msra.mxu3 %v3436_v37 }
 0x7e9   : > { %5062 = vmatmul.msk.bf16.vlgmr.msra.gmra.mxu2 %vm822_vm5, %v7299_v23 }
 0x7ea   : > { %3424 = vmatpush.bf16.msra.mxu2 %v3415_v8 }
 0x7ee   : > { %v7407_v13 = vpop.f32.mrf.mxu0 }
 0x7ef   : > { %v3103_v47 = vsel %vm822_vm5, %v7407_v13, -inf }
 0x7f6   : > { %v2836_v6 = vpop.f32.mrf.mxu0 }
 0x7fe   : > { %v7409_v14 = vpop.f32.mrf.mxu0 }
 0x806   : > { %v2928_v12 = vpop.f32.mrf.mxu0 }
 0x807   : > { %v7441_v12 = vpop.permute.xlu1 %3472 }
 0x816   : > { %v7411_v46 = vpop.f32.mrf.mxu0 }
 0x81e   : > { %v7413_v5 = vpop.f32.mrf.mxu1  ;;  %v3020_v11 = vpop.f32.mrf.mxu0 }
 0x81f   : > { %8452 = vst [vmem:[#allocation6_spill] sm:$0xff] %v7413_v5 }
 0x826   : > { %v2679_v21 = vpop.f32.mrf.mxu1 }
 0x828   : > { %v7415_v59 = vpop.f32.mrf.mxu3 }
 0x829   : > { %8453 = vst [vmem:[#allocation28_spill] sm:$0xff] %v7415_v59 }
 0x82c   : > { %v7417_v32 = vpop.f32.mrf.mxu2 }
 0x82d   : > { %8454 = vst [vmem:[#allocation14_spill] sm:$0xff] %v7417_v32 }
 0x82e   : > { %v7421_v63 = vpop.f32.mrf.mxu1 }
 0x82f   : > { %v3094_v62 = vsel %vm822_vm5, %v7421_v63, -inf }
 0x830   : > { %3095 = vmax.xlane.f32.xlu0 %v3094_v62  ;;  %v2721_v20 = vpop.f32.mrf.mxu3 }
 0x834   : > { %v2700_v34 = vpop.f32.mrf.mxu2 }
 0x835   : > { %v3115_v34 = vsel %vm822_vm5, %v7409_v14, -inf }
 0x836   : > { %v2767_v51 = vpop.f32.mrf.mxu1 }
 0x838   : > { %3104 = vmax.xlane.f32.xlu0 %v3103_v47  ;;  %v7427_v48 = vpop.f32.mrf.mxu3  ;;  %v7453_v47 = vpop.permute.xlu1 %3535 }
 0x839   : > { %v3100_v24 = vsel %vm822_vm5, %v7427_v48, -inf }
 0x83a   : > { %3101 = vmax.xlane.f32.xlu1 %v3100_v24 }
 0x83c   : > { %v7431_v40 = vpop.f32.mrf.mxu2 }
 0x83d   : > { %v3097_v8 = vsel %vm822_vm5, %v7431_v40, -inf }
 0x83e   : > { %v7433_v27 = vpop.f32.mrf.mxu1 }
 0x83f   : > { %v3106_v0 = vsel %vm822_vm5, %v7433_v27, -inf }
 0x840   : > { %3107 = vmax.xlane.f32.xlu2 %v3106_v0  ;;  %v2813_v58 = vpop.f32.mrf.mxu3 }
 0x844   : > { %v2790_v37 = vpop.f32.mrf.mxu2 }
 0x846   : > { %v2859_v39 = vpop.f32.mrf.mxu1 }
 0x848   : > { %3098 = vmax.xlane.f32.xlu2 %v3097_v8  ;;  %v7439_v6 = vpop.f32.mrf.mxu3 }
 0x849   : > { %v3112_v11 = vsel %vm822_vm5, %v7439_v6, -inf }
 0x84a   : > { %3113 = vmax.xlane.f32.xlu0 %v3112_v11 }
 0x84c   : > { %v7445_v21 = vpop.f32.mrf.mxu2 }
 0x84d   : > { %v3109_v58 = vsel %vm822_vm5, %v7445_v21, -inf }
 0x84e   : > { %v7447_v62 = vpop.f32.mrf.mxu1  ;;  %v3093_v8 = vpop.xlane.xlu1 %3092 }
 0x84f   : > { %v3118_v20 = vsel %vm822_vm5, %v7447_v62, -inf }
 0x850   : > { %3119 = vmax.xlane.f32.xlu1 %v3118_v20  ;;  %3116 = vmax.xlane.f32.xlu2 %v3115_v34  ;;  %v2905_v51 = vpop.f32.mrf.mxu3  ;;  %v3139_v20 = vsub.f32 %v7394_v52, %v3093_v8 }
 0x854   : > { %v2882_v24 = vpop.f32.mrf.mxu2 }
 0x855   : > { %v3127_v24 = vsel %vm822_vm5, %v7411_v46, -inf }
 0x856   : > { %v2951_v0 = vpop.f32.mrf.mxu1 }
 0x858   : > { %3110 = vmax.xlane.f32.xlu1 %v3109_v58  ;;  %v7457_v37 = vpop.f32.mrf.mxu3  ;;  %v3155_v58 = vmul.f32 1.442695, %v3139_v20 }
 0x859   : > { %v3124_v39 = vsel %vm822_vm5, %v7457_v37, -inf }
 0x85a   : > { %3125 = vmax.xlane.f32.xlu2 %v3124_v39  ;;  %5446 = vpow2.f32 %v3155_v58  ;;  %v7486_v58 = vpop.permute.xlu2 %3493 }
 0x85c   : > { %v7461_v11 = vpop.f32.mrf.mxu2 }
 0x85d   : > { %v3121_v60 = vsel %vm822_vm5, %v7461_v11, -inf }
 0x85e   : > { %v7464_v34 = vpop.f32.mrf.mxu1 }
 0x85f   : > { %v3130_v51 = vsel %vm822_vm5, %v7464_v34, -inf }
 0x860   : > { %3131 = vmax.xlane.f32.xlu0 %v3130_v51  ;;  %3128 = vmax.xlane.f32.xlu1 %v3127_v24  ;;  %v2997_v0 = vpop.f32.mrf.mxu3  ;;  %v7476_v41 = vpop.eup %5446 }
 0x861   : > { %v3452_v24 = vpop.permute.xlu0 %3451 }
 0x864   : > { %v2974_v23 = vpop.f32.mrf.mxu2 }
 0x865   : > { %v3187_v23 = vsel %vm822_vm5, %v7476_v41, 0.0 }
 0x866   : > { %v3043_v39 = vpop.f32.mrf.mxu1 }
 0x868   : > { %3122 = vmax.xlane.f32.xlu0 %v3121_v60  ;;  %v7472_v52 = vpop.f32.mrf.mxu3 }
 0x869   : > { %v3136_v8 = vsel %vm822_vm5, %v7472_v52, -inf  ;;  %v7484_v0 = vpop.permute.xlu0 %3514 }
 0x86a   : > { %3137 = vmax.xlane.f32.xlu1 %v3136_v8  ;;  %v7490_v8 = vpop.permute.xlu2 %3556 }
 0x86c   : > { %v7478_v38 = vpop.f32.mrf.mxu2 }
 0x86d   : > { %v3133_v20 = vsel %vm822_vm5, %v7478_v38, -inf }
 0x86e   : > { %3134 = vmax.xlane.f32.xlu2 %v3133_v20 }
 0x870   : > { %3188 = vadd.xlane.f32.xlu0 %v3187_v23  ;;  %v3089_v51 = vpop.f32.mrf.mxu3 }
 0x871   : > { %v7488_v39 = vpop.permute.xlu0 %3577 }
 0x872   : > { %v7493_v20 = vpop.permute.xlu2 %3598 }
 0x874   : > { %v3066_v60 = vpop.f32.mrf.mxu2 }
 0x8a3   : > { %v3096_v32 = vpop.xlane.xlu0 %3095 }
 0x8a4   : > { %v3140_v59 = vsub.f32 %v7421_v63, %v3096_v32 }
 0x8a6   : > { %v3157_v5 = vmul.f32 1.442695, %v3140_v59 }
 0x8a8   : > { %5448 = vpow2.f32 %v3157_v5 }
 0x8ab   : > { %v3105_v56 = vpop.xlane.xlu0 %3104 }
 0x8ac   : > { %v3143_v23 = vsub.f32 %v7407_v13, %v3105_v56 }
 0x8ae   : > { %v7496_v51 = vpop.eup %5448  ;;  %v3163_v60 = vmul.f32 1.442695, %v3143_v23 }
 0x8af   : > { %v3190_v2 = vsel %vm822_vm5, %v7496_v51, 0.0 }
 0x8b0   : > { %5450 = vpow2.f32 %v3163_v60  ;;  %3191 = vadd.xlane.f32.xlu2 %v3190_v2  ;;  %v3102_v60 = vpop.xlane.xlu1 %3101 }
 0x8b1   : > { %v3142_v18 = vsub.f32 %v7427_v48, %v3102_v60 }
 0x8b3   : > { %v3108_v36 = vpop.xlane.xlu2 %3107 }
 0x8b4   : > { %v3144_v16 = vsub.f32 %v7433_v27, %v3108_v36  ;;  %v8455_v27 = vld [vmem:[#allocation15_spill] sm:$0xff] }
 0x8b6   : > { %v7501_v30 = vpop.eup %5450  ;;  %v3165_v59 = vmul.f32 1.442695, %v3144_v16 }
 0x8b7   : > { %v3199_v5 = vsel %vm822_vm5, %v7501_v30, 0.0 }
 0x8b8   : > { %5452 = vpow2.f32 %v3165_v59  ;;  %3200 = vadd.xlane.f32.xlu0 %v3199_v5 }
 0x8bb   : > { %v3099_v56 = vpop.xlane.xlu2 %3098 }
 0x8bc   : > { %v3141_v13 = vsub.f32 %v7431_v40, %v3099_v56  ;;  %v8456_v40 = vld [vmem:[#allocation3_spill] sm:$0xff] }
 0x8bd   : > { %v3114_v23 = vpop.xlane.xlu0 %3113 }
 0x8be   : > { %v7506_v32 = vpop.eup %5452  ;;  %v3159_v63 = vmul.f32 1.442695, %v3141_v13 }
 0x8bf   : > { %v3202_v2 = vsel %vm822_vm5, %v7506_v32, 0.0 }
 0x8c0   : > { %5454 = vpow2.f32 %v3159_v63  ;;  %3203 = vadd.xlane.f32.xlu1 %v3202_v2  ;;  %v8457_v63 = vld [vmem:[#allocation2_spill] sm:$0xff] }
 0x8c3   : > { %v3120_v5 = vpop.xlane.xlu1 %3119 }
 0x8c4   : > { %v3148_v13 = vsub.f32 %v7447_v62, %v3120_v5 }
 0x8c6   : > { %v7510_v36 = vpop.eup %5454  ;;  %v3173_v2 = vmul.f32 1.442695, %v3148_v13 }
 0x8c7   : > { %v3193_v16 = vsel %vm822_vm5, %v7510_v36, 0.0 }
 0x8c8   : > { %3667 = vrot.lane.b32.xlu2 %v8455_v27, %s5593_s11  ;;  %3194 = vadd.xlane.f32.xlu1 %v3193_v16  ;;  %v3161_v27 = vmul.f32 1.442695, %v3142_v18 }
 0x8cb   : > { %v3111_v31 = vpop.xlane.xlu1 %3110 }
 0x8cc   : > { %3644 = vrot.lane.b32.xlu0 %v8456_v40, %s5593_s11  ;;  %v3145_v16 = vsub.f32 %v7445_v21, %v3111_v31  ;;  %v3117_v40 = vpop.xlane.xlu2 %3116 }
 0x8cd   : > { %v3147_v62 = vsub.f32 %v7409_v14, %v3117_v40 }
 0x8ce   : > { %v3167_v28 = vmul.f32 1.442695, %v3145_v16 }
 0x8d3   : > { %v3132_v59 = vpop.xlane.xlu0 %3131  ;;  %v3129_v21 = vpop.xlane.xlu1 %3128 }
 0x8d4   : > { %v3152_v48 = vsub.f32 %v7464_v34, %v3132_v59 }
 0x8db   : > { %v3123_v56 = vpop.xlane.xlu0 %3122 }
 0x8dc   : > { %v3149_v16 = vsub.f32 %v7461_v11, %v3123_v56 }
 0x8de   : > { %v3175_v34 = vmul.f32 1.442695, %v3149_v16 }
 0x8e1   : > { %3621 = vrot.lane.b32.xlu1 %v8457_v63, %s5593_s11  ;;  %v3457_v63 = vsel %vm1402_vm6, %v3452_v24, 0 }
 0x8e3   : > { %v3189_v49 = vpop.xlane.xlu0 %3188 }
 0x8e4   : > { %5456 = vrcp.f32 %v3189_v49  ;;  %v3171_v49 = vmul.f32 1.442695, %v3147_v62 }
 0x8e5   : > { %5458 = vpow2.f32 %v3173_v2 }
 0x8e6   : > { %5460 = vpow2.f32 %v3161_v27 }
 0x8e7   : > { %5462 = vpow2.f32 %v3167_v28 }
 0x8e8   : > { %5464 = vpow2.f32 %v3171_v49  ;;  %v3126_v49 = vpop.xlane.xlu2 %3125 }
 0x8ea   : > { %v5457_v54 = vpop.eup %5456 }
 0x8eb   : > { %v3251_v17 = vmul.f32 %v5457_v54, %v7476_v41  ;;  %v7525_v5 = vpop.eup %5458  ;;  %v3146_v54 = vsub.f32 %v7439_v6, %v3114_v23  ;;  %v3151_v6 = vsub.f32 %v7411_v46, %v3129_v21  ;;  %v3181_v23 = vmul.f32 1.442695, %v3152_v48  ;;  %v8461_v48 = vld [vmem:[#allocation24_spill] sm:$0xff]  ;;  %v3138_v21 = vpop.xlane.xlu1 %3137 }
 0x8ec   : > { %v3214_v31 = vsel %vm822_vm5, %v7525_v5, 0.0  ;;  %v7531_v18 = vpop.eup %5460 }
 0x8ed   : > { %v3267_v13 = vpack.c.bf16 %v3251_v17, %v3251_v17  ;;  %v7534_v41 = vpop.eup %5462  ;;  %v3196_v17 = vsel %vm822_vm5, %v7531_v18, 0.0  ;;  %v3169_v28 = vmul.f32 1.442695, %v3146_v54  ;;  %v3179_v2 = vmul.f32 1.442695, %v3151_v6 }
 0x8ee   : > { %v3205_v14 = vsel %vm822_vm5, %v7534_v41, 0.0  ;;  %v7541_v24 = vpop.eup %5464 }
 0x8ef   : > { %5064 = vmatmul.msk.bf16.vlgmr.msrb.gmra.mxu0 %vm822_vm5, %v3267_v13  ;;  %5466 = vpow2.f32 %v3169_v28  ;;  %v3211_v60 = vsel %vm822_vm5, %v7541_v24, 0.0  ;;  %v8458_v13 = vld [vmem:[#allocation30_spill] sm:$0xff] }
 0x8f0   : > { %3466 = vmatpush.bf16.msrb.mxu0 %v3457_v63  ;;  %5468 = vpow2.f32 %v3181_v23  ;;  %v3135_v54 = vpop.xlane.xlu2 %3134 }
 0x8f1   : > { %3215 = vadd.xlane.f32.xlu2 %v3214_v31  ;;  %5470 = vpow2.f32 %v3179_v2  ;;  %v8459_v31 = vld [vmem:[#allocation4_spill] sm:$0xff] }
 0x8f2   : > { %5472 = vpow2.f32 %v3175_v34 }
 0x8f5   : > { %v7547_v27 = vpop.eup %5466 }
 0x8f6   : > { %3197 = vadd.xlane.f32.xlu0 %v3196_v17  ;;  %v3208_v59 = vsel %vm822_vm5, %v7547_v27, 0.0  ;;  %v7551_v40 = vpop.eup %5468  ;;  %v8460_v17 = vld [vmem:[#allocation23_spill] sm:$0xff] }
 0x8f7   : > { %v7553_v46 = vpop.eup %5470  ;;  %v3226_v62 = vsel %vm822_vm5, %v7551_v40, 0.0 }
 0x8f8   : > { %v3223_v11 = vsel %vm822_vm5, %v7553_v46, 0.0  ;;  %v7559_v56 = vpop.eup %5472 }
 0x8f9   : > { %3206 = vadd.xlane.f32.xlu2 %v3205_v14  ;;  %v3217_v63 = vsel %vm822_vm5, %v7559_v56, 0.0 }
 0x8fe   : > { %3212 = vadd.xlane.f32.xlu0 %v3211_v60  ;;  %v8462_v60 = vld [vmem:[#allocation22_spill] sm:$0xff] }
 0x906   : > { %3209 = vadd.xlane.f32.xlu0 %v3208_v59 }
 0x90b   : > { %3227 = vadd.xlane.f32.xlu1 %v3226_v62 }
 0x90e   : > { %3224 = vadd.xlane.f32.xlu0 %v3223_v11  ;;  %v3541_v11 = vsel %vm1402_vm6, %v7453_v47, 0  ;;  %v3153_v47 = vsub.f32 %v7478_v38, %v3135_v54 }
 0x911   : > { %3642 = vrot.lane.b32.xlu2 %v8458_v13, %s5594_s12 }
 0x913   : > { %3218 = vadd.xlane.f32.xlu1 %v3217_v63 }
 0x919   : > { %3713 = vrot.lane.b32.xlu2 %v8459_v31, %s5593_s11 }
 0x921   : > { %3782 = vrot.lane.b32.xlu2 %v8423_v7, %s5593_s11  ;;  %v3478_v7 = vsel %vm1402_vm6, %v7441_v12, 0  ;;  %v3150_v12 = vsub.f32 %v7457_v37, %v3126_v49 }
 0x922   : > { %3619 = vrot.lane.b32.xlu0 %v8460_v17, %s5594_s12  ;;  %v3562_v17 = vsel %vm1402_vm6, %v7490_v8, 0  ;;  %v3154_v8 = vsub.f32 %v7472_v52, %v3138_v21 }
 0x923   : > { %v3192_v28 = vpop.xlane.xlu2 %3191  ;;  %v3177_v31 = vmul.f32 1.442695, %v3150_v12  ;;  %v8465_v12 = vld [vmem:[#allocation7_spill] sm:$0xff] }
 0x924   : > { %5474 = vrcp.f32 %v3192_v28 }
 0x92a   : > { %v5475_v14 = vpop.eup %5474  ;;  %3688 = vrot.lane.b32.xlu0 %v8461_v48, %s5594_s12 }
 0x92b   : > { %v3252_v6 = vmul.f32 %v5475_v14, %v7496_v51  ;;  %v3201_v23 = vpop.xlane.xlu0 %3200  ;;  %v8463_v51 = vld [vmem:[#allocation29_spill] sm:$0xff]  ;;  %v7618_v48 = vpop.permute.xlu2 %3667 }
 0x92c   : > { %5476 = vrcp.f32 %v3201_v23  ;;  %3690 = vrot.lane.b32.xlu1 %v8462_v60, %s5593_s11 }
 0x92d   : > { %v3268_v2 = vpack.c.bf16 %v3252_v6, %v3252_v6 }
 0x92f   : > { %5065 = vmatmul.msk.bf16.vlgmr.msrb.gmra.mxu1 %vm822_vm5, %v3268_v2 }
 0x930   : > { %3487 = vmatpush.bf16.msrb.mxu1 %v3478_v7 }
 0x932   : > { %v5477_v16 = vpop.eup %5476  ;;  %3759 = vrot.lane.b32.xlu0 %v8429_v33, %s5593_s11 }
 0x933   : > { %v3255_v34 = vmul.f32 %v5477_v16, %v7501_v30  ;;  %v3204_v59 = vpop.xlane.xlu1 %3203 }
 0x934   : > { %5478 = vrcp.f32 %v3204_v59  ;;  %3665 = vrot.lane.b32.xlu1 %v8463_v51, %s5594_s12 }
 0x935   : > { %v3271_v62 = vpack.c.bf16 %v3255_v34, %v3255_v34 }
 0x937   : > { %5068 = vmatmul.msk.bf16.vlgmr.msra.gmra.mxu0 %vm822_vm5, %v3271_v62 }
 0x938   : > { %3550 = vmatpush.bf16.msra.mxu0 %v3541_v11 }
 0x93a   : > { %v5479_v13 = vpop.eup %5478 }
 0x93b   : > { %v3256_v63 = vmul.f32 %v5479_v13, %v7506_v32  ;;  %v3195_v33 = vpop.xlane.xlu1 %3194  ;;  %v3183_v32 = vmul.f32 1.442695, %v3153_v47  ;;  %v3604_v47 = vsel %vm1402_vm6, %v7493_v20, 0 }
 0x93c   : > { %5480 = vrcp.f32 %v3195_v33  ;;  %3736 = vrot.lane.b32.xlu1 %v8430_v29, %s5593_s11  ;;  %v3499_v29 = vsel %vm1402_vm6, %v7486_v58, 0 }
 0x93d   : > { %v3272_v30 = vpack.c.bf16 %v3256_v63, %v3256_v63  ;;  %5482 = vpow2.f32 %v3177_v31  ;;  %v8466_v31 = vld [vmem:[#allocation54_spill] sm:$0xff] }
 0x93e   : > { %5484 = vpow2.f32 %v3183_v32 }
 0x93f   : > { %5069 = vmatmul.msk.bf16.vlgmr.msra.gmra.mxu1 %vm822_vm5, %v3272_v30 }
 0x940   : > { %3571 = vmatpush.bf16.msra.mxu1 %v3562_v17 }
 0x942   : > { %v5481_v37 = vpop.eup %5480 }
 0x943   : > { %v3253_v49 = vmul.f32 %v5481_v37, %v7510_v36  ;;  %v7598_v14 = vpop.eup %5482  ;;  %v3185_v36 = vmul.f32 1.442695, %v3154_v8  ;;  %v3673_v8 = vsel %vm822_vm5, %v7618_v48, 0 }
 0x944   : > { %3711 = vrot.lane.b32.xlu1 %v8431_v61, %s5594_s12  ;;  %v3220_v38 = vsel %vm822_vm5, %v7598_v14, 0.0  ;;  %v7608_v61 = vpop.eup %5484 }
 0x945   : > { %v3269_v28 = vpack.c.bf16 %v3253_v49, %v3253_v49  ;;  %v3229_v54 = vsel %vm822_vm5, %v7608_v61, 0.0  ;;  %5486 = vpow2.f32 %v3185_v36  ;;  %v8469_v36 = vld [vmem:[#allocation57_spill] sm:$0xff] }
 0x947   : > { %5066 = vmatmul.msk.bf16.vlgmr.msrb.gmra.mxu2 %vm822_vm5, %v3269_v28 }
 0x948   : > { %3508 = vmatpush.bf16.msrb.mxu2 %v3499_v29 }
 0x94a   : > { %3221 = vadd.xlane.f32.xlu2 %v3220_v38 }
 0x94b   : > { %v7614_v58 = vpop.eup %5486 }
 0x94c   : > { %3780 = vrot.lane.b32.xlu1 %v8422_v44, %s5594_s12  ;;  %v3232_v52 = vsel %vm822_vm5, %v7614_v58, 0.0  ;;  %v3645_v44 = vpop.permute.xlu0 %3644 }
 0x952   : > { %3230 = vadd.xlane.f32.xlu2 %v3229_v54 }
 0x954   : > { %3851 = vrot.lane.b32.xlu1 %v8424_v42, %s5593_s11 }
 0x95c   : > { %3826 = vrot.lane.b32.xlu1 %v6719_v3, %s5594_s12  ;;  %3233 = vadd.xlane.f32.xlu0 %v3232_v52 }
 0x964   : > { %3897 = vrot.lane.b32.xlu1 %v6101_v50, %s5593_s11  ;;  %v3216_v21 = vpop.xlane.xlu2 %3215  ;;  %v3650_v50 = vsel %vm822_vm5, %v3645_v44, 0 }
 0x965   : > { %5488 = vrcp.f32 %v3216_v21 }
 0x969   : > { %v3198_v6 = vpop.xlane.xlu0 %3197 }
 0x96a   : > { %5490 = vrcp.f32 %v3198_v6  ;;  %3757 = vrot.lane.b32.xlu2 %v8425_v10, %s5594_s12 }
 0x96b   : > { %v5489_v42 = vpop.eup %5488 }
 0x96c   : > { %v3260_v23 = vmul.f32 %v5489_v42, %v7525_v5  ;;  %v7627_v60 = vpop.f32.mrf.mxu0  ;;  %3966 = vrot.lane.b32.xlu1 %v6260_v35, %s5593_s11  ;;  %v3207_v3 = vpop.xlane.xlu2 %3206 }
 0x96d   : > { %5492 = vrcp.f32 %v3207_v3 }
 0x96e   : > { %v3276_v2 = vpack.c.bf16 %v3260_v23, %v3260_v23 }
 0x970   : > { %v5491_v7 = vpop.eup %5490  ;;  %3734 = vrot.lane.b32.xlu0 %v8427_v9, %s5594_s12  ;;  %5073 = vmatmul.msk.bf16.vlgmr.msrb.gmra.mxu1 %vm822_vm5, %v3276_v2  ;;  %v3520_v9 = vsel %vm1402_vm6, %v7484_v0, 0  ;;  %v8464_v0 = vld [vmem:[#allocation55_spill] sm:$0xff] }
 0x971   : > { %v3254_v10 = vmul.f32 %v5491_v7, %v7531_v18  ;;  %3659 = vmatpush.bf16.xpose.msrb.mxu1 %v3650_v50  ;;  %v3213_v5 = vpop.xlane.xlu0 %3212  ;;  %v3622_v18 = vpop.permute.xlu1 %3621 }
 0x972   : > { %5494 = vrcp.f32 %v3213_v5  ;;  %3828 = vrot.lane.b32.xlu2 %v8426_v55, %s5593_s11  ;;  %v3583_v55 = vsel %vm1402_vm6, %v7488_v39, 0  ;;  %v3627_v39 = vsel %vm822_vm5, %v3622_v18, 0 }
 0x973   : > { %v5493_v35 = vpop.eup %5492  ;;  %v3270_v16 = vpack.c.bf16 %v3254_v10, %v3254_v10 }
 0x974   : > { %v3257_v34 = vmul.f32 %v5493_v35, %v7534_v41  ;;  %v3302_v59 = vpop.f32.mrf.mxu0  ;;  %3941 = vrot.lane.b32.xlu1 %v6695_v43, %s5594_s12 }
 0x975   : > { %5067 = vmatmul.msk.bf16.vlgmr.msrb.gmra.mxu3 %vm822_vm5, %v3270_v16 }
 0x976   : > { %v3273_v51 = vpack.c.bf16 %v3257_v34, %v3257_v34  ;;  %3529 = vmatpush.bf16.msrb.mxu3 %v3520_v9 }
 0x978   : > { %v5495_v62 = vpop.eup %5494  ;;  %3805 = vrot.lane.b32.xlu0 %v8428_v25, %s5593_s11  ;;  %5070 = vmatmul.msk.bf16.vlgmr.msra.gmra.mxu2 %vm822_vm5, %v3273_v51 }
 0x979   : > { %v3259_v41 = vmul.f32 %v5495_v62, %v7541_v24  ;;  %3592 = vmatpush.bf16.msra.mxu2 %v3583_v55  ;;  %v3210_v43 = vpop.xlane.xlu0 %3209  ;;  %v3643_v24 = vpop.permute.xlu2 %3642 }
 0x97a   : > { %5496 = vrcp.f32 %v3210_v43  ;;  %3803 = vrot.lane.b32.xlu2 %v8464_v0, %s5594_s12 }
 0x97b   : > { %v3275_v11 = vpack.c.bf16 %v3259_v41, %v3259_v41 }
 0x97c   : > { %4179 = vrot.lane.b32.xlu1 %v8465_v12, %s5595_s13 }
 0x97d   : > { %5072 = vmatmul.msk.bf16.vlgmr.msrb.gmra.mxu0 %vm822_vm5, %v3275_v11 }
 0x97e   : > { %3636 = vmatpush.bf16.xpose.msrb.mxu0 %v3627_v39  ;;  %v3228_v25 = vpop.xlane.xlu1 %3227 }
 0x97f   : > { %5498 = vrcp.f32 %v3228_v25 }
 0x980   : > { %v5497_v13 = vpop.eup %5496  ;;  %3874 = vrot.lane.b32.xlu0 %v8432_v26, %s5593_s11 }
 0x981   : > { %v3258_v63 = vmul.f32 %v5497_v13, %v7547_v27  ;;  %v3225_v33 = vpop.xlane.xlu0 %3224  ;;  %v3714_v28 = vpop.permute.xlu2 %3713 }
 0x982   : > { %5500 = vrcp.f32 %v3225_v33  ;;  %3872 = vrot.lane.b32.xlu2 %v8466_v31, %s5594_s12  ;;  %v3719_v29 = vsel %vm822_vm5, %v3714_v28, 0 }
 0x983   : > { %v3274_v30 = vpack.c.bf16 %v3258_v63, %v3258_v63 }
 0x984   : > { %4221 = vrot.lane.b32.xlu1 %v6227_v45, %s5595_s13  ;;  %v8467_v45 = vld [vmem:[#allocation19_spill] sm:$0xff] }
 0x985   : > { %v5499_v17 = vpop.eup %5498  ;;  %5071 = vmatmul.msk.bf16.vlgmr.msra.gmra.mxu3 %vm822_vm5, %v3274_v30 }
 0x986   : > { %v3264_v37 = vmul.f32 %v5499_v17, %v7551_v40  ;;  %3613 = vmatpush.bf16.msra.mxu3 %v3604_v47  ;;  %v3219_v26 = vpop.xlane.xlu1 %3218 }
 0x987   : > { %5502 = vrcp.f32 %v3219_v26 }
 0x988   : > { %v5501_v27 = vpop.eup %5500  ;;  %v3280_v49 = vpack.c.bf16 %v3264_v37, %v3264_v37  ;;  %3849 = vrot.lane.b32.xlu0 %v6638_v1, %s5594_s12 }
 0x989   : > { %v3263_v32 = vmul.f32 %v5501_v27, %v7553_v46  ;;  %v8468_v46 = vld [vmem:[#allocation11_spill] sm:$0xff]  ;;  %v3783_v42 = vpop.permute.xlu2 %3782 }
 0x98a   : > { %3943 = vrot.lane.b32.xlu2 %v8467_v45, %s5593_s11  ;;  %5077 = vmatmul.msk.bf16.vlgmr.msra.gmra.mxu1 %vm822_vm5, %v3280_v49  ;;  %v3788_v33 = vsel %vm822_vm5, %v3783_v42, 0 }
 0x98b   : > { %v3279_v20 = vpack.c.bf16 %v3263_v32, %v3263_v32 }
 0x98c   : > { %4263 = vrot.lane.b32.xlu1 %v6147_v19, %s5595_s13  ;;  %v8470_v19 = vld [vmem:[#allocation56_spill] sm:$0xff] }
 0x98d   : > { %v5503_v40 = vpop.eup %5502  ;;  %5076 = vmatmul.msk.bf16.vlgmr.msra.gmra.mxu0 %vm822_vm5, %v3279_v20 }
 0x98e   : > { %v3261_v38 = vmul.f32 %v5503_v40, %v7559_v56  ;;  %3728 = vmatpush.bf16.xpose.msra.mxu0 %v3719_v29 }
 0x990   : > { %v3277_v1 = vpack.c.bf16 %v3261_v38, %v3261_v38  ;;  %3920 = vrot.lane.b32.xlu0 %v8468_v46, %s5593_s11 }
 0x992   : > { %3918 = vrot.lane.b32.xlu2 %v8469_v36, %s5594_s12  ;;  %5074 = vmatmul.msk.bf16.vlgmr.msrb.gmra.mxu2 %vm822_vm5, %v3277_v1 }
 0x993   : > { %3682 = vmatpush.bf16.xpose.msrb.mxu2 %v3673_v8 }
 0x994   : > { %v3620_v56 = vpop.permute.xlu0 %3619 }
 0x998   : > { %3895 = vrot.lane.b32.xlu0 %v8470_v19, %s5594_s12 }
 0x99a   : > { %4242 = vrot.lane.b32.xlu2 %v6294_v4, %s5595_s13  ;;  %5081 = vmatmul.msk.bf16.vlgmr.msrb.gmra.mxu1 %vm822_vm5, %v3643_v24 }
 0x99c   : > { %v3689_v3 = vpop.permute.xlu0 %3688 }
 0x99d   : > { %5080 = vmatmul.msk.bf16.vlgmr.msrb.gmra.mxu0 %vm822_vm5, %v3620_v56 }
 0x99e   : > { %v3691_v54 = vpop.permute.xlu1 %3690 }
 0x99f   : > { %v3696_v18 = vsel %vm822_vm5, %v3691_v54, 0 }
 0x9a0   : > { %3964 = vrot.lane.b32.xlu0 %v6738_v15, %s5594_s12  ;;  %v8471_v15 = vld [vmem:[#allocation12_spill] sm:$0xff] }
 0x9a2   : > { %4305 = vrot.lane.b32.xlu2 %v6193_v57, %s5595_s13 }
 0x9a4   : > { %v3760_v59 = vpop.permute.xlu0 %3759 }
 0x9a6   : > { %v3666_v52 = vpop.permute.xlu1 %3665 }
 0x9a8   : > { %4200 = vrot.lane.b32.xlu0 %v6149_v22, %s5595_s13 }
 0x9aa   : > { %4326 = vrot.lane.b32.xlu2 %v6309_v53, %s5595_s13 }
 0x9ac   : > { %v7699_v4 = vpop.f32.mrf.mxu1 }
 0x9ad   : > { %v5169_v48 = vpack.i.bf16 %v7699_v4, %v7627_v60  ;;  %v8483_v60 = vld [vmem:[#allocation48_spill] sm:$0xff] }
 0x9ae   : > { %v3737_v44 = vpop.permute.xlu1 %3736  ;;  %v8484_v4 = vld [vmem:[#allocation52_spill] sm:$0xff] }
 0x9af   : > { %v3742_v21 = vsel %vm822_vm5, %v3737_v44, 0 }
 0x9b0   : > { %4284 = vrot.lane.b32.xlu0 %v8471_v15, %s5595_s13  ;;  %3751 = vmatpush.bf16.xpose.msra.mxu1 %v3742_v21 }
 0x9b4   : > { %v3323_v57 = vpop.f32.mrf.mxu1  ;;  %v7706_v6 = vpop.f32.mrf.mxu0 }
 0x9b6   : > { %v3712_v22 = vpop.permute.xlu1 %3711 }
 0x9b7   : > { %5084 = vmatmul.msk.bf16.vlgmr.msra.gmra.mxu0 %vm822_vm5, %v3712_v22 }
 0x9bc   : > { %v3386_v53 = vpop.f32.mrf.mxu0  ;;  %v7709_v23 = vpop.f32.mrf.mxu1 }
 0x9bd   : > { %v5199_v2 = vpack.i.bf16 %v7709_v23, %v7706_v6  ;;  %v3222_v7 = vpop.xlane.xlu2 %3221 }
 0x9be   : > { %5504 = vrcp.f32 %v3222_v7  ;;  %v7713_v50 = vpop.permute.xlu1 %3780 }
 0x9c4   : > { %v5505_v10 = vpop.eup %5504  ;;  %v3407_v5 = vpop.f32.mrf.mxu1 }
 0x9c5   : > { %v3262_v35 = vmul.f32 %v5505_v10, %v7598_v14  ;;  %v3231_v16 = vpop.xlane.xlu2 %3230  ;;  %v3765_v14 = vsel %vm822_vm5, %v3760_v59, 0 }
 0x9c6   : > { %5506 = vrcp.f32 %v3231_v16  ;;  %v3852_v34 = vpop.permute.xlu1 %3851 }
 0x9c7   : > { %v3278_v9 = vpack.c.bf16 %v3262_v35, %v3262_v35  ;;  %v3857_v17 = vsel %vm822_vm5, %v3852_v34, 0 }
 0x9c9   : > { %5075 = vmatmul.msk.bf16.vlgmr.msrb.gmra.mxu3 %vm822_vm5, %v3278_v9 }
 0x9ca   : > { %3705 = vmatpush.bf16.xpose.msrb.mxu3 %v3696_v18  ;;  %v7718_v51 = vpop.f32.mrf.mxu2 }
 0x9cc   : > { %v5507_v62 = vpop.eup %5506 }
 0x9cd   : > { %v3265_v55 = vmul.f32 %v5507_v62, %v7608_v61  ;;  %v3758_v41 = vpop.permute.xlu2 %3757 }
 0x9ce   : > { %v3827_v43 = vpop.permute.xlu1 %3826 }
 0x9cf   : > { %v3281_v0 = vpack.c.bf16 %v3265_v55, %v3265_v55  ;;  %v3234_v11 = vpop.xlane.xlu0 %3233 }
 0x9d0   : > { %5508 = vrcp.f32 %v3234_v11 }
 0x9d1   : > { %5078 = vmatmul.msk.bf16.vlgmr.msra.gmra.mxu2 %vm822_vm5, %v3281_v0 }
 0x9d2   : > { %3774 = vmatpush.bf16.xpose.msra.mxu2 %v3765_v14  ;;  %v3344_v12 = vpop.f32.mrf.mxu2 }
 0x9d5   : > { %v3829_v39 = vpop.permute.xlu2 %3828 }
 0x9d6   : > { %v5509_v25 = vpop.eup %5508  ;;  %v3834_v13 = vsel %vm822_vm5, %v3829_v39, 0  ;;  %v3898_v24 = vpop.permute.xlu1 %3897 }
 0x9d7   : > { %v3266_v63 = vmul.f32 %v5509_v25, %v7614_v58  ;;  %3843 = vmatpush.bf16.xpose.msrb.mxu1 %v3834_v13  ;;  %v3903_v49 = vsel %vm822_vm5, %v3898_v24, 0 }
 0x9d9   : > { %v3282_v61 = vpack.c.bf16 %v3266_v63, %v3266_v63 }
 0x9db   : > { %5079 = vmatmul.msk.bf16.vlgmr.msra.gmra.mxu3 %vm822_vm5, %v3282_v61 }
 0x9dc   : > { %3797 = vmatpush.bf16.xpose.msra.mxu3 %v3788_v33 }
 0x9dd   : > { %v3804_v31 = vpop.permute.xlu2 %3803 }
 0x9de   : > { %v3967_v30 = vpop.permute.xlu1 %3966 }
 0x9df   : > { %v3972_v54 = vsel %vm822_vm5, %v3967_v30, 0 }
 0x9e1   : > { %5082 = vmatmul.msk.bf16.vlgmr.msrb.gmra.mxu2 %vm822_vm5, %v3666_v52 }
 0x9e2   : > { %3866 = vmatpush.bf16.xpose.msrb.mxu2 %v3857_v17  ;;  %v3735_v47 = vpop.permute.xlu0 %3734 }
 0x9e3   : > { %5085 = vmatmul.msk.bf16.vlgmr.msra.gmra.mxu1 %vm822_vm5, %v3735_v47 }
 0x9e5   : > { %v3873_v37 = vpop.permute.xlu2 %3872 }
 0x9e6   : > { %v3942_v26 = vpop.permute.xlu1 %3941 }
 0x9ea   : > { %v3806_v58 = vpop.permute.xlu0 %3805 }
 0x9eb   : > { %v3811_v27 = vsel %vm822_vm5, %v3806_v58, 0  ;;  %5083 = vmatmul.msk.bf16.vlgmr.msrb.gmra.mxu3 %vm822_vm5, %v3689_v3 }
 0x9ec   : > { %3820 = vmatpush.bf16.xpose.msrb.mxu0 %v3811_v27 }
 0x9ed   : > { %v7733_v32 = vpop.f32.mrf.mxu1  ;;  %v3944_v28 = vpop.permute.xlu2 %3943 }
 0x9ee   : > { %v4180_v45 = vpop.permute.xlu1 %4179  ;;  %v3949_v20 = vsel %vm822_vm5, %v3944_v28, 0 }
 0x9ef   : > { %v4185_v29 = vsel %vm1402_vm6, %v4180_v45, 0 }
 0x9f1   : > { %5086 = vmatmul.msk.bf16.vlgmr.msra.gmra.mxu2 %vm822_vm5, %v3758_v41 }
 0x9f2   : > { %3958 = vmatpush.bf16.xpose.msra.mxu2 %v3949_v20  ;;  %v3875_v40 = vpop.permute.xlu0 %3874 }
 0x9f3   : > { %v3880_v38 = vsel %vm822_vm5, %v3875_v40, 0  ;;  %5088 = vmatmul.msk.bf16.vlgmr.msrb.gmra.mxu0 %vm822_vm5, %v3804_v31  ;;  %5089 = vmatmul.msk.bf16.vlgmr.msrb.gmra.mxu1 %vm822_vm5, %v3827_v43 }
 0x9f4   : > { %3912 = vmatpush.bf16.xpose.msra.mxu0 %v3903_v49  ;;  %3889 = vmatpush.bf16.xpose.msrb.mxu3 %v3880_v38 }
 0x9f5   : > { %v3491_v1 = vpop.f32.mrf.mxu1  ;;  %v3919_v8 = vpop.permute.xlu2 %3918 }
 0x9f6   : > { %v4222_v21 = vpop.permute.xlu1 %4221 }
 0x9f7   : > { %v4227_v57 = vsel %vm1402_vm6, %v4222_v21, 0 }
 0x9f8   : > { %v7741_v46 = vpop.f32.mrf.mxu3 }
 0x9f9   : > { %v5184_v36 = vpack.i.bf16 %v7741_v46, %v7718_v51 }
 0x9fa   : > { %v7745_v19 = vpop.f32.mrf.mxu0  ;;  %v3850_v56 = vpop.permute.xlu0 %3849 }
 0x9fb   : > { %v5229_v52 = vpack.i.bf16 %v7733_v32, %v7745_v19  ;;  %v7750_v44 = vpop.f32.mrf.mxu2  ;;  %5087 = vmatmul.msk.bf16.vlgmr.msra.gmra.mxu3 %vm822_vm5, %v7713_v50  ;;  %v5132_v32 = vld [vmem:[%s8224_s3] sm:$0xff] }
 0x9fc   : > { %4194 = vmatpush.bf16.msrb.mxu0 %v4185_v29  ;;  %3981 = vmatpush.bf16.xpose.msra.mxu3 %v3972_v54 }
 0x9fd   : > { %v4243_v7 = vpop.permute.xlu2 %4242 }
 0x9fe   : > { %v4264_v50 = vpop.permute.xlu1 %4263  ;;  %v4248_v59 = vsel %vm1402_vm6, %v4243_v7, 0 }
 0x9ff   : > { %v4269_v18 = vsel %vm1402_vm6, %v4264_v50, 0 }
 0xa00   : > { %v3365_v15 = vpop.f32.mrf.mxu3 }
 0xa01   : > { %5090 = vmatmul.msk.bf16.vlgmr.msrb.gmra.mxu2 %vm822_vm5, %v3850_v56 }
 0xa02   : > { %4236 = vmatpush.bf16.msrb.mxu2 %v4227_v57  ;;  %v3470_v42 = vpop.f32.mrf.mxu0  ;;  %v3921_v22 = vpop.permute.xlu0 %3920 }
 0xa03   : > { %v3926_v53 = vsel %vm822_vm5, %v3921_v22, 0  ;;  %v3428_v3 = vpop.f32.mrf.mxu2 }
 0xa04   : > { %3935 = vmatpush.bf16.xpose.msra.mxu1 %v3926_v53 }
 0xa05   : > { %v4306_v62 = vpop.permute.xlu2 %4305 }
 0xa06   : > { %v4311_v43 = vsel %vm1402_vm6, %v4306_v62, 0 }
 0xa07   : > { %v7757_v10 = vpop.f32.mrf.mxu1 }
 0xa08   : > { %v7759_v5 = vpop.f32.mrf.mxu3 }
 0xa09   : > { %v5214_v35 = vpack.i.bf16 %v7759_v5, %v7750_v44 }
 0xa0a   : > { %v7763_v16 = vpop.f32.mrf.mxu0  ;;  %v3896_v34 = vpop.permute.xlu0 %3895 }
 0xa0b   : > { %v5259_v9 = vpack.i.bf16 %v7757_v10, %v7763_v16  ;;  %5091 = vmatmul.msk.bf16.vlgmr.msrb.gmra.mxu3 %vm822_vm5, %v3873_v37  ;;  %5092 = vmatmul.msk.bf16.vlgmr.msra.gmra.mxu0 %vm822_vm5, %v3896_v34  ;;  %v8504_v16 = vld [vmem:[#allocation45_spill] sm:$0xff] }
 0xa0c   : > { %5093 = vmatmul.msk.bf16.vlgmr.msra.gmra.mxu1 %vm822_vm5, %v3919_v8  ;;  %4257 = vmatpush.bf16.msrb.mxu3 %v4248_v59 }
 0xa0d   : > { %4278 = vmatpush.bf16.msra.mxu0 %v4269_v18  ;;  %v4327_v39 = vpop.permute.xlu2 %4326 }
 0xa0e   : > { %v4332_v63 = vsel %vm1402_vm6, %v4327_v39, 0  ;;  %v8472_v39 = vld [vmem:[#allocation9_spill] sm:$0xff] }
 0xa0f   : > { %v3575_v55 = vpop.f32.mrf.mxu1 }
 0xa10   : > { %v3449_v41 = vpop.f32.mrf.mxu3 }
 0xa11   : > { %5094 = vmatmul.msk.bf16.vlgmr.msra.gmra.mxu2 %vm822_vm5, %v3942_v26 }
 0xa12   : > { %4320 = vmatpush.bf16.msra.mxu2 %v4311_v43  ;;  %v3554_v0 = vpop.f32.mrf.mxu0  ;;  %v3965_v11 = vpop.permute.xlu0 %3964 }
 0xa15   : > { %v7774_v14 = vpop.f32.mrf.mxu2 }
 0xa17   : > { %v7776_v12 = vpop.f32.mrf.mxu1 }
 0xa18   : > { %v3990_v25 = vsel %vm822_vm5, %v7776_v12, -inf }
 0xa19   : > { %3991 = vmax.xlane.f32.xlu1 %v3990_v25 }
 0xa1a   : > { %v7780_v13 = vpop.f32.mrf.mxu0  ;;  %v4201_v24 = vpop.permute.xlu0 %4200 }
 0xa1b   : > { %v4206_v61 = vsel %vm1402_vm6, %v4201_v24, 0  ;;  %5095 = vmatmul.msk.bf16.vlgmr.msra.gmra.mxu3 %vm822_vm5, %v3965_v11  ;;  %v3987_v33 = vsel %vm822_vm5, %v7780_v13, -inf }
 0xa1c   : > { %4341 = vmatpush.bf16.msra.mxu3 %v4332_v63  ;;  %3988 = vmax.xlane.f32.xlu2 %v3987_v33 }
 0xa1d   : > { %4215 = vmatpush.bf16.msrb.mxu1 %v4206_v61  ;;  %v3512_v31 = vpop.f32.mrf.mxu2 }
 0xa1f   : > { %v3663_v30 = vpop.f32.mrf.mxu1 }
 0xa22   : > { %v3640_v17 = vpop.f32.mrf.mxu0  ;;  %v4285_v47 = vpop.permute.xlu0 %4284 }
 0xa23   : > { %v4290_v37 = vsel %vm1402_vm6, %v4285_v47, 0 }
 0xa24   : > { %4299 = vmatpush.bf16.msra.mxu1 %v4290_v37 }
 0xa34   : > { %v7788_v26 = vpop.f32.mrf.mxu0 }
 0xa35   : > { %v3999_v58 = vsel %vm822_vm5, %v7788_v26, -inf }
 0xa36   : > { %4000 = vmax.xlane.f32.xlu1 %v3999_v58  ;;  %v8473_v58 = vld [vmem:[#allocation18_spill] sm:$0xff] }
 0xa3c   : > { %v3732_v27 = vpop.f32.mrf.mxu0 }
 0xa4c   : > { %v7792_v49 = vpop.f32.mrf.mxu3 }
 0xa4d   : > { %v5244_v28 = vpack.i.bf16 %v7792_v49, %v7774_v14 }
 0xa54   : > { %v3533_v45 = vpop.f32.mrf.mxu3  ;;  %v7796_v20 = vpop.f32.mrf.mxu2 }
 0xa5c   : > { %v3596_v40 = vpop.f32.mrf.mxu2 }
 0xa5e   : > { %v7798_v29 = vpop.f32.mrf.mxu3 }
 0xa5f   : > { %v5274_v38 = vpack.i.bf16 %v7798_v29, %v7796_v20 }
 0xa60   : > { %v7802_v1 = vpop.f32.mrf.mxu1 }
 0xa61   : > { %v4002_v8 = vsel %vm822_vm5, %v7802_v1, -inf }
 0xa62   : > { %4003 = vmax.xlane.f32.xlu0 %v4002_v8 }
 0xa64   : > { %v7806_v56 = vpop.f32.mrf.mxu2 }
 0xa65   : > { %v3993_v15 = vsel %vm822_vm5, %v7806_v56, -inf }
 0xa66   : > { %v3617_v54 = vpop.f32.mrf.mxu3 }
 0xa68   : > { %v3755_v21 = vpop.f32.mrf.mxu1 }
 0xa6a   : > { %3994 = vmax.xlane.f32.xlu0 %v3993_v15 }
 0xa6c   : > { %v3686_v57 = vpop.f32.mrf.mxu2 }
 0xa6e   : > { %v7810_v42 = vpop.f32.mrf.mxu3 }
 0xa6f   : > { %v3996_v22 = vsel %vm822_vm5, %v7810_v42, -inf }
 0xa70   : > { %3997 = vmax.xlane.f32.xlu2 %v3996_v22  ;;  %v7814_v53 = vpop.f32.mrf.mxu0  ;;  %v7816_v3 = vpop.f32.mrf.mxu1  ;;  %v8474_v22 = vld [vmem:[#allocation10_spill] sm:$0xff] }
 0xa71   : > { %v4011_v7 = vsel %vm822_vm5, %v7814_v53, -inf  ;;  %v4014_v59 = vsel %vm822_vm5, %v7816_v3, -inf }
 0xa72   : > { %4012 = vmax.xlane.f32.xlu0 %v4011_v7 }
 0xa74   : > { %v7820_v50 = vpop.f32.mrf.mxu2 }
 0xa75   : > { %v4005_v43 = vsel %vm822_vm5, %v7820_v50, -inf }
 0xa76   : > { %v3709_v34 = vpop.f32.mrf.mxu3 }
 0xa78   : > { %4015 = vmax.xlane.f32.xlu2 %v4014_v59  ;;  %v3824_v18 = vpop.f32.mrf.mxu0  ;;  %v3847_v62 = vpop.f32.mrf.mxu1 }
 0xa7c   : > { %v3778_v55 = vpop.f32.mrf.mxu2 }
 0xa7e   : > { %v7824_v41 = vpop.f32.mrf.mxu3 }
 0xa7f   : > { %v4008_v17 = vsel %vm822_vm5, %v7824_v41, -inf }
 0xa80   : > { %4006 = vmax.xlane.f32.xlu2 %v4005_v43 }
 0xa84   : > { %v7828_v0 = vpop.f32.mrf.mxu2 }
 0xa86   : > { %v3801_v11 = vpop.f32.mrf.mxu3  ;;  %4368 = vrot.lane.b32.xlu0 %v8472_v39, %s5595_s13 }
 0xa88   : > { %v7832_v25 = vpop.f32.mrf.mxu0 }
 0xa89   : > { %v7834_v24 = vpop.f32.mrf.mxu1  ;;  %v4023_v63 = vsel %vm822_vm5, %v7832_v25, -inf }
 0xa8a   : > { %4024 = vmax.xlane.f32.xlu1 %v4023_v63 }
 0xa8c   : > { %v3870_v61 = vpop.f32.mrf.mxu2  ;;  %v3992_v40 = vpop.xlane.xlu1 %3991 }
 0xa8d   : > { %v4036_v55 = vsub.f32 %v7776_v12, %v3992_v40  ;;  %v4017_v12 = vsel %vm822_vm5, %v7828_v0, -inf }
 0xa8e   : > { %v7838_v33 = vpop.f32.mrf.mxu3 }
 0xa8f   : > { %v3989_v8 = vpop.xlane.xlu2 %3988  ;;  %v4053_v11 = vmul.f32 1.442695, %v4036_v55  ;;  %v4020_v39 = vsel %vm822_vm5, %v7838_v33, -inf }
 0xa90   : > { %v3916_v31 = vpop.f32.mrf.mxu0  ;;  %v4035_v54 = vsub.f32 %v7780_v13, %v3989_v8 }
 0xa91   : > { %v3939_v30 = vpop.f32.mrf.mxu1 }
 0xa92   : > { %4009 = vmax.xlane.f32.xlu1 %v4008_v17  ;;  %v4051_v15 = vmul.f32 1.442695, %v4035_v54 }
 0xa94   : > { %v7842_v47 = vpop.f32.mrf.mxu2  ;;  %5510 = vpow2.f32 %v4051_v15 }
 0xa95   : > { %v4029_v34 = vsel %vm822_vm5, %v7842_v47, -inf }
 0xa96   : > { %v3893_v37 = vpop.f32.mrf.mxu3 }
 0xa98   : > { %4389 = vrot.lane.b32.xlu2 %v8473_v58, %s5595_s13 }
 0xa9a   : > { %v7854_v18 = vpop.eup %5510 }
 0xa9b   : > { %v4083_v13 = vsel %vm822_vm5, %v7854_v18, 0.0 }
 0xa9c   : > { %v3962_v27 = vpop.f32.mrf.mxu2 }
 0xa9e   : > { %v7846_v45 = vpop.f32.mrf.mxu3 }
 0xa9f   : > { %v4032_v37 = vsel %vm822_vm5, %v7846_v45, -inf }
 0xaa6   : > { %v3985_v21 = vpop.f32.mrf.mxu3 }
 0xaa9   : > { %v4001_v57 = vpop.xlane.xlu1 %4000 }
 0xaaa   : > { %v4039_v7 = vsub.f32 %v7788_v26, %v4001_v57  ;;  %v4026_v26 = vsel %vm822_vm5, %v7834_v24, -inf }
 0xaab   : > { %4347 = vrot.lane.b32.xlu1 %v8474_v22, %s5595_s13 }
 0xaac   : > { %v4059_v59 = vmul.f32 1.442695, %v4039_v7 }
 0xaae   : > { %5512 = vpow2.f32 %v4059_v59 }
 0xaaf   : > { %5514 = vpow2.f32 %v4053_v11 }
 0xab0   : > { %4030 = vmax.xlane.f32.xlu0 %v4029_v34 }
 0xab4   : > { %v7858_v62 = vpop.eup %5512 }
 0xab5   : > { %v4095_v43 = vsel %vm822_vm5, %v7858_v62, 0.0  ;;  %v7867_v63 = vpop.eup %5514 }
 0xab6   : > { %v4086_v61 = vsel %vm822_vm5, %v7867_v63, 0.0 }
 0xab8   : > { %4084 = vadd.xlane.f32.xlu0 %v4083_v13 }
 0xac0   : > { %4096 = vadd.xlane.f32.xlu0 %v4095_v43 }
 0xac1   : > { %4027 = vmax.xlane.f32.xlu2 %v4026_v26 }
 0xac9   : > { %4021 = vmax.xlane.f32.xlu2 %v4020_v39 }
 0xad1   : > { %4087 = vadd.xlane.f32.xlu2 %v4086_v61 }
 0xad5   : > { %v4004_v31 = vpop.xlane.xlu0 %4003  ;;  %4018 = vmax.xlane.f32.xlu1 %v4017_v12 }
 0xad6   : > { %v4040_v30 = vsub.f32 %v7802_v1, %v4004_v31 }
 0xad8   : > { %v4061_v17 = vmul.f32 1.442695, %v4040_v30 }
 0xada   : > { %5516 = vpow2.f32 %v4061_v17 }
 0xadd   : > { %v3995_v58 = vpop.xlane.xlu0 %3994  ;;  %4033 = vmax.xlane.f32.xlu1 %v4032_v37 }
 0xade   : > { %v4037_v27 = vsub.f32 %v7806_v56, %v3995_v58 }
 0xae0   : > { %v7877_v40 = vpop.eup %5516  ;;  %v4055_v8 = vmul.f32 1.442695, %v4037_v27 }
 0xae1   : > { %v4098_v54 = vsel %vm822_vm5, %v7877_v40, 0.0 }
 0xae2   : > { %5518 = vpow2.f32 %v4055_v8  ;;  %4099 = vadd.xlane.f32.xlu0 %v4098_v54  ;;  %v8475_v54 = vld [vmem:[#allocation27_spill] sm:$0xff] }
 0xae3   : > { %v3998_v21 = vpop.xlane.xlu2 %3997 }
 0xae4   : > { %v4038_v57 = vsub.f32 %v7810_v42, %v3998_v21 }
 0xae5   : > { %v4013_v15 = vpop.xlane.xlu0 %4012 }
 0xae6   : > { %v4043_v1 = vsub.f32 %v7814_v53, %v4013_v15  ;;  %v4057_v34 = vmul.f32 1.442695, %v4038_v57 }
 0xae8   : > { %v7883_v22 = vpop.eup %5518  ;;  %v4067_v7 = vmul.f32 1.442695, %v4043_v1  ;;  %v8476_v1 = vld [vmem:[#allocation16_spill] sm:$0xff] }
 0xae9   : > { %v4089_v56 = vsel %vm822_vm5, %v7883_v22, 0.0 }
 0xaea   : > { %5520 = vpow2.f32 %v4067_v7  ;;  %4090 = vadd.xlane.f32.xlu2 %v4089_v56 }
 0xaeb   : > { %v4016_v59 = vpop.xlane.xlu2 %4015  ;;  %5522 = vpow2.f32 %v4057_v34 }
 0xaec   : > { %v4044_v13 = vsub.f32 %v7816_v3, %v4016_v59 }
 0xaee   : > { %v4069_v55 = vmul.f32 1.442695, %v4044_v13 }
 0xaf0   : > { %v7888_v43 = vpop.eup %5520  ;;  %5524 = vpow2.f32 %v4069_v55 }
 0xaf1   : > { %v4107_v42 = vsel %vm822_vm5, %v7888_v43, 0.0  ;;  %v7893_v11 = vpop.eup %5522 }
 0xaf2   : > { %4108 = vadd.xlane.f32.xlu2 %v4107_v42  ;;  %v4092_v12 = vsel %vm822_vm5, %v7893_v11, 0.0 }
 0xaf3   : > { %v4007_v53 = vpop.xlane.xlu2 %4006 }
 0xaf4   : > { %v4041_v26 = vsub.f32 %v7820_v50, %v4007_v53 }
 0xaf6   : > { %v7895_v39 = vpop.eup %5524  ;;  %v4063_v61 = vmul.f32 1.442695, %v4041_v26 }
 0xaf7   : > { %v4110_v3 = vsel %vm822_vm5, %v7895_v39, 0.0 }
 0xaf8   : > { %5526 = vpow2.f32 %v4063_v61  ;;  %4111 = vadd.xlane.f32.xlu0 %v4110_v3  ;;  %v4369_v21 = vpop.permute.xlu0 %4368 }
 0xafa   : > { %4093 = vadd.xlane.f32.xlu2 %v4092_v12 }
 0xafb   : > { %v7914_v7 = vpop.permute.xlu2 %4389 }
 0xafd   : > { %v4025_v31 = vpop.xlane.xlu1 %4024 }
 0xafe   : > { %v7901_v30 = vpop.eup %5526 }
 0xaff   : > { %v4101_v50 = vsel %vm822_vm5, %v7901_v30, 0.0 }
 0xb02   : > { %4102 = vadd.xlane.f32.xlu2 %v4101_v50 }
 0xb05   : > { %v4010_v17 = vpop.xlane.xlu1 %4009 }
 0xb06   : > { %v4042_v37 = vsub.f32 %v7824_v41, %v4010_v17  ;;  %v4047_v41 = vsub.f32 %v7832_v25, %v4025_v31 }
 0xb08   : > { %v4065_v58 = vmul.f32 1.442695, %v4042_v37  ;;  %v4075_v34 = vmul.f32 1.442695, %v4047_v41 }
 0xb0a   : > { %5528 = vpow2.f32 %v4065_v58 }
 0xb10   : > { %v7906_v27 = vpop.eup %5528 }
 0xb11   : > { %v4104_v8 = vsel %vm822_vm5, %v7906_v27, 0.0 }
 0xb12   : > { %4105 = vadd.xlane.f32.xlu0 %v4104_v8 }
 0xb1a   : > { %4410 = vrot.lane.b32.xlu2 %v8475_v54, %s5595_s13 }
 0xb1d   : > { %v4348_v13 = vpop.permute.xlu1 %4347 }
 0xb1e   : > { %v4353_v61 = vsel %vm1402_vm6, %v4348_v13, 0 }
 0xb23   : > { %v4031_v15 = vpop.xlane.xlu0 %4030 }
 0xb26   : > { %4431 = vrot.lane.b32.xlu0 %v8476_v1, %s5595_s13  ;;  %v4049_v1 = vsub.f32 %v7842_v47, %v4031_v15  ;;  %v4374_v47 = vsel %vm1402_vm6, %v4369_v21, 0  ;;  %v8477_v21 = vld [vmem:[#allocation20_spill] sm:$0xff] }
 0xb28   : > { %v4079_v41 = vmul.f32 1.442695, %v4049_v1 }
 0xb2b   : > { %v4085_v57 = vpop.xlane.xlu0 %4084 }
 0xb2c   : > { %5530 = vrcp.f32 %v4085_v57 }
 0xb2d   : > { %5532 = vpow2.f32 %v4075_v34 }
 0xb32   : > { %v5531_v56 = vpop.eup %5530 }
 0xb33   : > { %v4147_v59 = vmul.f32 %v5531_v56, %v7854_v18  ;;  %v4097_v53 = vpop.xlane.xlu0 %4096  ;;  %v7921_v12 = vpop.eup %5532 }
 0xb34   : > { %v4028_v55 = vpop.xlane.xlu2 %4027  ;;  %5534 = vrcp.f32 %v4097_v53  ;;  %v4119_v58 = vsel %vm822_vm5, %v7921_v12, 0.0 }
 0xb35   : > { %v4163_v42 = vpack.c.bf16 %v4147_v59, %v4147_v59  ;;  %v4048_v26 = vsub.f32 %v7834_v24, %v4028_v55 }
 0xb37   : > { %v4077_v3 = vmul.f32 1.442695, %v4048_v26  ;;  %5096 = vmatmul.msk.bf16.vlgmr.msrb.gmra.mxu0 %vm822_vm5, %v4163_v42 }
 0xb38   : > { %4362 = vmatpush.bf16.msrb.mxu0 %v4353_v61 }
 0xb39   : > { %5536 = vpow2.f32 %v4077_v3 }
 0xb3a   : > { %v5535_v31 = vpop.eup %5534 }
 0xb3b   : > { %v4151_v17 = vmul.f32 %v5535_v31, %v7858_v62  ;;  %v8478_v31 = vld [vmem:[#allocation44_spill] sm:$0xff] }
 0xb3c   : > { %v4022_v25 = vpop.xlane.xlu2 %4021 }
 0xb3d   : > { %v4046_v18 = vsub.f32 %v7838_v33, %v4022_v25  ;;  %v4167_v54 = vpack.c.bf16 %v4151_v17, %v4151_v17 }
 0xb3f   : > { %v7924_v50 = vpop.eup %5536  ;;  %v4073_v37 = vmul.f32 1.442695, %v4046_v18  ;;  %v8479_v18 = vld [vmem:[#allocation42_spill] sm:$0xff] }
 0xb40   : > { %v4122_v24 = vsel %vm822_vm5, %v7924_v50, 0.0 }
 0xb41   : > { %4123 = vadd.xlane.f32.xlu1 %v4122_v24  ;;  %v8480_v24 = vpack.i.bf16 %v8478_v31, %v8479_v18 }
 0xb43   : > { %4120 = vadd.xlane.f32.xlu2 %v4119_v58 }
 0xb44   : > { %v4088_v8 = vpop.xlane.xlu2 %4087 }
 0xb45   : > { %5538 = vrcp.f32 %v4088_v8 }
 0xb46   : > { %5540 = vpow2.f32 %v4073_v37 }
 0xb47   : > { %5100 = vmatmul.msk.bf16.vlgmr.msra.gmra.mxu0 %vm822_vm5, %v4167_v54 }
 0xb48   : > { %v4019_v33 = vpop.xlane.xlu1 %4018 }
 0xb49   : > { %v4045_v57 = vsub.f32 %v7828_v0, %v4019_v33 }
 0xb4b   : > { %v5539_v56 = vpop.eup %5538  ;;  %v4071_v62 = vmul.f32 1.442695, %v4045_v57 }
 0xb4c   : > { %v7934_v34 = vpop.eup %5540  ;;  %v4148_v59 = vmul.f32 %v5539_v56, %v7867_v63 }
 0xb4d   : > { %5542 = vpow2.f32 %v4071_v62  ;;  %v4116_v55 = vsel %vm822_vm5, %v7934_v34, 0.0 }
 0xb4e   : > { %5544 = vpow2.f32 %v4079_v41  ;;  %v4164_v13 = vpack.c.bf16 %v4148_v59, %v4148_v59 }
 0xb50   : > { %4117 = vadd.xlane.f32.xlu0 %v4116_v55  ;;  %5097 = vmatmul.msk.bf16.vlgmr.msrb.gmra.mxu1 %vm822_vm5, %v4164_v13 }
 0xb51   : > { %4383 = vmatpush.bf16.msrb.mxu1 %v4374_v47 }
 0xb53   : > { %v7941_v0 = vpop.eup %5542 }
 0xb54   : > { %v7943_v15 = vpop.eup %5544  ;;  %v4113_v42 = vsel %vm822_vm5, %v7941_v0, 0.0 }
 0xb55   : > { %v4100_v63 = vpop.xlane.xlu0 %4099  ;;  %4114 = vadd.xlane.f32.xlu1 %v4113_v42  ;;  %v4125_v53 = vsel %vm822_vm5, %v7943_v15, 0.0  ;;  %v8486_v42 = vld [vmem:[#allocation31_spill] sm:$0xff] }
 0xb56   : > { %5546 = vrcp.f32 %v4100_v63  ;;  %v8487_v63 = vld [vmem:[#allocation36_spill] sm:$0xff] }
 0xb58   : > { %4126 = vadd.xlane.f32.xlu0 %v4125_v53  ;;  %v8488_v53 = vpack.i.bf16 %v8486_v42, %v8487_v63 }
 0xb5b   : > { %4473 = vrot.lane.b32.xlu2 %v8477_v21, %s5595_s13 }
 0xb5c   : > { %v5547_v26 = vpop.eup %5546 }
 0xb5d   : > { %v4152_v61 = vmul.f32 %v5547_v26, %v7877_v40  ;;  %v4091_v3 = vpop.xlane.xlu2 %4090  ;;  %v4395_v40 = vsel %vm1402_vm6, %v7914_v7, 0  ;;  %v8482_v7 = vld [vmem:[#allocation26_spill] sm:$0xff] }
 0xb5e   : > { %5548 = vrcp.f32 %v4091_v3 }
 0xb5f   : > { %v4168_v25 = vpack.c.bf16 %v4152_v61, %v4152_v61 }
 0xb61   : > { %5101 = vmatmul.msk.bf16.vlgmr.msra.gmra.mxu1 %vm822_vm5, %v4168_v25 }
 0xb63   : > { %5165 = vrot.lane.b32.xlu2 %v8480_v24, %s5596_s14 }
 0xb64   : > { %v5549_v17 = vpop.eup %5548 }
 0xb65   : > { %v4149_v37 = vmul.f32 %v5549_v17, %v7883_v22  ;;  %v4109_v58 = vpop.xlane.xlu2 %4108  ;;  %v8481_v22 = vld [vmem:[#allocation32_spill] sm:$0xff] }
 0xb66   : > { %5550 = vrcp.f32 %v4109_v58 }
 0xb67   : > { %v4165_v8 = vpack.c.bf16 %v4149_v37, %v4149_v37 }
 0xb69   : > { %5098 = vmatmul.msk.bf16.vlgmr.msrb.gmra.mxu2 %vm822_vm5, %v4165_v8 }
 0xb6a   : > { %4404 = vmatpush.bf16.msrb.mxu2 %v4395_v40 }
 0xb6b   : > { %v4112_v54 = vpop.xlane.xlu0 %4111  ;;  %5170 = vrot.lane.b32.xlu2 %v5169_v48, %s5597_s16  ;;  %v8485_v48 = vpack.i.bf16 %v8483_v60, %v8484_v4 }
 0xb6c   : > { %v5551_v1 = vpop.eup %5550  ;;  %5552 = vrcp.f32 %v4112_v54  ;;  %4494 = vrot.lane.b32.xlu0 %v8481_v22, %s5595_s13 }
 0xb6d   : > { %v4155_v33 = vmul.f32 %v5551_v1, %v7888_v43  ;;  %v4094_v57 = vpop.xlane.xlu2 %4093 }
 0xb6e   : > { %5554 = vrcp.f32 %v4094_v57  ;;  %4452 = vrot.lane.b32.xlu1 %v8482_v7, %s5595_s13 }
 0xb6f   : > { %v4171_v41 = vpack.c.bf16 %v4155_v33, %v4155_v33 }
 0xb71   : > { %5104 = vmatmul.msk.bf16.vlgmr.msrb.gmra.mxu0 %vm822_vm5, %v4171_v41 }
 0xb72   : > { %v5553_v56 = vpop.eup %5552 }
 0xb73   : > { %v4156_v62 = vmul.f32 %v5553_v56, %v7895_v39  ;;  %5180 = vrot.lane.b32.xlu2 %v8485_v48, %s5596_s14 }
 0xb74   : > { %v5555_v59 = vpop.eup %5554  ;;  %5185 = vrot.lane.b32.xlu0 %v5184_v36, %s5597_s16 }
 0xb75   : > { %v4172_v43 = vpack.c.bf16 %v4156_v62, %v4156_v62  ;;  %v4150_v13 = vmul.f32 %v5555_v59, %v7893_v11  ;;  %v4103_v55 = vpop.xlane.xlu2 %4102  ;;  %v4034_v11 = vpop.xlane.xlu1 %4033 }
 0xb76   : > { %5556 = vrcp.f32 %v4103_v55  ;;  %v4050_v61 = vsub.f32 %v7846_v45, %v4034_v11 }
 0xb77   : > { %v4166_v47 = vpack.c.bf16 %v4150_v13, %v4150_v13  ;;  %5105 = vmatmul.msk.bf16.vlgmr.msrb.gmra.mxu1 %vm822_vm5, %v4172_v43 }
 0xb78   : > { %v4081_v3 = vmul.f32 1.442695, %v4050_v61  ;;  %v8492_v61 = vld [vmem:[#allocation8_spill] sm:$0xff] }
 0xb79   : > { %5099 = vmatmul.msk.bf16.vlgmr.msrb.gmra.mxu3 %vm822_vm5, %v4166_v47 }
 0xb7c   : > { %v5557_v39 = vpop.eup %5556  ;;  %5195 = vrot.lane.b32.xlu0 %v8488_v53, %s5596_s14 }
 0xb7d   : > { %v4153_v21 = vmul.f32 %v5557_v39, %v7901_v30  ;;  %v4411_v51 = vpop.permute.xlu2 %4410  ;;  %v8490_v39 = vld [vmem:[#allocation17_spill] sm:$0xff] }
 0xb7e   : > { %v4416_v46 = vsel %vm1402_vm6, %v4411_v51, 0 }
 0xb7f   : > { %v4169_v36 = vpack.c.bf16 %v4153_v21, %v4153_v21  ;;  %4425 = vmatpush.bf16.msrb.mxu3 %v4416_v46 }
 0xb81   : > { %5102 = vmatmul.msk.bf16.vlgmr.msra.gmra.mxu2 %vm822_vm5, %v4169_v36 }
 0xb85   : > { %v4106_v26 = vpop.xlane.xlu0 %4105 }
 0xb86   : > { %5558 = vrcp.f32 %v4106_v26 }
 0xb87   : > { %5560 = vpow2.f32 %v4081_v3  ;;  %v8493_v3 = vld [vmem:[#allocation21_spill] sm:$0xff] }
 0xb8c   : > { %v5559_v25 = vpop.eup %5558 }
 0xb8d   : > { %v4154_v31 = vmul.f32 %v5559_v25, %v7906_v27  ;;  %v7993_v30 = vpop.eup %5560  ;;  %v8494_v25 = vpack.i.bf16 %v8492_v61, %v8493_v3 }
 0xb8e   : > { %v4128_v24 = vsel %vm822_vm5, %v7993_v30, 0.0 }
 0xb8f   : > { %v4170_v18 = vpack.c.bf16 %v4154_v31, %v4154_v31 }
 0xb91   : > { %5103 = vmatmul.msk.bf16.vlgmr.msra.gmra.mxu3 %vm822_vm5, %v4170_v18 }
 0xb98   : > { %v4432_v17 = vpop.permute.xlu0 %4431  ;;  %4129 = vadd.xlane.f32.xlu1 %v4128_v24  ;;  %v8495_v24 = vld [vmem:[#allocation13_spill] sm:$0xff] }
 0xb99   : > { %v4437_v37 = vsel %vm1402_vm6, %v4432_v17, 0  ;;  %v8496_v17 = vld [vmem:[#allocation33_spill] sm:$0xff] }
 0xb9a   : > { %4446 = vmatpush.bf16.msra.mxu0 %v4437_v37  ;;  %v8497_v37 = vpack.i.bf16 %v8495_v24, %v8496_v17 }
 0xbb4   : > { %v4196_v45 = vpop.f32.mrf.mxu0  ;;  %v4124_v22 = vpop.xlane.xlu1 %4123 }
 0xbb6   : > { %v4121_v58 = vpop.xlane.xlu2 %4120 }
 0xbb7   : > { %5562 = vrcp.f32 %v4121_v58  ;;  %v8498_v58 = vld [vmem:[#allocation5_spill] sm:$0xff] }
 0xbbc   : > { %v4198_v8 = vpop.f32.mrf.mxu0 }
 0xbbd   : > { %v5563_v40 = vpop.eup %5562  ;;  %v8499_v8 = vld [vmem:[#allocation6_spill] sm:$0xff] }
 0xbbe   : > { %v4159_v27 = vmul.f32 %v5563_v40, %v7921_v12  ;;  %v4474_v54 = vpop.permute.xlu2 %4473  ;;  %v5254_v40 = vpack.i.bf16 %v8499_v8, %v8498_v58 }
 0xbbf   : > { %v4479_v1 = vsel %vm1402_vm6, %v4474_v54, 0 }
 0xbc0   : > { %v4175_v33 = vpack.c.bf16 %v4159_v27, %v4159_v27  ;;  %4488 = vmatpush.bf16.msra.mxu2 %v4479_v1 }
 0xbc2   : > { %5108 = vmatmul.msk.bf16.vlgmr.msra.gmra.mxu0 %vm822_vm5, %v4175_v33  ;;  %v8500_v33 = vld [vmem:[#allocation28_spill] sm:$0xff] }
 0xbc3   : > { %v4118_v57 = vpop.xlane.xlu0 %4117 }
 0xbc4   : > { %5564 = vrcp.f32 %v4118_v57  ;;  %v4280_v7 = vpop.f32.mrf.mxu0  ;;  %v8501_v57 = vld [vmem:[#allocation14_spill] sm:$0xff] }
 0xbc6   : > { %v5166_v19 = vpop.permute.xlu2 %5165 }
 0xbc7   : > { %v5168_v44 = vunpack.i.h.bf16 %v5166_v19  ;;  %v5167_v5 = vunpack.i.l.bf16 %v5166_v19 }
 0xbc8   : > { %v4115_v41 = vpop.xlane.xlu1 %4114 }
 0xbc9   : > { %5566 = vrcp.f32 %v4115_v41 }
 0xbca   : > { %v5565_v56 = vpop.eup %5564 }
 0xbcb   : > { %v4158_v62 = vmul.f32 %v5565_v56, %v7934_v34  ;;  %v4127_v55 = vpop.xlane.xlu0 %4126  ;;  %v8489_v34 = vld [vmem:[#allocation25_spill] sm:$0xff] }
 0xbcc   : > { %v4282_v60 = vpop.f32.mrf.mxu0  ;;  %5568 = vrcp.f32 %v4127_v55  ;;  %v8491_v42 = vpack.i.bf16 %v8489_v34, %v8490_v39 }
 0xbcd   : > { %v4174_v4 = vpack.c.bf16 %v4158_v62, %v4158_v62  ;;  %v4217_v48 = vpop.f32.mrf.mxu1  ;;  %5570 = vrcp.f32 %v4124_v22 }
 0xbce   : > { %v5174_v12 = vpack.i.bf16 %v4217_v48, %v4196_v45 }
 0xbcf   : > { %v5567_v59 = vpop.eup %5566  ;;  %5107 = vmatmul.msk.bf16.vlgmr.msrb.gmra.mxu3 %vm822_vm5, %v4174_v4 }
 0xbd0   : > { %v4157_v43 = vmul.f32 %v5567_v59, %v7941_v0  ;;  %5175 = vrot.lane.b32.xlu1 %v5174_v12, %s5598_s19 }
 0xbd2   : > { %v4173_v13 = vpack.c.bf16 %v4157_v43, %v4157_v43  ;;  %v5569_v63 = vpop.eup %5568 }
 0xbd3   : > { %v5571_v53 = vpop.eup %5570  ;;  %v4161_v21 = vmul.f32 %v5569_v63, %v7943_v15 }
 0xbd4   : > { %5106 = vmatmul.msk.bf16.vlgmr.msrb.gmra.mxu2 %vm822_vm5, %v4173_v13  ;;  %v4160_v46 = vmul.f32 %v5571_v53, %v7924_v50 }
 0xbd5   : > { %v4219_v47 = vpop.f32.mrf.mxu1  ;;  %v4177_v18 = vpack.c.bf16 %v4161_v21, %v4161_v21 }
 0xbd6   : > { %v4176_v15 = vpack.c.bf16 %v4160_v46, %v4160_v46 }
 0xbd8   : > { %5210 = vrot.lane.b32.xlu1 %v8491_v42, %s5596_s14 }
 0xbde   : > { %v4495_v0 = vpop.permute.xlu0 %4494  ;;  %v4301_v51 = vpop.f32.mrf.mxu1 }
 0xbdf   : > { %v4500_v36 = vsel %vm1402_vm6, %v4495_v0, 0  ;;  %v5204_v11 = vpack.i.bf16 %v4301_v51, %v4280_v7  ;;  %v8502_v7 = vpack.i.bf16 %v8500_v33, %v8501_v57 }
 0xbe0   : > { %v4453_v26 = vpop.permute.xlu1 %4452  ;;  %5225 = vrot.lane.b32.xlu1 %v8494_v25, %s5596_s14  ;;  %4509 = vmatpush.bf16.msra.mxu3 %v4500_v36 }
 0xbe1   : > { %v4458_v31 = vsel %vm1402_vm6, %v4453_v26, 0  ;;  %5205 = vrot.lane.b32.xlu0 %v5204_v11, %s5598_s19 }
 0xbe2   : > { %4467 = vmatpush.bf16.msra.mxu1 %v4458_v31  ;;  %v8505_v31 = vld [vmem:[#allocation34_spill] sm:$0xff] }
 0xbe4   : > { %5110 = vmatmul.msk.bf16.vlgmr.msra.gmra.mxu2 %vm822_vm5, %v4177_v18 }
 0xbe5   : > { %5109 = vmatmul.msk.bf16.vlgmr.msra.gmra.mxu1 %vm822_vm5, %v4176_v15  ;;  %v8506_v15 = vld [vmem:[#allocation46_spill] sm:$0xff] }
 0xbe6   : > { %v4303_v50 = vpop.f32.mrf.mxu1  ;;  %v5186_v51 = vpop.permute.xlu0 %5185 }
 0xbe7   : > { %v5188_v11 = vunpack.i.h.bf16 %v5186_v51  ;;  %v5187_v26 = vunpack.i.l.bf16 %v5186_v51 }
 0xbe8   : > { %5240 = vrot.lane.b32.xlu1 %v8497_v37, %s5596_s14 }
 0xbec   : > { %v4238_v45 = vpop.f32.mrf.mxu2 }
 0xbee   : > { %v4364_v27 = vpop.f32.mrf.mxu0 }
 0xbf0   : > { %5255 = vrot.lane.b32.xlu1 %v5254_v40, %s5596_s14 }
 0xbf4   : > { %v4240_v54 = vpop.f32.mrf.mxu2  ;;  %v4385_v1 = vpop.f32.mrf.mxu1 }
 0xbf5   : > { %v5234_v23 = vpack.i.bf16 %v4385_v1, %v4364_v27  ;;  %v5196_v27 = vpop.permute.xlu0 %5195 }
 0xbf6   : > { %v4366_v22 = vpop.f32.mrf.mxu0  ;;  %v5198_v33 = vunpack.i.h.bf16 %v5196_v27  ;;  %v5197_v57 = vunpack.i.l.bf16 %v5196_v27  ;;  %v5574_v27 = vld [vmem:[%s8222_s1] sm:$0xff] }
 0xbf8   : > { %5270 = vrot.lane.b32.xlu1 %v8502_v7, %s5596_s14 }
 0xbfc   : > { %v4259_v41 = vpop.f32.mrf.mxu3  ;;  %v4387_v56 = vpop.f32.mrf.mxu1 }
 0xbfd   : > { %v5189_v62 = vpack.i.bf16 %v4259_v41, %v4238_v45 }
 0xbff   : > { %5190 = vrot.lane.b32.xlu2 %v5189_v62, %s5598_s19 }
 0xc04   : > { %v4261_v60 = vpop.f32.mrf.mxu3  ;;  %v4322_v4 = vpop.f32.mrf.mxu2 }
 0xc07   : > { %5200 = vrot.lane.b32.xlu2 %v5199_v2, %s5597_s16  ;;  %v5133_v2 = vld [vmem:[%s8224_s3 + $0x8] sm:$0xff] }
 0xc08   : > { %4812 = vmatpush.bf16.msrb.mxu0 %v5133_v2 }
 0xc0b   : > { %v4130_v48 = vpop.xlane.xlu1 %4129 }
 0xc0c   : > { %5572 = vrcp.f32 %v4130_v48  ;;  %v4324_v12 = vpop.f32.mrf.mxu2  ;;  %4813 = vmatpush.bf16.msrb.mxu0 %v5132_v32 }
 0xc0d   : > { %v8508_v12 = vld [vmem:[#allocation51_spill] sm:$0xff] }
 0xc0f   : > { %5215 = vrot.lane.b32.xlu2 %v5214_v35, %s5597_s16 }
 0xc12   : > { %v5573_v59 = vpop.eup %5572 }
 0xc13   : > { %v4162_v43 = vmul.f32 %v5573_v59, %v7993_v30  ;;  %v8503_v30 = vld [vmem:[#allocation58_spill] sm:$0xff]  ;;  %v4711_v59 = vsel %vm822_vm5, %v8508_v12, %v5197_v57  ;;  %v8513_v12 = vld [vmem:[#allocation59_spill] sm:$0xff] }
 0xc14   : > { %v4343_v13 = vpop.f32.mrf.mxu3  ;;  %v4708_v10 = vsel %vm822_vm5, %v8503_v30, %v5168_v44 }
 0xc15   : > { %v4178_v55 = vpack.c.bf16 %v4162_v43, %v4162_v43  ;;  %v5219_v47 = vpack.i.bf16 %v4343_v13, %v4322_v4  ;;  %v8507_v4 = vld [vmem:[#allocation49_spill] sm:$0xff] }
 0xc16   : > { %v4712_v48 = vsel %vm822_vm5, %v8507_v4, %v5198_v33 }
 0xc17   : > { %5230 = vrot.lane.b32.xlu2 %v5229_v52, %s5597_s16  ;;  %5220 = vrot.lane.b32.xlu0 %v5219_v47, %s5598_s19  ;;  %v5171_v52 = vpop.permute.xlu2 %5170 }
 0xc18   : > { %5111 = vmatmul.msk.bf16.vlgmr.msra.gmra.mxu3 %vm822_vm5, %v4178_v55  ;;  %v5173_v14 = vunpack.i.h.bf16 %v5171_v52  ;;  %v5172_v49 = vunpack.i.l.bf16 %v5171_v52 }
 0xc1a   : > { %v4725_v29 = vsel %vm4723_vm7, %v4708_v10, %v5173_v14  ;;  %v8509_v10 = vld [vmem:[#allocation38_spill] sm:$0xff] }
 0xc1c   : > { %v4345_v6 = vpop.f32.mrf.mxu3 }
 0xc1f   : > { %5245 = vrot.lane.b32.xlu2 %v5244_v28, %s5597_s16  ;;  %5235 = vrot.lane.b32.xlu0 %v5234_v23, %s5598_s19  ;;  %v5181_v21 = vpop.permute.xlu2 %5180 }
 0xc20   : > { %v5183_v46 = vunpack.i.h.bf16 %v5181_v21  ;;  %v5182_v36 = vunpack.i.l.bf16 %v5181_v21 }
 0xc22   : > { %v4710_v18 = vsel %vm822_vm5, %v8505_v31, %v5183_v46  ;;  %v4709_v50 = vsel %vm822_vm5, %v8506_v15, %v5182_v36 }
 0xc23   : > { %v4726_v45 = vsel %vm4723_vm7, %v4709_v50, %v5187_v26  ;;  %v4727_v58 = vsel %vm4723_vm7, %v4710_v18, %v5188_v11  ;;  %v8512_v18 = vld [vmem:[#allocation43_spill] sm:$0xff] }
 0xc27   : > { %5260 = vrot.lane.b32.xlu2 %v5259_v9, %s5597_s16  ;;  %v4707_v9 = vsel %vm822_vm5, %v8504_v16, %v5167_v5 }
 0xc28   : > { %v4724_v20 = vsel %vm4723_vm7, %v4707_v9, %v5172_v49  ;;  %v8510_v9 = vld [vmem:[#allocation41_spill] sm:$0xff] }
 0xc2f   : > { %5275 = vrot.lane.b32.xlu2 %v5274_v38, %s5597_s16 }
 0xc3f   : > { %v4448_v35 = vpop.f32.mrf.mxu0 }
 0xc42   : > { %v5176_v28 = vpop.permute.xlu1 %5175 }
 0xc43   : > { %v5178_v34 = vunpack.i.h.bf16 %v5176_v28  ;;  %v5177_v39 = vunpack.i.l.bf16 %v5176_v28 }
 0xc45   : > { %v4741_v38 = vsel %vm4740_vm8, %v4724_v20, %v5177_v39  ;;  %v4742_v42 = vsel %vm4740_vm8, %v4725_v29, %v5178_v34 }
 0xc46   : > { %v4757_v63 = vpack.c.bf16 %v4742_v42, %v4741_v38 }
 0xc47   : > { %v4450_v53 = vpop.f32.mrf.mxu0 }
 0xc48   : > { %5120 = vmatmul.msk.bf16.vlgmr.msrb.gmra.mxu0 %vm219_vm0, %v4757_v63 }
 0xc4a   : > { %v5211_v44 = vpop.permute.xlu1 %5210 }
 0xc4b   : > { %v5212_v14 = vunpack.i.l.bf16 %v5211_v44 }
 0xc4d   : > { %v4713_v34 = vsel %vm822_vm5, %v8510_v9, %v5212_v14 }
 0xc52   : > { %v4427_v0 = vpop.f32.mrf.mxu3  ;;  %v5226_v21 = vpop.permute.xlu1 %5225 }
 0xc53   : > { %v5206_v60 = vpop.permute.xlu0 %5205  ;;  %v5228_v46 = vunpack.i.h.bf16 %v5226_v21  ;;  %v5227_v36 = vunpack.i.l.bf16 %v5226_v21 }
 0xc54   : > { %v5208_v47 = vunpack.i.h.bf16 %v5206_v60  ;;  %v5207_v6 = vunpack.i.l.bf16 %v5206_v60 }
 0xc55   : > { %v4715_v15 = vsel %vm822_vm5, %v8512_v18, %v5227_v36 }
 0xc57   : > { %v4406_v61 = vpop.f32.mrf.mxu2 }
 0xc58   : > { %v5249_v3 = vpack.i.bf16 %v4427_v0, %v4406_v61 }
 0xc59   : > { %v5191_v25 = vpop.permute.xlu2 %5190 }
 0xc5a   : > { %v5193_v24 = vunpack.i.h.bf16 %v5191_v25  ;;  %v5192_v17 = vunpack.i.l.bf16 %v5191_v25  ;;  %5250 = vrot.lane.b32.xlu0 %v5249_v3, %s5598_s19  ;;  %v4429_v37 = vpop.f32.mrf.mxu3  ;;  %v8511_v25 = vld [vmem:[#allocation37_spill] sm:$0xff]  ;;  %v5241_v33 = vpop.permute.xlu1 %5240 }
 0xc5b   : > { %v4716_v31 = vsel %vm822_vm5, %v8511_v25, %v5228_v46 }
 0xc5c   : > { %v4743_v8 = vsel %vm4740_vm8, %v4726_v45, %v5192_v17  ;;  %v4744_v40 = vsel %vm4740_vm8, %v4727_v58, %v5193_v24 }
 0xc5d   : > { %v4758_v54 = vpack.c.bf16 %v4744_v40, %v4743_v8 }
 0xc5f   : > { %v4408_v1 = vpop.f32.mrf.mxu2  ;;  %5121 = vmatmul.msk.bf16.gmra.mxu0 %vm219_vm0, %v4758_v54  ;;  %v8118_v54 = vperm.slane %v5574_v27, 5 }
 0xc61   : > { %v5201_v22 = vpop.permute.xlu2 %5200 }
 0xc62   : > { %v4469_v7 = vpop.f32.mrf.mxu1  ;;  %v5203_v41 = vunpack.i.h.bf16 %v5201_v22  ;;  %v5202_v56 = vunpack.i.l.bf16 %v5201_v22  ;;  %v4855_v22 = vld [vmem:[%s5640_s21] sm:$0xff]  ;;  %v5256_v14 = vpop.permute.xlu1 %5255 }
 0xc63   : > { %v5264_v62 = vpack.i.bf16 %v4469_v7, %v4448_v35  ;;  %v5213_v35 = vunpack.i.h.bf16 %v5211_v44 }
 0xc64   : > { %v4729_v43 = vsel %vm4723_vm7, %v4712_v48, %v5203_v41  ;;  %v4728_v13 = vsel %vm4723_vm7, %v4711_v59, %v5202_v56  ;;  %v5243_v56 = vunpack.i.h.bf16 %v5241_v33 }
 0xc65   : > { %5265 = vrot.lane.b32.xlu0 %v5264_v62, %s5598_s19  ;;  %v4745_v2 = vsel %vm4740_vm8, %v4728_v13, %v5207_v6  ;;  %v4746_v32 = vsel %vm4740_vm8, %v4729_v43, %v5208_v47  ;;  %v4714_v16 = vsel %vm822_vm5, %v8509_v10, %v5213_v35  ;;  %v5242_v62 = vunpack.i.l.bf16 %v5241_v33  ;;  %v8514_v43 = vld [vmem:[#allocation39_spill] sm:$0xff] }
 0xc66   : > { %v4759_v19 = vpack.c.bf16 %v4746_v32, %v4745_v2  ;;  %v4718_v59 = vsel %vm822_vm5, %v8513_v12, %v5243_v56 }
 0xc67   : > { %v4490_v55 = vpop.f32.mrf.mxu2  ;;  %v4717_v13 = vsel %vm822_vm5, %v8514_v43, %v5242_v62 }
 0xc69   : > { %v5216_v5 = vpop.permute.xlu2 %5215 }
 0xc6a   : > { %v4471_v23 = vpop.f32.mrf.mxu1  ;;  %v5218_v49 = vunpack.i.h.bf16 %v5216_v5  ;;  %v5217_v28 = vunpack.i.l.bf16 %v5216_v5 }
 0xc6b   : > { %v4856_v23 = vld [vmem:[%s5640_s21 + $0x8] sm:$0xff] }
 0xc6c   : > { %v4731_v29 = vsel %vm4723_vm7, %v4714_v16, %v5218_v49  ;;  %v4730_v38 = vsel %vm4723_vm7, %v4713_v34, %v5217_v28  ;;  %v5258_v28 = vunpack.i.h.bf16 %v5256_v14 }
 0xc6f   : > { %v4492_v52 = vpop.f32.mrf.mxu2  ;;  %5122 = vmatmul.msk.bf16.gmra.mxu0 %vm219_vm0, %v4759_v19 }
 0xc71   : > { %v5231_v0 = vpop.permute.xlu2 %5230 }
 0xc72   : > { %v5233_v11 = vunpack.i.h.bf16 %v5231_v0  ;;  %v5232_v26 = vunpack.i.l.bf16 %v5231_v0  ;;  %v4857_v0 = vld [vmem:[%s5640_s21 + $0x10] sm:$0xff] }
 0xc74   : > { %v4733_v50 = vsel %vm4723_vm7, %v4716_v31, %v5233_v11  ;;  %v4732_v24 = vsel %vm4723_vm7, %v4715_v15, %v5232_v26  ;;  %v4859_v15 = vld [vmem:[%s5640_s21 + $0x20] sm:$0xff] }
 0xc79   : > { %v5246_v7 = vpop.permute.xlu2 %5245 }
 0xc7a   : > { %v5248_v60 = vunpack.i.h.bf16 %v5246_v7  ;;  %v5247_v4 = vunpack.i.l.bf16 %v5246_v7 }
 0xc7c   : > { %v4735_v2 = vsel %vm4723_vm7, %v4718_v59, %v5248_v60  ;;  %v4734_v32 = vsel %vm4723_vm7, %v4717_v13, %v5247_v4  ;;  %v8517_v60 = vld [vmem:[#allocation40_spill] sm:$0xff] }
 0xc81   : > { %v5261_v49 = vpop.permute.xlu2 %5260 }
 0xc82   : > { %v5263_v16 = vunpack.i.h.bf16 %v5261_v49  ;;  %v5262_v9 = vunpack.i.l.bf16 %v5261_v49 }
 0xc89   : > { %v5221_v30 = vpop.permute.xlu0 %5220 }
 0xc8a   : > { %v5223_v39 = vunpack.i.h.bf16 %v5221_v30  ;;  %v5222_v20 = vunpack.i.l.bf16 %v5221_v30  ;;  %v5257_v30 = vunpack.i.l.bf16 %v5256_v14 }
 0xc8c   : > { %v4747_v42 = vsel %vm4740_vm8, %v4730_v38, %v5222_v20  ;;  %v4748_v63 = vsel %vm4740_vm8, %v4731_v29, %v5223_v39  ;;  %v8515_v20 = vld [vmem:[#allocation47_spill] sm:$0xff] }
 0xc8d   : > { %v4760_v53 = vpack.c.bf16 %v4748_v63, %v4747_v42  ;;  %v4720_v29 = vsel %vm822_vm5, %v8515_v20, %v5258_v28  ;;  %v8516_v38 = vld [vmem:[#allocation35_spill] sm:$0xff] }
 0xc8e   : > { %v4719_v42 = vsel %vm822_vm5, %v8516_v38, %v5257_v30  ;;  %v4737_v63 = vsel %vm4723_vm7, %v4720_v29, %v5263_v16  ;;  %v4864_v28 = vld [vmem:[%s5640_s21 + $0x48] sm:$0xff]  ;;  %v4866_v29 = vld [vmem:[%s5640_s21 + $0x58] sm:$0xff] }
 0xc8f   : > { %5123 = vmatmul.msk.bf16.gmra.mxu0 %vm219_vm0, %v4760_v53  ;;  %v4736_v53 = vsel %vm4723_vm7, %v4719_v42, %v5262_v9  ;;  %v4865_v9 = vld [vmem:[%s5640_s21 + $0x50] sm:$0xff] }
 0xc91   : > { %v5236_v51 = vpop.permute.xlu0 %5235 }
 0xc92   : > { %v5238_v61 = vunpack.i.h.bf16 %v5236_v51  ;;  %v5237_v3 = vunpack.i.l.bf16 %v5236_v51 }
 0xc94   : > { %v4749_v17 = vsel %vm4740_vm8, %v4732_v24, %v5237_v3  ;;  %v4750_v37 = vsel %vm4740_vm8, %v4733_v50, %v5238_v61  ;;  %v4858_v3 = vld [vmem:[%s5640_s21 + $0x18] sm:$0xff] }
 0xc95   : > { %v4761_v8 = vpack.c.bf16 %v4750_v37, %v4749_v17  ;;  %v4860_v37 = vld [vmem:[%s5640_s21 + $0x28] sm:$0xff] }
 0xc9b   : > { %v4511_v45 = vpop.f32.mrf.mxu3 }
 0xc9c   : > { %v5279_v58 = vpack.i.bf16 %v4511_v45, %v4490_v55 }
 0xc9e   : > { %5280 = vrot.lane.b32.xlu0 %v5279_v58, %s5598_s19 }
 0xc9f   : > { %5124 = vmatmul.msk.bf16.gmra.mxu0 %vm219_vm0, %v4761_v8  ;;  %v5271_v8 = vpop.permute.xlu1 %5270 }
 0xca0   : > { %v5272_v33 = vunpack.i.l.bf16 %v5271_v8 }
 0xca3   : > { %v4513_v40 = vpop.f32.mrf.mxu3 }
 0xca4   : > { %v5276_v40 = vpop.permute.xlu2 %5275 }
 0xca5   : > { %v5278_v7 = vunpack.i.h.bf16 %v5276_v40 }
 0xcc5   : > { %v4815_v1 = vpop.f32.mrf.mxu0 }
 0xcc6   : > { %v4816_v57 = vadd.f32 %v4815_v1, %v8118_v54  ;;  %v4861_v1 = vld [vmem:[%s5640_s21 + $0x30] sm:$0xff] }
 0xcc8   : > { %v4871_v41 = vadd.f32 %v4855_v22, %v4816_v57  ;;  %v5273_v22 = vunpack.i.h.bf16 %v5271_v8 }
 0xcca   : > { %4887 = vst.msk [vmem:[%s8127_s29] sm:$0xff] %vm219_vm0, %v4871_v41  ;;  %v5277_v41 = vunpack.i.l.bf16 %v5276_v40  ;;  %v4722_v4 = vsel %vm822_vm5, %v8517_v60, %v5273_v22 }
 0xccb   : > { %v4739_v13 = vsel %vm4723_vm7, %v4722_v4, %v5278_v7 }
 0xccc   : > { %v5251_v48 = vpop.permute.xlu0 %5250 }
 0xccd   : > { %v5253_v55 = vunpack.i.h.bf16 %v5251_v48  ;;  %v5252_v47 = vunpack.i.l.bf16 %v5251_v48  ;;  %v4817_v6 = vpop.f32.mrf.mxu0  ;;  %v8518_v48 = vld [vmem:[#allocation53_spill] sm:$0xff] }
 0xcce   : > { %v4818_v19 = vadd.f32 %v4817_v6, %v8118_v54  ;;  %v4721_v12 = vsel %vm822_vm5, %v8518_v48, %v5272_v33 }
 0xccf   : > { %v4751_v52 = vsel %vm4740_vm8, %v4734_v32, %v5252_v47  ;;  %v4752_v44 = vsel %vm4740_vm8, %v4735_v2, %v5253_v55  ;;  %v4738_v55 = vsel %vm4723_vm7, %v4721_v12, %v5277_v41  ;;  %v4862_v32 = vld [vmem:[%s5640_s21 + $0x38] sm:$0xff] }
 0xcd0   : > { %v4762_v5 = vpack.c.bf16 %v4752_v44, %v4751_v52  ;;  %v4872_v35 = vadd.f32 %v4856_v23, %v4818_v19 }
 0xcd2   : > { %4888 = vst.msk [vmem:[%s8127_s29 + $0x8] sm:$0xff] %vm219_vm0, %v4872_v35  ;;  %5125 = vmatmul.msk.bf16.gmra.mxu0 %vm219_vm0, %v4762_v5  ;;  %v4863_v5 = vld [vmem:[%s5640_s21 + $0x40] sm:$0xff] }
 0xcd7   : > { %v5266_v10 = vpop.permute.xlu0 %5265 }
 0xcd8   : > { %v5268_v34 = vunpack.i.h.bf16 %v5266_v10  ;;  %v5267_v39 = vunpack.i.l.bf16 %v5266_v10 }
 0xcda   : > { %v4753_v51 = vsel %vm4740_vm8, %v4736_v53, %v5267_v39  ;;  %v4754_v46 = vsel %vm4740_vm8, %v4737_v63, %v5268_v34  ;;  %v4867_v53 = vld [vmem:[%s5640_s21 + $0x60] sm:$0xff] }
 0xcdb   : > { %v4763_v26 = vpack.c.bf16 %v4754_v46, %v4753_v51  ;;  %v4868_v46 = vld [vmem:[%s5640_s21 + $0x68] sm:$0xff] }
 0xcdc   : > { %v4820_v21 = vpop.f32.mrf.mxu0 }
 0xcdd   : > { %v4821_v36 = vadd.f32 %v4820_v21, %v8118_v54 }
 0xcdf   : > { %v4873_v11 = vadd.f32 %v4857_v0, %v4821_v36 }
 0xce1   : > { %4889 = vst.msk [vmem:[%s8127_s29 + $0x10] sm:$0xff] %vm219_vm0, %v4873_v11 }
 0xce2   : > { %5126 = vmatmul.msk.bf16.gmra.mxu0 %vm219_vm0, %v4763_v26 }
 0xce4   : > { %v4822_v61 = vpop.f32.mrf.mxu0 }
 0xce5   : > { %v4823_v25 = vadd.f32 %v4822_v61, %v8118_v54  ;;  %v4869_v61 = vld [vmem:[%s5640_s21 + $0x70] sm:$0xff] }
 0xce7   : > { %v4874_v31 = vadd.f32 %v4858_v3, %v4823_v25 }
 0xce9   : > { %4890 = vst.msk [vmem:[%s8127_s29 + $0x18] sm:$0xff] %vm219_vm0, %v4874_v31 }
 0xcec   : > { %v4825_v18 = vpop.f32.mrf.mxu0 }
 0xced   : > { %v4826_v50 = vadd.f32 %v4825_v18, %v8118_v54  ;;  %v4870_v18 = vld [vmem:[%s5640_s21 + $0x78] sm:$0xff] }
 0xcef   : > { %v4875_v24 = vadd.f32 %v4859_v15, %v4826_v50 }
 0xcf1   : > { %4891 = vst.msk [vmem:[%s8127_s29 + $0x20] sm:$0xff] %vm219_vm0, %v4875_v24 }
 0xcf4   : > { %v4827_v17 = vpop.f32.mrf.mxu0 }
 0xcf5   : > { %v4828_v45 = vadd.f32 %v4827_v17, %v8118_v54 }
 0xcf7   : > { %v4876_v58 = vadd.f32 %v4860_v37, %v4828_v45 }
 0xcf9   : > { %4892 = vst.msk [vmem:[%s8127_s29 + $0x28] sm:$0xff] %vm219_vm0, %v4876_v58 }
 0xd0c   : > { %v4830_v27 = vpop.f32.mrf.mxu0 }
 0xd0d   : > { %v4831_v57 = vadd.f32 %v4830_v27, %v8118_v54 }
 0xd0f   : > { %v4877_v56 = vadd.f32 %v4861_v1, %v4831_v57 }
 0xd10   : > { %v5281_v62 = vpop.permute.xlu0 %5280 }
 0xd11   : > { %4893 = vst.msk [vmem:[%s8127_s29 + $0x30] sm:$0xff] %vm219_vm0, %v4877_v56  ;;  %v5283_v59 = vunpack.i.h.bf16 %v5281_v62  ;;  %v5282_v43 = vunpack.i.l.bf16 %v5281_v62 }
 0xd13   : > { %v4755_v47 = vsel %vm4740_vm8, %v4738_v55, %v5282_v43  ;;  %v4756_v6 = vsel %vm4740_vm8, %v4739_v13, %v5283_v59 }
 0xd14   : > { %v4764_v23 = vpack.c.bf16 %v4756_v6, %v4755_v47  ;;  %v4832_v2 = vpop.f32.mrf.mxu0 }
 0xd15   : > { %v4833_v19 = vadd.f32 %v4832_v2, %v8118_v54 }
 0xd16   : > { %5127 = vmatmul.msk.bf16.gmra.mxu0 %vm219_vm0, %v4764_v23 }
 0xd17   : > { %v4878_v52 = vadd.f32 %v4862_v32, %v4833_v19 }
 0xd19   : > { %4894 = vst.msk [vmem:[%s8127_s29 + $0x38] sm:$0xff] %vm219_vm0, %v4878_v52 }
 0xd1c   : > { %v4835_v44 = vpop.f32.mrf.mxu0 }
 0xd1d   : > { %v4836_v35 = vadd.f32 %v4835_v44, %v8118_v54 }
 0xd1f   : > { %v4879_v14 = vadd.f32 %v4863_v5, %v4836_v35 }
 0xd21   : > { %4895 = vst.msk [vmem:[%s8127_s29 + $0x40] sm:$0xff] %vm219_vm0, %v4879_v14 }
 0xd24   : > { %v4837_v49 = vpop.f32.mrf.mxu0 }
 0xd25   : > { %v4838_v30 = vadd.f32 %v4837_v49, %v8118_v54 }
 0xd27   : > { %v4880_v10 = vadd.f32 %v4864_v28, %v4838_v30 }
 0xd29   : > { %4896 = vst.msk [vmem:[%s8127_s29 + $0x48] sm:$0xff] %vm219_vm0, %v4880_v10 }
 0xd4f   : > { %v4840_v16 = vpop.f32.mrf.mxu0 }
 0xd50   : > { %v4841_v34 = vadd.f32 %v4840_v16, %v8118_v54 }
 0xd52   : > { %v4881_v39 = vadd.f32 %v4865_v9, %v4841_v34 }
 0xd54   : > { %4897 = vst.msk [vmem:[%s8127_s29 + $0x50] sm:$0xff] %vm219_vm0, %v4881_v39 }
 0xd57   : > { %v4842_v20 = vpop.f32.mrf.mxu0 }
 0xd58   : > { %v4843_v38 = vadd.f32 %v4842_v20, %v8118_v54 }
 0xd5a   : > { %v4882_v42 = vadd.f32 %v4866_v29, %v4843_v38 }
 0xd5c   : > { %4898 = vst.msk [vmem:[%s8127_s29 + $0x58] sm:$0xff] %vm219_vm0, %v4882_v42 }
 0xd5f   : > { %v4845_v63 = vpop.f32.mrf.mxu0 }
 0xd60   : > { %v4846_v21 = vadd.f32 %v4845_v63, %v8118_v54 }
 0xd62   : > { %v4883_v0 = vadd.f32 %v4867_v53, %v4846_v21 }
 0xd64   : > { %4899 = vst.msk [vmem:[%s8127_s29 + $0x60] sm:$0xff] %vm219_vm0, %v4883_v0 }
 0xd67   : > { %v4847_v51 = vpop.f32.mrf.mxu0 }
 0xd68   : > { %v4848_v36 = vadd.f32 %v4847_v51, %v8118_v54 }
 0xd6a   : > { %v4884_v11 = vadd.f32 %v4868_v46, %v4848_v36 }
 0xd6c   : > { %4900 = vst.msk [vmem:[%s8127_s29 + $0x68] sm:$0xff] %vm219_vm0, %v4884_v11 }
 0xd93   : > { %v4850_v26 = vpop.f32.mrf.mxu0 }
 0xd94   : > { %v4851_v3 = vadd.f32 %v4850_v26, %v8118_v54 }
 0xd96   : > { %v4885_v25 = vadd.f32 %v4869_v61, %v4851_v3 }
 0xd98   : > { %4901 = vst.msk [vmem:[%s8127_s29 + $0x70] sm:$0xff] %vm219_vm0, %v4885_v25 }
 0xd9b   : > { %v4852_v31 = vpop.f32.mrf.mxu0 }
 0xd9c   : > { %v4853_v15 = vadd.f32 %v4852_v31, %v8118_v54 }
 0xd9e   : > { %v4886_v50 = vadd.f32 %v4870_v18, %v4853_v15 }
 0xda0   : > { %4902 = vst.msk [vmem:[%s8127_s29 + $0x78] sm:$0xff] %vm219_vm0, %v4886_v50 }
 0xda1 PF: > { %s14_s15 = sadd.s32 1, %s5581_s15  }
 0xda2   : > { %p11_p4 = scmp.ge.s32.totalorder %s14_s15, 4  }
 0xda4   :  { %13 = sbr.rel (!%p11_p4) target bundleno = 1 (0x1), region = 66 }

// kernel: tpu_custom_call.1
= control target key start
LH: loop header
LB: loop body
LE: loop exit
PB: predicated region body
PF: predicated region fallthrough
CT: control target
= control target key end

     0   :  { %s5624_s15 = smov 0   ;;  %s8221_s0 = inlined_call_operand.vmem [shape: f32[256,32], index: 0, kind: input, shape index: {}]   ;;  %s8222_s1 = inlined_call_operand.vmem [shape: f32[8,32], index: 1, kind: input, shape index: {}]   ;;  %s8223_s2 = inlined_call_operand.vmem [shape: bf16[32,96], index: 2, kind: input, shape index: {}]   ;;  %s8224_s3 = inlined_call_operand.vmem [shape: bf16[32,32], index: 3, kind: input, shape index: {}]   ;;  %s8225_s4 = inlined_call_operand.vmem [shape: f32[256,32], index: 4, kind: output, shape index: {}]  }
   0x1 LB: > { %s4959_s16 = sadd.s32 4294967295, %s5581_s15   ;;  %p4963_p0 = scmp.ge.s32.totalorder %s5581_s15, 1  ;;  %s5581_s15 = sphi %s5624_s15, %s14_s15  }
   0x2   : > { %p163_p1 = scmp.lt.s32.totalorder %s5581_s15, 3 }
   0x4   : > { %p164_p2 = pnand %p4963_p0, %p163_p1 }
   0x6   : > { %167 = sbr.rel (%p164_p2) target bundleno = 3489 (0xda1), region = 36 }
   0xb   : > { %s4964_s17 = sshll.u32 %s4959_s16, 4  ;;  %vm219_vm0 = vcmask 261120   ;;  %v5583_v30 = vmov 32.0   ;;  %s5584_s28 = smov 32  }
   0xc   : > { %p190_p3 = scmp.lt.s32.totalorder %s4964_s17, 31  ;;  %5284 = vrcp.f32 %v5583_v30  ;;  %s5585_s29 = smov 96  }
   0xd   : > { %s5586_s30 = smov 64   ;;  %s5587_s5 = smov 88  }
   0xe   : > { %s8520_s17 = smov (!%p190_p3, %s4964_s17), 31  ;;  %s5588_s6 = smov 120  }
   0xf   : > { %s4965_s18 = sshll.u32 %s8520_s17, 3  ;;  %s5589_s7 = smov 56  }
  0x10   : > { %s5640_s21 = scalar_lea.vmem %s8221_s0, %s4965_s18  ;;  %s5590_s8 = smov 80  }
  0x11   : > { %v207_v0 = vld [vmem:[%s5640_s21 + $0x20] sm:$0xff]  ;;  %v5647_v4 = vld [vmem:[%s5640_s21 + $0x10] sm:$0xff]  ;;  %v5652_v6 = vld [vmem:[%s5640_s21 + $0x28] sm:$0xff]  ;;  %s5591_s9 = smov 112   ;;  %s5592_s10 = smov 48  }
  0x12   : > { %v203_v1 = vld [vmem:[%s5640_s21] sm:$0xff]  ;;  %v232_v2 = vsel %vm219_vm0, %v207_v0, 0.0  ;;  %v226_v5 = vsel %vm219_vm0, %v5647_v4, 0.0  ;;  %v5655_v7 = vld [vmem:[%s5640_s21 + $0x8] sm:$0xff]  ;;  %v5658_v8 = vld [vmem:[%s5640_s21 + $0x18] sm:$0xff]  ;;  %v235_v9 = vsel %vm219_vm0, %v5652_v6, 0.0  ;;  %v5285_v31 = vpop.eup %5284 }
  0x13   : > { %v220_v3 = vsel %vm219_vm0, %v203_v1, 0.0  ;;  %233 = vadd.xlane.f32.xlu2 %v232_v2  ;;  %227 = vadd.xlane.f32.xlu1 %v226_v5  ;;  %v223_v10 = vsel %vm219_vm0, %v5655_v7, 0.0  ;;  %v229_v11 = vsel %vm219_vm0, %v5658_v8, 0.0  ;;  %v5667_v12 = vld [vmem:[%s5640_s21 + $0x30] sm:$0xff]  ;;  %v5670_v13 = vld [vmem:[%s5640_s21 + $0x40] sm:$0xff]  ;;  %v5673_v14 = vld [vmem:[%s5640_s21 + $0x48] sm:$0xff]  ;;  %vm273_vm1 = vweird.f32 %v5285_v31 }
  0x14   : > { %221 = vadd.xlane.f32.xlu0 %v220_v3  ;;  %v238_v15 = vsel %vm219_vm0, %v5667_v12, 0.0  ;;  %v244_v16 = vsel %vm219_vm0, %v5670_v13, 0.0  ;;  %v247_v17 = vsel %vm219_vm0, %v5673_v14, 0.0  ;;  %v5682_v18 = vld [vmem:[%s5640_s21 + $0x38] sm:$0xff]  ;;  %v5685_v19 = vld [vmem:[%s5640_s21 + $0x60] sm:$0xff]  ;;  %v5692_v22 = vld [vmem:[%s5640_s21 + $0x50] sm:$0xff] }
  0x15   : > { %v241_v20 = vsel %vm219_vm0, %v5682_v18, 0.0  ;;  %v256_v21 = vsel %vm219_vm0, %v5685_v19, 0.0  ;;  %v250_v23 = vsel %vm219_vm0, %v5692_v22, 0.0  ;;  %v5697_v24 = vld [vmem:[%s5640_s21 + $0x68] sm:$0xff]  ;;  %v5702_v26 = vld [vmem:[%s5640_s21 + $0x78] sm:$0xff]  ;;  %v5707_v28 = vld [vmem:[%s5640_s21 + $0x70] sm:$0xff] }
  0x16   : > { %v259_v25 = vsel %vm219_vm0, %v5697_v24, 0.0  ;;  %v265_v27 = vsel %vm219_vm0, %v5702_v26, 0.0  ;;  %v262_v29 = vsel %vm219_vm0, %v5707_v28, 0.0  ;;  %v269_v32 = vmul.f32 32.0, %v5285_v31  ;;  %v5729_v54 = vld [vmem:[%s5640_s21 + $0x58] sm:$0xff]  ;;  %s5593_s11 = smov 72  }
  0x17   : > { %v253_v57 = vsel %vm219_vm0, %v5729_v54, 0.0  ;;  %s5594_s12 = smov 104   ;;  %s5595_s13 = smov 40  }
  0x18   : > { %v270_v33 = vsub.f32 1.0, %v269_v32  ;;  %s5596_s14 = smov 8   ;;  %s5597_s16 = smov 16  }
  0x19   : > { %s5598_s19 = smov 24  }
  0x1a   : > { %v271_v34 = vmul.f32 %v5285_v31, %v270_v33 }
  0x1b   : > { %236 = vadd.xlane.f32.xlu2 %v235_v9  ;;  %230 = vadd.xlane.f32.xlu1 %v229_v11 }
  0x1c   : > { %224 = vadd.xlane.f32.xlu0 %v223_v10  ;;  %v272_v35 = vadd.f32 %v5285_v31, %v271_v34 }
  0x1e   : > { %v5711_v36 = vsel %vm273_vm1, %v5285_v31, %v272_v35 }
  0x23   : > { %239 = vadd.xlane.f32.xlu2 %v238_v15  ;;  %248 = vadd.xlane.f32.xlu1 %v247_v17 }
  0x24   : > { %245 = vadd.xlane.f32.xlu0 %v244_v16 }
  0x2b   : > { %257 = vadd.xlane.f32.xlu2 %v256_v21 }
  0x2c   : > { %242 = vadd.xlane.f32.xlu0 %v241_v20 }
  0x33   : > { %263 = vadd.xlane.f32.xlu2 %v262_v29 }
  0x34   : > { %251 = vadd.xlane.f32.xlu0 %v250_v23 }
  0x3c   : > { %260 = vadd.xlane.f32.xlu0 %v259_v25 }
  0x44   : > { %266 = vadd.xlane.f32.xlu0 %v265_v27 }
  0x86   : > { %v234_v37 = vpop.xlane.xlu2 %233  ;;  %v228_v41 = vpop.xlane.xlu1 %227 }
  0x87   : > { %v222_v38 = vpop.xlane.xlu0 %221  ;;  %v279_v39 = vmul.f32 %v5711_v36, %v234_v37  ;;  %v277_v50 = vmul.f32 %v5711_v36, %v228_v41 }
  0x88   : > { %v275_v40 = vmul.f32 %v5711_v36, %v222_v38 }
  0x89   : > { %v5715_v42 = vsub.f32 %v207_v0, %v279_v39  ;;  %v5735_v56 = vsub.f32 %v5647_v4, %v277_v50 }
  0x8a   : > { %v5717_v43 = vsub.f32 %v203_v1, %v275_v40 }
  0x8b   : > { %v311_v44 = vmul.f32 %v5715_v42, %v5715_v42  ;;  %v309_v2 = vmul.f32 %v5735_v56, %v5735_v56 }
  0x8c   : > { %v307_v45 = vmul.f32 %v5717_v43, %v5717_v43 }
  0x8d   : > { %v335_v46 = vsel %vm219_vm0, %v311_v44, 0.0  ;;  %v329_v9 = vsel %vm219_vm0, %v309_v2, 0.0 }
  0x8e   : > { %v323_v47 = vsel %vm219_vm0, %v307_v45, 0.0  ;;  %v237_v48 = vpop.xlane.xlu2 %236  ;;  %336 = vadd.xlane.f32.xlu0 %v335_v46  ;;  %v231_v52 = vpop.xlane.xlu1 %230 }
  0x8f   : > { %324 = vadd.xlane.f32.xlu1 %v323_v47  ;;  %v225_v49 = vpop.xlane.xlu0 %224  ;;  %v278_v53 = vmul.f32 %v5711_v36, %v231_v52  ;;  %v280_v63 = vmul.f32 %v5711_v36, %v237_v48 }
  0x90   : > { %v276_v51 = vmul.f32 %v5711_v36, %v225_v49 }
  0x91   : > { %v5742_v59 = vsub.f32 %v5658_v8, %v278_v53  ;;  %v5131_v53 = vld [vmem:[%s8223_s2 + $0x8] sm:$0xff] }
  0x92   : > { %v5732_v55 = vsub.f32 %v5655_v7, %v276_v51  ;;  %v5756_v7 = vsub.f32 %v5652_v6, %v280_v63  ;;  %667 = vmatpush.bf16.msra.mxu0 %v5131_v53  ;;  %5134 = vmatpush.bf16.msra.mxu1 %v5131_v53 }
  0x93   : > { %v310_v4 = vmul.f32 %v5742_v59, %v5742_v59  ;;  %5135 = vmatpush.bf16.msra.mxu2 %v5131_v53  ;;  %5136 = vmatpush.bf16.msra.mxu3 %v5131_v53 }
  0x94   : > { %v308_v58 = vmul.f32 %v5732_v55, %v5732_v55  ;;  %v312_v6 = vmul.f32 %v5756_v7, %v5756_v7 }
  0x95   : > { %v332_v11 = vsel %vm219_vm0, %v310_v4, 0.0 }
  0x96   : > { %v326_v60 = vsel %vm219_vm0, %v308_v58, 0.0  ;;  %v240_v61 = vpop.xlane.xlu2 %239  ;;  %v249_v1 = vpop.xlane.xlu1 %248  ;;  %v338_v20 = vsel %vm219_vm0, %v312_v6, 0.0 }
  0x97   : > { %254 = vadd.xlane.f32.xlu1 %v253_v57  ;;  %327 = vadd.xlane.f32.xlu2 %v326_v60  ;;  %v246_v62 = vpop.xlane.xlu0 %245  ;;  %v281_v0 = vmul.f32 %v5711_v36, %v240_v61  ;;  %v284_v3 = vmul.f32 %v5711_v36, %v249_v1  ;;  %v5130_v60 = vld [vmem:[%s8223_s2] sm:$0xff] }
  0x98   : > { %v283_v17 = vmul.f32 %v5711_v36, %v246_v62  ;;  %668 = vmatpush.bf16.msra.mxu0 %v5130_v60  ;;  %5137 = vmatpush.bf16.msra.mxu1 %v5130_v60 }
  0x99   : > { %v5753_v5 = vsub.f32 %v5667_v12, %v281_v0  ;;  %v5762_v10 = vsub.f32 %v5673_v14, %v284_v3  ;;  %5138 = vmatpush.bf16.msra.mxu2 %v5130_v60  ;;  %5139 = vmatpush.bf16.msra.mxu3 %v5130_v60 }
  0x9a   : > { %v5774_v21 = vsub.f32 %v5670_v13, %v283_v17 }
  0x9b   : > { %v313_v8 = vmul.f32 %v5753_v5, %v5753_v5  ;;  %v316_v12 = vmul.f32 %v5762_v10, %v5762_v10 }
  0x9c   : > { %v315_v30 = vmul.f32 %v5774_v21, %v5774_v21 }
  0x9d   : > { %v341_v15 = vsel %vm219_vm0, %v313_v8, 0.0  ;;  %v350_v14 = vsel %vm219_vm0, %v316_v12, 0.0 }
  0x9e   : > { %342 = vadd.xlane.f32.xlu0 %v341_v15  ;;  %v258_v32 = vpop.xlane.xlu2 %257  ;;  %v347_v33 = vsel %vm219_vm0, %v315_v30, 0.0 }
  0x9f   : > { %330 = vadd.xlane.f32.xlu1 %v329_v9  ;;  %v243_v16 = vpop.xlane.xlu0 %242  ;;  %333 = vadd.xlane.f32.xlu2 %v332_v11  ;;  %v287_v37 = vmul.f32 %v5711_v36, %v258_v32 }
  0xa0   : > { %v282_v27 = vmul.f32 %v5711_v36, %v243_v16 }
  0xa2   : > { %v5786_v13 = vsub.f32 %v5682_v18, %v282_v27  ;;  %v5798_v18 = vsub.f32 %v5685_v19, %v287_v37 }
  0xa4   : > { %v314_v39 = vmul.f32 %v5786_v13, %v5786_v13 }
  0xa6   : > { %v344_v41 = vsel %vm219_vm0, %v314_v39, 0.0  ;;  %v264_v50 = vpop.xlane.xlu2 %263 }
  0xa7   : > { %339 = vadd.xlane.f32.xlu1 %v338_v20  ;;  %v252_v23 = vpop.xlane.xlu0 %251  ;;  %351 = vadd.xlane.f32.xlu2 %v350_v14  ;;  %v289_v8 = vmul.f32 %v5711_v36, %v264_v50 }
  0xa8   : > { %v285_v25 = vmul.f32 %v5711_v36, %v252_v23 }
  0xa9   : > { %v5836_v6 = vsub.f32 %v5707_v28, %v289_v8 }
  0xaa   : > { %v5779_v29 = vsub.f32 %v5692_v22, %v285_v25 }
  0xac   : > { %v317_v31 = vmul.f32 %v5779_v29, %v5779_v29 }
  0xae   : > { %v353_v34 = vsel %vm219_vm0, %v317_v31, 0.0 }
  0xaf   : > { %348 = vadd.xlane.f32.xlu1 %v347_v33  ;;  %v261_v35 = vpop.xlane.xlu0 %260  ;;  %354 = vadd.xlane.f32.xlu2 %v353_v34 }
  0xb0   : > { %v288_v22 = vmul.f32 %v5711_v36, %v261_v35  ;;  %v321_v35 = vmul.f32 %v5836_v6, %v5836_v6 }
  0xb2   : > { %v5793_v38 = vsub.f32 %v5697_v24, %v288_v22  ;;  %v319_v24 = vmul.f32 %v5798_v18, %v5798_v18 }
  0xb4   : > { %v320_v40 = vmul.f32 %v5793_v38, %v5793_v38  ;;  %v359_v47 = vsel %vm219_vm0, %v319_v24, 0.0 }
  0xb6   : > { %v362_v44 = vsel %vm219_vm0, %v320_v40, 0.0 }
  0xb7   : > { %345 = vadd.xlane.f32.xlu1 %v344_v41  ;;  %v267_v45 = vpop.xlane.xlu0 %266  ;;  %363 = vadd.xlane.f32.xlu2 %v362_v44  ;;  %v365_v44 = vsel %vm219_vm0, %v321_v35, 0.0 }
  0xb8   : > { %v290_v46 = vmul.f32 %v5711_v36, %v267_v45 }
  0xba   : > { %v5809_v19 = vsub.f32 %v5702_v26, %v290_v46 }
  0xbc   : > { %v322_v48 = vmul.f32 %v5809_v19, %v5809_v19 }
  0xbe   : > { %v368_v49 = vsel %vm219_vm0, %v322_v48, 0.0 }
  0xbf   : > { %360 = vadd.xlane.f32.xlu1 %v359_v47 }
  0xc7   : > { %369 = vadd.xlane.f32.xlu1 %v368_v49 }
 0x101   : > { %v337_v52 = vpop.xlane.xlu0 %336 }
 0x102   : > { %v325_v51 = vpop.xlane.xlu1 %324  ;;  %v375_v58 = vmul.f32 %v337_v52, %v5711_v36 }
 0x103   : > { %v371_v57 = vmul.f32 %v325_v51, %v5711_v36 }
 0x104   : > { %v5822_v61 = vadd.f32 1e-05, %v375_v58 }
 0x105   : > { %v387_v26 = vadd.f32 1e-05, %v371_v57  ;;  %v5872_v57 = vld [vmem:[%s8222_s1] sm:$0xff] }
 0x106   : > { %v5887_v8 = vperm.slane %v5872_v57, 0  ;;  %vm449_vm8 = vweird.f32 %v5822_v61 }
 0x107   : > { %5286 = vrsqrt.f32 %v387_v26  ;;  %vm409_vm3 = vweird.f32 %v387_v26 }
 0x108   : > { %5288 = vrsqrt.f32 %v5822_v61 }
 0x10a   : > { %v255_v62 = vpop.xlane.xlu1 %254  ;;  %v328_v63 = vpop.xlane.xlu2 %327 }
 0x10b   : > { %v286_v0 = vmul.f32 %v5711_v36, %v255_v62  ;;  %v372_v1 = vmul.f32 %v328_v63, %v5711_v36 }
 0x10d   : > { %v5287_v2 = vpop.eup %5286  ;;  %v5828_v3 = vsub.f32 %v5729_v54, %v286_v0  ;;  %v388_v4 = vadd.f32 1e-05, %v372_v1 }
 0x10e   : > { %v404_v9 = vmul.f32 %v5287_v2, %v387_v26  ;;  %v5833_v16 = vpop.eup %5288  ;;  %vm410_vm2 = vweird.f32 %v5287_v2 }
 0x10f   : > { %5290 = vrsqrt.f32 %v388_v4  ;;  %v318_v15 = vmul.f32 %v5828_v3, %v5828_v3  ;;  %v444_v32 = vmul.f32 %v5833_v16, %v5822_v61  ;;  %vm419_vm4 = vweird.f32 %v388_v4  ;;  %vm5857_vm5 = vmor %vm409_vm3, %vm410_vm2 }
 0x110   : > { %v405_v11 = vmul.f32 %v5287_v2, %v404_v9  ;;  %vm450_vm9 = vweird.f32 %v5833_v16 }
 0x111   : > { %v356_v17 = vsel %vm219_vm0, %v318_v15, 0.0  ;;  %v343_v54 = vpop.xlane.xlu0 %342  ;;  %v445_v40 = vmul.f32 %v5833_v16, %v444_v32  ;;  %vm5913_vm10 = vmor %vm449_vm8, %vm450_vm9 }
 0x112   : > { %v406_v12 = vmul.f32 0.5, %v405_v11  ;;  %v331_v20 = vpop.xlane.xlu1 %330  ;;  %357 = vadd.xlane.f32.xlu0 %v356_v17  ;;  %v334_v23 = vpop.xlane.xlu2 %333  ;;  %v377_v27 = vmul.f32 %v343_v54, %v5711_v36 }
 0x113   : > { %v373_v14 = vmul.f32 %v331_v20, %v5711_v36  ;;  %v374_v25 = vmul.f32 %v334_v23, %v5711_v36  ;;  %v446_v52 = vmul.f32 0.5, %v445_v40 }
 0x114   : > { %v407_v31 = vsub.f32 1.5, %v406_v12  ;;  %v5852_v37 = vadd.f32 1e-05, %v377_v27 }
 0x115   : > { %v5291_v30 = vpop.eup %5290  ;;  %v5844_v28 = vadd.f32 1e-05, %v373_v14  ;;  %v5846_v34 = vadd.f32 1e-05, %v374_v25  ;;  %v447_v9 = vsub.f32 1.5, %v446_v52 }
 0x116   : > { %v414_v33 = vmul.f32 %v5291_v30, %v388_v4  ;;  %v408_v39 = vmul.f32 %v5287_v2, %v407_v31  ;;  %vm420_vm6 = vweird.f32 %v5291_v30  ;;  %vm469_vm8 = vweird.f32 %v5852_v37 }
 0x117   : > { %5292 = vrsqrt.f32 %v5844_v28  ;;  %vm421_vm7 = vmor %vm419_vm4, %vm420_vm6  ;;  %vm439_vm12 = vweird.f32 %v5846_v34  ;;  %vm429_vm14 = vweird.f32 %v5844_v28 }
 0x118   : > { %v415_v22 = vmul.f32 %v5291_v30, %v414_v33  ;;  %5294 = vrsqrt.f32 %v5846_v34  ;;  %v412_v51 = vsel %vm5857_vm5, %v5287_v2, %v408_v39 }
 0x119   : > { %5296 = vrsqrt.f32 %v5852_v37  ;;  %v563_v2 = vmul.f32 %v412_v51, %v5717_v43 }
 0x11a   : > { %v416_v41 = vmul.f32 0.5, %v415_v22  ;;  %v340_v45 = vpop.xlane.xlu1 %339  ;;  %366 = vadd.xlane.f32.xlu0 %v365_v44  ;;  %v352_v46 = vpop.xlane.xlu2 %351 }
 0x11b   : > { %v376_v24 = vmul.f32 %v340_v45, %v5711_v36  ;;  %v380_v49 = vmul.f32 %v352_v46, %v5711_v36  ;;  %v580_v25 = vmul.f32 %v5887_v8, %v563_v2  ;;  %v727_v2 = vperm.slane %v5872_v57, 3 }
 0x11c   : > { %v417_v48 = vsub.f32 1.5, %v416_v41 }
 0x11d   : > { %v5863_v50 = vpop.eup %5292  ;;  %v5867_v53 = vadd.f32 1e-05, %v376_v24  ;;  %v5878_v62 = vadd.f32 1e-05, %v380_v49  ;;  %729 = vrot.lane.b32.xlu2 %v727_v2, %s5584_s28 }
 0x11e   : > { %v5874_v58 = vpop.eup %5294  ;;  %v418_v26 = vmul.f32 %v5291_v30, %v417_v48  ;;  %v424_v60 = vmul.f32 %v5863_v50, %v5844_v28  ;;  %vm430_vm11 = vweird.f32 %v5863_v50 }
 0x11f   : > { %v434_v63 = vmul.f32 %v5874_v58, %v5846_v34  ;;  %5298 = vrsqrt.f32 %v5867_v53  ;;  %v5892_v15 = vpop.eup %5296  ;;  %vm440_vm13 = vweird.f32 %v5874_v58  ;;  %vm5936_vm15 = vmor %vm429_vm14, %vm430_vm11  ;;  %vm459_vm1 = vweird.f32 %v5867_v53 }
 0x120   : > { %v422_v0 = vsel %vm421_vm7, %v5291_v30, %v418_v26  ;;  %v425_v1 = vmul.f32 %v5863_v50, %v424_v60  ;;  %5300 = vrsqrt.f32 %v5878_v62  ;;  %v448_v30 = vmul.f32 %v5833_v16, %v447_v9  ;;  %vm5945_vm2 = vmor %vm439_vm12, %vm440_vm13 }
 0x121   : > { %v435_v11 = vmul.f32 %v5874_v58, %v434_v63  ;;  %v564_v4 = vmul.f32 %v422_v0, %v5732_v55  ;;  %v5902_v55 = vperm.slane %v5872_v57, 1  ;;  %v464_v32 = vmul.f32 %v5892_v15, %v5852_v37 }
 0x122   : > { %v426_v12 = vmul.f32 0.5, %v425_v1  ;;  %v349_v17 = vpop.xlane.xlu1 %348  ;;  %v5897_v54 = vpop.xlane.xlu2 %354  ;;  %v452_v46 = vsel %vm5913_vm10, %v5833_v16, %v448_v30  ;;  %vm499_vm4 = vweird.f32 %v5878_v62  ;;  %vm470_vm9 = vweird.f32 %v5892_v15 }
 0x123   : > { %v436_v20 = vmul.f32 0.5, %v435_v11  ;;  %v379_v43 = vmul.f32 %v349_v17, %v5711_v36  ;;  %v581_v14 = vmul.f32 %v5887_v8, %v564_v4  ;;  %v597_v24 = vadd.f32 %v5902_v55, %v580_v25  ;;  %vm5999_vm12 = vmor %vm469_vm8, %vm470_vm9 }
 0x124   : > { %v427_v23 = vsub.f32 1.5, %v426_v12  ;;  %v465_v34 = vmul.f32 %v5892_v15, %v464_v32 }
 0x125   : > { %v5904_v27 = vpop.eup %5298  ;;  %v437_v31 = vsub.f32 1.5, %v436_v20  ;;  %v5909_v33 = vadd.f32 1e-05, %v379_v43  ;;  %v598_v40 = vadd.f32 %v5902_v55, %v581_v14 }
 0x126   : > { %v428_v22 = vmul.f32 %v5863_v50, %v427_v23  ;;  %v454_v39 = vmul.f32 %v5904_v27, %v5867_v53  ;;  %v5922_v41 = vpop.eup %5300  ;;  %vm460_vm3 = vweird.f32 %v5904_v27  ;;  %v466_v11 = vmul.f32 0.5, %v465_v34 }
 0x127   : > { %v438_v44 = vmul.f32 %v5874_v58, %v437_v31  ;;  %5302 = vrsqrt.f32 %v5909_v33  ;;  %v494_v45 = vmul.f32 %v5922_v41, %v5878_v62  ;;  %v613_v16 = vpack.c.bf16 %v598_v40, %v597_v24  ;;  %vm461_vm6 = vmor %vm459_vm1, %vm460_vm3 }
 0x128   : > { %v455_v61 = vmul.f32 %v5904_v27, %v454_v39  ;;  %v432_v28 = vsel %vm5936_vm15, %v5863_v50, %v428_v22  ;;  %vm500_vm5 = vweird.f32 %v5922_v41  ;;  %v467_v31 = vsub.f32 1.5, %v466_v11 }
 0x129   : > { %v495_v51 = vmul.f32 %v5922_v41, %v494_v45  ;;  %v442_v26 = vsel %vm5945_vm2, %v5874_v58, %v438_v44  ;;  %4976 = vmatmul.msk.bf16.vlgmr.msra.gmra.mxu0 %vm219_vm0, %v613_v16  ;;  %v565_v4 = vmul.f32 %v432_v28, %v5735_v56  ;;  %v567_v56 = vmul.f32 %v452_v46, %v5715_v42  ;;  %vm5980_vm7 = vmor %vm499_vm4, %vm500_vm5 }
 0x12a   : > { %v456_v49 = vmul.f32 0.5, %v455_v61  ;;  %v346_v52 = vpop.xlane.xlu1 %345  ;;  %v364_v50 = vpop.xlane.xlu2 %363  ;;  %v566_v43 = vmul.f32 %v442_v26, %v5742_v59  ;;  %vm489_vm11 = vweird.f32 %v5909_v33 }
 0x12b   : > { %v378_v60 = vmul.f32 %v346_v52, %v5711_v36  ;;  %v496_v0 = vmul.f32 0.5, %v495_v51  ;;  %v384_v1 = vmul.f32 %v364_v50, %v5711_v36  ;;  %v582_v53 = vmul.f32 %v5887_v8, %v565_v4 }
 0x12c   : > { %v457_v63 = vsub.f32 1.5, %v456_v49  ;;  %v583_v35 = vmul.f32 %v5887_v8, %v566_v43  ;;  %v584_v39 = vmul.f32 %v5887_v8, %v567_v56 }
 0x12d   : > { %v5303_v9 = vpop.eup %5302  ;;  %v5960_v58 = vadd.f32 1e-05, %v378_v60  ;;  %v497_v17 = vsub.f32 1.5, %v496_v0  ;;  %v5971_v14 = vadd.f32 1e-05, %v384_v1  ;;  %v599_v47 = vadd.f32 %v5902_v55, %v582_v53 }
 0x12e   : > { %v458_v12 = vmul.f32 %v5904_v27, %v457_v63  ;;  %v484_v20 = vmul.f32 %v5303_v9, %v5909_v33  ;;  %vm490_vm10 = vweird.f32 %v5303_v9  ;;  %v600_v34 = vadd.f32 %v5902_v55, %v583_v35 }
 0x12f   : > { %5304 = vrsqrt.f32 %v5960_v58  ;;  %v498_v25 = vmul.f32 %v5922_v41, %v497_v17  ;;  %vm491_vm13 = vmor %vm489_vm11, %vm490_vm10  ;;  %v601_v48 = vadd.f32 %v5902_v55, %v584_v39  ;;  %vm479_vm15 = vweird.f32 %v5960_v58 }
 0x130   : > { %v462_v23 = vsel %vm461_vm6, %v5904_v27, %v458_v12  ;;  %v485_v30 = vmul.f32 %v5303_v9, %v484_v20  ;;  %5306 = vrsqrt.f32 %v5971_v14  ;;  %v614_v0 = vpack.c.bf16 %v600_v34, %v599_v47 }
 0x131   : > { %v502_v42 = vsel %vm5980_vm7, %v5922_v41, %v498_v25  ;;  %v568_v22 = vmul.f32 %v462_v23, %v5756_v7  ;;  %v468_v41 = vmul.f32 %v5892_v15, %v467_v31  ;;  %vm539_vm1 = vweird.f32 %v5971_v14 }
 0x132   : > { %v486_v27 = vmul.f32 0.5, %v485_v30  ;;  %v361_v32 = vpop.xlane.xlu1 %360  ;;  %v572_v7 = vmul.f32 %v502_v42, %v5762_v10 }
 0x133   : > { %v383_v62 = vmul.f32 %v361_v32, %v5711_v36  ;;  %v585_v44 = vmul.f32 %v5887_v8, %v568_v22  ;;  %v472_v16 = vsel %vm5999_vm12, %v5892_v15, %v468_v41 }
 0x134   : > { %v487_v40 = vsub.f32 1.5, %v486_v27  ;;  %v589_v60 = vmul.f32 %v5887_v8, %v572_v7  ;;  %v569_v11 = vmul.f32 %v472_v16, %v5753_v5 }
 0x135   : > { %v5305_v61 = vpop.eup %5304  ;;  %v399_v45 = vadd.f32 1e-05, %v383_v62  ;;  %v602_v33 = vadd.f32 %v5902_v55, %v585_v44 }
 0x136   : > { %v488_v24 = vmul.f32 %v5303_v9, %v487_v40  ;;  %v474_v46 = vmul.f32 %v5305_v61, %v5960_v58  ;;  %v5307_v28 = vpop.eup %5306  ;;  %vm480_vm14 = vweird.f32 %v5305_v61  ;;  %v606_v4 = vadd.f32 %v5902_v55, %v589_v60 }
 0x137   : > { %5308 = vrsqrt.f32 %v399_v45  ;;  %v534_v51 = vmul.f32 %v5307_v28, %v5971_v14  ;;  %v615_v52 = vpack.c.bf16 %v602_v33, %v601_v48  ;;  %vm540_vm2 = vweird.f32 %v5307_v28  ;;  %vm481_vm3 = vmor %vm479_vm15, %vm480_vm14 }
 0x138   : > { %v492_v49 = vsel %vm491_vm13, %v5303_v9, %v488_v24  ;;  %v475_v10 = vmul.f32 %v5305_v61, %v474_v46  ;;  %vm541_vm4 = vmor %vm539_vm1, %vm540_vm2  ;;  %v586_v58 = vmul.f32 %v5887_v8, %v569_v11  ;;  %vm529_vm6 = vweird.f32 %v399_v45 }
 0x139   : > { %v571_v26 = vmul.f32 %v492_v49, %v5774_v21  ;;  %v535_v63 = vmul.f32 %v5307_v28, %v534_v51  ;;  %4978 = vmatmul.msk.bf16.vlgmr.msra.gmra.mxu1 %vm219_vm0, %v615_v52  ;;  %4977 = vmatmul.msk.bf16.gmra.mxu0 %vm219_vm0, %v614_v0 }
 0x13a   : > { %v476_v50 = vmul.f32 0.5, %v475_v10  ;;  %v603_v53 = vadd.f32 %v5902_v55, %v586_v58 }
 0x13b   : > { %v588_v1 = vmul.f32 %v5887_v8, %v571_v26  ;;  %v536_v9 = vmul.f32 0.5, %v535_v63 }
 0x13c   : > { %v477_v2 = vsub.f32 1.5, %v476_v50 }
 0x13d   : > { %v5309_v15 = vpop.eup %5308  ;;  %v605_v21 = vadd.f32 %v5902_v55, %v588_v1  ;;  %v537_v17 = vsub.f32 1.5, %v536_v9 }
 0x13e   : > { %v478_v12 = vmul.f32 %v5305_v61, %v477_v2  ;;  %v524_v20 = vmul.f32 %v5309_v15, %v399_v45  ;;  %vm530_vm5 = vweird.f32 %v5309_v15  ;;  %v370_v45 = vpop.xlane.xlu1 %369 }
 0x13f   : > { %v617_v43 = vpack.c.bf16 %v606_v4, %v605_v21  ;;  %v538_v23 = vmul.f32 %v5307_v28, %v537_v17  ;;  %vm531_vm7 = vmor %vm529_vm6, %vm530_vm5  ;;  %vm822_vm5 = vcmask 64512   ;;  %vm1402_vm6 = vcmask 1043456  }
 0x140   : > { %v482_v56 = vsel %vm481_vm3, %v5305_v61, %v478_v12  ;;  %v525_v25 = vmul.f32 %v5309_v15, %v524_v20 }
 0x141   : > { %4980 = vmatmul.msk.bf16.vlgmr.msra.gmra.mxu2 %vm219_vm0, %v617_v43  ;;  %v570_v5 = vmul.f32 %v482_v56, %v5786_v13  ;;  %v542_v14 = vsel %vm541_vm4, %v5307_v28, %v538_v23 }
 0x142   : > { %v526_v30 = vmul.f32 0.5, %v525_v25  ;;  %v576_v27 = vmul.f32 %v542_v14, %v5793_v38  ;;  %v381_v38 = vmul.f32 %v5897_v54, %v5711_v36 }
 0x143   : > { %v587_v31 = vmul.f32 %v5887_v8, %v570_v5 }
 0x144   : > { %v527_v59 = vsub.f32 1.5, %v526_v30  ;;  %v593_v62 = vmul.f32 %v5887_v8, %v576_v27  ;;  %v397_v41 = vadd.f32 1e-05, %v381_v38 }
 0x145   : > { %v604_v42 = vadd.f32 %v5902_v55, %v587_v31 }
 0x146   : > { %v528_v32 = vmul.f32 %v5309_v15, %v527_v59  ;;  %v610_v44 = vadd.f32 %v5902_v55, %v593_v62  ;;  %5310 = vrsqrt.f32 %v397_v41  ;;  %vm509_vm8 = vweird.f32 %v397_v41 }
 0x147   : > { %v616_v35 = vpack.c.bf16 %v604_v42, %v603_v53 }
 0x148   : > { %v532_v22 = vsel %vm531_vm7, %v5309_v15, %v528_v32  ;;  %vm4723_vm7 = vcmask 130048  }
 0x149   : > { %v575_v13 = vmul.f32 %v532_v22, %v5798_v18  ;;  %4979 = vmatmul.msk.bf16.gmra.mxu1 %vm219_vm0, %v616_v35  ;;  %v386_v18 = vmul.f32 %v370_v45, %v5711_v36 }
 0x14b   : > { %v592_v39 = vmul.f32 %v5887_v8, %v575_v13  ;;  %v402_v7 = vadd.f32 1e-05, %v386_v18 }
 0x14c   : > { %v5311_v37 = vpop.eup %5310 }
 0x14d   : > { %v609_v40 = vadd.f32 %v5902_v55, %v592_v39  ;;  %5312 = vrsqrt.f32 %v402_v7  ;;  %v504_v24 = vmul.f32 %v5311_v37, %v397_v41  ;;  %vm510_vm9 = vweird.f32 %v5311_v37 }
 0x14e   : > { %vm511_vm10 = vmor %vm509_vm8, %vm510_vm9  ;;  %vm559_vm11 = vweird.f32 %v402_v7  ;;  %vm4740_vm8 = vcmask 195584  }
 0x14f   : > { %v619_v61 = vpack.c.bf16 %v610_v44, %v609_v40  ;;  %v505_v46 = vmul.f32 %v5311_v37, %v504_v24 }
 0x151   : > { %4982 = vmatmul.msk.bf16.vlgmr.msra.gmra.mxu3 %vm219_vm0, %v619_v61  ;;  %v506_v33 = vmul.f32 0.5, %v505_v46 }
 0x153   : > { %v5313_v34 = vpop.eup %5312  ;;  %v507_v10 = vsub.f32 1.5, %v506_v33 }
 0x154   : > { %v554_v49 = vmul.f32 %v5313_v34, %v402_v7  ;;  %vm560_vm12 = vweird.f32 %v5313_v34 }
 0x155   : > { %v508_v60 = vmul.f32 %v5311_v37, %v507_v10  ;;  %vm6042_vm14 = vmor %vm559_vm11, %vm560_vm12 }
 0x156   : > { %v555_v54 = vmul.f32 %v5313_v34, %v554_v49 }
 0x157   : > { %v512_v1 = vsel %vm511_vm10, %v5311_v37, %v508_v60 }
 0x158   : > { %v556_v50 = vmul.f32 0.5, %v555_v54 }
 0x15a   : > { %v557_v2 = vsub.f32 1.5, %v556_v50 }
 0x15c   : > { %v558_v21 = vmul.f32 %v5313_v34, %v557_v2 }
 0x15e   : > { %v562_v25 = vsel %vm6042_vm14, %v5313_v34, %v558_v21 }
 0x15f   : > { %v578_v31 = vmul.f32 %v562_v25, %v5809_v19 }
 0x161   : > { %v595_v27 = vmul.f32 %v5887_v8, %v578_v31 }
 0x163   : > { %v612_v19 = vadd.f32 %v5902_v55, %v595_v27 }
 0x177   : > { %v6057_v32 = vpop.permute.xlu2 %729 }
 0x185   : > { %v358_v47 = vpop.xlane.xlu0 %357 }
 0x186   : > { %v382_v28 = vmul.f32 %v358_v47, %v5711_v36 }
 0x188   : > { %v398_v48 = vadd.f32 1e-05, %v382_v28 }
 0x18a   : > { %5314 = vrsqrt.f32 %v398_v48  ;;  %vm519_vm15 = vweird.f32 %v398_v48 }
 0x18d   : > { %v367_v51 = vpop.xlane.xlu0 %366 }
 0x18e   : > { %v385_v16 = vmul.f32 %v367_v51, %v5711_v36  ;;  %v573_v36 = vmul.f32 %v512_v1, %v5779_v29 }
 0x190   : > { %v5315_v52 = vpop.eup %5314  ;;  %v401_v26 = vadd.f32 1e-05, %v385_v16  ;;  %v590_v23 = vmul.f32 %v5887_v8, %v573_v36 }
 0x191   : > { %v514_v63 = vmul.f32 %v5315_v52, %v398_v48  ;;  %vm520_vm13 = vweird.f32 %v5315_v52 }
 0x192   : > { %5316 = vrsqrt.f32 %v401_v26  ;;  %vm521_vm1 = vmor %vm519_vm15, %vm520_vm13  ;;  %v607_v14 = vadd.f32 %v5902_v55, %v590_v23  ;;  %vm549_vm3 = vweird.f32 %v401_v26 }
 0x193   : > { %v515_v0 = vmul.f32 %v5315_v52, %v514_v63  ;;  %v748_v63 = vperm.slane %v5872_v57, 4 }
 0x195   : > { %v516_v9 = vmul.f32 0.5, %v515_v0  ;;  %v6108_v0 = vperm.slane %v5872_v57, 2 }
 0x197   : > { %v517_v11 = vsub.f32 1.5, %v516_v9 }
 0x198   : > { %v5317_v15 = vpop.eup %5316 }
 0x199   : > { %v518_v12 = vmul.f32 %v5315_v52, %v517_v11  ;;  %v544_v17 = vmul.f32 %v5317_v15, %v401_v26  ;;  %vm550_vm2 = vweird.f32 %v5317_v15 }
 0x19a   : > { %vm551_vm4 = vmor %vm549_vm3, %vm550_vm2 }
 0x19b   : > { %v522_v20 = vsel %vm521_vm1, %v5315_v52, %v518_v12  ;;  %v545_v43 = vmul.f32 %v5317_v15, %v544_v17 }
 0x19c   : > { %v574_v56 = vmul.f32 %v522_v20, %v5828_v3 }
 0x19d   : > { %v546_v5 = vmul.f32 0.5, %v545_v43 }
 0x19e   : > { %v591_v29 = vmul.f32 %v5887_v8, %v574_v56 }
 0x19f   : > { %v547_v58 = vsub.f32 1.5, %v546_v5 }
 0x1a0   : > { %v608_v30 = vadd.f32 %v5902_v55, %v591_v29 }
 0x1a1   : > { %v548_v59 = vmul.f32 %v5317_v15, %v547_v58 }
 0x1a2   : > { %v618_v3 = vpack.c.bf16 %v608_v30, %v607_v14 }
 0x1a3   : > { %v552_v53 = vsel %vm551_vm4, %v5317_v15, %v548_v59 }
 0x1a4   : > { %4981 = vmatmul.msk.bf16.gmra.mxu2 %vm219_vm0, %v618_v3  ;;  %v577_v42 = vmul.f32 %v552_v53, %v5836_v6 }
 0x1a6   : > { %v594_v35 = vmul.f32 %v5887_v8, %v577_v42  ;;  %v6060_v22 = vpop.f32.mrf.mxu0 }
 0x1a7   : > { %v732_v62 = vadd.f32 %v6057_v32, %v6060_v22  ;;  %v711_v9 = vadd.f32 %v6108_v0, %v6060_v22 }
 0x1a8   : > { %v611_v13 = vadd.f32 %v5902_v55, %v594_v35 }
 0x1a9   : > { %v785_v40 = vpack.c.bf16 %v732_v62, %v732_v62  ;;  %v6113_v11 = vpack.c.bf16 %v711_v9, %v711_v9 }
 0x1aa   : > { %v620_v39 = vpack.c.bf16 %v612_v19, %v611_v13 }
 0x1ab   : > { %v818_v6 = vunpack.c.l.b16 %v785_v40 }
 0x1ac   : > { %4983 = vmatmul.msk.bf16.gmra.mxu3 %vm219_vm0, %v620_v39 }
 0x1ad   : > { %v6067_v44 = vpack.c.b16 %v818_v6, %v818_v6 }
 0x1ae   : > { %v672_v61 = vpop.f32.mrf.mxu0 }
 0x1af   : > { %8318 = vst [vmem:[#allocation2_spill] sm:$0xff] %v6067_v44  ;;  %v733_v38 = vadd.f32 %v6057_v32, %v672_v61  ;;  %820 = vrot.lane.b32.xlu0 %v6067_v44, %s5585_s29  ;;  %v712_v4 = vadd.f32 %v6108_v0, %v672_v61 }
 0x1b1   : > { %v786_v8 = vpack.c.bf16 %v733_v38, %v733_v38  ;;  %v6120_v12 = vpack.c.bf16 %v712_v4, %v712_v4 }
 0x1b3   : > { %v843_v41 = vunpack.c.l.b16 %v786_v8 }
 0x1b5   : > { %v6072_v55 = vpack.c.b16 %v843_v41, %v843_v41 }
 0x1b6   : > { %v680_v45 = vpop.f32.mrf.mxu1 }
 0x1b7   : > { %8319 = vst [vmem:[#allocation3_spill] sm:$0xff] %v6072_v55  ;;  %v736_v18 = vadd.f32 %v6057_v32, %v680_v45  ;;  %845 = vrot.lane.b32.xlu1 %v6072_v55, %s5585_s29  ;;  %v715_v17 = vadd.f32 %v6108_v0, %v680_v45 }
 0x1b9   : > { %v789_v7 = vpack.c.bf16 %v736_v18, %v736_v18  ;;  %v6125_v20 = vpack.c.bf16 %v715_v17, %v715_v17 }
 0x1bb   : > { %v915_v37 = vunpack.c.l.b16 %v789_v7 }
 0x1bd   : > { %v6077_v24 = vpack.c.b16 %v915_v37, %v915_v37 }
 0x1be   : > { %v6081_v46 = vpop.f32.mrf.mxu1 }
 0x1bf   : > { %8320 = vst [vmem:[#allocation4_spill] sm:$0xff] %v6077_v24  ;;  %917 = vrot.lane.b32.xlu2 %v6077_v24, %s5585_s29  ;;  %v737_v28 = vadd.f32 %v6057_v32, %v6081_v46 }
 0x1c1   : > { %v790_v49 = vpack.c.bf16 %v737_v28, %v737_v28 }
 0x1c3   : > { %v939_v54 = vunpack.c.l.b16 %v790_v49 }
 0x1c4   : > { %v6083_v47 = vpop.f32.mrf.mxu2 }
 0x1c5   : > { %v740_v34 = vadd.f32 %v6057_v32, %v6083_v47  ;;  %v6093_v51 = vpack.c.b16 %v939_v54, %v939_v54 }
 0x1c7   : > { %v793_v48 = vpack.c.bf16 %v740_v34, %v740_v34  ;;  %8322 = vst [vmem:[#allocation6_spill] sm:$0xff] %v6093_v51 }
 0x1c9   : > { %v1011_v33 = vunpack.c.l.b16 %v793_v48 }
 0x1cb   : > { %v6089_v10 = vpack.c.b16 %v1011_v33, %v1011_v33 }
 0x1cc   : > { %v6131_v56 = vpop.f32.mrf.mxu2 }
 0x1cd   : > { %8321 = vst [vmem:[#allocation5_spill] sm:$0xff] %v6089_v10  ;;  %1013 = vrot.lane.b32.xlu1 %v6089_v10, %s5585_s29  ;;  %v741_v58 = vadd.f32 %v6057_v32, %v6131_v56 }
 0x1cf   : > { %v794_v35 = vpack.c.bf16 %v741_v58, %v741_v58 }
 0x1d1   : > { %v1035_v38 = vunpack.c.l.b16 %v794_v35 }
 0x1d3   : > { %v6169_v37 = vpack.c.b16 %v1035_v38, %v1035_v38 }
 0x1d4   : > { %v6095_v16 = vpop.f32.mrf.mxu3 }
 0x1d5   : > { %v744_v52 = vadd.f32 %v6057_v32, %v6095_v16  ;;  %941 = vrot.lane.b32.xlu1 %v6093_v51, %s5585_s29  ;;  %8324 = vst [vmem:[#allocation8_spill] sm:$0xff] %v6169_v37 }
 0x1d7   : > { %v797_v26 = vpack.c.bf16 %v744_v52, %v744_v52  ;;  %v6177_v52 = vpop.f32.mrf.mxu0 }
 0x1d9   : > { %v1107_v60 = vunpack.c.l.b16 %v797_v26 }
 0x1db   : > { %v6101_v50 = vpack.c.b16 %v1107_v60, %v1107_v60 }
 0x1dc   : > { %v6153_v40 = vpop.f32.mrf.mxu3 }
 0x1dd   : > { %1109 = vrot.lane.b32.xlu0 %v6101_v50, %s5585_s29  ;;  %v745_v8 = vadd.f32 %v6057_v32, %v6153_v40 }
 0x1df   : > { %v798_v34 = vpack.c.bf16 %v745_v8, %v745_v8 }
 0x1e1   : > { %v1131_v60 = vunpack.c.l.b16 %v798_v34 }
 0x1e5   : > { %750 = vrot.lane.b32.xlu0 %v748_v63, %s5586_s30 }
 0x219   : > { %v918_v15 = vpop.permute.xlu2 %917 }
 0x21a   : > { %v923_v57 = vsel %vm822_vm5, %v918_v15, 0 }
 0x221   : > { %v821_v1 = vpop.permute.xlu0 %820 }
 0x222   : > { %v827_v2 = vsel %vm822_vm5, %v821_v1, 0 }
 0x223   : > { %836 = vmatpush.bf16.xpose.msrb.mxu1 %v827_v2  ;;  %v734_v2 = vadd.f32 %v6057_v32, %v6177_v52 }
 0x225   : > { %v787_v4 = vpack.c.bf16 %v734_v2, %v734_v2 }
 0x227   : > { %v6145_v13 = vpop.f32.mrf.mxu2 }
 0x229   : > { %v846_v36 = vpop.permute.xlu1 %845 }
 0x22a   : > { %4984 = vmatmul.msk.bf16.vlgmr.msrb.gmra.mxu1 %vm822_vm5, %v6113_v11  ;;  %v851_v21 = vsel %vm822_vm5, %v846_v36, 0  ;;  %v6191_v36 = vpack.c.b16 %v1131_v60, %v1131_v60 }
 0x22b   : > { %860 = vmatpush.bf16.xpose.msrb.mxu2 %v851_v21 }
 0x22c   : > { %8327 = vst [vmem:[#allocation11_spill] sm:$0xff] %v6191_v36 }
 0x22f   : > { %v6173_v33 = vpop.f32.mrf.mxu2 }
 0x230   : > { %v743_v63 = vadd.f32 %v6057_v32, %v6173_v33 }
 0x232   : > { %4985 = vmatmul.msk.bf16.vlgmr.msrb.gmra.mxu2 %vm822_vm5, %v6120_v12  ;;  %v796_v21 = vpack.c.bf16 %v743_v63, %v743_v63 }
 0x233   : > { %932 = vmatpush.bf16.xpose.msra.mxu2 %v923_v57 }
 0x242   : > { %4988 = vmatmul.msk.bf16.vlgmr.msra.gmra.mxu2 %vm822_vm5, %v6125_v20 }
 0x24f   : > { %v6129_v43 = vpop.permute.xlu0 %1109 }
 0x257   : > { %v6133_v23 = vpop.permute.xlu0 %750 }
 0x258   : > { %v757_v25 = vadd.f32 %v6133_v23, %v680_v45  ;;  %v754_v5 = vadd.f32 %v6133_v23, %v672_v61  ;;  %v753_v29 = vadd.f32 %v6133_v23, %v6060_v22  ;;  %v762_v59 = vadd.f32 %v6133_v23, %v6131_v56  ;;  %v6159_v61 = vpop.f32.mrf.mxu1 }
 0x259   : > { %v761_v3 = vadd.f32 %v6133_v23, %v6083_v47  ;;  %v759_v45 = vadd.f32 %v6133_v23, %v6159_v61  ;;  %v758_v7 = vadd.f32 %v6133_v23, %v6081_v46  ;;  %v738_v26 = vadd.f32 %v6057_v32, %v6159_v61 }
 0x25a   : > { %v805_v14 = vpack.c.bf16 %v757_v25, %v757_v25  ;;  %v802_v30 = vpack.c.bf16 %v754_v5, %v754_v5  ;;  %v801_v31 = vpack.c.bf16 %v753_v29, %v753_v29  ;;  %v810_v39 = vpack.c.bf16 %v762_v59, %v762_v59 }
 0x25b   : > { %v809_v6 = vpack.c.bf16 %v761_v3, %v761_v3  ;;  %v807_v48 = vpack.c.bf16 %v759_v45, %v759_v45  ;;  %v806_v54 = vpack.c.bf16 %v758_v7, %v758_v7  ;;  %v791_v15 = vpack.c.bf16 %v738_v26, %v738_v26 }
 0x25c   : > { %v1492_v53 = vunpack.c.l.b16 %v805_v14  ;;  %v1420_v42 = vunpack.c.l.b16 %v802_v30  ;;  %v1395_v27 = vunpack.c.l.b16 %v801_v31  ;;  %v1612_v41 = vunpack.c.l.b16 %v810_v39  ;;  %v6209_v31 = vpop.f32.mrf.mxu3 }
 0x25d   : > { %v1588_v18 = vunpack.c.l.b16 %v809_v6  ;;  %v1540_v1 = vunpack.c.l.b16 %v807_v48  ;;  %v1516_v9 = vunpack.c.l.b16 %v806_v54  ;;  %v963_v25 = vunpack.c.l.b16 %v791_v15 }
 0x25e   : > { %v6147_v19 = vpack.c.b16 %v1492_v53, %v1492_v53  ;;  %v6149_v22 = vpack.c.b16 %v1420_v42, %v1420_v42  ;;  %v6151_v62 = vpack.c.b16 %v1395_v27, %v1395_v27  ;;  %v6171_v28 = vpack.c.b16 %v1612_v41, %v1612_v41 }
 0x25f   : > { %v6175_v49 = vpack.c.b16 %v1588_v18, %v1588_v18  ;;  %v6193_v57 = vpack.c.b16 %v1540_v1, %v1540_v1  ;;  %v6195_v17 = vpack.c.b16 %v1516_v9, %v1516_v9  ;;  %v1083_v5 = vunpack.c.l.b16 %v796_v21 }
 0x260   : > { %8323 = vst [vmem:[#allocation7_spill] sm:$0xff] %v6151_v62  ;;  %1494 = vrot.lane.b32.xlu0 %v6147_v19, %s5586_s30  ;;  %1422 = vrot.lane.b32.xlu1 %v6149_v22, %s5586_s30  ;;  %v755_v29 = vadd.f32 %v6133_v23, %v6177_v52  ;;  %v765_v58 = vadd.f32 %v6133_v23, %v6095_v16  ;;  %v867_v14 = vunpack.c.l.b16 %v787_v4  ;;  %v6235_v26 = vpop.f32.mrf.mxu1 }
 0x261   : > { %1397 = vrot.lane.b32.xlu2 %v6151_v62, %s5586_s30  ;;  %8325 = vst [vmem:[#allocation9_spill] sm:$0xff] %v6171_v28  ;;  %v742_v30 = vadd.f32 %v6057_v32, %v6145_v13  ;;  %v6211_v59 = vpack.c.b16 %v963_v25, %v963_v25  ;;  %v6213_v3 = vpack.c.b16 %v1083_v5, %v1083_v5  ;;  %v677_v25 = vpop.f32.mrf.mxu0 }
 0x262   : > { %8326 = vst [vmem:[#allocation10_spill] sm:$0xff] %v6175_v49  ;;  %v803_v53 = vpack.c.bf16 %v755_v29, %v755_v29  ;;  %v813_v42 = vpack.c.bf16 %v765_v58, %v765_v58  ;;  %v6215_v27 = vpack.c.b16 %v867_v14, %v867_v14  ;;  %v763_v38 = vadd.f32 %v6133_v23, %v6145_v13 }
 0x263   : > { %8328 = vst [vmem:[#allocation12_spill] sm:$0xff] %v6195_v17  ;;  %v795_v35 = vpack.c.bf16 %v742_v30, %v742_v30  ;;  %v746_v41 = vadd.f32 %v6057_v32, %v6209_v31  ;;  %v767_v1 = vadd.f32 %v6133_v23, %v6209_v31  ;;  %v739_v2 = vadd.f32 %v6057_v32, %v6235_v26 }
 0x264   : > { %8329 = vst [vmem:[#allocation13_spill] sm:$0xff] %v6211_v59  ;;  %v1444_v39 = vunpack.c.l.b16 %v803_v53  ;;  %v1684_v6 = vunpack.c.l.b16 %v813_v42  ;;  %v811_v7 = vpack.c.bf16 %v763_v38, %v763_v38  ;;  %v6233_v54 = vpop.f32.mrf.mxu3  ;;  %v735_v58 = vadd.f32 %v6057_v32, %v677_v25 }
 0x265   : > { %8330 = vst [vmem:[#allocation14_spill] sm:$0xff] %v6213_v3  ;;  %v1059_v8 = vunpack.c.l.b16 %v795_v35  ;;  %v799_v48 = vpack.c.bf16 %v746_v41, %v746_v41  ;;  %v747_v60 = vadd.f32 %v6057_v32, %v6233_v54  ;;  %v815_v4 = vpack.c.bf16 %v767_v1, %v767_v1 }
 0x266   : > { %8331 = vst [vmem:[#allocation15_spill] sm:$0xff] %v6215_v27  ;;  %v6227_v45 = vpack.c.b16 %v1444_v39, %v1444_v39  ;;  %v6229_v18 = vpack.c.b16 %v1684_v6, %v1684_v6  ;;  %v1636_v63 = vunpack.c.l.b16 %v811_v7  ;;  %v792_v5 = vpack.c.bf16 %v739_v2, %v739_v2 }
 0x267   : > { %v6231_v34 = vpack.c.b16 %v1059_v8, %v1059_v8  ;;  %v1155_v9 = vunpack.c.l.b16 %v799_v48  ;;  %v800_v15 = vpack.c.bf16 %v747_v60, %v747_v60  ;;  %v1732_v30 = vunpack.c.l.b16 %v815_v4 }
 0x268   : > { %1037 = vrot.lane.b32.xlu0 %v6169_v37, %s5585_s29  ;;  %1614 = vrot.lane.b32.xlu1 %v6171_v28, %s5586_s30  ;;  %8332 = vst [vmem:[#allocation16_spill] sm:$0xff] %v6229_v18  ;;  %v6249_v21 = vpack.c.b16 %v1636_v63, %v1636_v63  ;;  %v987_v53 = vunpack.c.l.b16 %v792_v5  ;;  %v788_v42 = vpack.c.bf16 %v735_v58, %v735_v58  ;;  %v1780_v38 = vunpack.c.l.b16 %v6113_v11 }
 0x269   : > { %1590 = vrot.lane.b32.xlu2 %v6175_v49, %s5586_s30  ;;  %8333 = vst [vmem:[#allocation17_spill] sm:$0xff] %v6231_v34  ;;  %v6251_v29 = vpack.c.b16 %v1155_v9, %v1155_v9  ;;  %v1179_v14 = vunpack.c.l.b16 %v800_v15  ;;  %v6262_v39 = vpack.c.b16 %v1732_v30, %v1732_v30  ;;  %v756_v8 = vadd.f32 %v6133_v23, %v677_v25 }
 0x26a   : > { %8334 = vst [vmem:[#allocation18_spill] sm:$0xff] %v6249_v21  ;;  %v6264_v6 = vpack.c.b16 %v987_v53, %v987_v53  ;;  %v891_v32 = vunpack.c.l.b16 %v788_v42  ;;  %v714_v41 = vadd.f32 %v6108_v0, %v677_v25  ;;  %v6277_v48 = vpack.c.b16 %v1780_v38, %v1780_v38 }
 0x26b   : > { %8335 = vst [vmem:[#allocation19_spill] sm:$0xff] %v6251_v29  ;;  %v6260_v35 = vpack.c.b16 %v1179_v14, %v1179_v14  ;;  %v804_v60 = vpack.c.bf16 %v756_v8, %v756_v8  ;;  %v717_v11 = vadd.f32 %v6108_v0, %v6159_v61  ;;  %v760_v2 = vadd.f32 %v6133_v23, %v6235_v26 }
 0x26c   : > { %8336 = vst [vmem:[#allocation20_spill] sm:$0xff] %v6262_v39  ;;  %v6275_v7 = vpack.c.b16 %v891_v32, %v891_v32  ;;  %v6279_v63 = vpack.c.bf16 %v714_v41, %v714_v41  ;;  %v766_v14 = vadd.f32 %v6133_v23, %v6153_v40  ;;  %v764_v30 = vadd.f32 %v6133_v23, %v6173_v33 }
 0x26d   : > { %8337 = vst [vmem:[#allocation21_spill] sm:$0xff] %v6264_v6  ;;  %v1468_v1 = vunpack.c.l.b16 %v804_v60  ;;  %v6292_v15 = vpack.c.bf16 %v717_v11, %v717_v11  ;;  %v808_v25 = vpack.c.bf16 %v760_v2, %v760_v2 }
 0x26e   : > { %8338 = vst [vmem:[#allocation22_spill] sm:$0xff] %v6275_v7  ;;  %v1858_v9 = vunpack.c.l.b16 %v6279_v63  ;;  %v814_v32 = vpack.c.bf16 %v766_v14, %v766_v14  ;;  %v812_v38 = vpack.c.bf16 %v764_v30, %v764_v30 }
 0x26f   : > { %8339 = vst [vmem:[#allocation23_spill] sm:$0xff] %v6277_v48  ;;  %v6294_v4 = vpack.c.b16 %v1468_v1, %v1468_v1  ;;  %v1564_v61 = vunpack.c.l.b16 %v808_v25  ;;  %v1936_v58 = vunpack.c.l.b16 %v6292_v15 }
 0x270   : > { %1133 = vrot.lane.b32.xlu0 %v6191_v36, %s5585_s29  ;;  %1542 = vrot.lane.b32.xlu1 %v6193_v57, %s5586_s30  ;;  %v6296_v5 = vpack.c.b16 %v1858_v9, %v1858_v9  ;;  %v1708_v41 = vunpack.c.l.b16 %v814_v32  ;;  %v1660_v60 = vunpack.c.l.b16 %v812_v38  ;;  %v1884_v9 = vunpack.c.l.b16 %v6125_v20  ;;  %v1014_v32 = vpop.permute.xlu1 %1013 }
 0x271   : > { %1518 = vrot.lane.b32.xlu2 %v6195_v17, %s5586_s30  ;;  %v6309_v53 = vpack.c.b16 %v1564_v61, %v1564_v61  ;;  %v6311_v42 = vpack.c.b16 %v1936_v58, %v1936_v58  ;;  %v713_v58 = vadd.f32 %v6108_v0, %v6177_v52 }
 0x272   : > { %8340 = vst [vmem:[#allocation24_spill] sm:$0xff] %v6296_v5  ;;  %v6321_v11 = vpack.c.b16 %v1708_v41, %v1708_v41  ;;  %v6323_v1 = vpack.c.b16 %v1660_v60, %v1660_v60  ;;  %v6332_v25 = vpack.c.b16 %v1884_v9, %v1884_v9 }
 0x273   : > { %8341 = vst [vmem:[#allocation25_spill] sm:$0xff] %v6311_v42  ;;  %v771_v30 = vpack.c.bf16 %v713_v58, %v713_v58  ;;  %v1806_v58 = vunpack.c.l.b16 %v6120_v12 }
 0x274   : > { %8342 = vst [vmem:[#allocation26_spill] sm:$0xff] %v6321_v11 }
 0x275   : > { %8343 = vst [vmem:[#allocation27_spill] sm:$0xff] %v6323_v1  ;;  %v1832_v20 = vunpack.c.l.b16 %v771_v30 }
 0x276   : > { %8344 = vst [vmem:[#allocation28_spill] sm:$0xff] %v6332_v25 }
 0x278   : > { %965 = vrot.lane.b32.xlu0 %v6211_v59, %s5585_s29  ;;  %1085 = vrot.lane.b32.xlu1 %v6213_v3, %s5585_s29  ;;  %v942_v52 = vpop.permute.xlu1 %941 }
 0x279   : > { %869 = vrot.lane.b32.xlu2 %v6215_v27, %s5585_s29  ;;  %v947_v12 = vsel %vm822_vm5, %v942_v52, 0 }
 0x280   : > { %1446 = vrot.lane.b32.xlu0 %v6227_v45, %s5586_s30  ;;  %1686 = vrot.lane.b32.xlu1 %v6229_v18, %s5586_s30 }
 0x281   : > { %1061 = vrot.lane.b32.xlu2 %v6231_v34, %s5585_s29 }
 0x288   : > { %1638 = vrot.lane.b32.xlu0 %v6249_v21, %s5586_s30  ;;  %1810 = vrot.lane.b32.xlu1 %v6072_v55, %s5587_s5 }
 0x289   : > { %1157 = vrot.lane.b32.xlu2 %v6251_v29, %s5585_s29 }
 0x290   : > { %1734 = vrot.lane.b32.xlu0 %v6262_v39, %s5586_s30  ;;  %1181 = vrot.lane.b32.xlu1 %v6260_v35, %s5585_s29 }
 0x291   : > { %989 = vrot.lane.b32.xlu2 %v6264_v6, %s5585_s29 }
 0x298   : > { %893 = vrot.lane.b32.xlu0 %v6275_v7, %s5585_s29  ;;  %1782 = vrot.lane.b32.xlu1 %v6277_v48, %s5588_s6  ;;  %s8127_s29 = scalar_lea.vmem %s8225_s4, %s4965_s18 }
 0x299   : > { %1836 = vrot.lane.b32.xlu2 %v6215_v27, %s5587_s5 }
 0x2a0   : > { %1470 = vrot.lane.b32.xlu0 %v6294_v4, %s5586_s30  ;;  %1966 = vrot.lane.b32.xlu1 %v6264_v6, %s5587_s5 }
 0x2a1   : > { %1860 = vrot.lane.b32.xlu2 %v6296_v5, %s5588_s6 }
 0x2a7   : > { %v6319_v8 = vpop.f32.mrf.mxu1 }
 0x2a8   : > { %1566 = vrot.lane.b32.xlu0 %v6309_v53, %s5586_s30  ;;  %1938 = vrot.lane.b32.xlu1 %v6311_v42, %s5588_s6 }
 0x2a9   : > { %1940 = vrot.lane.b32.xlu2 %v6211_v59, %s5587_s5 }
 0x2af   : > { %v840_v2 = vpop.f32.mrf.mxu1 }
 0x2b0   : > { %1710 = vrot.lane.b32.xlu0 %v6321_v11, %s5586_s30  ;;  %1662 = vrot.lane.b32.xlu1 %v6323_v1, %s5586_s30  ;;  %v6347_v2 = vpack.c.b16 %v1832_v20, %v1832_v20  ;;  %v718_v20 = vadd.f32 %v6108_v0, %v6235_v26 }
 0x2b1   : > { %1914 = vrot.lane.b32.xlu2 %v6093_v51, %s5587_s5 }
 0x2b2   : > { %8345 = vst [vmem:[#allocation29_spill] sm:$0xff] %v6347_v2  ;;  %v776_v6 = vpack.c.bf16 %v718_v20, %v718_v20 }
 0x2b4   : > { %v1962_v5 = vunpack.c.l.b16 %v776_v6 }
 0x2b5   : > { %v6334_v61 = vpop.f32.mrf.mxu2 }
 0x2b6   : > { %v6380_v52 = vpack.c.b16 %v1962_v5, %v1962_v5 }
 0x2b8   : > { %1862 = vrot.lane.b32.xlu0 %v6275_v7, %s5587_s5  ;;  %8347 = vst [vmem:[#allocation31_spill] sm:$0xff] %v6380_v52 }
 0x2b9   : > { %1886 = vrot.lane.b32.xlu2 %v6332_v25, %s5588_s6  ;;  %v6356_v25 = vpack.c.b16 %v1806_v58, %v1806_v58 }
 0x2bb   : > { %v6342_v14 = vpop.permute.xlu2 %1397  ;;  %8346 = vst [vmem:[#allocation30_spill] sm:$0xff] %v6356_v25 }
 0x2bd   : > { %v864_v38 = vpop.f32.mrf.mxu2 }
 0x2c0   : > { %1784 = vrot.lane.b32.xlu0 %v6067_v44, %s5587_s5 }
 0x2c3   : > { %v1591_v41 = vpop.permute.xlu2 %1590 }
 0x2c4   : > { %v1596_v60 = vsel %vm1402_vm6, %v1591_v41, 0 }
 0x2c5   : > { %1605 = vmatpush.bf16.msrb.mxu0 %v1596_v60  ;;  %v6349_v9 = vpop.f32.mrf.mxu2 }
 0x2c8   : > { %1834 = vrot.lane.b32.xlu0 %v6347_v2, %s5588_s6 }
 0x2cb   : > { %v6354_v38 = vpop.permute.xlu2 %1518 }
 0x2cd   : > { %v936_v51 = vpop.f32.mrf.mxu2 }
 0x2ce   : > { %v1205_v51 = vsel %vm822_vm5, %v6334_v61, -inf }
 0x2d0   : > { %1808 = vrot.lane.b32.xlu0 %v6356_v25, %s5588_s6 }
 0x2d2   : > { %v6362_v41 = vpop.permute.xlu0 %1494  ;;  %v6364_v60 = vpop.permute.xlu1 %1422 }
 0x2d3   : > { %v870_v59 = vpop.permute.xlu2 %869 }
 0x2d4   : > { %v875_v42 = vsel %vm822_vm5, %v870_v59, 0  ;;  %v768_v59 = vadd.f32 %v6133_v23, %v6233_v54 }
 0x2d5   : > { %884 = vmatpush.bf16.xpose.msrb.mxu3 %v875_v42  ;;  %v1019_v42 = vsel %vm822_vm5, %v1014_v32, 0  ;;  %v716_v32 = vadd.f32 %v6108_v0, %v6081_v46 }
 0x2d6   : > { %v816_v20 = vpack.c.bf16 %v768_v59, %v768_v59 }
 0x2d7   : > { %v774_v5 = vpack.c.bf16 %v716_v32, %v716_v32 }
 0x2d8   : > { %1888 = vrot.lane.b32.xlu0 %v6077_v24, %s5587_s5  ;;  %v1756_v23 = vunpack.c.l.b16 %v816_v20 }
 0x2d9   : > { %v1910_v46 = vunpack.c.l.b16 %v774_v5 }
 0x2da   : > { %v6372_v58 = vpop.permute.xlu0 %1037  ;;  %1206 = vmax.xlane.f32.xlu1 %v1205_v51  ;;  %v6374_v26 = vpop.permute.xlu1 %1614 }
 0x2db   : > { %v1062_v25 = vpop.permute.xlu2 %1061 }
 0x2dc   : > { %4986 = vmatmul.msk.bf16.vlgmr.msrb.gmra.mxu3 %vm822_vm5, %v771_v30  ;;  %v6390_v30 = vpack.c.b16 %v1756_v23, %v1756_v23  ;;  %v1067_v20 = vsel %vm822_vm5, %v1062_v25, 0  ;;  %v6400_v23 = vpack.c.b16 %v1910_v46, %v1910_v46  ;;  %v719_v25 = vadd.f32 %v6108_v0, %v6083_v47 }
 0x2dd   : > { %956 = vmatpush.bf16.xpose.msra.mxu3 %v947_v12  ;;  %v1202_v12 = vsel %vm822_vm5, %v6319_v8, -inf  ;;  %v1404_v47 = vsel %vm1402_vm6, %v6342_v14, 0  ;;  %v724_v14 = vadd.f32 %v6108_v0, %v6153_v40 }
 0x2de   : > { %8348 = vst [vmem:[#allocation32_spill] sm:$0xff] %v6390_v30 }
 0x2df   : > { %8349 = vst [vmem:[#allocation33_spill] sm:$0xff] %v6400_v23 }
 0x2e0   : > { %1964 = vrot.lane.b32.xlu0 %v6380_v52, %s5588_s6 }
 0x2e2   : > { %1203 = vmax.xlane.f32.xlu2 %v1202_v12  ;;  %v1134_v51 = vpop.permute.xlu0 %1133  ;;  %v6386_v24 = vpop.permute.xlu1 %1542 }
 0x2e3   : > { %v1158_v48 = vpop.permute.xlu2 %1157 }
 0x2e5   : > { %1028 = vmatpush.bf16.xpose.msrb.mxu3 %v1019_v42 }
 0x2e8   : > { %1758 = vrot.lane.b32.xlu0 %v6390_v30, %s5586_s30 }
 0x2ea   : > { %v966_v59 = vpop.permute.xlu0 %965  ;;  %v1086_v42 = vpop.permute.xlu1 %1085 }
 0x2eb   : > { %v1091_v52 = vsel %vm822_vm5, %v1086_v42, 0  ;;  %v990_v2 = vpop.permute.xlu2 %989 }
 0x2ec   : > { %v995_v12 = vsel %vm822_vm5, %v990_v2, 0  ;;  %4989 = vmatmul.msk.bf16.vlgmr.msra.gmra.mxu3 %vm822_vm5, %v774_v5  ;;  %v1139_v2 = vsel %vm822_vm5, %v1134_v51, 0 }
 0x2ed   : > { %1004 = vmatpush.bf16.xpose.msrb.mxu2 %v995_v12  ;;  %1100 = vmatpush.bf16.xpose.msra.mxu3 %v1091_v52  ;;  %v6409_v52 = vpack.c.bf16 %v719_v25, %v719_v25 }
 0x2f0   : > { %2044 = vrot.lane.b32.xlu0 %v6231_v34, %s5587_s5 }
 0x2f2   : > { %v1447_v32 = vpop.permute.xlu0 %1446  ;;  %v1687_v55 = vpop.permute.xlu1 %1686 }
 0x2f3   : > { %v1692_v42 = vsel %vm1402_vm6, %v1687_v55, 0  ;;  %1912 = vrot.lane.b32.xlu1 %v6400_v23, %s5588_s6  ;;  %v1163_v55 = vsel %vm822_vm5, %v1158_v48, 0  ;;  %v722_v48 = vadd.f32 %v6108_v0, %v6173_v33  ;;  %v6440_v33 = vpack.c.bf16 %v724_v14, %v724_v14  ;;  %v6491_v14 = vpop.permute.xlu2 %1836 }
 0x2f4   : > { %4991 = vmatmul.msk.bf16.vlgmr.msrb.gmra.mxu2 %vm822_vm5, %v776_v6  ;;  %1701 = vmatpush.bf16.msra.mxu0 %v1692_v42  ;;  %v721_v6 = vadd.f32 %v6108_v0, %v6145_v13  ;;  %v1428_v13 = vsel %vm1402_vm6, %v6364_v60, 0  ;;  %v725_v60 = vadd.f32 %v6108_v0, %v6209_v31  ;;  %8351 = vst [vmem:[#allocation35_spill] sm:$0xff] %v6491_v14 }
 0x2f5   : > { %1076 = vmatpush.bf16.xpose.msra.mxu2 %v1067_v20  ;;  %v6430_v20 = vpack.c.bf16 %v722_v48, %v722_v48 }
 0x2f6   : > { %v6420_v51 = vpack.c.bf16 %v721_v6, %v721_v6  ;;  %v6451_v40 = vpack.c.bf16 %v725_v60, %v725_v60 }
 0x2fa   : > { %2070 = vrot.lane.b32.xlu2 %v6213_v3, %s5587_s5  ;;  %v6413_v5 = vpop.permute.xlu0 %1638  ;;  %v6463_v31 = vpop.permute.xlu1 %1810 }
 0x2fb   : > { %8350 = vst [vmem:[#allocation34_spill] sm:$0xff] %v6463_v31 }
 0x2fc   : > { %4992 = vmatmul.msk.bf16.vlgmr.msrb.gmra.mxu3 %vm822_vm5, %v6409_v52 }
 0x2fd   : > { %1148 = vmatpush.bf16.xpose.msrb.mxu2 %v1139_v2  ;;  %1172 = vmatpush.bf16.xpose.msrb.mxu3 %v1163_v55  ;;  %v971_v2 = vsel %vm822_vm5, %v966_v59, 0  ;;  %v1043_v55 = vsel %vm822_vm5, %v6372_v58, 0  ;;  %v1500_v59 = vsel %vm1402_vm6, %v6362_v41, 0  ;;  %v1115_v58 = vsel %vm822_vm5, %v6129_v43, 0 }
 0x2fe   : > { %v720_v41 = vadd.f32 %v6108_v0, %v6131_v56  ;;  %v723_v43 = vadd.f32 %v6108_v0, %v6095_v16  ;;  %v726_v56 = vadd.f32 %v6108_v0, %v6233_v54 }
 0x300   : > { %v6467_v48 = vpack.c.bf16 %v720_v41, %v720_v41 }
 0x302   : > { %v6422_v12 = vpop.permute.xlu0 %1734 }
 0x304   : > { %4994 = vmatmul.msk.bf16.vlgmr.msra.gmra.mxu2 %vm822_vm5, %v6420_v51 }
 0x305   : > { %1413 = vmatpush.bf16.msra.mxu2 %v1404_v47  ;;  %v1182_v47 = vpop.permute.xlu1 %1181 }
 0x30a   : > { %v894_v46 = vpop.permute.xlu0 %893 }
 0x30b   : > { %v899_v42 = vsel %vm822_vm5, %v894_v46, 0  ;;  %v1187_v46 = vsel %vm822_vm5, %v1182_v47, 0 }
 0x30c   : > { %4995 = vmatmul.msk.bf16.vlgmr.msra.gmra.mxu3 %vm822_vm5, %v6430_v20  ;;  %908 = vmatpush.bf16.xpose.msra.mxu1 %v899_v42  ;;  %v6474_v42 = vpack.c.bf16 %v723_v43, %v723_v43 }
 0x30d   : > { %1437 = vmatpush.bf16.msra.mxu3 %v1428_v13  ;;  %v6481_v13 = vpack.c.bf16 %v726_v56, %v726_v56 }
 0x312   : > { %v1471_v25 = vpop.permute.xlu0 %1470 }
 0x313   : > { %v1476_v6 = vsel %vm1402_vm6, %v1471_v25, 0  ;;  %4987 = vmatmul.msk.bf16.vlgmr.msra.gmra.mxu1 %vm822_vm5, %v6279_v63  ;;  %v1214_v63 = vsel %vm822_vm5, %v6349_v9, -inf }
 0x314   : > { %980 = vmatpush.bf16.xpose.msrb.mxu1 %v971_v2  ;;  %4997 = vmatmul.msk.bf16.vlgmr.msrb.gmra.mxu2 %vm822_vm5, %v6440_v33  ;;  %v1524_v2 = vsel %vm1402_vm6, %v6354_v38, 0  ;;  %v6499_v38 = vpop.permute.xlu1 %1782 }
 0x315   : > { %1485 = vmatpush.bf16.msrb.mxu2 %v1476_v6  ;;  %8354 = vst [vmem:[#allocation38_spill] sm:$0xff] %v6499_v38 }
 0x31c   : > { %1052 = vmatpush.bf16.xpose.msra.mxu1 %v1043_v55  ;;  %4998 = vmatmul.msk.bf16.vlgmr.msrb.gmra.mxu3 %vm822_vm5, %v6451_v40  ;;  %v6493_v55 = vpop.permute.xlu2 %1860 }
 0x31d   : > { %1509 = vmatpush.bf16.msrb.mxu3 %v1500_v59  ;;  %8352 = vst [vmem:[#allocation36_spill] sm:$0xff] %v6493_v55 }
 0x323   : > { %1215 = vmax.xlane.f32.xlu2 %v1214_v63  ;;  %4990 = vmatmul.msk.bf16.vlgmr.msrb.gmra.mxu1 %vm822_vm5, %v6292_v15  ;;  %v1452_v15 = vsel %vm1402_vm6, %v1447_v32, 0 }
 0x324   : > { %1124 = vmatpush.bf16.xpose.msrb.mxu1 %v1115_v58  ;;  %v6497_v54 = vpop.permute.xlu2 %1940 }
 0x325   : > { %8353 = vst [vmem:[#allocation37_spill] sm:$0xff] %v6497_v54  ;;  %v6542_v54 = vpop.permute.xlu0 %1566 }
 0x32c   : > { %v6509_v47 = vpop.permute.xlu2 %1914 }
 0x32d   : > { %8355 = vst [vmem:[#allocation39_spill] sm:$0xff] %v6509_v47 }
 0x333   : > { %4993 = vmatmul.msk.bf16.vlgmr.msra.gmra.mxu1 %vm822_vm5, %v6467_v48 }
 0x334   : > { %1196 = vmatpush.bf16.xpose.msra.mxu1 %v1187_v46  ;;  %v6511_v46 = vpop.permute.xlu1 %1966  ;;  %v6515_v56 = vpop.permute.xlu2 %1886 }
 0x335   : > { %8356 = vst [vmem:[#allocation40_spill] sm:$0xff] %v6511_v46 }
 0x336   : > { %8357 = vst [vmem:[#allocation41_spill] sm:$0xff] %v6515_v56 }
 0x343   : > { %4996 = vmatmul.msk.bf16.vlgmr.msrb.gmra.mxu1 %vm822_vm5, %v6474_v42 }
 0x344   : > { %1461 = vmatpush.bf16.msrb.mxu1 %v1452_v15 }
 0x353   : > { %4999 = vmatmul.msk.bf16.vlgmr.msra.gmra.mxu1 %vm822_vm5, %v6481_v13 }
 0x354   : > { %1533 = vmatpush.bf16.msra.mxu1 %v1524_v2  ;;  %v6517_v2 = vpop.permute.xlu1 %1938 }
 0x355   : > { %8358 = vst [vmem:[#allocation42_spill] sm:$0xff] %v6517_v2 }
 0x35f   : > { %v6487_v16 = vpop.f32.mrf.mxu3 }
 0x360   : > { %v1208_v32 = vsel %vm822_vm5, %v6487_v16, -inf }
 0x361   : > { %1209 = vmax.xlane.f32.xlu1 %v1208_v32 }
 0x367   : > { %v888_v25 = vpop.f32.mrf.mxu3 }
 0x36f   : > { %v6495_v0 = vpop.f32.mrf.mxu3 }
 0x377   : > { %v960_v6 = vpop.f32.mrf.mxu3  ;;  %v6501_v60 = vpop.f32.mrf.mxu2 }
 0x378   : > { %v1223_v59 = vsel %vm822_vm5, %v6501_v60, -inf }
 0x379   : > { %1224 = vmax.xlane.f32.xlu1 %v1223_v59 }
 0x37f   : > { %v1008_v63 = vpop.f32.mrf.mxu2  ;;  %v6505_v58 = vpop.f32.mrf.mxu3 }
 0x380   : > { %v1226_v41 = vsel %vm822_vm5, %v6505_v58, -inf }
 0x381   : > { %1227 = vmax.xlane.f32.xlu1 %v1226_v41  ;;  %v1204_v41 = vpop.xlane.xlu2 %1203 }
 0x387   : > { %v1032_v43 = vpop.f32.mrf.mxu3  ;;  %v6513_v15 = vpop.f32.mrf.mxu2 }
 0x388   : > { %v6527_v43 = vpop.permute.xlu1 %1662 }
 0x389   : > { %v6533_v2 = vpop.permute.xlu2 %2070 }
 0x38a   : > { %8360 = vst [vmem:[#allocation44_spill] sm:$0xff] %v6533_v2 }
 0x38f   : > { %v1080_v32 = vpop.f32.mrf.mxu2  ;;  %v6519_v25 = vpop.f32.mrf.mxu3 }
 0x390   : > { %v6521_v6 = vpop.f32.mrf.mxu1  ;;  %v1235_v59 = vsel %vm822_vm5, %v6519_v25, -inf  ;;  %v1217_v32 = vsel %vm822_vm5, %v6495_v0, -inf  ;;  %v1207_v55 = vpop.xlane.xlu1 %1206 }
 0x391   : > { %1236 = vmax.xlane.f32.xlu1 %v1235_v59  ;;  %v1211_v63 = vsel %vm822_vm5, %v6521_v6, -inf  ;;  %v1251_v47 = vsub.f32 %v6334_v61, %v1207_v55  ;;  %v6547_v55 = vpop.permute.xlu0 %1710 }
 0x392   : > { %1212 = vmax.xlane.f32.xlu0 %v1211_v63 }
 0x396   : > { %v1216_v14 = vpop.xlane.xlu2 %1215 }
 0x397   : > { %v1104_v3 = vpop.f32.mrf.mxu3  ;;  %v6529_v23 = vpop.f32.mrf.mxu2 }
 0x398   : > { %8359 = vst [vmem:[#allocation43_spill] sm:$0xff] %v6529_v23  ;;  %v912_v34 = vpop.f32.mrf.mxu1 }
 0x399   : > { %v1268_v34 = vmul.f32 1.442695, %v1251_v47 }
 0x39a   : > { %1218 = vmax.xlane.f32.xlu0 %v1217_v32  ;;  %v1254_v32 = vsub.f32 %v6349_v9, %v1216_v14  ;;  %v6559_v14 = vpop.permute.xlu0 %1862 }
 0x39b   : > { %5318 = vpow2.f32 %v1268_v34  ;;  %8362 = vst [vmem:[#allocation46_spill] sm:$0xff] %v6559_v14  ;;  %v1241_v34 = vsel %vm822_vm5, %v6529_v23, -inf }
 0x39c   : > { %v1274_v61 = vmul.f32 1.442695, %v1254_v32 }
 0x39e   : > { %5320 = vpow2.f32 %v1274_v61 }
 0x39f   : > { %v1152_v46 = vpop.f32.mrf.mxu2  ;;  %v6535_v59 = vpop.f32.mrf.mxu3 }
 0x3a0   : > { %8361 = vst [vmem:[#allocation45_spill] sm:$0xff] %v6535_v59  ;;  %v6538_v63 = vpop.f32.mrf.mxu1  ;;  %v1232_v46 = vsel %vm822_vm5, %v6513_v15, -inf }
 0x3a1   : > { %v1220_v3 = vsel %vm822_vm5, %v6538_v63, -inf  ;;  %v6549_v31 = vpop.eup %5318 }
 0x3a2   : > { %1221 = vmax.xlane.f32.xlu2 %v1220_v3  ;;  %v6567_v61 = vpop.permute.xlu0 %1784 }
 0x3a4   : > { %v6557_v9 = vpop.eup %5320 }
 0x3a5   : > { %v1310_v32 = vsel %vm822_vm5, %v6557_v9, 0.0 }
 0x3a7   : > { %v1176_v56 = vpop.f32.mrf.mxu3 }
 0x3a8   : > { %v984_v2 = vpop.f32.mrf.mxu1  ;;  %v1301_v56 = vsel %vm822_vm5, %v6549_v31, 0.0 }
 0x3aa   : > { %1233 = vmax.xlane.f32.xlu2 %v1232_v46  ;;  %v6574_v38 = vpop.permute.xlu0 %1834 }
 0x3ab   : > { %8363 = vst [vmem:[#allocation47_spill] sm:$0xff] %v6574_v38 }
 0x3b0   : > { %v6551_v3 = vpop.f32.mrf.mxu1 }
 0x3b1   : > { %v1229_v47 = vsel %vm822_vm5, %v6551_v3, -inf }
 0x3b2   : > { %1230 = vmax.xlane.f32.xlu0 %v1229_v47  ;;  %1302 = vadd.xlane.f32.xlu2 %v1301_v56  ;;  %v1244_v56 = vsel %vm822_vm5, %v6535_v59, -inf  ;;  %v6582_v27 = vpop.permute.xlu0 %1808 }
 0x3b3   : > { %8366 = vst [vmem:[#allocation50_spill] sm:$0xff] %v6582_v27 }
 0x3b8   : > { %v1056_v2 = vpop.f32.mrf.mxu1 }
 0x3b9   : > { %v1250_v2 = vsub.f32 %v6319_v8, %v1204_v41 }
 0x3ba   : > { %1242 = vmax.xlane.f32.xlu0 %v1241_v34  ;;  %1311 = vadd.xlane.f32.xlu2 %v1310_v32  ;;  %v6576_v34 = vpop.permute.xlu1 %1912 }
 0x3bb   : > { %v1266_v14 = vmul.f32 1.442695, %v1250_v2  ;;  %8364 = vst [vmem:[#allocation48_spill] sm:$0xff] %v6576_v34  ;;  %v6591_v2 = vpop.permute.xlu0 %1888 }
 0x3bc   : > { %8367 = vst [vmem:[#allocation51_spill] sm:$0xff] %v6591_v2 }
 0x3bd   : > { %5322 = vpow2.f32 %v1266_v14 }
 0x3c0   : > { %v6565_v46 = vpop.f32.mrf.mxu1 }
 0x3c1   : > { %v1238_v47 = vsel %vm822_vm5, %v6565_v46, -inf }
 0x3c2   : > { %1239 = vmax.xlane.f32.xlu1 %v1238_v47  ;;  %1245 = vmax.xlane.f32.xlu0 %v1244_v56 }
 0x3c3   : > { %v6585_v56 = vpop.eup %5322  ;;  %v6595_v34 = vpop.permute.xlu0 %1964 }
 0x3c4   : > { %v1298_v41 = vsel %vm822_vm5, %v6585_v56, 0.0  ;;  %8368 = vst [vmem:[#allocation52_spill] sm:$0xff] %v6595_v34 }
 0x3c8   : > { %v1128_v23 = vpop.f32.mrf.mxu1 }
 0x3d0   : > { %v6578_v32 = vpop.f32.mrf.mxu1 }
 0x3d1   : > { %8365 = vst [vmem:[#allocation49_spill] sm:$0xff] %v6578_v32  ;;  %v1247_v7 = vsel %vm822_vm5, %v6578_v32, -inf }
 0x3d2   : > { %1248 = vmax.xlane.f32.xlu0 %v1247_v7 }
 0x3d4   : > { %v1210_v18 = vpop.xlane.xlu1 %1209 }
 0x3d5   : > { %v1252_v47 = vsub.f32 %v6487_v16, %v1210_v18 }
 0x3d7   : > { %v1270_v8 = vmul.f32 1.442695, %v1252_v47 }
 0x3d8   : > { %v1200_v23 = vpop.f32.mrf.mxu1 }
 0x3d9   : > { %5324 = vpow2.f32 %v1270_v8  ;;  %v6598_v8 = vpop.permute.xlu0 %1758 }
 0x3da   : > { %1299 = vadd.xlane.f32.xlu0 %v1298_v41 }
 0x3df   : > { %v6589_v14 = vpop.eup %5324 }
 0x3e0   : > { %v1304_v7 = vsel %vm822_vm5, %v6589_v14, 0.0 }
 0x3e2   : > { %1305 = vadd.xlane.f32.xlu0 %v1304_v7  ;;  %v6605_v7 = vpop.permute.xlu0 %2044 }
 0x3e3   : > { %8369 = vst [vmem:[#allocation53_spill] sm:$0xff] %v6605_v7 }
 0x3ec   : > { %v1225_v18 = vpop.xlane.xlu1 %1224 }
 0x3ed   : > { %v1257_v16 = vsub.f32 %v6501_v60, %v1225_v18 }
 0x3ef   : > { %v1280_v47 = vmul.f32 1.442695, %v1257_v16 }
 0x3f1   : > { %5326 = vpow2.f32 %v1280_v47 }
 0x3f4   : > { %v1228_v23 = vpop.xlane.xlu1 %1227 }
 0x3f5   : > { %v1258_v41 = vsub.f32 %v6505_v58, %v1228_v23 }
 0x3f7   : > { %v6601_v27 = vpop.eup %5326  ;;  %v1282_v38 = vmul.f32 1.442695, %v1258_v41 }
 0x3f8   : > { %v1319_v32 = vsel %vm822_vm5, %v6601_v27, 0.0 }
 0x3f9   : > { %5328 = vpow2.f32 %v1282_v38  ;;  %1320 = vadd.xlane.f32.xlu1 %v1319_v32 }
 0x3ff   : > { %v6607_v34 = vpop.eup %5328 }
 0x400   : > { %v1322_v60 = vsel %vm822_vm5, %v6607_v34, 0.0 }
 0x401   : > { %1323 = vadd.xlane.f32.xlu1 %v1322_v60 }
 0x405   : > { %v1213_v18 = vpop.xlane.xlu0 %1212 }
 0x406   : > { %v1253_v16 = vsub.f32 %v6521_v6, %v1213_v18 }
 0x408   : > { %v1272_v58 = vmul.f32 1.442695, %v1253_v16 }
 0x40a   : > { %5330 = vpow2.f32 %v1272_v58 }
 0x40d   : > { %v1219_v47 = vpop.xlane.xlu0 %1218 }
 0x40e   : > { %v1255_v23 = vsub.f32 %v6495_v0, %v1219_v47 }
 0x410   : > { %v6613_v41 = vpop.eup %5330  ;;  %v1276_v38 = vmul.f32 1.442695, %v1255_v23 }
 0x411   : > { %v1307_v32 = vsel %vm822_vm5, %v6613_v41, 0.0 }
 0x412   : > { %5332 = vpow2.f32 %v1276_v38  ;;  %1308 = vadd.xlane.f32.xlu0 %v1307_v32  ;;  %v1572_v38 = vsel %vm1402_vm6, %v6542_v54, 0 }
 0x415   : > { %v1222_v7 = vpop.xlane.xlu2 %1221 }
 0x416   : > { %v1256_v59 = vsub.f32 %v6538_v63, %v1222_v7  ;;  %v1237_v7 = vpop.xlane.xlu1 %1236 }
 0x418   : > { %v6618_v60 = vpop.eup %5332  ;;  %v1278_v2 = vmul.f32 1.442695, %v1256_v59 }
 0x419   : > { %v1313_v6 = vsel %vm822_vm5, %v6618_v60, 0.0 }
 0x41a   : > { %5334 = vpow2.f32 %v1278_v2  ;;  %1992 = vrot.lane.b32.xlu1 %v6089_v10, %s5587_s5  ;;  %1314 = vadd.xlane.f32.xlu2 %v1313_v6  ;;  %v2040_v6 = vunpack.c.l.b16 %v6420_v51  ;;  %v1668_v51 = vsel %vm1402_vm6, %v6527_v43, 0 }
 0x41c   : > { %v6638_v1 = vpack.c.b16 %v2040_v6, %v2040_v6 }
 0x41d   : > { %v1234_v0 = vpop.xlane.xlu2 %1233 }
 0x420   : > { %v6624_v18 = vpop.eup %5334 }
 0x421   : > { %v1316_v16 = vsel %vm822_vm5, %v6624_v18, 0.0 }
 0x422   : > { %1317 = vadd.xlane.f32.xlu2 %v1316_v16 }
 0x425   : > { %v1303_v58 = vpop.xlane.xlu2 %1302  ;;  %v1231_v59 = vpop.xlane.xlu0 %1230 }
 0x426   : > { %5336 = vrcp.f32 %v1303_v58  ;;  %2018 = vrot.lane.b32.xlu0 %v6169_v37, %s5587_s5  ;;  %v1259_v43 = vsub.f32 %v6551_v3, %v1231_v59 }
 0x42c   : > { %v5337_v63 = vpop.eup %5336 }
 0x42d   : > { %v1363_v2 = vmul.f32 %v5337_v63, %v6549_v31  ;;  %v1312_v23 = vpop.xlane.xlu2 %1311  ;;  %v6634_v32 = vpop.xlane.xlu0 %1242  ;;  %v1261_v63 = vsub.f32 %v6519_v25, %v1237_v7 }
 0x42e   : > { %5338 = vrcp.f32 %v1312_v23 }
 0x42f   : > { %v1379_v47 = vpack.c.bf16 %v1363_v2, %v1363_v2 }
 0x431   : > { %5001 = vmatmul.msk.bf16.vlgmr.msra.gmra.mxu3 %vm822_vm5, %v1379_v47 }
 0x432   : > { %1581 = vmatpush.bf16.msra.mxu3 %v1572_v38  ;;  %v1284_v38 = vmul.f32 1.442695, %v1259_v43 }
 0x434   : > { %v5339_v10 = vpop.eup %5338 }
 0x435   : > { %v1240_v16 = vpop.xlane.xlu1 %1239  ;;  %v1366_v31 = vmul.f32 %v5339_v10, %v6557_v9  ;;  %v6643_v54 = vpop.xlane.xlu0 %1245 }
 0x436   : > { %v1262_v58 = vsub.f32 %v6565_v46, %v1240_v16  ;;  %v1288_v46 = vmul.f32 1.442695, %v1261_v63  ;;  %v1548_v63 = vsel %vm1402_vm6, %v6386_v24, 0 }
 0x437   : > { %v1382_v2 = vpack.c.bf16 %v1366_v31, %v1366_v31  ;;  %v2066_v31 = vunpack.c.l.b16 %v6430_v20  ;;  %v1988_v20 = vunpack.c.l.b16 %v6409_v52 }
 0x438   : > { %v1290_v37 = vmul.f32 1.442695, %v1262_v58 }
 0x43a   : > { %5340 = vpow2.f32 %v1290_v37  ;;  %2042 = vrot.lane.b32.xlu2 %v6638_v1, %s5588_s6 }
 0x43b   : > { %5342 = vpow2.f32 %v1288_v46  ;;  %v6679_v46 = vpack.c.b16 %v1988_v20, %v1988_v20 }
 0x43d   : > { %8371 = vst [vmem:[#allocation55_spill] sm:$0xff] %v6679_v46 }
 0x440   : > { %v6646_v47 = vpop.eup %5340 }
 0x441   : > { %5004 = vmatmul.msk.bf16.vlgmr.msrb.gmra.mxu3 %vm822_vm5, %v1382_v2  ;;  %v1334_v37 = vsel %vm822_vm5, %v6646_v47, 0.0  ;;  %v6655_v10 = vpop.eup %5342  ;;  %v1260_v2 = vsub.f32 %v6513_v15, %v1234_v0  ;;  %v1620_v15 = vsel %vm1402_vm6, %v6374_v26, 0 }
 0x442   : > { %1677 = vmatpush.bf16.msrb.mxu3 %v1668_v51  ;;  %v1331_v9 = vsel %vm822_vm5, %v6655_v10, 0.0  ;;  %v6666_v51 = vpack.c.b16 %v2066_v31, %v2066_v31 }
 0x443   : > { %v1286_v59 = vmul.f32 1.442695, %v1260_v2 }
 0x444   : > { %1335 = vadd.xlane.f32.xlu1 %v1334_v37  ;;  %8370 = vst [vmem:[#allocation54_spill] sm:$0xff] %v6666_v51 }
 0x445   : > { %v6653_v23 = vpop.xlane.xlu0 %1248 }
 0x44d   : > { %v1300_v25 = vpop.xlane.xlu0 %1299 }
 0x44e   : > { %5344 = vrcp.f32 %v1300_v25  ;;  %v2144_v25 = vunpack.c.l.b16 %v6451_v40  ;;  %v2118_v40 = vunpack.c.l.b16 %v6440_v33  ;;  %v2014_v33 = vunpack.c.l.b16 %v6467_v48 }
 0x450   : > { %1332 = vadd.xlane.f32.xlu0 %v1331_v9  ;;  %v2092_v9 = vunpack.c.l.b16 %v6474_v42  ;;  %v6695_v43 = vpack.c.b16 %v2144_v25, %v2144_v25  ;;  %v1764_v42 = vsel %vm1402_vm6, %v6598_v8, 0  ;;  %v6708_v31 = vpack.c.b16 %v2118_v40, %v2118_v40 }
 0x451   : > { %v1790_v8 = vsel %vm822_vm5, %v6567_v61, 0 }
 0x452   : > { %8373 = vst [vmem:[#allocation57_spill] sm:$0xff] %v6708_v31 }
 0x454   : > { %v5345_v7 = vpop.eup %5344 }
 0x455   : > { %v1362_v6 = vmul.f32 %v5345_v7, %v6585_v56  ;;  %v1306_v16 = vpop.xlane.xlu0 %1305 }
 0x456   : > { %5346 = vrcp.f32 %v1306_v16 }
 0x457   : > { %v1378_v58 = vpack.c.bf16 %v1362_v6, %v1362_v6  ;;  %5348 = vpow2.f32 %v1284_v38  ;;  %v6697_v38 = vpack.c.b16 %v2092_v9, %v2092_v9  ;;  %v1740_v9 = vsel %vm1402_vm6, %v6422_v12, 0 }
 0x458   : > { %5350 = vpow2.f32 %v1286_v59 }
 0x459   : > { %5000 = vmatmul.msk.bf16.vlgmr.msra.gmra.mxu2 %vm822_vm5, %v1378_v58  ;;  %8372 = vst [vmem:[#allocation56_spill] sm:$0xff] %v6697_v38 }
 0x45a   : > { %1557 = vmatpush.bf16.msra.mxu2 %v1548_v63 }
 0x45c   : > { %v5347_v3 = vpop.eup %5346 }
 0x45d   : > { %v1364_v56 = vmul.f32 %v5347_v3, %v6589_v14  ;;  %2068 = vrot.lane.b32.xlu1 %v6666_v51, %s5588_s6  ;;  %v6672_v37 = vpop.eup %5348  ;;  %v6719_v3 = vpack.c.b16 %v2014_v33, %v2014_v33  ;;  %v8378_v33 = vld [vmem:[#allocation51_spill] sm:$0xff] }
 0x45e   : > { %v1325_v0 = vsel %vm822_vm5, %v6672_v37, 0.0  ;;  %v6685_v52 = vpop.eup %5350 }
 0x45f   : > { %v1380_v24 = vpack.c.bf16 %v1364_v56, %v1364_v56  ;;  %v1328_v26 = vsel %vm822_vm5, %v6685_v52, 0.0  ;;  %v2170_v56 = vunpack.c.l.b16 %v6481_v13 }
 0x461   : > { %5002 = vmatmul.msk.bf16.vlgmr.msrb.gmra.mxu1 %vm822_vm5, %v1380_v24  ;;  %v1644_v24 = vsel %vm1402_vm6, %v6413_v5, 0 }
 0x462   : > { %1629 = vmatpush.bf16.msrb.mxu1 %v1620_v15  ;;  %v6738_v15 = vpack.c.b16 %v2170_v56, %v2170_v56  ;;  %v8381_v56 = vld [vmem:[#allocation45_spill] sm:$0xff] }
 0x463   : > { %1326 = vadd.xlane.f32.xlu2 %v1325_v0 }
 0x464   : > { %1990 = vrot.lane.b32.xlu0 %v6679_v46, %s5588_s6 }
 0x465   : > { %2148 = vrot.lane.b32.xlu1 %v6251_v29, %s5587_s5 }
 0x46b   : > { %1329 = vadd.xlane.f32.xlu2 %v1328_v26  ;;  %v1716_v26 = vsel %vm1402_vm6, %v6547_v55, 0  ;;  %v8374_v55 = vld [vmem:[#allocation27_spill] sm:$0xff] }
 0x46c   : > { %v1321_v14 = vpop.xlane.xlu1 %1320  ;;  %2174 = vrot.lane.b32.xlu0 %v6260_v35, %s5587_s5 }
 0x46d   : > { %5352 = vrcp.f32 %v1321_v14  ;;  %2122 = vrot.lane.b32.xlu1 %v6191_v36, %s5587_s5 }
 0x473   : > { %v5353_v7 = vpop.eup %5352 }
 0x474   : > { %v1369_v6 = vmul.f32 %v5353_v7, %v6601_v27  ;;  %v1324_v16 = vpop.xlane.xlu1 %1323  ;;  %2146 = vrot.lane.b32.xlu0 %v6695_v43, %s5588_s6 }
 0x475   : > { %5354 = vrcp.f32 %v1324_v16  ;;  %2094 = vrot.lane.b32.xlu1 %v6697_v38, %s5588_s6 }
 0x476   : > { %v1385_v58 = vpack.c.bf16 %v1369_v6, %v1369_v6 }
 0x478   : > { %5007 = vmatmul.msk.bf16.vlgmr.msra.gmra.mxu3 %vm822_vm5, %v1385_v58  ;;  %v8377_v58 = vld [vmem:[#allocation16_spill] sm:$0xff] }
 0x479   : > { %1773 = vmatpush.bf16.msra.mxu3 %v1764_v42 }
 0x47b   : > { %v5355_v27 = vpop.eup %5354 }
 0x47c   : > { %2120 = vrot.lane.b32.xlu0 %v6708_v31, %s5588_s6  ;;  %v1370_v63 = vmul.f32 %v5355_v27, %v6607_v34 }
 0x47d   : > { %2387 = vrot.lane.b32.xlu1 %v6151_v62, %s5589_s7 }
 0x47e   : > { %v1386_v2 = vpack.c.bf16 %v1370_v63, %v1370_v63 }
 0x480   : > { %5008 = vmatmul.msk.bf16.vlgmr.msrb.gmra.mxu0 %vm822_vm5, %v1386_v2  ;;  %v1894_v2 = vsel %vm822_vm5, %v8378_v33, 0 }
 0x481   : > { %1799 = vmatpush.bf16.xpose.msrb.mxu0 %v1790_v8 }
 0x483   : > { %2016 = vrot.lane.b32.xlu2 %v6719_v3, %s5588_s6 }
 0x484   : > { %2429 = vrot.lane.b32.xlu0 %v6227_v45, %s5589_s7 }
 0x485   : > { %2534 = vrot.lane.b32.xlu1 %v6309_v53, %s5589_s7  ;;  %v1309_v34 = vpop.xlane.xlu0 %1308 }
 0x486   : > { %5356 = vrcp.f32 %v1309_v34  ;;  %v8379_v34 = vld [vmem:[#allocation22_spill] sm:$0xff] }
 0x48b   : > { %2096 = vrot.lane.b32.xlu2 %v6101_v50, %s5587_s5 }
 0x48c   : > { %v5357_v48 = vpop.eup %5356  ;;  %2408 = vrot.lane.b32.xlu0 %v6149_v22, %s5589_s7  ;;  %v1993_v12 = vpop.permute.xlu1 %1992 }
 0x48d   : > { %v1365_v61 = vmul.f32 %v5357_v48, %v6613_v41  ;;  %2597 = vrot.lane.b32.xlu1 %v6249_v21, %s5589_s7  ;;  %v1315_v59 = vpop.xlane.xlu2 %1314 }
 0x48e   : > { %5358 = vrcp.f32 %v1315_v59 }
 0x48f   : > { %v1381_v20 = vpack.c.bf16 %v1365_v61, %v1365_v61 }
 0x491   : > { %5003 = vmatmul.msk.bf16.vlgmr.msrb.gmra.mxu2 %vm822_vm5, %v1381_v20 }
 0x492   : > { %1653 = vmatpush.bf16.msrb.mxu2 %v1644_v24 }
 0x493   : > { %2172 = vrot.lane.b32.xlu2 %v6738_v15, %s5588_s6 }
 0x494   : > { %v5359_v41 = vpop.eup %5358  ;;  %2471 = vrot.lane.b32.xlu0 %v6147_v19, %s5589_s7 }
 0x495   : > { %v1367_v0 = vmul.f32 %v5359_v41, %v6618_v60  ;;  %2576 = vrot.lane.b32.xlu1 %v6171_v28, %s5589_s7  ;;  %v1318_v13 = vpop.xlane.xlu2 %1317 }
 0x496   : > { %5360 = vrcp.f32 %v1318_v13 }
 0x497   : > { %v1383_v5 = vpack.c.bf16 %v1367_v0, %v1367_v0  ;;  %v8382_v0 = vld [vmem:[#allocation46_spill] sm:$0xff] }
 0x498   : > { %v6776_v16 = vpop.permute.xlu0 %2018  ;;  %v1868_v13 = vsel %vm822_vm5, %v8382_v0, 0 }
 0x499   : > { %5005 = vmatmul.msk.bf16.vlgmr.msra.gmra.mxu1 %vm822_vm5, %v1383_v5 }
 0x49a   : > { %1725 = vmatpush.bf16.msra.mxu1 %v1716_v26 }
 0x49b   : > { %2450 = vrot.lane.b32.xlu2 %v6294_v4, %s5589_s7 }
 0x49c   : > { %v5361_v14 = vpop.eup %5360  ;;  %2555 = vrot.lane.b32.xlu0 %v6175_v49, %s5589_s7 }
 0x49d   : > { %v1368_v60 = vmul.f32 %v5361_v14, %v6624_v18  ;;  %2702 = vrot.lane.b32.xlu1 %v6390_v30, %s5589_s7  ;;  %v8375_v18 = vld [vmem:[#allocation15_spill] sm:$0xff]  ;;  %v6791_v41 = vpop.permute.xlu2 %2042  ;;  %v1998_v14 = vsel %vm822_vm5, %v1993_v12, 0 }
 0x49f   : > { %v1384_v25 = vpack.c.bf16 %v1368_v60, %v1368_v60  ;;  %v8383_v60 = vld [vmem:[#allocation38_spill] sm:$0xff] }
 0x4a1   : > { %5006 = vmatmul.msk.bf16.vlgmr.msra.gmra.mxu2 %vm822_vm5, %v1384_v25 }
 0x4a2   : > { %1749 = vmatpush.bf16.msra.mxu2 %v1740_v9 }
 0x4a3   : > { %2513 = vrot.lane.b32.xlu2 %v6193_v57, %s5589_s7 }
 0x4a4   : > { %2681 = vrot.lane.b32.xlu0 %v6262_v39, %s5589_s7 }
 0x4a5   : > { %2725 = vrot.lane.b32.xlu1 %v6067_v44, %s5590_s8 }
 0x4ab   : > { %2492 = vrot.lane.b32.xlu2 %v6195_v17, %s5589_s7 }
 0x4ac   : > { %2660 = vrot.lane.b32.xlu0 %v6321_v11, %s5589_s7 }
 0x4b3   : > { %2618 = vrot.lane.b32.xlu2 %v8374_v55, %s5589_s7 }
 0x4b4   : > { %2771 = vrot.lane.b32.xlu0 %v8375_v18, %s5590_s8  ;;  %v6774_v7 = vpop.f32.mrf.mxu3 }
 0x4b5   : > { %8376 = vst [vmem:[#allocation58_spill] sm:$0xff] %v6774_v7 }
 0x4b7   : > { %v1336_v6 = vpop.xlane.xlu1 %1335 }
 0x4b8   : > { %5362 = vrcp.f32 %v1336_v6  ;;  %v8384_v6 = vld [vmem:[#allocation43_spill] sm:$0xff] }
 0x4bb   : > { %2639 = vrot.lane.b32.xlu2 %v8377_v58, %s5589_s7 }
 0x4bc   : > { %v1441_v40 = vpop.f32.mrf.mxu3 }
 0x4bd   : > { %v1263_v40 = vsub.f32 %v8384_v6, %v6634_v32  ;;  %v8387_v32 = vld [vmem:[#allocation34_spill] sm:$0xff] }
 0x4be   : > { %v5363_v42 = vpop.eup %5362 }
 0x4bf   : > { %v1374_v27 = vmul.f32 %v5363_v42, %v6646_v47  ;;  %v1264_v47 = vsub.f32 %v8381_v56, %v6643_v54 }
 0x4c1   : > { %v1390_v63 = vpack.c.bf16 %v1374_v27, %v1374_v27  ;;  %v1294_v26 = vmul.f32 1.442695, %v1264_v47  ;;  %v1816_v47 = vsel %vm822_vm5, %v8387_v32, 0 }
 0x4c3   : > { %5012 = vmatmul.msk.bf16.vlgmr.msra.gmra.mxu0 %vm822_vm5, %v1390_v63  ;;  %v1333_v8 = vpop.xlane.xlu0 %1332  ;;  %2794 = vrot.lane.b32.xlu2 %v8379_v34, %s5590_s8  ;;  %v1292_v63 = vmul.f32 1.442695, %v1263_v40 }
 0x4c4   : > { %1903 = vmatpush.bf16.xpose.msra.mxu0 %v1894_v2  ;;  %5364 = vrcp.f32 %v1333_v8  ;;  %v6786_v48 = vpop.f32.mrf.mxu3 }
 0x4c5   : > { %8380 = vst [vmem:[#allocation51_spill] sm:$0xff] %v6786_v48  ;;  %5366 = vpow2.f32 %v1294_v26 }
 0x4ca   : > { %v5365_v61 = vpop.eup %5364 }
 0x4cb   : > { %v1373_v59 = vmul.f32 %v5365_v61, %v6655_v10  ;;  %v6803_v9 = vpop.eup %5366 }
 0x4cc   : > { %v1513_v20 = vpop.f32.mrf.mxu3  ;;  %v1340_v12 = vsel %vm822_vm5, %v6803_v9, 0.0 }
 0x4cd   : > { %v1389_v24 = vpack.c.bf16 %v1373_v59, %v1373_v59  ;;  %v8388_v20 = vld [vmem:[#allocation49_spill] sm:$0xff] }
 0x4cf   : > { %v6795_v5 = vpop.permute.xlu1 %2068  ;;  %5011 = vmatmul.msk.bf16.vlgmr.msrb.gmra.mxu3 %vm822_vm5, %v1389_v24  ;;  %v1265_v24 = vsub.f32 %v8388_v20, %v6653_v23  ;;  %v8391_v20 = vld [vmem:[#allocation3_spill] sm:$0xff] }
 0x4d0   : > { %1877 = vmatpush.bf16.xpose.msrb.mxu3 %v1868_v13 }
 0x4d1   : > { %v1296_v26 = vmul.f32 1.442695, %v1265_v24 }
 0x4d3   : > { %5016 = vmatmul.msk.bf16.vlgmr.msrb.gmra.mxu0 %vm822_vm5, %v8383_v60 }
 0x4d4   : > { %2007 = vmatpush.bf16.xpose.msrb.mxu0 %v1998_v14 }
 0x4d6   : > { %v1991_v54 = vpop.permute.xlu0 %1990  ;;  %v1327_v10 = vpop.xlane.xlu2 %1326 }
 0x4d7   : > { %v6801_v25 = vpop.permute.xlu1 %2148  ;;  %5368 = vrcp.f32 %v1327_v10 }
 0x4dc   : > { %v6807_v42 = vpop.f32.mrf.mxu2 }
 0x4dd   : > { %8385 = vst [vmem:[#allocation45_spill] sm:$0xff] %v6807_v42  ;;  %v5369_v27 = vpop.eup %5368 }
 0x4de   : > { %v1371_v33 = vmul.f32 %v5369_v27, %v6672_v37  ;;  %1341 = vadd.xlane.f32.xlu0 %v1340_v12  ;;  %v6812_v2 = vpop.f32.mrf.mxu1  ;;  %v6814_v8 = vpop.permute.xlu0 %2174  ;;  %v8389_v37 = vld [vmem:[#allocation41_spill] sm:$0xff]  ;;  %v8390_v12 = vld [vmem:[#allocation35_spill] sm:$0xff] }
 0x4df   : > { %8386 = vst [vmem:[#allocation46_spill] sm:$0xff] %v6812_v2  ;;  %v6816_v61 = vpop.permute.xlu1 %2122  ;;  %v1330_v59 = vpop.xlane.xlu2 %1329 }
 0x4e0   : > { %v1387_v56 = vpack.c.bf16 %v1371_v33, %v1371_v33  ;;  %5370 = vrcp.f32 %v1330_v59 }
 0x4e1   : > { %5372 = vpow2.f32 %v1292_v63  ;;  %v1842_v63 = vsel %vm822_vm5, %v8390_v12, 0 }
 0x4e2   : > { %5009 = vmatmul.msk.bf16.vlgmr.msrb.gmra.mxu1 %vm822_vm5, %v1387_v56  ;;  %5374 = vpow2.f32 %v1296_v26 }
 0x4e3   : > { %1825 = vmatpush.bf16.xpose.msrb.mxu1 %v1816_v47  ;;  %5020 = vmatmul.msk.bf16.vlgmr.msra.gmra.mxu0 %vm822_vm5, %v8389_v37 }
 0x4e4   : > { %v1417_v0 = vpop.f32.mrf.mxu2 }
 0x4e6   : > { %v5371_v13 = vpop.eup %5370  ;;  %v1465_v14 = vpop.f32.mrf.mxu1 }
 0x4e7   : > { %v6825_v60 = vpop.permute.xlu0 %2146  ;;  %v1372_v10 = vmul.f32 %v5371_v13, %v6685_v52  ;;  %v2095_v6 = vpop.permute.xlu1 %2094 }
 0x4e8   : > { %v6828_v40 = vpop.permute.xlu2 %2016  ;;  %v6830_v27 = vpop.eup %5372 }
 0x4e9   : > { %v1388_v23 = vpack.c.bf16 %v1372_v10, %v1372_v10  ;;  %v1337_v33 = vsel %vm822_vm5, %v6830_v27, 0.0  ;;  %v6839_v56 = vpop.eup %5374 }
 0x4ea   : > { %v1343_v37 = vsel %vm822_vm5, %v6839_v56, 0.0 }
 0x4eb   : > { %5010 = vmatmul.msk.bf16.vlgmr.msrb.gmra.mxu2 %vm822_vm5, %v1388_v23 }
 0x4ec   : > { %1851 = vmatpush.bf16.xpose.msrb.mxu2 %v1842_v63  ;;  %1338 = vadd.xlane.f32.xlu2 %v1337_v33  ;;  %v8394_v63 = vld [vmem:[#allocation29_spill] sm:$0xff] }
 0x4ef   : > { %v6837_v59 = vpop.permute.xlu0 %2120  ;;  %v2388_v32 = vpop.permute.xlu1 %2387 }
 0x4f0   : > { %v2097_v52 = vpop.permute.xlu2 %2096  ;;  %v2393_v24 = vsel %vm1402_vm6, %v2388_v32, 0 }
 0x4f1   : > { %v2102_v47 = vsel %vm822_vm5, %v2097_v52, 0 }
 0x4f2   : > { %2111 = vmatpush.bf16.xpose.msra.mxu0 %v2102_v47  ;;  %2748 = vrot.lane.b32.xlu0 %v8391_v20, %s5590_s8  ;;  %v8401_v20 = vld [vmem:[#allocation37_spill] sm:$0xff] }
 0x4f3   : > { %5024 = vmatmul.msk.bf16.vlgmr.msrb.gmra.mxu0 %vm822_vm5, %v1991_v54  ;;  %v1946_v18 = vsel %vm822_vm5, %v8401_v20, 0 }
 0x4f4   : > { %1344 = vadd.xlane.f32.xlu2 %v1343_v37 }
 0x4f7   : > { %v6848_v0 = vpop.permute.xlu0 %2429 }
 0x4f8   : > { %v6864_v32 = vpop.permute.xlu2 %2172 }
 0x4fa   : > { %2402 = vmatpush.bf16.msrb.mxu0 %v2393_v24 }
 0x4fb   : > { %v6850_v13 = vpop.f32.mrf.mxu3 }
 0x4fc   : > { %8392 = vst [vmem:[#allocation38_spill] sm:$0xff] %v6850_v13 }
 0x4fd   : > { %v6852_v26 = vpop.f32.mrf.mxu0 }
 0x4fe   : > { %8393 = vst [vmem:[#allocation43_spill] sm:$0xff] %v6852_v26 }
 0x4ff   : > { %v6854_v14 = vpop.permute.xlu0 %2408 }
 0x503   : > { %v1585_v10 = vpop.f32.mrf.mxu3  ;;  %5028 = vmatmul.msk.bf16.vlgmr.msra.gmra.mxu0 %vm822_vm5, %v2095_v6  ;;  %v6868_v6 = vpop.permute.xlu2 %2450 }
 0x505   : > { %v1609_v23 = vpop.f32.mrf.mxu0 }
 0x507   : > { %v2472_v12 = vpop.permute.xlu0 %2471 }
 0x508   : > { %v2477_v54 = vsel %vm1402_vm6, %v2472_v12, 0 }
 0x509   : > { %2486 = vmatpush.bf16.msra.mxu0 %v2477_v54 }
 0x50b   : > { %v6872_v12 = vpop.permute.xlu2 %2513 }
 0x50c   : > { %2769 = vrot.lane.b32.xlu2 %v8394_v63, %s5591_s9 }
 0x50f   : > { %v6870_v10 = vpop.permute.xlu0 %2555 }
 0x513   : > { %v6876_v26 = vpop.permute.xlu2 %2492 }
 0x514   : > { %v6860_v33 = vpop.f32.mrf.mxu2 }
 0x515   : > { %8395 = vst [vmem:[#allocation34_spill] sm:$0xff] %v6860_v33 }
 0x516   : > { %v6862_v52 = vpop.f32.mrf.mxu1 }
 0x517   : > { %8396 = vst [vmem:[#allocation49_spill] sm:$0xff] %v6862_v52  ;;  %v6874_v54 = vpop.permute.xlu0 %2681 }
 0x51b   : > { %v6882_v52 = vpop.permute.xlu2 %2618 }
 0x51c   : > { %v1489_v47 = vpop.f32.mrf.mxu2 }
 0x51e   : > { %v1537_v24 = vpop.f32.mrf.mxu1 }
 0x51f   : > { %v6878_v13 = vpop.permute.xlu0 %2660 }
 0x524   : > { %v6866_v37 = vpop.f32.mrf.mxu2 }
 0x525   : > { %8397 = vst [vmem:[#allocation41_spill] sm:$0xff] %v6866_v37  ;;  %v6886_v37 = vpop.permute.xlu2 %2639 }
 0x527   : > { %v6884_v24 = vpop.permute.xlu0 %2771 }
 0x52c   : > { %v1561_v23 = vpop.f32.mrf.mxu2 }
 0x52d   : > { %v6894_v7 = vpop.permute.xlu2 %2794 }
 0x52e   : > { %8400 = vst [vmem:[#allocation60_spill] sm:$0xff] %v6894_v7 }
 0x540   : > { %v6880_v48 = vpop.f32.mrf.mxu0 }
 0x541   : > { %8398 = vst [vmem:[#allocation35_spill] sm:$0xff] %v6880_v48 }
 0x548   : > { %v1705_v47 = vpop.f32.mrf.mxu0 }
 0x550   : > { %v6888_v2 = vpop.f32.mrf.mxu0 }
 0x551   : > { %v2195_v23 = vsel %vm822_vm5, %v6888_v2, -inf  ;;  %v1342_v33 = vpop.xlane.xlu0 %1341 }
 0x552   : > { %2196 = vmax.xlane.f32.xlu0 %v2195_v23  ;;  %5376 = vrcp.f32 %v1342_v33  ;;  %v6892_v42 = vpop.f32.mrf.mxu3 }
 0x553   : > { %8399 = vst [vmem:[#allocation59_spill] sm:$0xff] %v6892_v42 }
 0x558   : > { %v5377_v48 = vpop.eup %5376  ;;  %v1803_v63 = vpop.f32.mrf.mxu0 }
 0x559   : > { %v1376_v47 = vmul.f32 %v5377_v48, %v6803_v9  ;;  %v8403_v9 = vld [vmem:[#allocation39_spill] sm:$0xff] }
 0x55a   : > { %v1681_v34 = vpop.f32.mrf.mxu3  ;;  %v1920_v20 = vsel %vm822_vm5, %v8403_v9, 0  ;;  %v2024_v9 = vsel %vm822_vm5, %v6776_v16, 0 }
 0x55b   : > { %v1392_v44 = vpack.c.bf16 %v1376_v47, %v1376_v47  ;;  %v8405_v47 = vld [vmem:[#allocation47_spill] sm:$0xff] }
 0x55d   : > { %5014 = vmatmul.msk.bf16.vlgmr.msra.gmra.mxu2 %vm822_vm5, %v1392_v44  ;;  %v8404_v44 = vld [vmem:[#allocation53_spill] sm:$0xff] }
 0x55e   : > { %1955 = vmatpush.bf16.xpose.msra.mxu2 %v1946_v18  ;;  %v2050_v18 = vsel %vm822_vm5, %v8404_v44, 0  ;;  %v8409_v44 = vld [vmem:[#allocation42_spill] sm:$0xff] }
 0x55f   : > { %v6900_v30 = vpop.f32.mrf.mxu1  ;;  %v1339_v23 = vpop.xlane.xlu2 %1338 }
 0x560   : > { %8402 = vst [vmem:[#allocation37_spill] sm:$0xff] %v6900_v30  ;;  %v6902_v33 = vpop.f32.mrf.mxu0  ;;  %5378 = vrcp.f32 %v1339_v23 }
 0x566   : > { %v5379_v42 = vpop.eup %5378 }
 0x567   : > { %v1375_v39 = vmul.f32 %v5379_v42, %v6830_v27  ;;  %v1633_v63 = vpop.f32.mrf.mxu1  ;;  %v1345_v11 = vpop.xlane.xlu2 %1344  ;;  %v8407_v27 = vld [vmem:[#allocation40_spill] sm:$0xff] }
 0x568   : > { %v1907_v48 = vpop.f32.mrf.mxu0  ;;  %5380 = vrcp.f32 %v1345_v11  ;;  %v1972_v63 = vsel %vm822_vm5, %v8407_v27, 0  ;;  %v8412_v27 = vld [vmem:[#allocation48_spill] sm:$0xff] }
 0x569   : > { %v1391_v34 = vpack.c.bf16 %v1375_v39, %v1375_v39 }
 0x56b   : > { %5013 = vmatmul.msk.bf16.vlgmr.msra.gmra.mxu1 %vm822_vm5, %v1391_v34 }
 0x56c   : > { %1929 = vmatpush.bf16.xpose.msra.mxu1 %v1920_v20  ;;  %v8408_v20 = vld [vmem:[#allocation50_spill] sm:$0xff] }
 0x56d   : > { %5018 = vmatmul.msk.bf16.vlgmr.msrb.gmra.mxu2 %vm822_vm5, %v8405_v47  ;;  %v8410_v47 = vld [vmem:[#allocation44_spill] sm:$0xff] }
 0x56e   : > { %v5381_v23 = vpop.eup %5380  ;;  %v6912_v30 = vpop.f32.mrf.mxu2  ;;  %2059 = vmatpush.bf16.xpose.msrb.mxu2 %v2050_v18 }
 0x56f   : > { %8406 = vst [vmem:[#allocation39_spill] sm:$0xff] %v6912_v30  ;;  %v1377_v42 = vmul.f32 %v5381_v23, %v6839_v56  ;;  %v2154_v56 = vsel %vm822_vm5, %v6801_v25, 0  ;;  %v2076_v23 = vsel %vm822_vm5, %v8410_v47, 0  ;;  %v2435_v25 = vsel %vm1402_vm6, %v6848_v0, 0 }
 0x570   : > { %v6915_v11 = vpop.f32.mrf.mxu0  ;;  %v2519_v0 = vsel %vm1402_vm6, %v6872_v12, 0  ;;  %v2207_v47 = vsel %vm822_vm5, %v6902_v33, -inf }
 0x571   : > { %v1393_v39 = vpack.c.bf16 %v1377_v42, %v1377_v42  ;;  %v8411_v42 = vld [vmem:[#allocation36_spill] sm:$0xff] }
 0x573   : > { %5015 = vmatmul.msk.bf16.vlgmr.msra.gmra.mxu3 %vm822_vm5, %v1393_v39  ;;  %v2128_v39 = vsel %vm822_vm5, %v6816_v61, 0  ;;  %v2414_v61 = vsel %vm1402_vm6, %v6854_v14, 0 }
 0x574   : > { %1981 = vmatpush.bf16.xpose.msra.mxu3 %v1972_v63  ;;  %v2180_v63 = vsel %vm822_vm5, %v6814_v8, 0  ;;  %v2498_v8 = vsel %vm1402_vm6, %v6876_v26, 0 }
 0x576   : > { %v1657_v48 = vpop.f32.mrf.mxu2 }
 0x577   : > { %v8413_v48 = vld [vmem:[#allocation52_spill] sm:$0xff] }
 0x578   : > { %v2011_v34 = vpop.f32.mrf.mxu0 }
 0x57b   : > { %5017 = vmatmul.msk.bf16.vlgmr.msrb.gmra.mxu1 %vm822_vm5, %v8408_v20 }
 0x57c   : > { %2033 = vmatpush.bf16.xpose.msrb.mxu1 %v2024_v9 }
 0x57d   : > { %5022 = vmatmul.msk.bf16.vlgmr.msra.gmra.mxu2 %vm822_vm5, %v8409_v44 }
 0x57e   : > { %2163 = vmatpush.bf16.xpose.msra.mxu2 %v2154_v56 }
 0x580   : > { %v6928_v18 = vpop.f32.mrf.mxu0 }
 0x583   : > { %5019 = vmatmul.msk.bf16.vlgmr.msrb.gmra.mxu3 %vm822_vm5, %v8411_v42 }
 0x584   : > { %2085 = vmatpush.bf16.xpose.msrb.mxu3 %v2076_v23 }
 0x588   : > { %v2115_v16 = vpop.f32.mrf.mxu0 }
 0x58b   : > { %5021 = vmatmul.msk.bf16.vlgmr.msra.gmra.mxu1 %vm822_vm5, %v8412_v27 }
 0x58c   : > { %2137 = vmatpush.bf16.xpose.msra.mxu1 %v2128_v39 }
 0x58d   : > { %5026 = vmatmul.msk.bf16.vlgmr.msrb.gmra.mxu2 %vm822_vm5, %v6791_v41  ;;  %v2456_v41 = vsel %vm1402_vm6, %v6868_v6, 0 }
 0x58e   : > { %2444 = vmatpush.bf16.msrb.mxu2 %v2435_v25 }
 0x593   : > { %5023 = vmatmul.msk.bf16.vlgmr.msra.gmra.mxu3 %vm822_vm5, %v8413_v48 }
 0x594   : > { %2189 = vmatpush.bf16.xpose.msra.mxu3 %v2180_v63 }
 0x59b   : > { %5025 = vmatmul.msk.bf16.vlgmr.msrb.gmra.mxu1 %vm822_vm5, %v6828_v40  ;;  %v2535_v40 = vpop.permute.xlu1 %2534 }
 0x59c   : > { %2423 = vmatpush.bf16.msrb.mxu1 %v2414_v61  ;;  %v2540_v14 = vsel %vm1402_vm6, %v2535_v40, 0 }
 0x59d   : > { %5030 = vmatmul.msk.bf16.vlgmr.msra.gmra.mxu2 %vm822_vm5, %v6825_v60 }
 0x59e   : > { %2528 = vmatpush.bf16.msra.mxu2 %v2519_v0 }
 0x5a3   : > { %5027 = vmatmul.msk.bf16.vlgmr.msrb.gmra.mxu3 %vm822_vm5, %v6795_v5 }
 0x5a4   : > { %2465 = vmatpush.bf16.msrb.mxu3 %v2456_v41  ;;  %v2219_v41 = vsel %vm822_vm5, %v6915_v11, -inf }
 0x5ab   : > { %5029 = vmatmul.msk.bf16.vlgmr.msra.gmra.mxu1 %vm822_vm5, %v6837_v59 }
 0x5ac   : > { %2507 = vmatpush.bf16.msra.mxu1 %v2498_v8 }
 0x5b3   : > { %5031 = vmatmul.msk.bf16.vlgmr.msra.gmra.mxu3 %vm822_vm5, %v6864_v32 }
 0x5b4   : > { %2549 = vmatpush.bf16.msra.mxu3 %v2540_v14 }
 0x5e0   : > { %v6965_v60 = vpop.f32.mrf.mxu2 }
 0x5e1   : > { %8414 = vst [vmem:[#allocation53_spill] sm:$0xff] %v6965_v60 }
 0x5e8   : > { %v6967_v6 = vpop.f32.mrf.mxu1  ;;  %v1753_v5 = vpop.f32.mrf.mxu2 }
 0x5e9   : > { %8415 = vst [vmem:[#allocation47_spill] sm:$0xff] %v6967_v6 }
 0x5f0   : > { %v1729_v12 = vpop.f32.mrf.mxu1  ;;  %v6969_v34 = vpop.f32.mrf.mxu2 }
 0x5f1   : > { %v2201_v27 = vsel %vm822_vm5, %v6969_v34, -inf }
 0x5f6   : > { %v6971_v26 = vpop.f32.mrf.mxu3 }
 0x5f7   : > { %8416 = vst [vmem:[#allocation40_spill] sm:$0xff] %v6971_v26 }
 0x5f8   : > { %v6973_v9 = vpop.f32.mrf.mxu1  ;;  %v1855_v59 = vpop.f32.mrf.mxu2 }
 0x5f9   : > { %v2198_v20 = vsel %vm822_vm5, %v6973_v9, -inf }
 0x5fa   : > { %2199 = vmax.xlane.f32.xlu2 %v2198_v20 }
 0x5fe   : > { %v1777_v56 = vpop.f32.mrf.mxu3 }
 0x600   : > { %v1829_v32 = vpop.f32.mrf.mxu1  ;;  %v6977_v44 = vpop.f32.mrf.mxu2 }
 0x601   : > { %v2213_v12 = vsel %vm822_vm5, %v6977_v44, -inf  ;;  %v7007_v32 = vpop.permute.xlu0 %2748 }
 0x602   : > { %2208 = vmax.xlane.f32.xlu2 %v2207_v47 }
 0x606   : > { %v6981_v23 = vpop.f32.mrf.mxu3 }
 0x607   : > { %v2204_v42 = vsel %vm822_vm5, %v6981_v23, -inf }
 0x608   : > { %v6985_v16 = vpop.f32.mrf.mxu1  ;;  %v1959_v39 = vpop.f32.mrf.mxu2  ;;  %2205 = vmax.xlane.f32.xlu1 %v2204_v42  ;;  %v2231_v42 = vsel %vm822_vm5, %v6928_v18, -inf }
 0x609   : > { %v2210_v63 = vsel %vm822_vm5, %v6985_v16, -inf }
 0x60a   : > { %2202 = vmax.xlane.f32.xlu2 %v2201_v27 }
 0x60e   : > { %v1881_v25 = vpop.f32.mrf.mxu3 }
 0x610   : > { %v1933_v48 = vpop.f32.mrf.mxu1  ;;  %v6991_v61 = vpop.f32.mrf.mxu2  ;;  %2211 = vmax.xlane.f32.xlu1 %v2210_v63 }
 0x611   : > { %v2197_v63 = vpop.xlane.xlu0 %2196 }
 0x612   : > { %v2243_v48 = vsub.f32 %v6888_v2, %v2197_v63  ;;  %v8417_v63 = vld [vmem:[#allocation23_spill] sm:$0xff] }
 0x616   : > { %v6993_v0 = vpop.f32.mrf.mxu3 }
 0x617   : > { %v2216_v8 = vsel %vm822_vm5, %v6993_v0, -inf }
 0x618   : > { %v6999_v40 = vpop.f32.mrf.mxu1  ;;  %v2063_v14 = vpop.f32.mrf.mxu2  ;;  %2220 = vmax.xlane.f32.xlu1 %v2219_v41  ;;  %2217 = vmax.xlane.f32.xlu0 %v2216_v8  ;;  %v2225_v8 = vsel %vm822_vm5, %v6991_v61, -inf }
 0x619   : > { %v2222_v59 = vsel %vm822_vm5, %v6999_v40, -inf }
 0x61e   : > { %v1985_v5 = vpop.f32.mrf.mxu3 }
 0x620   : > { %v2037_v20 = vpop.f32.mrf.mxu1  ;;  %v7005_v56 = vpop.f32.mrf.mxu2  ;;  %2214 = vmax.xlane.f32.xlu1 %v2213_v12  ;;  %2223 = vmax.xlane.f32.xlu0 %v2222_v59  ;;  %v2259_v12 = vmul.f32 1.442695, %v2243_v48 }
 0x621   : > { %v2237_v20 = vsel %vm822_vm5, %v7005_v56, -inf  ;;  %v7034_v48 = vpop.permute.xlu1 %2597 }
 0x622   : > { %5382 = vpow2.f32 %v2259_v12 }
 0x626   : > { %v7009_v47 = vpop.f32.mrf.mxu3 }
 0x627   : > { %v2228_v39 = vsel %vm822_vm5, %v7009_v47, -inf }
 0x628   : > { %v7015_v27 = vpop.f32.mrf.mxu1  ;;  %v2167_v25 = vpop.f32.mrf.mxu2  ;;  %2232 = vmax.xlane.f32.xlu0 %v2231_v42  ;;  %2229 = vmax.xlane.f32.xlu2 %v2228_v39 }
 0x629   : > { %v2234_v14 = vsel %vm822_vm5, %v7015_v27, -inf  ;;  %v7028_v42 = vpop.eup %5382 }
 0x62a   : > { %v2291_v25 = vsel %vm822_vm5, %v7028_v42, 0.0 }
 0x62e   : > { %v2089_v41 = vpop.f32.mrf.mxu3 }
 0x62f   : > { %v8418_v41 = vld [vmem:[#allocation30_spill] sm:$0xff] }
 0x630   : > { %v2141_v5 = vpop.f32.mrf.mxu1  ;;  %2226 = vmax.xlane.f32.xlu0 %v2225_v8  ;;  %2235 = vmax.xlane.f32.xlu2 %v2234_v14  ;;  %v7038_v8 = vpop.permute.xlu1 %2576 }
 0x631   : > { %v7040_v14 = vpop.permute.xlu2 %2769 }
 0x632   : > { %8419 = vst [vmem:[#allocation50_spill] sm:$0xff] %v7040_v14 }
 0x636   : > { %v7022_v59 = vpop.f32.mrf.mxu3 }
 0x637   : > { %v2240_v2 = vsel %vm822_vm5, %v7022_v59, -inf }
 0x638   : > { %2238 = vmax.xlane.f32.xlu2 %v2237_v20  ;;  %2241 = vmax.xlane.f32.xlu1 %v2240_v2  ;;  %v7042_v5 = vpop.permute.xlu1 %2702 }
 0x63e   : > { %v2193_v39 = vpop.f32.mrf.mxu3 }
 0x640   : > { %2292 = vadd.xlane.f32.xlu2 %v2291_v25  ;;  %v7045_v39 = vpop.permute.xlu1 %2725 }
 0x644   : > { %2723 = vrot.lane.b32.xlu0 %v8417_v63, %s5591_s9 }
 0x658   : > { %2746 = vrot.lane.b32.xlu2 %v8418_v41, %s5591_s9 }
 0x66d   : > { %v2200_v12 = vpop.xlane.xlu2 %2199 }
 0x66e   : > { %v2244_v20 = vsub.f32 %v6973_v9, %v2200_v12 }
 0x670   : > { %v2261_v2 = vmul.f32 1.442695, %v2244_v20 }
 0x672   : > { %5384 = vpow2.f32 %v2261_v2 }
 0x675   : > { %v2209_v25 = vpop.xlane.xlu2 %2208 }
 0x676   : > { %v2247_v60 = vsub.f32 %v6902_v33, %v2209_v25 }
 0x678   : > { %v7048_v26 = vpop.eup %5384  ;;  %v2267_v6 = vmul.f32 1.442695, %v2247_v60 }
 0x679   : > { %v2294_v30 = vsel %vm822_vm5, %v7048_v26, 0.0 }
 0x67a   : > { %5386 = vpow2.f32 %v2267_v6  ;;  %2295 = vadd.xlane.f32.xlu1 %v2294_v30 }
 0x67b   : > { %v2206_v63 = vpop.xlane.xlu1 %2205 }
 0x67c   : > { %v2246_v41 = vsub.f32 %v6981_v23, %v2206_v63 }
 0x67d   : > { %v2203_v14 = vpop.xlane.xlu2 %2202 }
 0x67e   : > { %v2265_v9 = vmul.f32 1.442695, %v2246_v41  ;;  %v2245_v12 = vsub.f32 %v6969_v34, %v2203_v14 }
 0x680   : > { %v7054_v20 = vpop.eup %5386  ;;  %5388 = vpow2.f32 %v2265_v9  ;;  %v2263_v2 = vmul.f32 1.442695, %v2245_v12 }
 0x681   : > { %v2303_v33 = vsel %vm822_vm5, %v7054_v20, 0.0 }
 0x682   : > { %5390 = vpow2.f32 %v2263_v2  ;;  %2304 = vadd.xlane.f32.xlu1 %v2303_v33 }
 0x683   : > { %v2212_v60 = vpop.xlane.xlu1 %2211 }
 0x684   : > { %v2248_v6 = vsub.f32 %v6985_v16, %v2212_v60 }
 0x686   : > { %v7059_v30 = vpop.eup %5388  ;;  %v2269_v25 = vmul.f32 1.442695, %v2248_v6 }
 0x687   : > { %v2300_v23 = vsel %vm822_vm5, %v7059_v30, 0.0 }
 0x688   : > { %v7063_v63 = vpop.eup %5390  ;;  %5392 = vpow2.f32 %v2269_v25  ;;  %2301 = vadd.xlane.f32.xlu0 %v2300_v23 }
 0x689   : > { %v2297_v34 = vsel %vm822_vm5, %v7063_v63, 0.0 }
 0x68a   : > { %2298 = vadd.xlane.f32.xlu1 %v2297_v34 }
 0x68b   : > { %v2221_v41 = vpop.xlane.xlu1 %2220  ;;  %v2218_v14 = vpop.xlane.xlu0 %2217 }
 0x68c   : > { %v2251_v9 = vsub.f32 %v6915_v11, %v2221_v41  ;;  %v2250_v2 = vsub.f32 %v6993_v0, %v2218_v14 }
 0x68e   : > { %v7068_v12 = vpop.eup %5392  ;;  %v2275_v16 = vmul.f32 1.442695, %v2251_v9  ;;  %v2273_v60 = vmul.f32 1.442695, %v2250_v2 }
 0x68f   : > { %v2306_v33 = vsel %vm822_vm5, %v7068_v12, 0.0 }
 0x690   : > { %5394 = vpow2.f32 %v2275_v16  ;;  %2307 = vadd.xlane.f32.xlu0 %v2306_v33 }
 0x691   : > { %5396 = vpow2.f32 %v2273_v60 }
 0x693   : > { %v2215_v6 = vpop.xlane.xlu1 %2214  ;;  %v2224_v25 = vpop.xlane.xlu0 %2223 }
 0x694   : > { %v2249_v23 = vsub.f32 %v6977_v44, %v2215_v6  ;;  %v2252_v11 = vsub.f32 %v6999_v40, %v2224_v25 }
 0x696   : > { %v7074_v34 = vpop.eup %5394  ;;  %v2271_v7 = vmul.f32 1.442695, %v2249_v23  ;;  %v2277_v0 = vmul.f32 1.442695, %v2252_v11 }
 0x697   : > { %v2315_v41 = vsel %vm822_vm5, %v7074_v34, 0.0  ;;  %v7079_v16 = vpop.eup %5396 }
 0x698   : > { %5398 = vpow2.f32 %v2271_v7  ;;  %2316 = vadd.xlane.f32.xlu2 %v2315_v41  ;;  %v2312_v33 = vsel %vm822_vm5, %v7079_v16, 0.0  ;;  %v8420_v7 = vld [vmem:[#allocation24_spill] sm:$0xff] }
 0x699   : > { %5400 = vpow2.f32 %v2277_v0 }
 0x69b   : > { %v2233_v14 = vpop.xlane.xlu0 %2232  ;;  %v2230_v9 = vpop.xlane.xlu2 %2229 }
 0x69e   : > { %v7081_v2 = vpop.eup %5398 }
 0x69f   : > { %v2309_v44 = vsel %vm822_vm5, %v7081_v2, 0.0  ;;  %v7091_v6 = vpop.eup %5400 }
 0x6a0   : > { %2310 = vadd.xlane.f32.xlu0 %v2309_v44  ;;  %2313 = vadd.xlane.f32.xlu2 %v2312_v33  ;;  %v2318_v11 = vsel %vm822_vm5, %v7091_v6, 0.0 }
 0x6a3   : > { %v2227_v40 = vpop.xlane.xlu0 %2226  ;;  %2792 = vrot.lane.b32.xlu1 %v8420_v7, %s5591_s9  ;;  %v7089_v60 = vpop.xlane.xlu2 %2235  ;;  %v8421_v7 = vld [vmem:[#allocation4_spill] sm:$0xff] }
 0x6a4   : > { %v2253_v25 = vsub.f32 %v6991_v61, %v2227_v40  ;;  %v2255_v40 = vsub.f32 %v6928_v18, %v2233_v14 }
 0x6a6   : > { %v2279_v23 = vmul.f32 1.442695, %v2253_v25  ;;  %v2283_v55 = vmul.f32 1.442695, %v2255_v40 }
 0x6a8   : > { %5402 = vpow2.f32 %v2279_v23  ;;  %2319 = vadd.xlane.f32.xlu0 %v2318_v11  ;;  %v2561_v11 = vsel %vm1402_vm6, %v6870_v10, 0  ;;  %v8425_v10 = vld [vmem:[#allocation25_spill] sm:$0xff] }
 0x6ab   : > { %v7096_v41 = vpop.xlane.xlu2 %2238 }
 0x6ae   : > { %v7098_v0 = vpop.eup %5402 }
 0x6af   : > { %v2321_v44 = vsel %vm822_vm5, %v7098_v0, 0.0 }
 0x6b0   : > { %2322 = vadd.xlane.f32.xlu0 %v2321_v44  ;;  %v8422_v44 = vld [vmem:[#allocation31_spill] sm:$0xff] }
 0x6b3   : > { %v2293_v33 = vpop.xlane.xlu2 %2292 }
 0x6b4   : > { %5404 = vrcp.f32 %v2293_v33  ;;  %v2254_v33 = vsub.f32 %v7009_v47, %v2230_v9  ;;  %v8427_v9 = vld [vmem:[#allocation33_spill] sm:$0xff] }
 0x6b5   : > { %5406 = vpow2.f32 %v2283_v55  ;;  %v8426_v55 = vld [vmem:[#allocation8_spill] sm:$0xff] }
 0x6b6   : > { %v2281_v18 = vmul.f32 1.442695, %v2254_v33  ;;  %v8429_v33 = vld [vmem:[#allocation13_spill] sm:$0xff] }
 0x6b8   : > { %2817 = vrot.lane.b32.xlu2 %v8421_v7, %s5590_s8  ;;  %v8423_v7 = vld [vmem:[#allocation21_spill] sm:$0xff]  ;;  %5408 = vpow2.f32 %v2281_v18  ;;  %v7148_v18 = vpop.permute.xlu0 %2723 }
 0x6ba   : > { %v5405_v61 = vpop.eup %5404 }
 0x6bb   : > { %v2355_v25 = vmul.f32 %v5405_v61, %v7028_v42  ;;  %v8424_v42 = vld [vmem:[#allocation17_spill] sm:$0xff]  ;;  %v7116_v14 = vpop.eup %5406 }
 0x6bc   : > { %v2327_v61 = vsel %vm822_vm5, %v7116_v14, 0.0 }
 0x6bd   : > { %v2371_v23 = vpack.c.bf16 %v2355_v25, %v2355_v25  ;;  %v8428_v25 = vld [vmem:[#allocation5_spill] sm:$0xff] }
 0x6be   : > { %v7124_v47 = vpop.eup %5408 }
 0x6bf   : > { %5032 = vmatmul.msk.bf16.vlgmr.msrb.gmra.mxu0 %vm822_vm5, %v2371_v23  ;;  %v2324_v40 = vsel %vm822_vm5, %v7124_v47, 0.0  ;;  %v7138_v23 = vpop.xlane.xlu1 %2241 }
 0x6c0   : > { %2570 = vmatpush.bf16.msrb.mxu0 %v2561_v11  ;;  %2884 = vrot.lane.b32.xlu2 %v8422_v44, %s5591_s9 }
 0x6c4   : > { %2886 = vrot.lane.b32.xlu0 %v8423_v7, %s5590_s8 }
 0x6c8   : > { %2955 = vrot.lane.b32.xlu2 %v8424_v42, %s5590_s8 }
 0x6cc   : > { %2861 = vrot.lane.b32.xlu0 %v8425_v10, %s5591_s9 }
 0x6cd   : > { %2328 = vadd.xlane.f32.xlu1 %v2327_v61 }
 0x6d0   : > { %2932 = vrot.lane.b32.xlu2 %v8426_v55, %s5590_s8 }
 0x6d4   : > { %2838 = vrot.lane.b32.xlu0 %v8427_v9, %s5591_s9 }
 0x6d5   : > { %2325 = vadd.xlane.f32.xlu1 %v2324_v40 }
 0x6d8   : > { %2907 = vrot.lane.b32.xlu2 %v6679_v46, %s5591_s9 }
 0x6dc   : > { %2909 = vrot.lane.b32.xlu0 %v8428_v25, %s5590_s8 }
 0x6e0   : > { %3070 = vrot.lane.b32.xlu2 %v6260_v35, %s5590_s8 }
 0x6e4   : > { %2976 = vrot.lane.b32.xlu0 %v6666_v51, %s5591_s9 }
 0x6e8   : > { %3045 = vrot.lane.b32.xlu2 %v6695_v43, %s5591_s9 }
 0x6ec   : > { %3047 = vrot.lane.b32.xlu0 %v6251_v29, %s5590_s8  ;;  %v8430_v29 = vld [vmem:[#allocation6_spill] sm:$0xff] }
 0x6ed   : > { %v2296_v11 = vpop.xlane.xlu1 %2295 }
 0x6ee   : > { %5410 = vrcp.f32 %v2296_v11  ;;  %2863 = vrot.lane.b32.xlu1 %v8429_v33, %s5590_s8 }
 0x6f0   : > { %3022 = vrot.lane.b32.xlu2 %v6708_v31, %s5591_s9  ;;  %v2582_v31 = vsel %vm1402_vm6, %v7038_v8, 0  ;;  %v2645_v8 = vsel %vm1402_vm6, %v6886_v37, 0  ;;  %v2624_v37 = vsel %vm1402_vm6, %v6882_v52, 0  ;;  %v2666_v52 = vsel %vm1402_vm6, %v6878_v13, 0 }
 0x6f1   : > { %v2731_v13 = vsel %vm822_vm5, %v7045_v39, 0 }
 0x6f4   : > { %v5411_v61 = vpop.eup %5410  ;;  %3024 = vrot.lane.b32.xlu0 %v6191_v36, %s5590_s8 }
 0x6f5   : > { %v2356_v40 = vmul.f32 %v5411_v61, %v7048_v26  ;;  %v2305_v51 = vpop.xlane.xlu1 %2304  ;;  %v8431_v61 = vld [vmem:[#allocation28_spill] sm:$0xff] }
 0x6f6   : > { %5412 = vrcp.f32 %v2305_v51  ;;  %2840 = vrot.lane.b32.xlu1 %v8430_v29, %s5590_s8 }
 0x6f7   : > { %v2372_v11 = vpack.c.bf16 %v2356_v40, %v2356_v40 }
 0x6f8   : > { %3283 = vrot.lane.b32.xlu2 %v6151_v62, %s5592_s10 }
 0x6f9   : > { %5033 = vmatmul.msk.bf16.vlgmr.msrb.gmra.mxu1 %vm822_vm5, %v2372_v11  ;;  %v7168_v11 = vpop.permute.xlu2 %2746 }
 0x6fa   : > { %2591 = vmatpush.bf16.msrb.mxu1 %v2582_v31 }
 0x6fb   : > { %v2302_v46 = vpop.xlane.xlu0 %2301 }
 0x6fc   : > { %v5413_v36 = vpop.eup %5412  ;;  %5414 = vrcp.f32 %v2302_v46  ;;  %2999 = vrot.lane.b32.xlu0 %v6697_v38, %s5591_s9 }
 0x6fd   : > { %v2359_v51 = vmul.f32 %v5413_v36, %v7054_v20  ;;  %v2299_v26 = vpop.xlane.xlu1 %2298 }
 0x6fe   : > { %5416 = vrcp.f32 %v2299_v26  ;;  %2815 = vrot.lane.b32.xlu1 %v8431_v61, %s5591_s9  ;;  %v8432_v26 = vld [vmem:[#allocation14_spill] sm:$0xff] }
 0x6ff   : > { %v2375_v40 = vpack.c.bf16 %v2359_v51, %v2359_v51 }
 0x701   : > { %5036 = vmatmul.msk.bf16.vlgmr.msra.gmra.mxu0 %vm822_vm5, %v2375_v40  ;;  %v2603_v40 = vsel %vm1402_vm6, %v7034_v48, 0 }
 0x702   : > { %v5415_v31 = vpop.eup %5414  ;;  %2654 = vmatpush.bf16.msra.mxu0 %v2645_v8  ;;  %v2256_v8 = vsub.f32 %v7015_v27, %v7089_v60  ;;  %v2257_v60 = vsub.f32 %v7005_v56, %v7096_v41  ;;  %v2687_v56 = vsel %vm1402_vm6, %v6874_v54, 0 }
 0x703   : > { %v2358_v46 = vmul.f32 %v5415_v31, %v7059_v30  ;;  %v2308_v38 = vpop.xlane.xlu0 %2307 }
 0x704   : > { %v5417_v62 = vpop.eup %5416  ;;  %5418 = vrcp.f32 %v2308_v38  ;;  %v2285_v31 = vmul.f32 1.442695, %v2256_v8 }
 0x705   : > { %v2374_v36 = vpack.c.bf16 %v2358_v46, %v2358_v46  ;;  %v2357_v20 = vmul.f32 %v5417_v62, %v7063_v63 }
 0x706   : > { %2978 = vrot.lane.b32.xlu1 %v8432_v26, %s5590_s8 }
 0x707   : > { %v2373_v51 = vpack.c.bf16 %v2357_v20, %v2357_v20  ;;  %5035 = vmatmul.msk.bf16.vlgmr.msrb.gmra.mxu3 %vm822_vm5, %v2374_v36 }
 0x708   : > { %2633 = vmatpush.bf16.msrb.mxu3 %v2624_v37 }
 0x709   : > { %5034 = vmatmul.msk.bf16.vlgmr.msrb.gmra.mxu2 %vm822_vm5, %v2373_v51 }
 0x70a   : > { %v5419_v30 = vpop.eup %5418  ;;  %2612 = vmatpush.bf16.msrb.mxu2 %v2603_v40 }
 0x70b   : > { %v2360_v38 = vmul.f32 %v5419_v30, %v7068_v12  ;;  %v2317_v62 = vpop.xlane.xlu2 %2316  ;;  %v2258_v12 = vsub.f32 %v7022_v59, %v7138_v23  ;;  %v2287_v23 = vmul.f32 1.442695, %v2257_v60 }
 0x70c   : > { %5420 = vrcp.f32 %v2317_v62 }
 0x70d   : > { %v2376_v63 = vpack.c.bf16 %v2360_v38, %v2360_v38  ;;  %v2289_v27 = vmul.f32 1.442695, %v2258_v12 }
 0x70e   : > { %2953 = vrot.lane.b32.xlu1 %v6638_v1, %s5591_s9 }
 0x70f   : > { %5037 = vmatmul.msk.bf16.vlgmr.msra.gmra.mxu1 %vm822_vm5, %v2376_v63 }
 0x710   : > { %2675 = vmatpush.bf16.msra.mxu1 %v2666_v52 }
 0x712   : > { %v5421_v48 = vpop.eup %5420 }
 0x713   : > { %v2363_v46 = vmul.f32 %v5421_v48, %v7074_v34  ;;  %v2311_v36 = vpop.xlane.xlu0 %2310  ;;  %v2314_v20 = vpop.xlane.xlu2 %2313 }
 0x714   : > { %5422 = vrcp.f32 %v2311_v36 }
 0x715   : > { %v2379_v37 = vpack.c.bf16 %v2363_v46, %v2363_v46  ;;  %5424 = vrcp.f32 %v2314_v20  ;;  %v2777_v20 = vsel %vm822_vm5, %v6884_v24, 0 }
 0x716   : > { %2930 = vrot.lane.b32.xlu1 %v6719_v3, %s5591_s9  ;;  %5426 = vpow2.f32 %v2285_v31  ;;  %v2754_v31 = vsel %vm822_vm5, %v7007_v32, 0  ;;  %v7234_v32 = vpop.permute.xlu1 %2792 }
 0x717   : > { %5040 = vmatmul.msk.bf16.vlgmr.msrb.gmra.mxu0 %vm822_vm5, %v2379_v37  ;;  %5428 = vpow2.f32 %v2289_v27 }
 0x718   : > { %2740 = vmatpush.bf16.xpose.msrb.mxu0 %v2731_v13 }
 0x71a   : > { %v5423_v59 = vpop.eup %5422 }
 0x71b   : > { %v5425_v34 = vpop.eup %5424  ;;  %v2361_v51 = vmul.f32 %v5423_v59, %v7081_v2  ;;  %v2320_v40 = vpop.xlane.xlu0 %2319  ;;  %v2708_v2 = vsel %vm1402_vm6, %v7042_v5, 0 }
 0x71c   : > { %v2362_v30 = vmul.f32 %v5425_v34, %v7079_v16  ;;  %5430 = vrcp.f32 %v2320_v40  ;;  %v7200_v38 = vpop.eup %5426  ;;  %v2818_v13 = vpop.permute.xlu2 %2817 }
 0x71d   : > { %v2377_v39 = vpack.c.bf16 %v2361_v51, %v2361_v51  ;;  %5432 = vpow2.f32 %v2287_v23  ;;  %v2330_v16 = vsel %vm822_vm5, %v7200_v38, 0.0  ;;  %v7212_v41 = vpop.eup %5428 }
 0x71e   : > { %v2378_v62 = vpack.c.bf16 %v2362_v30, %v2362_v30  ;;  %3001 = vrot.lane.b32.xlu1 %v6101_v50, %s5590_s8  ;;  %v2336_v5 = vsel %vm822_vm5, %v7212_v41, 0.0  ;;  %v2823_v30 = vsel %vm822_vm5, %v2818_v13, 0 }
 0x71f   : > { %5038 = vmatmul.msk.bf16.vlgmr.msra.gmra.mxu2 %vm822_vm5, %v2377_v39 }
 0x720   : > { %5039 = vmatmul.msk.bf16.vlgmr.msra.gmra.mxu3 %vm822_vm5, %v2378_v62  ;;  %2696 = vmatpush.bf16.msra.mxu2 %v2687_v56 }
 0x721   : > { %2717 = vmatpush.bf16.msra.mxu3 %v2708_v2  ;;  %2331 = vadd.xlane.f32.xlu2 %v2330_v16  ;;  %v8434_v16 = vld [vmem:[#allocation27_spill] sm:$0xff] }
 0x722   : > { %v5431_v63 = vpop.eup %5430 }
 0x723   : > { %v2364_v52 = vmul.f32 %v5431_v63, %v7091_v6  ;;  %v2323_v54 = vpop.xlane.xlu0 %2322  ;;  %v7215_v8 = vpop.eup %5432  ;;  %v8435_v63 = vld [vmem:[#allocation60_spill] sm:$0xff] }
 0x724   : > { %5434 = vrcp.f32 %v2323_v54  ;;  %v2333_v6 = vsel %vm822_vm5, %v7215_v8, 0.0  ;;  %v7252_v34 = vpop.permute.xlu2 %2884 }
 0x725   : > { %v2380_v48 = vpack.c.bf16 %v2364_v52, %v2364_v52  ;;  %v2800_v52 = vsel %vm822_vm5, %v8435_v63, 0 }
 0x726   : > { %2337 = vadd.xlane.f32.xlu0 %v2336_v5  ;;  %3068 = vrot.lane.b32.xlu1 %v6738_v15, %s5591_s9 }
 0x727   : > { %5041 = vmatmul.msk.bf16.vlgmr.msrb.gmra.mxu1 %vm822_vm5, %v2380_v48  ;;  %v8436_v48 = vld [vmem:[#allocation26_spill] sm:$0xff] }
 0x728   : > { %2763 = vmatpush.bf16.xpose.msrb.mxu1 %v2754_v31 }
 0x729   : > { %2334 = vadd.xlane.f32.xlu2 %v2333_v6 }
 0x72a   : > { %v5435_v12 = vpop.eup %5434 }
 0x72b   : > { %v2365_v46 = vmul.f32 %v5435_v12, %v7098_v0  ;;  %v8438_v12 = vld [vmem:[#allocation32_spill] sm:$0xff] }
 0x72c   : > { %v7266_v56 = vpop.permute.xlu2 %2955 }
 0x72d   : > { %v2381_v36 = vpack.c.bf16 %v2365_v46, %v2365_v46 }
 0x72e   : > { %3304 = vrot.lane.b32.xlu1 %v6149_v22, %s5592_s10 }
 0x72f   : > { %5042 = vmatmul.msk.bf16.vlgmr.msrb.gmra.mxu2 %vm822_vm5, %v2381_v36 }
 0x730   : > { %2786 = vmatpush.bf16.xpose.msrb.mxu2 %v2777_v20 }
 0x734   : > { %v7279_v5 = vpop.permute.xlu2 %2932 }
 0x736   : > { %3367 = vrot.lane.b32.xlu1 %v6147_v19, %s5592_s10  ;;  %v7238_v37 = vpop.permute.xlu0 %2886 }
 0x73a   : > { %3325 = vrot.lane.b32.xlu0 %v6227_v45, %s5592_s10 }
 0x73c   : > { %v7240_v0 = vpop.f32.mrf.mxu0  ;;  %v2908_v46 = vpop.permute.xlu2 %2907 }
 0x73d   : > { %8433 = vst [vmem:[#allocation42_spill] sm:$0xff] %v7240_v0 }
 0x73e   : > { %3430 = vrot.lane.b32.xlu1 %v6309_v53, %s5592_s10  ;;  %v7248_v60 = vpop.permute.xlu0 %2861 }
 0x740   : > { %v2329_v24 = vpop.xlane.xlu1 %2328 }
 0x741   : > { %5436 = vrcp.f32 %v2329_v24  ;;  %3346 = vrot.lane.b32.xlu2 %v6294_v4, %s5592_s10 }
 0x742   : > { %3409 = vrot.lane.b32.xlu0 %v6193_v57, %s5592_s10 }
 0x744   : > { %v2406_v27 = vpop.f32.mrf.mxu0  ;;  %v7288_v20 = vpop.permute.xlu2 %3070 }
 0x746   : > { %3472 = vrot.lane.b32.xlu1 %v6171_v28, %s5592_s10  ;;  %v7263_v62 = vpop.permute.xlu0 %2838 }
 0x747   : > { %v5437_v59 = vpop.eup %5436 }
 0x748   : > { %v2367_v23 = vmul.f32 %v5437_v59, %v7116_v14  ;;  %v2326_v51 = vpop.xlane.xlu1 %2325 }
 0x749   : > { %5438 = vrcp.f32 %v2326_v51  ;;  %3388 = vrot.lane.b32.xlu2 %v6195_v17, %s5592_s10 }
 0x74a   : > { %v2383_v40 = vpack.c.bf16 %v2367_v23, %v2367_v23  ;;  %3451 = vrot.lane.b32.xlu0 %v6175_v49, %s5592_s10 }
 0x74c   : > { %5044 = vmatmul.msk.bf16.vlgmr.msra.gmra.mxu0 %vm822_vm5, %v2383_v40  ;;  %v7299_v23 = vpop.permute.xlu2 %3045 }
 0x74d   : > { %2832 = vmatpush.bf16.xpose.msra.mxu0 %v2823_v30 }
 0x74e   : > { %3535 = vrot.lane.b32.xlu1 %v8377_v58, %s5592_s10  ;;  %v2910_v54 = vpop.permute.xlu0 %2909 }
 0x74f   : > { %v5439_v39 = vpop.eup %5438  ;;  %v2915_v31 = vsel %vm822_vm5, %v2910_v54, 0 }
 0x750   : > { %v2366_v14 = vmul.f32 %v5439_v39, %v7124_v47  ;;  %v8437_v47 = vld [vmem:[#allocation20_spill] sm:$0xff] }
 0x751   : > { %3493 = vrot.lane.b32.xlu2 %v6249_v21, %s5592_s10 }
 0x752   : > { %v2382_v2 = vpack.c.bf16 %v2366_v14, %v2366_v14  ;;  %3514 = vrot.lane.b32.xlu0 %v8434_v16, %s5592_s10 }
 0x754   : > { %5043 = vmatmul.msk.bf16.vlgmr.msrb.gmra.mxu3 %vm822_vm5, %v2382_v2  ;;  %v7308_v14 = vpop.permute.xlu2 %3022 }
 0x755   : > { %2809 = vmatpush.bf16.xpose.msrb.mxu3 %v2800_v52 }
 0x756   : > { %v7291_v24 = vpop.permute.xlu0 %2976 }
 0x759   : > { %3556 = vrot.lane.b32.xlu2 %v8436_v48, %s5592_s10 }
 0x75a   : > { %3577 = vrot.lane.b32.xlu0 %v8437_v47, %s5592_s10 }
 0x75c   : > { %5048 = vmatmul.msk.bf16.vlgmr.msrb.gmra.mxu0 %vm822_vm5, %v7148_v18 }
 0x75d   : > { %2924 = vmatpush.bf16.xpose.msrb.mxu0 %v2915_v31 }
 0x75e   : > { %v7301_v51 = vpop.permute.xlu0 %3047 }
 0x760   : > { %v7284_v6 = vpop.permute.xlu1 %2863 }
 0x761   : > { %3598 = vrot.lane.b32.xlu2 %v8438_v12, %s5592_s10 }
 0x766   : > { %v7310_v63 = vpop.permute.xlu0 %3024 }
 0x768   : > { %v2841_v36 = vpop.permute.xlu1 %2840 }
 0x76e   : > { %v3000_v12 = vpop.permute.xlu0 %2999 }
 0x770   : > { %v2816_v13 = vpop.permute.xlu1 %2815 }
 0x771   : > { %5052 = vmatmul.msk.bf16.vlgmr.msra.gmra.mxu0 %vm822_vm5, %v2816_v13 }
 0x776   : > { %v7293_v27 = vpop.f32.mrf.mxu1 }
 0x777   : > { %8439 = vst [vmem:[#allocation44_spill] sm:$0xff] %v7293_v27 }
 0x778   : > { %v7297_v59 = vpop.permute.xlu1 %2978 }
 0x77e   : > { %v2427_v40 = vpop.f32.mrf.mxu1  ;;  %v7303_v30 = vpop.f32.mrf.mxu0 }
 0x77f   : > { %8440 = vst [vmem:[#allocation36_spill] sm:$0xff] %v7303_v30  ;;  %v3284_v40 = vpop.permute.xlu2 %3283 }
 0x780   : > { %v7305_v39 = vpop.permute.xlu1 %2953  ;;  %v3289_v0 = vsel %vm1402_vm6, %v3284_v40, 0 }
 0x781   : > { %5056 = vmatmul.msk.bf16.vlgmr.msrb.gmra.mxu0 %vm822_vm5, %v2908_v46 }
 0x786   : > { %v2490_v2 = vpop.f32.mrf.mxu0 }
 0x788   : > { %v7312_v52 = vpop.permute.xlu1 %2930 }
 0x78a   : > { %v7314_v54 = vpop.f32.mrf.mxu3 }
 0x78b   : > { %8441 = vst [vmem:[#allocation48_spill] sm:$0xff] %v7314_v54 }
 0x78c   : > { %v7316_v31 = vpop.f32.mrf.mxu2  ;;  %v7318_v13 = vpop.f32.mrf.mxu1 }
 0x78d   : > { %8442 = vst [vmem:[#allocation52_spill] sm:$0xff] %v7316_v31 }
 0x78e   : > { %8443 = vst [vmem:[#allocation31_spill] sm:$0xff] %v7318_v13 }
 0x790   : > { %v3002_v48 = vpop.permute.xlu1 %3001 }
 0x791   : > { %v3007_v2 = vsel %vm822_vm5, %v3002_v48, 0 }
 0x792   : > { %v2469_v27 = vpop.f32.mrf.mxu3  ;;  %3016 = vmatpush.bf16.xpose.msra.mxu0 %v3007_v2 }
 0x794   : > { %v2448_v47 = vpop.f32.mrf.mxu2  ;;  %v2511_v58 = vpop.f32.mrf.mxu1 }
 0x795   : > { %v7326_v16 = vpop.f32.mrf.mxu0  ;;  %v2332_v49 = vpop.xlane.xlu2 %2331  ;;  %v2846_v58 = vsel %vm822_vm5, %v2841_v36, 0 }
 0x796   : > { %8444 = vst [vmem:[#allocation21_spill] sm:$0xff] %v7326_v16  ;;  %5440 = vrcp.f32 %v2332_v49 }
 0x798   : > { %v7328_v21 = vpop.permute.xlu1 %3068 }
 0x799   : > { %v2338_v18 = vpop.xlane.xlu0 %2337  ;;  %5060 = vmatmul.msk.bf16.vlgmr.msra.gmra.mxu0 %vm822_vm5, %v3000_v12 }
 0x79a   : > { %3298 = vmatpush.bf16.msrb.mxu0 %v3289_v0  ;;  %5442 = vrcp.f32 %v2338_v18 }
 0x79c   : > { %v5441_v46 = vpop.eup %5440 }
 0x79d   : > { %v2368_v48 = vmul.f32 %v5441_v46, %v7200_v38  ;;  %v2574_v30 = vpop.f32.mrf.mxu0  ;;  %v2335_v40 = vpop.xlane.xlu2 %2334  ;;  %v2892_v46 = vsel %vm822_vm5, %v7238_v37, 0 }
 0x79e   : > { %5444 = vrcp.f32 %v2335_v40 }
 0x79f   : > { %v2384_v27 = vpack.c.bf16 %v2368_v48, %v2368_v48 }
 0x7a0   : > { %v5443_v0 = vpop.eup %5442  ;;  %v3305_v47 = vpop.permute.xlu1 %3304 }
 0x7a1   : > { %v2370_v2 = vmul.f32 %v5443_v0, %v7212_v41  ;;  %5045 = vmatmul.msk.bf16.vlgmr.msra.gmra.mxu1 %vm822_vm5, %v2384_v27  ;;  %v2869_v27 = vsel %vm822_vm5, %v7284_v6, 0  ;;  %v2984_v6 = vsel %vm822_vm5, %v7297_v59, 0  ;;  %v3076_v59 = vsel %vm822_vm5, %v7288_v20, 0 }
 0x7a2   : > { %2855 = vmatpush.bf16.xpose.msra.mxu1 %v2846_v58  ;;  %v7335_v49 = vpop.f32.mrf.mxu2 }
 0x7a3   : > { %8445 = vst [vmem:[#allocation17_spill] sm:$0xff] %v7335_v49  ;;  %v2386_v12 = vpack.c.bf16 %v2370_v2, %v2370_v2  ;;  %v7337_v18 = vpop.f32.mrf.mxu3 }
 0x7a4   : > { %8446 = vst [vmem:[#allocation25_spill] sm:$0xff] %v7337_v18  ;;  %v5445_v13 = vpop.eup %5444  ;;  %v7341_v30 = vpop.f32.mrf.mxu1 }
 0x7a5   : > { %8447 = vst [vmem:[#allocation8_spill] sm:$0xff] %v7341_v30  ;;  %v2369_v36 = vmul.f32 %v5445_v13, %v7215_v8  ;;  %5047 = vmatmul.msk.bf16.vlgmr.msra.gmra.mxu3 %vm822_vm5, %v2386_v12  ;;  %v2938_v13 = vsel %vm822_vm5, %v7279_v5, 0  ;;  %v2961_v12 = vsel %vm822_vm5, %v7266_v56, 0  ;;  %v3347_v20 = vpop.permute.xlu2 %3346 }
 0x7a6   : > { %2901 = vmatpush.bf16.xpose.msra.mxu3 %v2892_v46  ;;  %v8449_v46 = vld [vmem:[#allocation50_spill] sm:$0xff] }
 0x7a7   : > { %v2385_v48 = vpack.c.bf16 %v2369_v36, %v2369_v36 }
 0x7a8   : > { %v3368_v40 = vpop.permute.xlu1 %3367 }
 0x7a9   : > { %v3373_v0 = vsel %vm1402_vm6, %v3368_v40, 0  ;;  %5046 = vmatmul.msk.bf16.vlgmr.msra.gmra.mxu2 %vm822_vm5, %v2385_v48 }
 0x7aa   : > { %2878 = vmatpush.bf16.xpose.msra.mxu2 %v2869_v27  ;;  %v2532_v58 = vpop.f32.mrf.mxu2  ;;  %3382 = vmatpush.bf16.msra.mxu0 %v3373_v0 }
 0x7ab   : > { %v2553_v37 = vpop.f32.mrf.mxu3 }
 0x7ac   : > { %v2595_v8 = vpop.f32.mrf.mxu1 }
 0x7b0   : > { %v3431_v58 = vpop.permute.xlu1 %3430 }
 0x7b1   : > { %5049 = vmatmul.msk.bf16.vlgmr.msrb.gmra.mxu1 %vm822_vm5, %v7168_v11  ;;  %v3030_v11 = vsel %vm822_vm5, %v7310_v63, 0  ;;  %v3310_v63 = vsel %vm1402_vm6, %v3305_v47, 0  ;;  %v3436_v37 = vsel %vm1402_vm6, %v3431_v58, 0 }
 0x7b2   : > { %2947 = vmatpush.bf16.xpose.msrb.mxu1 %v2938_v13  ;;  %v7357_v2 = vpop.f32.mrf.mxu2 }
 0x7b3   : > { %8448 = vst [vmem:[#allocation33_spill] sm:$0xff] %v7357_v2 }
 0x7b5   : > { %5051 = vmatmul.msk.bf16.vlgmr.msrb.gmra.mxu3 %vm822_vm5, %v7234_v32  ;;  %v3053_v32 = vsel %vm822_vm5, %v7301_v51, 0  ;;  %v3326_v51 = vpop.permute.xlu0 %3325 }
 0x7b6   : > { %2993 = vmatpush.bf16.xpose.msrb.mxu3 %v2984_v6  ;;  %v3331_v47 = vsel %vm1402_vm6, %v3326_v51, 0 }
 0x7b9   : > { %5050 = vmatmul.msk.bf16.vlgmr.msrb.gmra.mxu2 %vm822_vm5, %v8449_v46 }
 0x7ba   : > { %2970 = vmatpush.bf16.xpose.msrb.mxu2 %v2961_v12  ;;  %v2616_v5 = vpop.f32.mrf.mxu2 }
 0x7c1   : > { %5053 = vmatmul.msk.bf16.vlgmr.msra.gmra.mxu1 %vm822_vm5, %v7263_v62 }
 0x7c2   : > { %3039 = vmatpush.bf16.xpose.msra.mxu1 %v3030_v11 }
 0x7c5   : > { %5055 = vmatmul.msk.bf16.vlgmr.msra.gmra.mxu3 %vm822_vm5, %v7252_v34  ;;  %v3352_v34 = vsel %vm1402_vm6, %v3347_v20, 0 }
 0x7c6   : > { %3085 = vmatpush.bf16.xpose.msra.mxu3 %v3076_v59 }
 0x7c9   : > { %5054 = vmatmul.msk.bf16.vlgmr.msra.gmra.mxu2 %vm822_vm5, %v7248_v60  ;;  %v7379_v56 = vpop.f32.mrf.mxu0 }
 0x7ca   : > { %8450 = vst [vmem:[#allocation5_spill] sm:$0xff] %v7379_v56  ;;  %3062 = vmatpush.bf16.xpose.msra.mxu2 %v3053_v32 }
 0x7d1   : > { %5057 = vmatmul.msk.bf16.vlgmr.msrb.gmra.mxu1 %vm822_vm5, %v7312_v52  ;;  %v2658_v62 = vpop.f32.mrf.mxu0 }
 0x7d2   : > { %3319 = vmatpush.bf16.msrb.mxu1 %v3310_v63 }
 0x7d5   : > { %5059 = vmatmul.msk.bf16.vlgmr.msrb.gmra.mxu3 %vm822_vm5, %v7291_v24  ;;  %v3389_v24 = vpop.permute.xlu2 %3388 }
 0x7d6   : > { %3361 = vmatpush.bf16.msrb.mxu3 %v3352_v34  ;;  %v3394_v27 = vsel %vm1402_vm6, %v3389_v24, 0 }
 0x7d7   : > { %v7387_v36 = vpop.f32.mrf.mxu3 }
 0x7d8   : > { %8451 = vst [vmem:[#allocation13_spill] sm:$0xff] %v7387_v36 }
 0x7d9   : > { %5058 = vmatmul.msk.bf16.vlgmr.msrb.gmra.mxu2 %vm822_vm5, %v7305_v39  ;;  %v7394_v52 = vpop.f32.mrf.mxu0  ;;  %v3410_v39 = vpop.permute.xlu0 %3409 }
 0x7da   : > { %3340 = vmatpush.bf16.msrb.mxu2 %v3331_v47  ;;  %v3091_v48 = vsel %vm822_vm5, %v7394_v52, -inf  ;;  %v3415_v8 = vsel %vm1402_vm6, %v3410_v39, 0 }
 0x7db   : > { %3092 = vmax.xlane.f32.xlu1 %v3091_v48 }
 0x7df   : > { %v2637_v40 = vpop.f32.mrf.mxu3 }
 0x7e1   : > { %5061 = vmatmul.msk.bf16.vlgmr.msra.gmra.mxu1 %vm822_vm5, %v7308_v14  ;;  %v2744_v0 = vpop.f32.mrf.mxu0 }
 0x7e2   : > { %3403 = vmatpush.bf16.msra.mxu1 %v3394_v27 }
 0x7e5   : > { %5063 = vmatmul.msk.bf16.vlgmr.msra.gmra.mxu3 %vm822_vm5, %v7328_v21 }
 0x7e6   : > { %3445 = vmatpush.bf16.msra.mxu3 %v3436_v37 }
 0x7e9   : > { %5062 = vmatmul.msk.bf16.vlgmr.msra.gmra.mxu2 %vm822_vm5, %v7299_v23 }
 0x7ea   : > { %3424 = vmatpush.bf16.msra.mxu2 %v3415_v8 }
 0x7ee   : > { %v7407_v13 = vpop.f32.mrf.mxu0 }
 0x7ef   : > { %v3103_v47 = vsel %vm822_vm5, %v7407_v13, -inf }
 0x7f6   : > { %v2836_v6 = vpop.f32.mrf.mxu0 }
 0x7fe   : > { %v7409_v14 = vpop.f32.mrf.mxu0 }
 0x806   : > { %v2928_v12 = vpop.f32.mrf.mxu0 }
 0x807   : > { %v7441_v12 = vpop.permute.xlu1 %3472 }
 0x816   : > { %v7411_v46 = vpop.f32.mrf.mxu0 }
 0x81e   : > { %v7413_v5 = vpop.f32.mrf.mxu1  ;;  %v3020_v11 = vpop.f32.mrf.mxu0 }
 0x81f   : > { %8452 = vst [vmem:[#allocation6_spill] sm:$0xff] %v7413_v5 }
 0x826   : > { %v2679_v21 = vpop.f32.mrf.mxu1 }
 0x828   : > { %v7415_v59 = vpop.f32.mrf.mxu3 }
 0x829   : > { %8453 = vst [vmem:[#allocation28_spill] sm:$0xff] %v7415_v59 }
 0x82c   : > { %v7417_v32 = vpop.f32.mrf.mxu2 }
 0x82d   : > { %8454 = vst [vmem:[#allocation14_spill] sm:$0xff] %v7417_v32 }
 0x82e   : > { %v7421_v63 = vpop.f32.mrf.mxu1 }
 0x82f   : > { %v3094_v62 = vsel %vm822_vm5, %v7421_v63, -inf }
 0x830   : > { %3095 = vmax.xlane.f32.xlu0 %v3094_v62  ;;  %v2721_v20 = vpop.f32.mrf.mxu3 }
 0x834   : > { %v2700_v34 = vpop.f32.mrf.mxu2 }
 0x835   : > { %v3115_v34 = vsel %vm822_vm5, %v7409_v14, -inf }
 0x836   : > { %v2767_v51 = vpop.f32.mrf.mxu1 }
 0x838   : > { %3104 = vmax.xlane.f32.xlu0 %v3103_v47  ;;  %v7427_v48 = vpop.f32.mrf.mxu3  ;;  %v7453_v47 = vpop.permute.xlu1 %3535 }
 0x839   : > { %v3100_v24 = vsel %vm822_vm5, %v7427_v48, -inf }
 0x83a   : > { %3101 = vmax.xlane.f32.xlu1 %v3100_v24 }
 0x83c   : > { %v7431_v40 = vpop.f32.mrf.mxu2 }
 0x83d   : > { %v3097_v8 = vsel %vm822_vm5, %v7431_v40, -inf }
 0x83e   : > { %v7433_v27 = vpop.f32.mrf.mxu1 }
 0x83f   : > { %v3106_v0 = vsel %vm822_vm5, %v7433_v27, -inf }
 0x840   : > { %3107 = vmax.xlane.f32.xlu2 %v3106_v0  ;;  %v2813_v58 = vpop.f32.mrf.mxu3 }
 0x844   : > { %v2790_v37 = vpop.f32.mrf.mxu2 }
 0x846   : > { %v2859_v39 = vpop.f32.mrf.mxu1 }
 0x848   : > { %3098 = vmax.xlane.f32.xlu2 %v3097_v8  ;;  %v7439_v6 = vpop.f32.mrf.mxu3 }
 0x849   : > { %v3112_v11 = vsel %vm822_vm5, %v7439_v6, -inf }
 0x84a   : > { %3113 = vmax.xlane.f32.xlu0 %v3112_v11 }
 0x84c   : > { %v7445_v21 = vpop.f32.mrf.mxu2 }
 0x84d   : > { %v3109_v58 = vsel %vm822_vm5, %v7445_v21, -inf }
 0x84e   : > { %v7447_v62 = vpop.f32.mrf.mxu1  ;;  %v3093_v8 = vpop.xlane.xlu1 %3092 }
 0x84f   : > { %v3118_v20 = vsel %vm822_vm5, %v7447_v62, -inf }
 0x850   : > { %3119 = vmax.xlane.f32.xlu1 %v3118_v20  ;;  %3116 = vmax.xlane.f32.xlu2 %v3115_v34  ;;  %v2905_v51 = vpop.f32.mrf.mxu3  ;;  %v3139_v20 = vsub.f32 %v7394_v52, %v3093_v8 }
 0x854   : > { %v2882_v24 = vpop.f32.mrf.mxu2 }
 0x855   : > { %v3127_v24 = vsel %vm822_vm5, %v7411_v46, -inf }
 0x856   : > { %v2951_v0 = vpop.f32.mrf.mxu1 }
 0x858   : > { %3110 = vmax.xlane.f32.xlu1 %v3109_v58  ;;  %v7457_v37 = vpop.f32.mrf.mxu3  ;;  %v3155_v58 = vmul.f32 1.442695, %v3139_v20 }
 0x859   : > { %v3124_v39 = vsel %vm822_vm5, %v7457_v37, -inf }
 0x85a   : > { %3125 = vmax.xlane.f32.xlu2 %v3124_v39  ;;  %5446 = vpow2.f32 %v3155_v58  ;;  %v7486_v58 = vpop.permute.xlu2 %3493 }
 0x85c   : > { %v7461_v11 = vpop.f32.mrf.mxu2 }
 0x85d   : > { %v3121_v60 = vsel %vm822_vm5, %v7461_v11, -inf }
 0x85e   : > { %v7464_v34 = vpop.f32.mrf.mxu1 }
 0x85f   : > { %v3130_v51 = vsel %vm822_vm5, %v7464_v34, -inf }
 0x860   : > { %3131 = vmax.xlane.f32.xlu0 %v3130_v51  ;;  %3128 = vmax.xlane.f32.xlu1 %v3127_v24  ;;  %v2997_v0 = vpop.f32.mrf.mxu3  ;;  %v7476_v41 = vpop.eup %5446 }
 0x861   : > { %v3452_v24 = vpop.permute.xlu0 %3451 }
 0x864   : > { %v2974_v23 = vpop.f32.mrf.mxu2 }
 0x865   : > { %v3187_v23 = vsel %vm822_vm5, %v7476_v41, 0.0 }
 0x866   : > { %v3043_v39 = vpop.f32.mrf.mxu1 }
 0x868   : > { %3122 = vmax.xlane.f32.xlu0 %v3121_v60  ;;  %v7472_v52 = vpop.f32.mrf.mxu3 }
 0x869   : > { %v3136_v8 = vsel %vm822_vm5, %v7472_v52, -inf  ;;  %v7484_v0 = vpop.permute.xlu0 %3514 }
 0x86a   : > { %3137 = vmax.xlane.f32.xlu1 %v3136_v8  ;;  %v7490_v8 = vpop.permute.xlu2 %3556 }
 0x86c   : > { %v7478_v38 = vpop.f32.mrf.mxu2 }
 0x86d   : > { %v3133_v20 = vsel %vm822_vm5, %v7478_v38, -inf }
 0x86e   : > { %3134 = vmax.xlane.f32.xlu2 %v3133_v20 }
 0x870   : > { %3188 = vadd.xlane.f32.xlu0 %v3187_v23  ;;  %v3089_v51 = vpop.f32.mrf.mxu3 }
 0x871   : > { %v7488_v39 = vpop.permute.xlu0 %3577 }
 0x872   : > { %v7493_v20 = vpop.permute.xlu2 %3598 }
 0x874   : > { %v3066_v60 = vpop.f32.mrf.mxu2 }
 0x8a3   : > { %v3096_v32 = vpop.xlane.xlu0 %3095 }
 0x8a4   : > { %v3140_v59 = vsub.f32 %v7421_v63, %v3096_v32 }
 0x8a6   : > { %v3157_v5 = vmul.f32 1.442695, %v3140_v59 }
 0x8a8   : > { %5448 = vpow2.f32 %v3157_v5 }
 0x8ab   : > { %v3105_v56 = vpop.xlane.xlu0 %3104 }
 0x8ac   : > { %v3143_v23 = vsub.f32 %v7407_v13, %v3105_v56 }
 0x8ae   : > { %v7496_v51 = vpop.eup %5448  ;;  %v3163_v60 = vmul.f32 1.442695, %v3143_v23 }
 0x8af   : > { %v3190_v2 = vsel %vm822_vm5, %v7496_v51, 0.0 }
 0x8b0   : > { %5450 = vpow2.f32 %v3163_v60  ;;  %3191 = vadd.xlane.f32.xlu2 %v3190_v2  ;;  %v3102_v60 = vpop.xlane.xlu1 %3101 }
 0x8b1   : > { %v3142_v18 = vsub.f32 %v7427_v48, %v3102_v60 }
 0x8b3   : > { %v3108_v36 = vpop.xlane.xlu2 %3107 }
 0x8b4   : > { %v3144_v16 = vsub.f32 %v7433_v27, %v3108_v36  ;;  %v8455_v27 = vld [vmem:[#allocation15_spill] sm:$0xff] }
 0x8b6   : > { %v7501_v30 = vpop.eup %5450  ;;  %v3165_v59 = vmul.f32 1.442695, %v3144_v16 }
 0x8b7   : > { %v3199_v5 = vsel %vm822_vm5, %v7501_v30, 0.0 }
 0x8b8   : > { %5452 = vpow2.f32 %v3165_v59  ;;  %3200 = vadd.xlane.f32.xlu0 %v3199_v5 }
 0x8bb   : > { %v3099_v56 = vpop.xlane.xlu2 %3098 }
 0x8bc   : > { %v3141_v13 = vsub.f32 %v7431_v40, %v3099_v56  ;;  %v8456_v40 = vld [vmem:[#allocation3_spill] sm:$0xff] }
 0x8bd   : > { %v3114_v23 = vpop.xlane.xlu0 %3113 }
 0x8be   : > { %v7506_v32 = vpop.eup %5452  ;;  %v3159_v63 = vmul.f32 1.442695, %v3141_v13 }
 0x8bf   : > { %v3202_v2 = vsel %vm822_vm5, %v7506_v32, 0.0 }
 0x8c0   : > { %5454 = vpow2.f32 %v3159_v63  ;;  %3203 = vadd.xlane.f32.xlu1 %v3202_v2  ;;  %v8457_v63 = vld [vmem:[#allocation2_spill] sm:$0xff] }
 0x8c3   : > { %v3120_v5 = vpop.xlane.xlu1 %3119 }
 0x8c4   : > { %v3148_v13 = vsub.f32 %v7447_v62, %v3120_v5 }
 0x8c6   : > { %v7510_v36 = vpop.eup %5454  ;;  %v3173_v2 = vmul.f32 1.442695, %v3148_v13 }
 0x8c7   : > { %v3193_v16 = vsel %vm822_vm5, %v7510_v36, 0.0 }
 0x8c8   : > { %3667 = vrot.lane.b32.xlu2 %v8455_v27, %s5593_s11  ;;  %3194 = vadd.xlane.f32.xlu1 %v3193_v16  ;;  %v3161_v27 = vmul.f32 1.442695, %v3142_v18 }
 0x8cb   : > { %v3111_v31 = vpop.xlane.xlu1 %3110 }
 0x8cc   : > { %3644 = vrot.lane.b32.xlu0 %v8456_v40, %s5593_s11  ;;  %v3145_v16 = vsub.f32 %v7445_v21, %v3111_v31  ;;  %v3117_v40 = vpop.xlane.xlu2 %3116 }
 0x8cd   : > { %v3147_v62 = vsub.f32 %v7409_v14, %v3117_v40 }
 0x8ce   : > { %v3167_v28 = vmul.f32 1.442695, %v3145_v16 }
 0x8d3   : > { %v3132_v59 = vpop.xlane.xlu0 %3131  ;;  %v3129_v21 = vpop.xlane.xlu1 %3128 }
 0x8d4   : > { %v3152_v48 = vsub.f32 %v7464_v34, %v3132_v59 }
 0x8db   : > { %v3123_v56 = vpop.xlane.xlu0 %3122 }
 0x8dc   : > { %v3149_v16 = vsub.f32 %v7461_v11, %v3123_v56 }
 0x8de   : > { %v3175_v34 = vmul.f32 1.442695, %v3149_v16 }
 0x8e1   : > { %3621 = vrot.lane.b32.xlu1 %v8457_v63, %s5593_s11  ;;  %v3457_v63 = vsel %vm1402_vm6, %v3452_v24, 0 }
 0x8e3   : > { %v3189_v49 = vpop.xlane.xlu0 %3188 }
 0x8e4   : > { %5456 = vrcp.f32 %v3189_v49  ;;  %v3171_v49 = vmul.f32 1.442695, %v3147_v62 }
 0x8e5   : > { %5458 = vpow2.f32 %v3173_v2 }
 0x8e6   : > { %5460 = vpow2.f32 %v3161_v27 }
 0x8e7   : > { %5462 = vpow2.f32 %v3167_v28 }
 0x8e8   : > { %5464 = vpow2.f32 %v3171_v49  ;;  %v3126_v49 = vpop.xlane.xlu2 %3125 }
 0x8ea   : > { %v5457_v54 = vpop.eup %5456 }
 0x8eb   : > { %v3251_v17 = vmul.f32 %v5457_v54, %v7476_v41  ;;  %v7525_v5 = vpop.eup %5458  ;;  %v3146_v54 = vsub.f32 %v7439_v6, %v3114_v23  ;;  %v3151_v6 = vsub.f32 %v7411_v46, %v3129_v21  ;;  %v3181_v23 = vmul.f32 1.442695, %v3152_v48  ;;  %v8461_v48 = vld [vmem:[#allocation24_spill] sm:$0xff]  ;;  %v3138_v21 = vpop.xlane.xlu1 %3137 }
 0x8ec   : > { %v3214_v31 = vsel %vm822_vm5, %v7525_v5, 0.0  ;;  %v7531_v18 = vpop.eup %5460 }
 0x8ed   : > { %v3267_v13 = vpack.c.bf16 %v3251_v17, %v3251_v17  ;;  %v7534_v41 = vpop.eup %5462  ;;  %v3196_v17 = vsel %vm822_vm5, %v7531_v18, 0.0  ;;  %v3169_v28 = vmul.f32 1.442695, %v3146_v54  ;;  %v3179_v2 = vmul.f32 1.442695, %v3151_v6 }
 0x8ee   : > { %v3205_v14 = vsel %vm822_vm5, %v7534_v41, 0.0  ;;  %v7541_v24 = vpop.eup %5464 }
 0x8ef   : > { %5064 = vmatmul.msk.bf16.vlgmr.msrb.gmra.mxu0 %vm822_vm5, %v3267_v13  ;;  %5466 = vpow2.f32 %v3169_v28  ;;  %v3211_v60 = vsel %vm822_vm5, %v7541_v24, 0.0  ;;  %v8458_v13 = vld [vmem:[#allocation30_spill] sm:$0xff] }
 0x8f0   : > { %3466 = vmatpush.bf16.msrb.mxu0 %v3457_v63  ;;  %5468 = vpow2.f32 %v3181_v23  ;;  %v3135_v54 = vpop.xlane.xlu2 %3134 }
 0x8f1   : > { %3215 = vadd.xlane.f32.xlu2 %v3214_v31  ;;  %5470 = vpow2.f32 %v3179_v2  ;;  %v8459_v31 = vld [vmem:[#allocation4_spill] sm:$0xff] }
 0x8f2   : > { %5472 = vpow2.f32 %v3175_v34 }
 0x8f5   : > { %v7547_v27 = vpop.eup %5466 }
 0x8f6   : > { %3197 = vadd.xlane.f32.xlu0 %v3196_v17  ;;  %v3208_v59 = vsel %vm822_vm5, %v7547_v27, 0.0  ;;  %v7551_v40 = vpop.eup %5468  ;;  %v8460_v17 = vld [vmem:[#allocation23_spill] sm:$0xff] }
 0x8f7   : > { %v7553_v46 = vpop.eup %5470  ;;  %v3226_v62 = vsel %vm822_vm5, %v7551_v40, 0.0 }
 0x8f8   : > { %v3223_v11 = vsel %vm822_vm5, %v7553_v46, 0.0  ;;  %v7559_v56 = vpop.eup %5472 }
 0x8f9   : > { %3206 = vadd.xlane.f32.xlu2 %v3205_v14  ;;  %v3217_v63 = vsel %vm822_vm5, %v7559_v56, 0.0 }
 0x8fe   : > { %3212 = vadd.xlane.f32.xlu0 %v3211_v60  ;;  %v8462_v60 = vld [vmem:[#allocation22_spill] sm:$0xff] }
 0x906   : > { %3209 = vadd.xlane.f32.xlu0 %v3208_v59 }
 0x90b   : > { %3227 = vadd.xlane.f32.xlu1 %v3226_v62 }
 0x90e   : > { %3224 = vadd.xlane.f32.xlu0 %v3223_v11  ;;  %v3541_v11 = vsel %vm1402_vm6, %v7453_v47, 0  ;;  %v3153_v47 = vsub.f32 %v7478_v38, %v3135_v54 }
 0x911   : > { %3642 = vrot.lane.b32.xlu2 %v8458_v13, %s5594_s12 }
 0x913   : > { %3218 = vadd.xlane.f32.xlu1 %v3217_v63 }
 0x919   : > { %3713 = vrot.lane.b32.xlu2 %v8459_v31, %s5593_s11 }
 0x921   : > { %3782 = vrot.lane.b32.xlu2 %v8423_v7, %s5593_s11  ;;  %v3478_v7 = vsel %vm1402_vm6, %v7441_v12, 0  ;;  %v3150_v12 = vsub.f32 %v7457_v37, %v3126_v49 }
 0x922   : > { %3619 = vrot.lane.b32.xlu0 %v8460_v17, %s5594_s12  ;;  %v3562_v17 = vsel %vm1402_vm6, %v7490_v8, 0  ;;  %v3154_v8 = vsub.f32 %v7472_v52, %v3138_v21 }
 0x923   : > { %v3192_v28 = vpop.xlane.xlu2 %3191  ;;  %v3177_v31 = vmul.f32 1.442695, %v3150_v12  ;;  %v8465_v12 = vld [vmem:[#allocation7_spill] sm:$0xff] }
 0x924   : > { %5474 = vrcp.f32 %v3192_v28 }
 0x92a   : > { %v5475_v14 = vpop.eup %5474  ;;  %3688 = vrot.lane.b32.xlu0 %v8461_v48, %s5594_s12 }
 0x92b   : > { %v3252_v6 = vmul.f32 %v5475_v14, %v7496_v51  ;;  %v3201_v23 = vpop.xlane.xlu0 %3200  ;;  %v8463_v51 = vld [vmem:[#allocation29_spill] sm:$0xff]  ;;  %v7618_v48 = vpop.permute.xlu2 %3667 }
 0x92c   : > { %5476 = vrcp.f32 %v3201_v23  ;;  %3690 = vrot.lane.b32.xlu1 %v8462_v60, %s5593_s11 }
 0x92d   : > { %v3268_v2 = vpack.c.bf16 %v3252_v6, %v3252_v6 }
 0x92f   : > { %5065 = vmatmul.msk.bf16.vlgmr.msrb.gmra.mxu1 %vm822_vm5, %v3268_v2 }
 0x930   : > { %3487 = vmatpush.bf16.msrb.mxu1 %v3478_v7 }
 0x932   : > { %v5477_v16 = vpop.eup %5476  ;;  %3759 = vrot.lane.b32.xlu0 %v8429_v33, %s5593_s11 }
 0x933   : > { %v3255_v34 = vmul.f32 %v5477_v16, %v7501_v30  ;;  %v3204_v59 = vpop.xlane.xlu1 %3203 }
 0x934   : > { %5478 = vrcp.f32 %v3204_v59  ;;  %3665 = vrot.lane.b32.xlu1 %v8463_v51, %s5594_s12 }
 0x935   : > { %v3271_v62 = vpack.c.bf16 %v3255_v34, %v3255_v34 }
 0x937   : > { %5068 = vmatmul.msk.bf16.vlgmr.msra.gmra.mxu0 %vm822_vm5, %v3271_v62 }
 0x938   : > { %3550 = vmatpush.bf16.msra.mxu0 %v3541_v11 }
 0x93a   : > { %v5479_v13 = vpop.eup %5478 }
 0x93b   : > { %v3256_v63 = vmul.f32 %v5479_v13, %v7506_v32  ;;  %v3195_v33 = vpop.xlane.xlu1 %3194  ;;  %v3183_v32 = vmul.f32 1.442695, %v3153_v47  ;;  %v3604_v47 = vsel %vm1402_vm6, %v7493_v20, 0 }
 0x93c   : > { %5480 = vrcp.f32 %v3195_v33  ;;  %3736 = vrot.lane.b32.xlu1 %v8430_v29, %s5593_s11  ;;  %v3499_v29 = vsel %vm1402_vm6, %v7486_v58, 0 }
 0x93d   : > { %v3272_v30 = vpack.c.bf16 %v3256_v63, %v3256_v63  ;;  %5482 = vpow2.f32 %v3177_v31  ;;  %v8466_v31 = vld [vmem:[#allocation54_spill] sm:$0xff] }
 0x93e   : > { %5484 = vpow2.f32 %v3183_v32 }
 0x93f   : > { %5069 = vmatmul.msk.bf16.vlgmr.msra.gmra.mxu1 %vm822_vm5, %v3272_v30 }
 0x940   : > { %3571 = vmatpush.bf16.msra.mxu1 %v3562_v17 }
 0x942   : > { %v5481_v37 = vpop.eup %5480 }
 0x943   : > { %v3253_v49 = vmul.f32 %v5481_v37, %v7510_v36  ;;  %v7598_v14 = vpop.eup %5482  ;;  %v3185_v36 = vmul.f32 1.442695, %v3154_v8  ;;  %v3673_v8 = vsel %vm822_vm5, %v7618_v48, 0 }
 0x944   : > { %3711 = vrot.lane.b32.xlu1 %v8431_v61, %s5594_s12  ;;  %v3220_v38 = vsel %vm822_vm5, %v7598_v14, 0.0  ;;  %v7608_v61 = vpop.eup %5484 }
 0x945   : > { %v3269_v28 = vpack.c.bf16 %v3253_v49, %v3253_v49  ;;  %v3229_v54 = vsel %vm822_vm5, %v7608_v61, 0.0  ;;  %5486 = vpow2.f32 %v3185_v36  ;;  %v8469_v36 = vld [vmem:[#allocation57_spill] sm:$0xff] }
 0x947   : > { %5066 = vmatmul.msk.bf16.vlgmr.msrb.gmra.mxu2 %vm822_vm5, %v3269_v28 }
 0x948   : > { %3508 = vmatpush.bf16.msrb.mxu2 %v3499_v29 }
 0x94a   : > { %3221 = vadd.xlane.f32.xlu2 %v3220_v38 }
 0x94b   : > { %v7614_v58 = vpop.eup %5486 }
 0x94c   : > { %3780 = vrot.lane.b32.xlu1 %v8422_v44, %s5594_s12  ;;  %v3232_v52 = vsel %vm822_vm5, %v7614_v58, 0.0  ;;  %v3645_v44 = vpop.permute.xlu0 %3644 }
 0x952   : > { %3230 = vadd.xlane.f32.xlu2 %v3229_v54 }
 0x954   : > { %3851 = vrot.lane.b32.xlu1 %v8424_v42, %s5593_s11 }
 0x95c   : > { %3826 = vrot.lane.b32.xlu1 %v6719_v3, %s5594_s12  ;;  %3233 = vadd.xlane.f32.xlu0 %v3232_v52 }
 0x964   : > { %3897 = vrot.lane.b32.xlu1 %v6101_v50, %s5593_s11  ;;  %v3216_v21 = vpop.xlane.xlu2 %3215  ;;  %v3650_v50 = vsel %vm822_vm5, %v3645_v44, 0 }
 0x965   : > { %5488 = vrcp.f32 %v3216_v21 }
 0x969   : > { %v3198_v6 = vpop.xlane.xlu0 %3197 }
 0x96a   : > { %5490 = vrcp.f32 %v3198_v6  ;;  %3757 = vrot.lane.b32.xlu2 %v8425_v10, %s5594_s12 }
 0x96b   : > { %v5489_v42 = vpop.eup %5488 }
 0x96c   : > { %v3260_v23 = vmul.f32 %v5489_v42, %v7525_v5  ;;  %v7627_v60 = vpop.f32.mrf.mxu0  ;;  %3966 = vrot.lane.b32.xlu1 %v6260_v35, %s5593_s11  ;;  %v3207_v3 = vpop.xlane.xlu2 %3206 }
 0x96d   : > { %5492 = vrcp.f32 %v3207_v3 }
 0x96e   : > { %v3276_v2 = vpack.c.bf16 %v3260_v23, %v3260_v23 }
 0x970   : > { %v5491_v7 = vpop.eup %5490  ;;  %3734 = vrot.lane.b32.xlu0 %v8427_v9, %s5594_s12  ;;  %5073 = vmatmul.msk.bf16.vlgmr.msrb.gmra.mxu1 %vm822_vm5, %v3276_v2  ;;  %v3520_v9 = vsel %vm1402_vm6, %v7484_v0, 0  ;;  %v8464_v0 = vld [vmem:[#allocation55_spill] sm:$0xff] }
 0x971   : > { %v3254_v10 = vmul.f32 %v5491_v7, %v7531_v18  ;;  %3659 = vmatpush.bf16.xpose.msrb.mxu1 %v3650_v50  ;;  %v3213_v5 = vpop.xlane.xlu0 %3212  ;;  %v3622_v18 = vpop.permute.xlu1 %3621 }
 0x972   : > { %5494 = vrcp.f32 %v3213_v5  ;;  %3828 = vrot.lane.b32.xlu2 %v8426_v55, %s5593_s11  ;;  %v3583_v55 = vsel %vm1402_vm6, %v7488_v39, 0  ;;  %v3627_v39 = vsel %vm822_vm5, %v3622_v18, 0 }
 0x973   : > { %v5493_v35 = vpop.eup %5492  ;;  %v3270_v16 = vpack.c.bf16 %v3254_v10, %v3254_v10 }
 0x974   : > { %v3257_v34 = vmul.f32 %v5493_v35, %v7534_v41  ;;  %v3302_v59 = vpop.f32.mrf.mxu0  ;;  %3941 = vrot.lane.b32.xlu1 %v6695_v43, %s5594_s12 }
 0x975   : > { %5067 = vmatmul.msk.bf16.vlgmr.msrb.gmra.mxu3 %vm822_vm5, %v3270_v16 }
 0x976   : > { %v3273_v51 = vpack.c.bf16 %v3257_v34, %v3257_v34  ;;  %3529 = vmatpush.bf16.msrb.mxu3 %v3520_v9 }
 0x978   : > { %v5495_v62 = vpop.eup %5494  ;;  %3805 = vrot.lane.b32.xlu0 %v8428_v25, %s5593_s11  ;;  %5070 = vmatmul.msk.bf16.vlgmr.msra.gmra.mxu2 %vm822_vm5, %v3273_v51 }
 0x979   : > { %v3259_v41 = vmul.f32 %v5495_v62, %v7541_v24  ;;  %3592 = vmatpush.bf16.msra.mxu2 %v3583_v55  ;;  %v3210_v43 = vpop.xlane.xlu0 %3209  ;;  %v3643_v24 = vpop.permute.xlu2 %3642 }
 0x97a   : > { %5496 = vrcp.f32 %v3210_v43  ;;  %3803 = vrot.lane.b32.xlu2 %v8464_v0, %s5594_s12 }
 0x97b   : > { %v3275_v11 = vpack.c.bf16 %v3259_v41, %v3259_v41 }
 0x97c   : > { %4179 = vrot.lane.b32.xlu1 %v8465_v12, %s5595_s13 }
 0x97d   : > { %5072 = vmatmul.msk.bf16.vlgmr.msrb.gmra.mxu0 %vm822_vm5, %v3275_v11 }
 0x97e   : > { %3636 = vmatpush.bf16.xpose.msrb.mxu0 %v3627_v39  ;;  %v3228_v25 = vpop.xlane.xlu1 %3227 }
 0x97f   : > { %5498 = vrcp.f32 %v3228_v25 }
 0x980   : > { %v5497_v13 = vpop.eup %5496  ;;  %3874 = vrot.lane.b32.xlu0 %v8432_v26, %s5593_s11 }
 0x981   : > { %v3258_v63 = vmul.f32 %v5497_v13, %v7547_v27  ;;  %v3225_v33 = vpop.xlane.xlu0 %3224  ;;  %v3714_v28 = vpop.permute.xlu2 %3713 }
 0x982   : > { %5500 = vrcp.f32 %v3225_v33  ;;  %3872 = vrot.lane.b32.xlu2 %v8466_v31, %s5594_s12  ;;  %v3719_v29 = vsel %vm822_vm5, %v3714_v28, 0 }
 0x983   : > { %v3274_v30 = vpack.c.bf16 %v3258_v63, %v3258_v63 }
 0x984   : > { %4221 = vrot.lane.b32.xlu1 %v6227_v45, %s5595_s13  ;;  %v8467_v45 = vld [vmem:[#allocation19_spill] sm:$0xff] }
 0x985   : > { %v5499_v17 = vpop.eup %5498  ;;  %5071 = vmatmul.msk.bf16.vlgmr.msra.gmra.mxu3 %vm822_vm5, %v3274_v30 }
 0x986   : > { %v3264_v37 = vmul.f32 %v5499_v17, %v7551_v40  ;;  %3613 = vmatpush.bf16.msra.mxu3 %v3604_v47  ;;  %v3219_v26 = vpop.xlane.xlu1 %3218 }
 0x987   : > { %5502 = vrcp.f32 %v3219_v26 }
 0x988   : > { %v5501_v27 = vpop.eup %5500  ;;  %v3280_v49 = vpack.c.bf16 %v3264_v37, %v3264_v37  ;;  %3849 = vrot.lane.b32.xlu0 %v6638_v1, %s5594_s12 }
 0x989   : > { %v3263_v32 = vmul.f32 %v5501_v27, %v7553_v46  ;;  %v8468_v46 = vld [vmem:[#allocation11_spill] sm:$0xff]  ;;  %v3783_v42 = vpop.permute.xlu2 %3782 }
 0x98a   : > { %3943 = vrot.lane.b32.xlu2 %v8467_v45, %s5593_s11  ;;  %5077 = vmatmul.msk.bf16.vlgmr.msra.gmra.mxu1 %vm822_vm5, %v3280_v49  ;;  %v3788_v33 = vsel %vm822_vm5, %v3783_v42, 0 }
 0x98b   : > { %v3279_v20 = vpack.c.bf16 %v3263_v32, %v3263_v32 }
 0x98c   : > { %4263 = vrot.lane.b32.xlu1 %v6147_v19, %s5595_s13  ;;  %v8470_v19 = vld [vmem:[#allocation56_spill] sm:$0xff] }
 0x98d   : > { %v5503_v40 = vpop.eup %5502  ;;  %5076 = vmatmul.msk.bf16.vlgmr.msra.gmra.mxu0 %vm822_vm5, %v3279_v20 }
 0x98e   : > { %v3261_v38 = vmul.f32 %v5503_v40, %v7559_v56  ;;  %3728 = vmatpush.bf16.xpose.msra.mxu0 %v3719_v29 }
 0x990   : > { %v3277_v1 = vpack.c.bf16 %v3261_v38, %v3261_v38  ;;  %3920 = vrot.lane.b32.xlu0 %v8468_v46, %s5593_s11 }
 0x992   : > { %3918 = vrot.lane.b32.xlu2 %v8469_v36, %s5594_s12  ;;  %5074 = vmatmul.msk.bf16.vlgmr.msrb.gmra.mxu2 %vm822_vm5, %v3277_v1 }
 0x993   : > { %3682 = vmatpush.bf16.xpose.msrb.mxu2 %v3673_v8 }
 0x994   : > { %v3620_v56 = vpop.permute.xlu0 %3619 }
 0x998   : > { %3895 = vrot.lane.b32.xlu0 %v8470_v19, %s5594_s12 }
 0x99a   : > { %4242 = vrot.lane.b32.xlu2 %v6294_v4, %s5595_s13  ;;  %5081 = vmatmul.msk.bf16.vlgmr.msrb.gmra.mxu1 %vm822_vm5, %v3643_v24 }
 0x99c   : > { %v3689_v3 = vpop.permute.xlu0 %3688 }
 0x99d   : > { %5080 = vmatmul.msk.bf16.vlgmr.msrb.gmra.mxu0 %vm822_vm5, %v3620_v56 }
 0x99e   : > { %v3691_v54 = vpop.permute.xlu1 %3690 }
 0x99f   : > { %v3696_v18 = vsel %vm822_vm5, %v3691_v54, 0 }
 0x9a0   : > { %3964 = vrot.lane.b32.xlu0 %v6738_v15, %s5594_s12  ;;  %v8471_v15 = vld [vmem:[#allocation12_spill] sm:$0xff] }
 0x9a2   : > { %4305 = vrot.lane.b32.xlu2 %v6193_v57, %s5595_s13 }
 0x9a4   : > { %v3760_v59 = vpop.permute.xlu0 %3759 }
 0x9a6   : > { %v3666_v52 = vpop.permute.xlu1 %3665 }
 0x9a8   : > { %4200 = vrot.lane.b32.xlu0 %v6149_v22, %s5595_s13 }
 0x9aa   : > { %4326 = vrot.lane.b32.xlu2 %v6309_v53, %s5595_s13 }
 0x9ac   : > { %v7699_v4 = vpop.f32.mrf.mxu1 }
 0x9ad   : > { %v5169_v48 = vpack.i.bf16 %v7699_v4, %v7627_v60  ;;  %v8483_v60 = vld [vmem:[#allocation48_spill] sm:$0xff] }
 0x9ae   : > { %v3737_v44 = vpop.permute.xlu1 %3736  ;;  %v8484_v4 = vld [vmem:[#allocation52_spill] sm:$0xff] }
 0x9af   : > { %v3742_v21 = vsel %vm822_vm5, %v3737_v44, 0 }
 0x9b0   : > { %4284 = vrot.lane.b32.xlu0 %v8471_v15, %s5595_s13  ;;  %3751 = vmatpush.bf16.xpose.msra.mxu1 %v3742_v21 }
 0x9b4   : > { %v3323_v57 = vpop.f32.mrf.mxu1  ;;  %v7706_v6 = vpop.f32.mrf.mxu0 }
 0x9b6   : > { %v3712_v22 = vpop.permute.xlu1 %3711 }
 0x9b7   : > { %5084 = vmatmul.msk.bf16.vlgmr.msra.gmra.mxu0 %vm822_vm5, %v3712_v22 }
 0x9bc   : > { %v3386_v53 = vpop.f32.mrf.mxu0  ;;  %v7709_v23 = vpop.f32.mrf.mxu1 }
 0x9bd   : > { %v5199_v2 = vpack.i.bf16 %v7709_v23, %v7706_v6  ;;  %v3222_v7 = vpop.xlane.xlu2 %3221 }
 0x9be   : > { %5504 = vrcp.f32 %v3222_v7  ;;  %v7713_v50 = vpop.permute.xlu1 %3780 }
 0x9c4   : > { %v5505_v10 = vpop.eup %5504  ;;  %v3407_v5 = vpop.f32.mrf.mxu1 }
 0x9c5   : > { %v3262_v35 = vmul.f32 %v5505_v10, %v7598_v14  ;;  %v3231_v16 = vpop.xlane.xlu2 %3230  ;;  %v3765_v14 = vsel %vm822_vm5, %v3760_v59, 0 }
 0x9c6   : > { %5506 = vrcp.f32 %v3231_v16  ;;  %v3852_v34 = vpop.permute.xlu1 %3851 }
 0x9c7   : > { %v3278_v9 = vpack.c.bf16 %v3262_v35, %v3262_v35  ;;  %v3857_v17 = vsel %vm822_vm5, %v3852_v34, 0 }
 0x9c9   : > { %5075 = vmatmul.msk.bf16.vlgmr.msrb.gmra.mxu3 %vm822_vm5, %v3278_v9 }
 0x9ca   : > { %3705 = vmatpush.bf16.xpose.msrb.mxu3 %v3696_v18  ;;  %v7718_v51 = vpop.f32.mrf.mxu2 }
 0x9cc   : > { %v5507_v62 = vpop.eup %5506 }
 0x9cd   : > { %v3265_v55 = vmul.f32 %v5507_v62, %v7608_v61  ;;  %v3758_v41 = vpop.permute.xlu2 %3757 }
 0x9ce   : > { %v3827_v43 = vpop.permute.xlu1 %3826 }
 0x9cf   : > { %v3281_v0 = vpack.c.bf16 %v3265_v55, %v3265_v55  ;;  %v3234_v11 = vpop.xlane.xlu0 %3233 }
 0x9d0   : > { %5508 = vrcp.f32 %v3234_v11 }
 0x9d1   : > { %5078 = vmatmul.msk.bf16.vlgmr.msra.gmra.mxu2 %vm822_vm5, %v3281_v0 }
 0x9d2   : > { %3774 = vmatpush.bf16.xpose.msra.mxu2 %v3765_v14  ;;  %v3344_v12 = vpop.f32.mrf.mxu2 }
 0x9d5   : > { %v3829_v39 = vpop.permute.xlu2 %3828 }
 0x9d6   : > { %v5509_v25 = vpop.eup %5508  ;;  %v3834_v13 = vsel %vm822_vm5, %v3829_v39, 0  ;;  %v3898_v24 = vpop.permute.xlu1 %3897 }
 0x9d7   : > { %v3266_v63 = vmul.f32 %v5509_v25, %v7614_v58  ;;  %3843 = vmatpush.bf16.xpose.msrb.mxu1 %v3834_v13  ;;  %v3903_v49 = vsel %vm822_vm5, %v3898_v24, 0 }
 0x9d9   : > { %v3282_v61 = vpack.c.bf16 %v3266_v63, %v3266_v63 }
 0x9db   : > { %5079 = vmatmul.msk.bf16.vlgmr.msra.gmra.mxu3 %vm822_vm5, %v3282_v61 }
 0x9dc   : > { %3797 = vmatpush.bf16.xpose.msra.mxu3 %v3788_v33 }
 0x9dd   : > { %v3804_v31 = vpop.permute.xlu2 %3803 }
 0x9de   : > { %v3967_v30 = vpop.permute.xlu1 %3966 }
 0x9df   : > { %v3972_v54 = vsel %vm822_vm5, %v3967_v30, 0 }
 0x9e1   : > { %5082 = vmatmul.msk.bf16.vlgmr.msrb.gmra.mxu2 %vm822_vm5, %v3666_v52 }
 0x9e2   : > { %3866 = vmatpush.bf16.xpose.msrb.mxu2 %v3857_v17  ;;  %v3735_v47 = vpop.permute.xlu0 %3734 }
 0x9e3   : > { %5085 = vmatmul.msk.bf16.vlgmr.msra.gmra.mxu1 %vm822_vm5, %v3735_v47 }
 0x9e5   : > { %v3873_v37 = vpop.permute.xlu2 %3872 }
 0x9e6   : > { %v3942_v26 = vpop.permute.xlu1 %3941 }
 0x9ea   : > { %v3806_v58 = vpop.permute.xlu0 %3805 }
 0x9eb   : > { %v3811_v27 = vsel %vm822_vm5, %v3806_v58, 0  ;;  %5083 = vmatmul.msk.bf16.vlgmr.msrb.gmra.mxu3 %vm822_vm5, %v3689_v3 }
 0x9ec   : > { %3820 = vmatpush.bf16.xpose.msrb.mxu0 %v3811_v27 }
 0x9ed   : > { %v7733_v32 = vpop.f32.mrf.mxu1  ;;  %v3944_v28 = vpop.permute.xlu2 %3943 }
 0x9ee   : > { %v4180_v45 = vpop.permute.xlu1 %4179  ;;  %v3949_v20 = vsel %vm822_vm5, %v3944_v28, 0 }
 0x9ef   : > { %v4185_v29 = vsel %vm1402_vm6, %v4180_v45, 0 }
 0x9f1   : > { %5086 = vmatmul.msk.bf16.vlgmr.msra.gmra.mxu2 %vm822_vm5, %v3758_v41 }
 0x9f2   : > { %3958 = vmatpush.bf16.xpose.msra.mxu2 %v3949_v20  ;;  %v3875_v40 = vpop.permute.xlu0 %3874 }
 0x9f3   : > { %v3880_v38 = vsel %vm822_vm5, %v3875_v40, 0  ;;  %5088 = vmatmul.msk.bf16.vlgmr.msrb.gmra.mxu0 %vm822_vm5, %v3804_v31  ;;  %5089 = vmatmul.msk.bf16.vlgmr.msrb.gmra.mxu1 %vm822_vm5, %v3827_v43 }
 0x9f4   : > { %3912 = vmatpush.bf16.xpose.msra.mxu0 %v3903_v49  ;;  %3889 = vmatpush.bf16.xpose.msrb.mxu3 %v3880_v38 }
 0x9f5   : > { %v3491_v1 = vpop.f32.mrf.mxu1  ;;  %v3919_v8 = vpop.permute.xlu2 %3918 }
 0x9f6   : > { %v4222_v21 = vpop.permute.xlu1 %4221 }
 0x9f7   : > { %v4227_v57 = vsel %vm1402_vm6, %v4222_v21, 0 }
 0x9f8   : > { %v7741_v46 = vpop.f32.mrf.mxu3 }
 0x9f9   : > { %v5184_v36 = vpack.i.bf16 %v7741_v46, %v7718_v51 }
 0x9fa   : > { %v7745_v19 = vpop.f32.mrf.mxu0  ;;  %v3850_v56 = vpop.permute.xlu0 %3849 }
 0x9fb   : > { %v5229_v52 = vpack.i.bf16 %v7733_v32, %v7745_v19  ;;  %v7750_v44 = vpop.f32.mrf.mxu2  ;;  %5087 = vmatmul.msk.bf16.vlgmr.msra.gmra.mxu3 %vm822_vm5, %v7713_v50  ;;  %v5132_v32 = vld [vmem:[%s8224_s3] sm:$0xff] }
 0x9fc   : > { %4194 = vmatpush.bf16.msrb.mxu0 %v4185_v29  ;;  %3981 = vmatpush.bf16.xpose.msra.mxu3 %v3972_v54 }
 0x9fd   : > { %v4243_v7 = vpop.permute.xlu2 %4242 }
 0x9fe   : > { %v4264_v50 = vpop.permute.xlu1 %4263  ;;  %v4248_v59 = vsel %vm1402_vm6, %v4243_v7, 0 }
 0x9ff   : > { %v4269_v18 = vsel %vm1402_vm6, %v4264_v50, 0 }
 0xa00   : > { %v3365_v15 = vpop.f32.mrf.mxu3 }
 0xa01   : > { %5090 = vmatmul.msk.bf16.vlgmr.msrb.gmra.mxu2 %vm822_vm5, %v3850_v56 }
 0xa02   : > { %4236 = vmatpush.bf16.msrb.mxu2 %v4227_v57  ;;  %v3470_v42 = vpop.f32.mrf.mxu0  ;;  %v3921_v22 = vpop.permute.xlu0 %3920 }
 0xa03   : > { %v3926_v53 = vsel %vm822_vm5, %v3921_v22, 0  ;;  %v3428_v3 = vpop.f32.mrf.mxu2 }
 0xa04   : > { %3935 = vmatpush.bf16.xpose.msra.mxu1 %v3926_v53 }
 0xa05   : > { %v4306_v62 = vpop.permute.xlu2 %4305 }
 0xa06   : > { %v4311_v43 = vsel %vm1402_vm6, %v4306_v62, 0 }
 0xa07   : > { %v7757_v10 = vpop.f32.mrf.mxu1 }
 0xa08   : > { %v7759_v5 = vpop.f32.mrf.mxu3 }
 0xa09   : > { %v5214_v35 = vpack.i.bf16 %v7759_v5, %v7750_v44 }
 0xa0a   : > { %v7763_v16 = vpop.f32.mrf.mxu0  ;;  %v3896_v34 = vpop.permute.xlu0 %3895 }
 0xa0b   : > { %v5259_v9 = vpack.i.bf16 %v7757_v10, %v7763_v16  ;;  %5091 = vmatmul.msk.bf16.vlgmr.msrb.gmra.mxu3 %vm822_vm5, %v3873_v37  ;;  %5092 = vmatmul.msk.bf16.vlgmr.msra.gmra.mxu0 %vm822_vm5, %v3896_v34  ;;  %v8504_v16 = vld [vmem:[#allocation45_spill] sm:$0xff] }
 0xa0c   : > { %5093 = vmatmul.msk.bf16.vlgmr.msra.gmra.mxu1 %vm822_vm5, %v3919_v8  ;;  %4257 = vmatpush.bf16.msrb.mxu3 %v4248_v59 }
 0xa0d   : > { %4278 = vmatpush.bf16.msra.mxu0 %v4269_v18  ;;  %v4327_v39 = vpop.permute.xlu2 %4326 }
 0xa0e   : > { %v4332_v63 = vsel %vm1402_vm6, %v4327_v39, 0  ;;  %v8472_v39 = vld [vmem:[#allocation9_spill] sm:$0xff] }
 0xa0f   : > { %v3575_v55 = vpop.f32.mrf.mxu1 }
 0xa10   : > { %v3449_v41 = vpop.f32.mrf.mxu3 }
 0xa11   : > { %5094 = vmatmul.msk.bf16.vlgmr.msra.gmra.mxu2 %vm822_vm5, %v3942_v26 }
 0xa12   : > { %4320 = vmatpush.bf16.msra.mxu2 %v4311_v43  ;;  %v3554_v0 = vpop.f32.mrf.mxu0  ;;  %v3965_v11 = vpop.permute.xlu0 %3964 }
 0xa15   : > { %v7774_v14 = vpop.f32.mrf.mxu2 }
 0xa17   : > { %v7776_v12 = vpop.f32.mrf.mxu1 }
 0xa18   : > { %v3990_v25 = vsel %vm822_vm5, %v7776_v12, -inf }
 0xa19   : > { %3991 = vmax.xlane.f32.xlu1 %v3990_v25 }
 0xa1a   : > { %v7780_v13 = vpop.f32.mrf.mxu0  ;;  %v4201_v24 = vpop.permute.xlu0 %4200 }
 0xa1b   : > { %v4206_v61 = vsel %vm1402_vm6, %v4201_v24, 0  ;;  %5095 = vmatmul.msk.bf16.vlgmr.msra.gmra.mxu3 %vm822_vm5, %v3965_v11  ;;  %v3987_v33 = vsel %vm822_vm5, %v7780_v13, -inf }
 0xa1c   : > { %4341 = vmatpush.bf16.msra.mxu3 %v4332_v63  ;;  %3988 = vmax.xlane.f32.xlu2 %v3987_v33 }
 0xa1d   : > { %4215 = vmatpush.bf16.msrb.mxu1 %v4206_v61  ;;  %v3512_v31 = vpop.f32.mrf.mxu2 }
 0xa1f   : > { %v3663_v30 = vpop.f32.mrf.mxu1 }
 0xa22   : > { %v3640_v17 = vpop.f32.mrf.mxu0  ;;  %v4285_v47 = vpop.permute.xlu0 %4284 }
 0xa23   : > { %v4290_v37 = vsel %vm1402_vm6, %v4285_v47, 0 }
 0xa24   : > { %4299 = vmatpush.bf16.msra.mxu1 %v4290_v37 }
 0xa34   : > { %v7788_v26 = vpop.f32.mrf.mxu0 }
 0xa35   : > { %v3999_v58 = vsel %vm822_vm5, %v7788_v26, -inf }
 0xa36   : > { %4000 = vmax.xlane.f32.xlu1 %v3999_v58  ;;  %v8473_v58 = vld [vmem:[#allocation18_spill] sm:$0xff] }
 0xa3c   : > { %v3732_v27 = vpop.f32.mrf.mxu0 }
 0xa4c   : > { %v7792_v49 = vpop.f32.mrf.mxu3 }
 0xa4d   : > { %v5244_v28 = vpack.i.bf16 %v7792_v49, %v7774_v14 }
 0xa54   : > { %v3533_v45 = vpop.f32.mrf.mxu3  ;;  %v7796_v20 = vpop.f32.mrf.mxu2 }
 0xa5c   : > { %v3596_v40 = vpop.f32.mrf.mxu2 }
 0xa5e   : > { %v7798_v29 = vpop.f32.mrf.mxu3 }
 0xa5f   : > { %v5274_v38 = vpack.i.bf16 %v7798_v29, %v7796_v20 }
 0xa60   : > { %v7802_v1 = vpop.f32.mrf.mxu1 }
 0xa61   : > { %v4002_v8 = vsel %vm822_vm5, %v7802_v1, -inf }
 0xa62   : > { %4003 = vmax.xlane.f32.xlu0 %v4002_v8 }
 0xa64   : > { %v7806_v56 = vpop.f32.mrf.mxu2 }
 0xa65   : > { %v3993_v15 = vsel %vm822_vm5, %v7806_v56, -inf }
 0xa66   : > { %v3617_v54 = vpop.f32.mrf.mxu3 }
 0xa68   : > { %v3755_v21 = vpop.f32.mrf.mxu1 }
 0xa6a   : > { %3994 = vmax.xlane.f32.xlu0 %v3993_v15 }
 0xa6c   : > { %v3686_v57 = vpop.f32.mrf.mxu2 }
 0xa6e   : > { %v7810_v42 = vpop.f32.mrf.mxu3 }
 0xa6f   : > { %v3996_v22 = vsel %vm822_vm5, %v7810_v42, -inf }
 0xa70   : > { %3997 = vmax.xlane.f32.xlu2 %v3996_v22  ;;  %v7814_v53 = vpop.f32.mrf.mxu0  ;;  %v7816_v3 = vpop.f32.mrf.mxu1  ;;  %v8474_v22 = vld [vmem:[#allocation10_spill] sm:$0xff] }
 0xa71   : > { %v4011_v7 = vsel %vm822_vm5, %v7814_v53, -inf  ;;  %v4014_v59 = vsel %vm822_vm5, %v7816_v3, -inf }
 0xa72   : > { %4012 = vmax.xlane.f32.xlu0 %v4011_v7 }
 0xa74   : > { %v7820_v50 = vpop.f32.mrf.mxu2 }
 0xa75   : > { %v4005_v43 = vsel %vm822_vm5, %v7820_v50, -inf }
 0xa76   : > { %v3709_v34 = vpop.f32.mrf.mxu3 }
 0xa78   : > { %4015 = vmax.xlane.f32.xlu2 %v4014_v59  ;;  %v3824_v18 = vpop.f32.mrf.mxu0  ;;  %v3847_v62 = vpop.f32.mrf.mxu1 }
 0xa7c   : > { %v3778_v55 = vpop.f32.mrf.mxu2 }
 0xa7e   : > { %v7824_v41 = vpop.f32.mrf.mxu3 }
 0xa7f   : > { %v4008_v17 = vsel %vm822_vm5, %v7824_v41, -inf }
 0xa80   : > { %4006 = vmax.xlane.f32.xlu2 %v4005_v43 }
 0xa84   : > { %v7828_v0 = vpop.f32.mrf.mxu2 }
 0xa86   : > { %v3801_v11 = vpop.f32.mrf.mxu3  ;;  %4368 = vrot.lane.b32.xlu0 %v8472_v39, %s5595_s13 }
 0xa88   : > { %v7832_v25 = vpop.f32.mrf.mxu0 }
 0xa89   : > { %v7834_v24 = vpop.f32.mrf.mxu1  ;;  %v4023_v63 = vsel %vm822_vm5, %v7832_v25, -inf }
 0xa8a   : > { %4024 = vmax.xlane.f32.xlu1 %v4023_v63 }
 0xa8c   : > { %v3870_v61 = vpop.f32.mrf.mxu2  ;;  %v3992_v40 = vpop.xlane.xlu1 %3991 }
 0xa8d   : > { %v4036_v55 = vsub.f32 %v7776_v12, %v3992_v40  ;;  %v4017_v12 = vsel %vm822_vm5, %v7828_v0, -inf }
 0xa8e   : > { %v7838_v33 = vpop.f32.mrf.mxu3 }
 0xa8f   : > { %v3989_v8 = vpop.xlane.xlu2 %3988  ;;  %v4053_v11 = vmul.f32 1.442695, %v4036_v55  ;;  %v4020_v39 = vsel %vm822_vm5, %v7838_v33, -inf }
 0xa90   : > { %v3916_v31 = vpop.f32.mrf.mxu0  ;;  %v4035_v54 = vsub.f32 %v7780_v13, %v3989_v8 }
 0xa91   : > { %v3939_v30 = vpop.f32.mrf.mxu1 }
 0xa92   : > { %4009 = vmax.xlane.f32.xlu1 %v4008_v17  ;;  %v4051_v15 = vmul.f32 1.442695, %v4035_v54 }
 0xa94   : > { %v7842_v47 = vpop.f32.mrf.mxu2  ;;  %5510 = vpow2.f32 %v4051_v15 }
 0xa95   : > { %v4029_v34 = vsel %vm822_vm5, %v7842_v47, -inf }
 0xa96   : > { %v3893_v37 = vpop.f32.mrf.mxu3 }
 0xa98   : > { %4389 = vrot.lane.b32.xlu2 %v8473_v58, %s5595_s13 }
 0xa9a   : > { %v7854_v18 = vpop.eup %5510 }
 0xa9b   : > { %v4083_v13 = vsel %vm822_vm5, %v7854_v18, 0.0 }
 0xa9c   : > { %v3962_v27 = vpop.f32.mrf.mxu2 }
 0xa9e   : > { %v7846_v45 = vpop.f32.mrf.mxu3 }
 0xa9f   : > { %v4032_v37 = vsel %vm822_vm5, %v7846_v45, -inf }
 0xaa6   : > { %v3985_v21 = vpop.f32.mrf.mxu3 }
 0xaa9   : > { %v4001_v57 = vpop.xlane.xlu1 %4000 }
 0xaaa   : > { %v4039_v7 = vsub.f32 %v7788_v26, %v4001_v57  ;;  %v4026_v26 = vsel %vm822_vm5, %v7834_v24, -inf }
 0xaab   : > { %4347 = vrot.lane.b32.xlu1 %v8474_v22, %s5595_s13 }
 0xaac   : > { %v4059_v59 = vmul.f32 1.442695, %v4039_v7 }
 0xaae   : > { %5512 = vpow2.f32 %v4059_v59 }
 0xaaf   : > { %5514 = vpow2.f32 %v4053_v11 }
 0xab0   : > { %4030 = vmax.xlane.f32.xlu0 %v4029_v34 }
 0xab4   : > { %v7858_v62 = vpop.eup %5512 }
 0xab5   : > { %v4095_v43 = vsel %vm822_vm5, %v7858_v62, 0.0  ;;  %v7867_v63 = vpop.eup %5514 }
 0xab6   : > { %v4086_v61 = vsel %vm822_vm5, %v7867_v63, 0.0 }
 0xab8   : > { %4084 = vadd.xlane.f32.xlu0 %v4083_v13 }
 0xac0   : > { %4096 = vadd.xlane.f32.xlu0 %v4095_v43 }
 0xac1   : > { %4027 = vmax.xlane.f32.xlu2 %v4026_v26 }
 0xac9   : > { %4021 = vmax.xlane.f32.xlu2 %v4020_v39 }
 0xad1   : > { %4087 = vadd.xlane.f32.xlu2 %v4086_v61 }
 0xad5   : > { %v4004_v31 = vpop.xlane.xlu0 %4003  ;;  %4018 = vmax.xlane.f32.xlu1 %v4017_v12 }
 0xad6   : > { %v4040_v30 = vsub.f32 %v7802_v1, %v4004_v31 }
 0xad8   : > { %v4061_v17 = vmul.f32 1.442695, %v4040_v30 }
 0xada   : > { %5516 = vpow2.f32 %v4061_v17 }
 0xadd   : > { %v3995_v58 = vpop.xlane.xlu0 %3994  ;;  %4033 = vmax.xlane.f32.xlu1 %v4032_v37 }
 0xade   : > { %v4037_v27 = vsub.f32 %v7806_v56, %v3995_v58 }
 0xae0   : > { %v7877_v40 = vpop.eup %5516  ;;  %v4055_v8 = vmul.f32 1.442695, %v4037_v27 }
 0xae1   : > { %v4098_v54 = vsel %vm822_vm5, %v7877_v40, 0.0 }
 0xae2   : > { %5518 = vpow2.f32 %v4055_v8  ;;  %4099 = vadd.xlane.f32.xlu0 %v4098_v54  ;;  %v8475_v54 = vld [vmem:[#allocation27_spill] sm:$0xff] }
 0xae3   : > { %v3998_v21 = vpop.xlane.xlu2 %3997 }
 0xae4   : > { %v4038_v57 = vsub.f32 %v7810_v42, %v3998_v21 }
 0xae5   : > { %v4013_v15 = vpop.xlane.xlu0 %4012 }
 0xae6   : > { %v4043_v1 = vsub.f32 %v7814_v53, %v4013_v15  ;;  %v4057_v34 = vmul.f32 1.442695, %v4038_v57 }
 0xae8   : > { %v7883_v22 = vpop.eup %5518  ;;  %v4067_v7 = vmul.f32 1.442695, %v4043_v1  ;;  %v8476_v1 = vld [vmem:[#allocation16_spill] sm:$0xff] }
 0xae9   : > { %v4089_v56 = vsel %vm822_vm5, %v7883_v22, 0.0 }
 0xaea   : > { %5520 = vpow2.f32 %v4067_v7  ;;  %4090 = vadd.xlane.f32.xlu2 %v4089_v56 }
 0xaeb   : > { %v4016_v59 = vpop.xlane.xlu2 %4015  ;;  %5522 = vpow2.f32 %v4057_v34 }
 0xaec   : > { %v4044_v13 = vsub.f32 %v7816_v3, %v4016_v59 }
 0xaee   : > { %v4069_v55 = vmul.f32 1.442695, %v4044_v13 }
 0xaf0   : > { %v7888_v43 = vpop.eup %5520  ;;  %5524 = vpow2.f32 %v4069_v55 }
 0xaf1   : > { %v4107_v42 = vsel %vm822_vm5, %v7888_v43, 0.0  ;;  %v7893_v11 = vpop.eup %5522 }
 0xaf2   : > { %4108 = vadd.xlane.f32.xlu2 %v4107_v42  ;;  %v4092_v12 = vsel %vm822_vm5, %v7893_v11, 0.0 }
 0xaf3   : > { %v4007_v53 = vpop.xlane.xlu2 %4006 }
 0xaf4   : > { %v4041_v26 = vsub.f32 %v7820_v50, %v4007_v53 }
 0xaf6   : > { %v7895_v39 = vpop.eup %5524  ;;  %v4063_v61 = vmul.f32 1.442695, %v4041_v26 }
 0xaf7   : > { %v4110_v3 = vsel %vm822_vm5, %v7895_v39, 0.0 }
 0xaf8   : > { %5526 = vpow2.f32 %v4063_v61  ;;  %4111 = vadd.xlane.f32.xlu0 %v4110_v3  ;;  %v4369_v21 = vpop.permute.xlu0 %4368 }
 0xafa   : > { %4093 = vadd.xlane.f32.xlu2 %v4092_v12 }
 0xafb   : > { %v7914_v7 = vpop.permute.xlu2 %4389 }
 0xafd   : > { %v4025_v31 = vpop.xlane.xlu1 %4024 }
 0xafe   : > { %v7901_v30 = vpop.eup %5526 }
 0xaff   : > { %v4101_v50 = vsel %vm822_vm5, %v7901_v30, 0.0 }
 0xb02   : > { %4102 = vadd.xlane.f32.xlu2 %v4101_v50 }
 0xb05   : > { %v4010_v17 = vpop.xlane.xlu1 %4009 }
 0xb06   : > { %v4042_v37 = vsub.f32 %v7824_v41, %v4010_v17  ;;  %v4047_v41 = vsub.f32 %v7832_v25, %v4025_v31 }
 0xb08   : > { %v4065_v58 = vmul.f32 1.442695, %v4042_v37  ;;  %v4075_v34 = vmul.f32 1.442695, %v4047_v41 }
 0xb0a   : > { %5528 = vpow2.f32 %v4065_v58 }
 0xb10   : > { %v7906_v27 = vpop.eup %5528 }
 0xb11   : > { %v4104_v8 = vsel %vm822_vm5, %v7906_v27, 0.0 }
 0xb12   : > { %4105 = vadd.xlane.f32.xlu0 %v4104_v8 }
 0xb1a   : > { %4410 = vrot.lane.b32.xlu2 %v8475_v54, %s5595_s13 }
 0xb1d   : > { %v4348_v13 = vpop.permute.xlu1 %4347 }
 0xb1e   : > { %v4353_v61 = vsel %vm1402_vm6, %v4348_v13, 0 }
 0xb23   : > { %v4031_v15 = vpop.xlane.xlu0 %4030 }
 0xb26   : > { %4431 = vrot.lane.b32.xlu0 %v8476_v1, %s5595_s13  ;;  %v4049_v1 = vsub.f32 %v7842_v47, %v4031_v15  ;;  %v4374_v47 = vsel %vm1402_vm6, %v4369_v21, 0  ;;  %v8477_v21 = vld [vmem:[#allocation20_spill] sm:$0xff] }
 0xb28   : > { %v4079_v41 = vmul.f32 1.442695, %v4049_v1 }
 0xb2b   : > { %v4085_v57 = vpop.xlane.xlu0 %4084 }
 0xb2c   : > { %5530 = vrcp.f32 %v4085_v57 }
 0xb2d   : > { %5532 = vpow2.f32 %v4075_v34 }
 0xb32   : > { %v5531_v56 = vpop.eup %5530 }
 0xb33   : > { %v4147_v59 = vmul.f32 %v5531_v56, %v7854_v18  ;;  %v4097_v53 = vpop.xlane.xlu0 %4096  ;;  %v7921_v12 = vpop.eup %5532 }
 0xb34   : > { %v4028_v55 = vpop.xlane.xlu2 %4027  ;;  %5534 = vrcp.f32 %v4097_v53  ;;  %v4119_v58 = vsel %vm822_vm5, %v7921_v12, 0.0 }
 0xb35   : > { %v4163_v42 = vpack.c.bf16 %v4147_v59, %v4147_v59  ;;  %v4048_v26 = vsub.f32 %v7834_v24, %v4028_v55 }
 0xb37   : > { %v4077_v3 = vmul.f32 1.442695, %v4048_v26  ;;  %5096 = vmatmul.msk.bf16.vlgmr.msrb.gmra.mxu0 %vm822_vm5, %v4163_v42 }
 0xb38   : > { %4362 = vmatpush.bf16.msrb.mxu0 %v4353_v61 }
 0xb39   : > { %5536 = vpow2.f32 %v4077_v3 }
 0xb3a   : > { %v5535_v31 = vpop.eup %5534 }
 0xb3b   : > { %v4151_v17 = vmul.f32 %v5535_v31, %v7858_v62  ;;  %v8478_v31 = vld [vmem:[#allocation44_spill] sm:$0xff] }
 0xb3c   : > { %v4022_v25 = vpop.xlane.xlu2 %4021 }
 0xb3d   : > { %v4046_v18 = vsub.f32 %v7838_v33, %v4022_v25  ;;  %v4167_v54 = vpack.c.bf16 %v4151_v17, %v4151_v17 }
 0xb3f   : > { %v7924_v50 = vpop.eup %5536  ;;  %v4073_v37 = vmul.f32 1.442695, %v4046_v18  ;;  %v8479_v18 = vld [vmem:[#allocation42_spill] sm:$0xff] }
 0xb40   : > { %v4122_v24 = vsel %vm822_vm5, %v7924_v50, 0.0 }
 0xb41   : > { %4123 = vadd.xlane.f32.xlu1 %v4122_v24  ;;  %v8480_v24 = vpack.i.bf16 %v8478_v31, %v8479_v18 }
 0xb43   : > { %4120 = vadd.xlane.f32.xlu2 %v4119_v58 }
 0xb44   : > { %v4088_v8 = vpop.xlane.xlu2 %4087 }
 0xb45   : > { %5538 = vrcp.f32 %v4088_v8 }
 0xb46   : > { %5540 = vpow2.f32 %v4073_v37 }
 0xb47   : > { %5100 = vmatmul.msk.bf16.vlgmr.msra.gmra.mxu0 %vm822_vm5, %v4167_v54 }
 0xb48   : > { %v4019_v33 = vpop.xlane.xlu1 %4018 }
 0xb49   : > { %v4045_v57 = vsub.f32 %v7828_v0, %v4019_v33 }
 0xb4b   : > { %v5539_v56 = vpop.eup %5538  ;;  %v4071_v62 = vmul.f32 1.442695, %v4045_v57 }
 0xb4c   : > { %v7934_v34 = vpop.eup %5540  ;;  %v4148_v59 = vmul.f32 %v5539_v56, %v7867_v63 }
 0xb4d   : > { %5542 = vpow2.f32 %v4071_v62  ;;  %v4116_v55 = vsel %vm822_vm5, %v7934_v34, 0.0 }
 0xb4e   : > { %5544 = vpow2.f32 %v4079_v41  ;;  %v4164_v13 = vpack.c.bf16 %v4148_v59, %v4148_v59 }
 0xb50   : > { %4117 = vadd.xlane.f32.xlu0 %v4116_v55  ;;  %5097 = vmatmul.msk.bf16.vlgmr.msrb.gmra.mxu1 %vm822_vm5, %v4164_v13 }
 0xb51   : > { %4383 = vmatpush.bf16.msrb.mxu1 %v4374_v47 }
 0xb53   : > { %v7941_v0 = vpop.eup %5542 }
 0xb54   : > { %v7943_v15 = vpop.eup %5544  ;;  %v4113_v42 = vsel %vm822_vm5, %v7941_v0, 0.0 }
 0xb55   : > { %v4100_v63 = vpop.xlane.xlu0 %4099  ;;  %4114 = vadd.xlane.f32.xlu1 %v4113_v42  ;;  %v4125_v53 = vsel %vm822_vm5, %v7943_v15, 0.0  ;;  %v8486_v42 = vld [vmem:[#allocation31_spill] sm:$0xff] }
 0xb56   : > { %5546 = vrcp.f32 %v4100_v63  ;;  %v8487_v63 = vld [vmem:[#allocation36_spill] sm:$0xff] }
 0xb58   : > { %4126 = vadd.xlane.f32.xlu0 %v4125_v53  ;;  %v8488_v53 = vpack.i.bf16 %v8486_v42, %v8487_v63 }
 0xb5b   : > { %4473 = vrot.lane.b32.xlu2 %v8477_v21, %s5595_s13 }
 0xb5c   : > { %v5547_v26 = vpop.eup %5546 }
 0xb5d   : > { %v4152_v61 = vmul.f32 %v5547_v26, %v7877_v40  ;;  %v4091_v3 = vpop.xlane.xlu2 %4090  ;;  %v4395_v40 = vsel %vm1402_vm6, %v7914_v7, 0  ;;  %v8482_v7 = vld [vmem:[#allocation26_spill] sm:$0xff] }
 0xb5e   : > { %5548 = vrcp.f32 %v4091_v3 }
 0xb5f   : > { %v4168_v25 = vpack.c.bf16 %v4152_v61, %v4152_v61 }
 0xb61   : > { %5101 = vmatmul.msk.bf16.vlgmr.msra.gmra.mxu1 %vm822_vm5, %v4168_v25 }
 0xb63   : > { %5165 = vrot.lane.b32.xlu2 %v8480_v24, %s5596_s14 }
 0xb64   : > { %v5549_v17 = vpop.eup %5548 }
 0xb65   : > { %v4149_v37 = vmul.f32 %v5549_v17, %v7883_v22  ;;  %v4109_v58 = vpop.xlane.xlu2 %4108  ;;  %v8481_v22 = vld [vmem:[#allocation32_spill] sm:$0xff] }
 0xb66   : > { %5550 = vrcp.f32 %v4109_v58 }
 0xb67   : > { %v4165_v8 = vpack.c.bf16 %v4149_v37, %v4149_v37 }
 0xb69   : > { %5098 = vmatmul.msk.bf16.vlgmr.msrb.gmra.mxu2 %vm822_vm5, %v4165_v8 }
 0xb6a   : > { %4404 = vmatpush.bf16.msrb.mxu2 %v4395_v40 }
 0xb6b   : > { %v4112_v54 = vpop.xlane.xlu0 %4111  ;;  %5170 = vrot.lane.b32.xlu2 %v5169_v48, %s5597_s16  ;;  %v8485_v48 = vpack.i.bf16 %v8483_v60, %v8484_v4 }
 0xb6c   : > { %v5551_v1 = vpop.eup %5550  ;;  %5552 = vrcp.f32 %v4112_v54  ;;  %4494 = vrot.lane.b32.xlu0 %v8481_v22, %s5595_s13 }
 0xb6d   : > { %v4155_v33 = vmul.f32 %v5551_v1, %v7888_v43  ;;  %v4094_v57 = vpop.xlane.xlu2 %4093 }
 0xb6e   : > { %5554 = vrcp.f32 %v4094_v57  ;;  %4452 = vrot.lane.b32.xlu1 %v8482_v7, %s5595_s13 }
 0xb6f   : > { %v4171_v41 = vpack.c.bf16 %v4155_v33, %v4155_v33 }
 0xb71   : > { %5104 = vmatmul.msk.bf16.vlgmr.msrb.gmra.mxu0 %vm822_vm5, %v4171_v41 }
 0xb72   : > { %v5553_v56 = vpop.eup %5552 }
 0xb73   : > { %v4156_v62 = vmul.f32 %v5553_v56, %v7895_v39  ;;  %5180 = vrot.lane.b32.xlu2 %v8485_v48, %s5596_s14 }
 0xb74   : > { %v5555_v59 = vpop.eup %5554  ;;  %5185 = vrot.lane.b32.xlu0 %v5184_v36, %s5597_s16 }
 0xb75   : > { %v4172_v43 = vpack.c.bf16 %v4156_v62, %v4156_v62  ;;  %v4150_v13 = vmul.f32 %v5555_v59, %v7893_v11  ;;  %v4103_v55 = vpop.xlane.xlu2 %4102  ;;  %v4034_v11 = vpop.xlane.xlu1 %4033 }
 0xb76   : > { %5556 = vrcp.f32 %v4103_v55  ;;  %v4050_v61 = vsub.f32 %v7846_v45, %v4034_v11 }
 0xb77   : > { %v4166_v47 = vpack.c.bf16 %v4150_v13, %v4150_v13  ;;  %5105 = vmatmul.msk.bf16.vlgmr.msrb.gmra.mxu1 %vm822_vm5, %v4172_v43 }
 0xb78   : > { %v4081_v3 = vmul.f32 1.442695, %v4050_v61  ;;  %v8492_v61 = vld [vmem:[#allocation8_spill] sm:$0xff] }
 0xb79   : > { %5099 = vmatmul.msk.bf16.vlgmr.msrb.gmra.mxu3 %vm822_vm5, %v4166_v47 }
 0xb7c   : > { %v5557_v39 = vpop.eup %5556  ;;  %5195 = vrot.lane.b32.xlu0 %v8488_v53, %s5596_s14 }
 0xb7d   : > { %v4153_v21 = vmul.f32 %v5557_v39, %v7901_v30  ;;  %v4411_v51 = vpop.permute.xlu2 %4410  ;;  %v8490_v39 = vld [vmem:[#allocation17_spill] sm:$0xff] }
 0xb7e   : > { %v4416_v46 = vsel %vm1402_vm6, %v4411_v51, 0 }
 0xb7f   : > { %v4169_v36 = vpack.c.bf16 %v4153_v21, %v4153_v21  ;;  %4425 = vmatpush.bf16.msrb.mxu3 %v4416_v46 }
 0xb81   : > { %5102 = vmatmul.msk.bf16.vlgmr.msra.gmra.mxu2 %vm822_vm5, %v4169_v36 }
 0xb85   : > { %v4106_v26 = vpop.xlane.xlu0 %4105 }
 0xb86   : > { %5558 = vrcp.f32 %v4106_v26 }
 0xb87   : > { %5560 = vpow2.f32 %v4081_v3  ;;  %v8493_v3 = vld [vmem:[#allocation21_spill] sm:$0xff] }
 0xb8c   : > { %v5559_v25 = vpop.eup %5558 }
 0xb8d   : > { %v4154_v31 = vmul.f32 %v5559_v25, %v7906_v27  ;;  %v7993_v30 = vpop.eup %5560  ;;  %v8494_v25 = vpack.i.bf16 %v8492_v61, %v8493_v3 }
 0xb8e   : > { %v4128_v24 = vsel %vm822_vm5, %v7993_v30, 0.0 }
 0xb8f   : > { %v4170_v18 = vpack.c.bf16 %v4154_v31, %v4154_v31 }
 0xb91   : > { %5103 = vmatmul.msk.bf16.vlgmr.msra.gmra.mxu3 %vm822_vm5, %v4170_v18 }
 0xb98   : > { %v4432_v17 = vpop.permute.xlu0 %4431  ;;  %4129 = vadd.xlane.f32.xlu1 %v4128_v24  ;;  %v8495_v24 = vld [vmem:[#allocation13_spill] sm:$0xff] }
 0xb99   : > { %v4437_v37 = vsel %vm1402_vm6, %v4432_v17, 0  ;;  %v8496_v17 = vld [vmem:[#allocation33_spill] sm:$0xff] }
 0xb9a   : > { %4446 = vmatpush.bf16.msra.mxu0 %v4437_v37  ;;  %v8497_v37 = vpack.i.bf16 %v8495_v24, %v8496_v17 }
 0xbb4   : > { %v4196_v45 = vpop.f32.mrf.mxu0  ;;  %v4124_v22 = vpop.xlane.xlu1 %4123 }
 0xbb6   : > { %v4121_v58 = vpop.xlane.xlu2 %4120 }
 0xbb7   : > { %5562 = vrcp.f32 %v4121_v58  ;;  %v8498_v58 = vld [vmem:[#allocation5_spill] sm:$0xff] }
 0xbbc   : > { %v4198_v8 = vpop.f32.mrf.mxu0 }
 0xbbd   : > { %v5563_v40 = vpop.eup %5562  ;;  %v8499_v8 = vld [vmem:[#allocation6_spill] sm:$0xff] }
 0xbbe   : > { %v4159_v27 = vmul.f32 %v5563_v40, %v7921_v12  ;;  %v4474_v54 = vpop.permute.xlu2 %4473  ;;  %v5254_v40 = vpack.i.bf16 %v8499_v8, %v8498_v58 }
 0xbbf   : > { %v4479_v1 = vsel %vm1402_vm6, %v4474_v54, 0 }
 0xbc0   : > { %v4175_v33 = vpack.c.bf16 %v4159_v27, %v4159_v27  ;;  %4488 = vmatpush.bf16.msra.mxu2 %v4479_v1 }
 0xbc2   : > { %5108 = vmatmul.msk.bf16.vlgmr.msra.gmra.mxu0 %vm822_vm5, %v4175_v33  ;;  %v8500_v33 = vld [vmem:[#allocation28_spill] sm:$0xff] }
 0xbc3   : > { %v4118_v57 = vpop.xlane.xlu0 %4117 }
 0xbc4   : > { %5564 = vrcp.f32 %v4118_v57  ;;  %v4280_v7 = vpop.f32.mrf.mxu0  ;;  %v8501_v57 = vld [vmem:[#allocation14_spill] sm:$0xff] }
 0xbc6   : > { %v5166_v19 = vpop.permute.xlu2 %5165 }
 0xbc7   : > { %v5168_v44 = vunpack.i.h.bf16 %v5166_v19  ;;  %v5167_v5 = vunpack.i.l.bf16 %v5166_v19 }
 0xbc8   : > { %v4115_v41 = vpop.xlane.xlu1 %4114 }
 0xbc9   : > { %5566 = vrcp.f32 %v4115_v41 }
 0xbca   : > { %v5565_v56 = vpop.eup %5564 }
 0xbcb   : > { %v4158_v62 = vmul.f32 %v5565_v56, %v7934_v34  ;;  %v4127_v55 = vpop.xlane.xlu0 %4126  ;;  %v8489_v34 = vld [vmem:[#allocation25_spill] sm:$0xff] }
 0xbcc   : > { %v4282_v60 = vpop.f32.mrf.mxu0  ;;  %5568 = vrcp.f32 %v4127_v55  ;;  %v8491_v42 = vpack.i.bf16 %v8489_v34, %v8490_v39 }
 0xbcd   : > { %v4174_v4 = vpack.c.bf16 %v4158_v62, %v4158_v62  ;;  %v4217_v48 = vpop.f32.mrf.mxu1  ;;  %5570 = vrcp.f32 %v4124_v22 }
 0xbce   : > { %v5174_v12 = vpack.i.bf16 %v4217_v48, %v4196_v45 }
 0xbcf   : > { %v5567_v59 = vpop.eup %5566  ;;  %5107 = vmatmul.msk.bf16.vlgmr.msrb.gmra.mxu3 %vm822_vm5, %v4174_v4 }
 0xbd0   : > { %v4157_v43 = vmul.f32 %v5567_v59, %v7941_v0  ;;  %5175 = vrot.lane.b32.xlu1 %v5174_v12, %s5598_s19 }
 0xbd2   : > { %v4173_v13 = vpack.c.bf16 %v4157_v43, %v4157_v43  ;;  %v5569_v63 = vpop.eup %5568 }
 0xbd3   : > { %v5571_v53 = vpop.eup %5570  ;;  %v4161_v21 = vmul.f32 %v5569_v63, %v7943_v15 }
 0xbd4   : > { %5106 = vmatmul.msk.bf16.vlgmr.msrb.gmra.mxu2 %vm822_vm5, %v4173_v13  ;;  %v4160_v46 = vmul.f32 %v5571_v53, %v7924_v50 }
 0xbd5   : > { %v4219_v47 = vpop.f32.mrf.mxu1  ;;  %v4177_v18 = vpack.c.bf16 %v4161_v21, %v4161_v21 }
 0xbd6   : > { %v4176_v15 = vpack.c.bf16 %v4160_v46, %v4160_v46 }
 0xbd8   : > { %5210 = vrot.lane.b32.xlu1 %v8491_v42, %s5596_s14 }
 0xbde   : > { %v4495_v0 = vpop.permute.xlu0 %4494  ;;  %v4301_v51 = vpop.f32.mrf.mxu1 }
 0xbdf   : > { %v4500_v36 = vsel %vm1402_vm6, %v4495_v0, 0  ;;  %v5204_v11 = vpack.i.bf16 %v4301_v51, %v4280_v7  ;;  %v8502_v7 = vpack.i.bf16 %v8500_v33, %v8501_v57 }
 0xbe0   : > { %v4453_v26 = vpop.permute.xlu1 %4452  ;;  %5225 = vrot.lane.b32.xlu1 %v8494_v25, %s5596_s14  ;;  %4509 = vmatpush.bf16.msra.mxu3 %v4500_v36 }
 0xbe1   : > { %v4458_v31 = vsel %vm1402_vm6, %v4453_v26, 0  ;;  %5205 = vrot.lane.b32.xlu0 %v5204_v11, %s5598_s19 }
 0xbe2   : > { %4467 = vmatpush.bf16.msra.mxu1 %v4458_v31  ;;  %v8505_v31 = vld [vmem:[#allocation34_spill] sm:$0xff] }
 0xbe4   : > { %5110 = vmatmul.msk.bf16.vlgmr.msra.gmra.mxu2 %vm822_vm5, %v4177_v18 }
 0xbe5   : > { %5109 = vmatmul.msk.bf16.vlgmr.msra.gmra.mxu1 %vm822_vm5, %v4176_v15  ;;  %v8506_v15 = vld [vmem:[#allocation46_spill] sm:$0xff] }
 0xbe6   : > { %v4303_v50 = vpop.f32.mrf.mxu1  ;;  %v5186_v51 = vpop.permute.xlu0 %5185 }
 0xbe7   : > { %v5188_v11 = vunpack.i.h.bf16 %v5186_v51  ;;  %v5187_v26 = vunpack.i.l.bf16 %v5186_v51 }
 0xbe8   : > { %5240 = vrot.lane.b32.xlu1 %v8497_v37, %s5596_s14 }
 0xbec   : > { %v4238_v45 = vpop.f32.mrf.mxu2 }
 0xbee   : > { %v4364_v27 = vpop.f32.mrf.mxu0 }
 0xbf0   : > { %5255 = vrot.lane.b32.xlu1 %v5254_v40, %s5596_s14 }
 0xbf4   : > { %v4240_v54 = vpop.f32.mrf.mxu2  ;;  %v4385_v1 = vpop.f32.mrf.mxu1 }
 0xbf5   : > { %v5234_v23 = vpack.i.bf16 %v4385_v1, %v4364_v27  ;;  %v5196_v27 = vpop.permute.xlu0 %5195 }
 0xbf6   : > { %v4366_v22 = vpop.f32.mrf.mxu0  ;;  %v5198_v33 = vunpack.i.h.bf16 %v5196_v27  ;;  %v5197_v57 = vunpack.i.l.bf16 %v5196_v27  ;;  %v5574_v27 = vld [vmem:[%s8222_s1] sm:$0xff] }
 0xbf8   : > { %5270 = vrot.lane.b32.xlu1 %v8502_v7, %s5596_s14 }
 0xbfc   : > { %v4259_v41 = vpop.f32.mrf.mxu3  ;;  %v4387_v56 = vpop.f32.mrf.mxu1 }
 0xbfd   : > { %v5189_v62 = vpack.i.bf16 %v4259_v41, %v4238_v45 }
 0xbff   : > { %5190 = vrot.lane.b32.xlu2 %v5189_v62, %s5598_s19 }
 0xc04   : > { %v4261_v60 = vpop.f32.mrf.mxu3  ;;  %v4322_v4 = vpop.f32.mrf.mxu2 }
 0xc07   : > { %5200 = vrot.lane.b32.xlu2 %v5199_v2, %s5597_s16  ;;  %v5133_v2 = vld [vmem:[%s8224_s3 + $0x8] sm:$0xff] }
 0xc08   : > { %4812 = vmatpush.bf16.msrb.mxu0 %v5133_v2 }
 0xc0b   : > { %v4130_v48 = vpop.xlane.xlu1 %4129 }
 0xc0c   : > { %5572 = vrcp.f32 %v4130_v48  ;;  %v4324_v12 = vpop.f32.mrf.mxu2  ;;  %4813 = vmatpush.bf16.msrb.mxu0 %v5132_v32 }
 0xc0d   : > { %v8508_v12 = vld [vmem:[#allocation51_spill] sm:$0xff] }
 0xc0f   : > { %5215 = vrot.lane.b32.xlu2 %v5214_v35, %s5597_s16 }
 0xc12   : > { %v5573_v59 = vpop.eup %5572 }
 0xc13   : > { %v4162_v43 = vmul.f32 %v5573_v59, %v7993_v30  ;;  %v8503_v30 = vld [vmem:[#allocation58_spill] sm:$0xff]  ;;  %v4711_v59 = vsel %vm822_vm5, %v8508_v12, %v5197_v57  ;;  %v8513_v12 = vld [vmem:[#allocation59_spill] sm:$0xff] }
 0xc14   : > { %v4343_v13 = vpop.f32.mrf.mxu3  ;;  %v4708_v10 = vsel %vm822_vm5, %v8503_v30, %v5168_v44 }
 0xc15   : > { %v4178_v55 = vpack.c.bf16 %v4162_v43, %v4162_v43  ;;  %v5219_v47 = vpack.i.bf16 %v4343_v13, %v4322_v4  ;;  %v8507_v4 = vld [vmem:[#allocation49_spill] sm:$0xff] }
 0xc16   : > { %v4712_v48 = vsel %vm822_vm5, %v8507_v4, %v5198_v33 }
 0xc17   : > { %5230 = vrot.lane.b32.xlu2 %v5229_v52, %s5597_s16  ;;  %5220 = vrot.lane.b32.xlu0 %v5219_v47, %s5598_s19  ;;  %v5171_v52 = vpop.permute.xlu2 %5170 }
 0xc18   : > { %5111 = vmatmul.msk.bf16.vlgmr.msra.gmra.mxu3 %vm822_vm5, %v4178_v55  ;;  %v5173_v14 = vunpack.i.h.bf16 %v5171_v52  ;;  %v5172_v49 = vunpack.i.l.bf16 %v5171_v52 }
 0xc1a   : > { %v4725_v29 = vsel %vm4723_vm7, %v4708_v10, %v5173_v14  ;;  %v8509_v10 = vld [vmem:[#allocation38_spill] sm:$0xff] }
 0xc1c   : > { %v4345_v6 = vpop.f32.mrf.mxu3 }
 0xc1f   : > { %5245 = vrot.lane.b32.xlu2 %v5244_v28, %s5597_s16  ;;  %5235 = vrot.lane.b32.xlu0 %v5234_v23, %s5598_s19  ;;  %v5181_v21 = vpop.permute.xlu2 %5180 }
 0xc20   : > { %v5183_v46 = vunpack.i.h.bf16 %v5181_v21  ;;  %v5182_v36 = vunpack.i.l.bf16 %v5181_v21 }
 0xc22   : > { %v4710_v18 = vsel %vm822_vm5, %v8505_v31, %v5183_v46  ;;  %v4709_v50 = vsel %vm822_vm5, %v8506_v15, %v5182_v36 }
 0xc23   : > { %v4726_v45 = vsel %vm4723_vm7, %v4709_v50, %v5187_v26  ;;  %v4727_v58 = vsel %vm4723_vm7, %v4710_v18, %v5188_v11  ;;  %v8512_v18 = vld [vmem:[#allocation43_spill] sm:$0xff] }
 0xc27   : > { %5260 = vrot.lane.b32.xlu2 %v5259_v9, %s5597_s16  ;;  %v4707_v9 = vsel %vm822_vm5, %v8504_v16, %v5167_v5 }
 0xc28   : > { %v4724_v20 = vsel %vm4723_vm7, %v4707_v9, %v5172_v49  ;;  %v8510_v9 = vld [vmem:[#allocation41_spill] sm:$0xff] }
 0xc2f   : > { %5275 = vrot.lane.b32.xlu2 %v5274_v38, %s5597_s16 }
 0xc3f   : > { %v4448_v35 = vpop.f32.mrf.mxu0 }
 0xc42   : > { %v5176_v28 = vpop.permute.xlu1 %5175 }
 0xc43   : > { %v5178_v34 = vunpack.i.h.bf16 %v5176_v28  ;;  %v5177_v39 = vunpack.i.l.bf16 %v5176_v28 }
 0xc45   : > { %v4741_v38 = vsel %vm4740_vm8, %v4724_v20, %v5177_v39  ;;  %v4742_v42 = vsel %vm4740_vm8, %v4725_v29, %v5178_v34 }
 0xc46   : > { %v4757_v63 = vpack.c.bf16 %v4742_v42, %v4741_v38 }
 0xc47   : > { %v4450_v53 = vpop.f32.mrf.mxu0 }
 0xc48   : > { %5120 = vmatmul.msk.bf16.vlgmr.msrb.gmra.mxu0 %vm219_vm0, %v4757_v63 }
 0xc4a   : > { %v5211_v44 = vpop.permute.xlu1 %5210 }
 0xc4b   : > { %v5212_v14 = vunpack.i.l.bf16 %v5211_v44 }
 0xc4d   : > { %v4713_v34 = vsel %vm822_vm5, %v8510_v9, %v5212_v14 }
 0xc52   : > { %v4427_v0 = vpop.f32.mrf.mxu3  ;;  %v5226_v21 = vpop.permute.xlu1 %5225 }
 0xc53   : > { %v5206_v60 = vpop.permute.xlu0 %5205  ;;  %v5228_v46 = vunpack.i.h.bf16 %v5226_v21  ;;  %v5227_v36 = vunpack.i.l.bf16 %v5226_v21 }
 0xc54   : > { %v5208_v47 = vunpack.i.h.bf16 %v5206_v60  ;;  %v5207_v6 = vunpack.i.l.bf16 %v5206_v60 }
 0xc55   : > { %v4715_v15 = vsel %vm822_vm5, %v8512_v18, %v5227_v36 }
 0xc57   : > { %v4406_v61 = vpop.f32.mrf.mxu2 }
 0xc58   : > { %v5249_v3 = vpack.i.bf16 %v4427_v0, %v4406_v61 }
 0xc59   : > { %v5191_v25 = vpop.permute.xlu2 %5190 }
 0xc5a   : > { %v5193_v24 = vunpack.i.h.bf16 %v5191_v25  ;;  %v5192_v17 = vunpack.i.l.bf16 %v5191_v25  ;;  %5250 = vrot.lane.b32.xlu0 %v5249_v3, %s5598_s19  ;;  %v4429_v37 = vpop.f32.mrf.mxu3  ;;  %v8511_v25 = vld [vmem:[#allocation37_spill] sm:$0xff]  ;;  %v5241_v33 = vpop.permute.xlu1 %5240 }
 0xc5b   : > { %v4716_v31 = vsel %vm822_vm5, %v8511_v25, %v5228_v46 }
 0xc5c   : > { %v4743_v8 = vsel %vm4740_vm8, %v4726_v45, %v5192_v17  ;;  %v4744_v40 = vsel %vm4740_vm8, %v4727_v58, %v5193_v24 }
 0xc5d   : > { %v4758_v54 = vpack.c.bf16 %v4744_v40, %v4743_v8 }
 0xc5f   : > { %v4408_v1 = vpop.f32.mrf.mxu2  ;;  %5121 = vmatmul.msk.bf16.gmra.mxu0 %vm219_vm0, %v4758_v54  ;;  %v8118_v54 = vperm.slane %v5574_v27, 5 }
 0xc61   : > { %v5201_v22 = vpop.permute.xlu2 %5200 }
 0xc62   : > { %v4469_v7 = vpop.f32.mrf.mxu1  ;;  %v5203_v41 = vunpack.i.h.bf16 %v5201_v22  ;;  %v5202_v56 = vunpack.i.l.bf16 %v5201_v22  ;;  %v4855_v22 = vld [vmem:[%s5640_s21] sm:$0xff]  ;;  %v5256_v14 = vpop.permute.xlu1 %5255 }
 0xc63   : > { %v5264_v62 = vpack.i.bf16 %v4469_v7, %v4448_v35  ;;  %v5213_v35 = vunpack.i.h.bf16 %v5211_v44 }
 0xc64   : > { %v4729_v43 = vsel %vm4723_vm7, %v4712_v48, %v5203_v41  ;;  %v4728_v13 = vsel %vm4723_vm7, %v4711_v59, %v5202_v56  ;;  %v5243_v56 = vunpack.i.h.bf16 %v5241_v33 }
 0xc65   : > { %5265 = vrot.lane.b32.xlu0 %v5264_v62, %s5598_s19  ;;  %v4745_v2 = vsel %vm4740_vm8, %v4728_v13, %v5207_v6  ;;  %v4746_v32 = vsel %vm4740_vm8, %v4729_v43, %v5208_v47  ;;  %v4714_v16 = vsel %vm822_vm5, %v8509_v10, %v5213_v35  ;;  %v5242_v62 = vunpack.i.l.bf16 %v5241_v33  ;;  %v8514_v43 = vld [vmem:[#allocation39_spill] sm:$0xff] }
 0xc66   : > { %v4759_v19 = vpack.c.bf16 %v4746_v32, %v4745_v2  ;;  %v4718_v59 = vsel %vm822_vm5, %v8513_v12, %v5243_v56 }
 0xc67   : > { %v4490_v55 = vpop.f32.mrf.mxu2  ;;  %v4717_v13 = vsel %vm822_vm5, %v8514_v43, %v5242_v62 }
 0xc69   : > { %v5216_v5 = vpop.permute.xlu2 %5215 }
 0xc6a   : > { %v4471_v23 = vpop.f32.mrf.mxu1  ;;  %v5218_v49 = vunpack.i.h.bf16 %v5216_v5  ;;  %v5217_v28 = vunpack.i.l.bf16 %v5216_v5 }
 0xc6b   : > { %v4856_v23 = vld [vmem:[%s5640_s21 + $0x8] sm:$0xff] }
 0xc6c   : > { %v4731_v29 = vsel %vm4723_vm7, %v4714_v16, %v5218_v49  ;;  %v4730_v38 = vsel %vm4723_vm7, %v4713_v34, %v5217_v28  ;;  %v5258_v28 = vunpack.i.h.bf16 %v5256_v14 }
 0xc6f   : > { %v4492_v52 = vpop.f32.mrf.mxu2  ;;  %5122 = vmatmul.msk.bf16.gmra.mxu0 %vm219_vm0, %v4759_v19 }
 0xc71   : > { %v5231_v0 = vpop.permute.xlu2 %5230 }
 0xc72   : > { %v5233_v11 = vunpack.i.h.bf16 %v5231_v0  ;;  %v5232_v26 = vunpack.i.l.bf16 %v5231_v0  ;;  %v4857_v0 = vld [vmem:[%s5640_s21 + $0x10] sm:$0xff] }
 0xc74   : > { %v4733_v50 = vsel %vm4723_vm7, %v4716_v31, %v5233_v11  ;;  %v4732_v24 = vsel %vm4723_vm7, %v4715_v15, %v5232_v26  ;;  %v4859_v15 = vld [vmem:[%s5640_s21 + $0x20] sm:$0xff] }
 0xc79   : > { %v5246_v7 = vpop.permute.xlu2 %5245 }
 0xc7a   : > { %v5248_v60 = vunpack.i.h.bf16 %v5246_v7  ;;  %v5247_v4 = vunpack.i.l.bf16 %v5246_v7 }
 0xc7c   : > { %v4735_v2 = vsel %vm4723_vm7, %v4718_v59, %v5248_v60  ;;  %v4734_v32 = vsel %vm4723_vm7, %v4717_v13, %v5247_v4  ;;  %v8517_v60 = vld [vmem:[#allocation40_spill] sm:$0xff] }
 0xc81   : > { %v5261_v49 = vpop.permute.xlu2 %5260 }
 0xc82   : > { %v5263_v16 = vunpack.i.h.bf16 %v5261_v49  ;;  %v5262_v9 = vunpack.i.l.bf16 %v5261_v49 }
 0xc89   : > { %v5221_v30 = vpop.permute.xlu0 %5220 }
 0xc8a   : > { %v5223_v39 = vunpack.i.h.bf16 %v5221_v30  ;;  %v5222_v20 = vunpack.i.l.bf16 %v5221_v30  ;;  %v5257_v30 = vunpack.i.l.bf16 %v5256_v14 }
 0xc8c   : > { %v4747_v42 = vsel %vm4740_vm8, %v4730_v38, %v5222_v20  ;;  %v4748_v63 = vsel %vm4740_vm8, %v4731_v29, %v5223_v39  ;;  %v8515_v20 = vld [vmem:[#allocation47_spill] sm:$0xff] }
 0xc8d   : > { %v4760_v53 = vpack.c.bf16 %v4748_v63, %v4747_v42  ;;  %v4720_v29 = vsel %vm822_vm5, %v8515_v20, %v5258_v28  ;;  %v8516_v38 = vld [vmem:[#allocation35_spill] sm:$0xff] }
 0xc8e   : > { %v4719_v42 = vsel %vm822_vm5, %v8516_v38, %v5257_v30  ;;  %v4737_v63 = vsel %vm4723_vm7, %v4720_v29, %v5263_v16  ;;  %v4864_v28 = vld [vmem:[%s5640_s21 + $0x48] sm:$0xff]  ;;  %v4866_v29 = vld [vmem:[%s5640_s21 + $0x58] sm:$0xff] }
 0xc8f   : > { %5123 = vmatmul.msk.bf16.gmra.mxu0 %vm219_vm0, %v4760_v53  ;;  %v4736_v53 = vsel %vm4723_vm7, %v4719_v42, %v5262_v9  ;;  %v4865_v9 = vld [vmem:[%s5640_s21 + $0x50] sm:$0xff] }
 0xc91   : > { %v5236_v51 = vpop.permute.xlu0 %5235 }
 0xc92   : > { %v5238_v61 = vunpack.i.h.bf16 %v5236_v51  ;;  %v5237_v3 = vunpack.i.l.bf16 %v5236_v51 }
 0xc94   : > { %v4749_v17 = vsel %vm4740_vm8, %v4732_v24, %v5237_v3  ;;  %v4750_v37 = vsel %vm4740_vm8, %v4733_v50, %v5238_v61  ;;  %v4858_v3 = vld [vmem:[%s5640_s21 + $0x18] sm:$0xff] }
 0xc95   : > { %v4761_v8 = vpack.c.bf16 %v4750_v37, %v4749_v17  ;;  %v4860_v37 = vld [vmem:[%s5640_s21 + $0x28] sm:$0xff] }
 0xc9b   : > { %v4511_v45 = vpop.f32.mrf.mxu3 }
 0xc9c   : > { %v5279_v58 = vpack.i.bf16 %v4511_v45, %v4490_v55 }
 0xc9e   : > { %5280 = vrot.lane.b32.xlu0 %v5279_v58, %s5598_s19 }
 0xc9f   : > { %5124 = vmatmul.msk.bf16.gmra.mxu0 %vm219_vm0, %v4761_v8  ;;  %v5271_v8 = vpop.permute.xlu1 %5270 }
 0xca0   : > { %v5272_v33 = vunpack.i.l.bf16 %v5271_v8 }
 0xca3   : > { %v4513_v40 = vpop.f32.mrf.mxu3 }
 0xca4   : > { %v5276_v40 = vpop.permute.xlu2 %5275 }
 0xca5   : > { %v5278_v7 = vunpack.i.h.bf16 %v5276_v40 }
 0xcc5   : > { %v4815_v1 = vpop.f32.mrf.mxu0 }
 0xcc6   : > { %v4816_v57 = vadd.f32 %v4815_v1, %v8118_v54  ;;  %v4861_v1 = vld [vmem:[%s5640_s21 + $0x30] sm:$0xff] }
 0xcc8   : > { %v4871_v41 = vadd.f32 %v4855_v22, %v4816_v57  ;;  %v5273_v22 = vunpack.i.h.bf16 %v5271_v8 }
 0xcca   : > { %4887 = vst.msk [vmem:[%s8127_s29] sm:$0xff] %vm219_vm0, %v4871_v41  ;;  %v5277_v41 = vunpack.i.l.bf16 %v5276_v40  ;;  %v4722_v4 = vsel %vm822_vm5, %v8517_v60, %v5273_v22 }
 0xccb   : > { %v4739_v13 = vsel %vm4723_vm7, %v4722_v4, %v5278_v7 }
 0xccc   : > { %v5251_v48 = vpop.permute.xlu0 %5250 }
 0xccd   : > { %v5253_v55 = vunpack.i.h.bf16 %v5251_v48  ;;  %v5252_v47 = vunpack.i.l.bf16 %v5251_v48  ;;  %v4817_v6 = vpop.f32.mrf.mxu0  ;;  %v8518_v48 = vld [vmem:[#allocation53_spill] sm:$0xff] }
 0xcce   : > { %v4818_v19 = vadd.f32 %v4817_v6, %v8118_v54  ;;  %v4721_v12 = vsel %vm822_vm5, %v8518_v48, %v5272_v33 }
 0xccf   : > { %v4751_v52 = vsel %vm4740_vm8, %v4734_v32, %v5252_v47  ;;  %v4752_v44 = vsel %vm4740_vm8, %v4735_v2, %v5253_v55  ;;  %v4738_v55 = vsel %vm4723_vm7, %v4721_v12, %v5277_v41  ;;  %v4862_v32 = vld [vmem:[%s5640_s21 + $0x38] sm:$0xff] }
 0xcd0   : > { %v4762_v5 = vpack.c.bf16 %v4752_v44, %v4751_v52  ;;  %v4872_v35 = vadd.f32 %v4856_v23, %v4818_v19 }
 0xcd2   : > { %4888 = vst.msk [vmem:[%s8127_s29 + $0x8] sm:$0xff] %vm219_vm0, %v4872_v35  ;;  %5125 = vmatmul.msk.bf16.gmra.mxu0 %vm219_vm0, %v4762_v5  ;;  %v4863_v5 = vld [vmem:[%s5640_s21 + $0x40] sm:$0xff] }
 0xcd7   : > { %v5266_v10 = vpop.permute.xlu0 %5265 }
 0xcd8   : > { %v5268_v34 = vunpack.i.h.bf16 %v5266_v10  ;;  %v5267_v39 = vunpack.i.l.bf16 %v5266_v10 }
 0xcda   : > { %v4753_v51 = vsel %vm4740_vm8, %v4736_v53, %v5267_v39  ;;  %v4754_v46 = vsel %vm4740_vm8, %v4737_v63, %v5268_v34  ;;  %v4867_v53 = vld [vmem:[%s5640_s21 + $0x60] sm:$0xff] }
 0xcdb   : > { %v4763_v26 = vpack.c.bf16 %v4754_v46, %v4753_v51  ;;  %v4868_v46 = vld [vmem:[%s5640_s21 + $0x68] sm:$0xff] }
 0xcdc   : > { %v4820_v21 = vpop.f32.mrf.mxu0 }
 0xcdd   : > { %v4821_v36 = vadd.f32 %v4820_v21, %v8118_v54 }
 0xcdf   : > { %v4873_v11 = vadd.f32 %v4857_v0, %v4821_v36 }
 0xce1   : > { %4889 = vst.msk [vmem:[%s8127_s29 + $0x10] sm:$0xff] %vm219_vm0, %v4873_v11 }
 0xce2   : > { %5126 = vmatmul.msk.bf16.gmra.mxu0 %vm219_vm0, %v4763_v26 }
 0xce4   : > { %v4822_v61 = vpop.f32.mrf.mxu0 }
 0xce5   : > { %v4823_v25 = vadd.f32 %v4822_v61, %v8118_v54  ;;  %v4869_v61 = vld [vmem:[%s5640_s21 + $0x70] sm:$0xff] }
 0xce7   : > { %v4874_v31 = vadd.f32 %v4858_v3, %v4823_v25 }
 0xce9   : > { %4890 = vst.msk [vmem:[%s8127_s29 + $0x18] sm:$0xff] %vm219_vm0, %v4874_v31 }
 0xcec   : > { %v4825_v18 = vpop.f32.mrf.mxu0 }
 0xced   : > { %v4826_v50 = vadd.f32 %v4825_v18, %v8118_v54  ;;  %v4870_v18 = vld [vmem:[%s5640_s21 + $0x78] sm:$0xff] }
 0xcef   : > { %v4875_v24 = vadd.f32 %v4859_v15, %v4826_v50 }
 0xcf1   : > { %4891 = vst.msk [vmem:[%s8127_s29 + $0x20] sm:$0xff] %vm219_vm0, %v4875_v24 }
 0xcf4   : > { %v4827_v17 = vpop.f32.mrf.mxu0 }
 0xcf5   : > { %v4828_v45 = vadd.f32 %v4827_v17, %v8118_v54 }
 0xcf7   : > { %v4876_v58 = vadd.f32 %v4860_v37, %v4828_v45 }
 0xcf9   : > { %4892 = vst.msk [vmem:[%s8127_s29 + $0x28] sm:$0xff] %vm219_vm0, %v4876_v58 }
 0xd0c   : > { %v4830_v27 = vpop.f32.mrf.mxu0 }
 0xd0d   : > { %v4831_v57 = vadd.f32 %v4830_v27, %v8118_v54 }
 0xd0f   : > { %v4877_v56 = vadd.f32 %v4861_v1, %v4831_v57 }
 0xd10   : > { %v5281_v62 = vpop.permute.xlu0 %5280 }
 0xd11   : > { %4893 = vst.msk [vmem:[%s8127_s29 + $0x30] sm:$0xff] %vm219_vm0, %v4877_v56  ;;  %v5283_v59 = vunpack.i.h.bf16 %v5281_v62  ;;  %v5282_v43 = vunpack.i.l.bf16 %v5281_v62 }
 0xd13   : > { %v4755_v47 = vsel %vm4740_vm8, %v4738_v55, %v5282_v43  ;;  %v4756_v6 = vsel %vm4740_vm8, %v4739_v13, %v5283_v59 }
 0xd14   : > { %v4764_v23 = vpack.c.bf16 %v4756_v6, %v4755_v47  ;;  %v4832_v2 = vpop.f32.mrf.mxu0 }
 0xd15   : > { %v4833_v19 = vadd.f32 %v4832_v2, %v8118_v54 }
 0xd16   : > { %5127 = vmatmul.msk.bf16.gmra.mxu0 %vm219_vm0, %v4764_v23 }
 0xd17   : > { %v4878_v52 = vadd.f32 %v4862_v32, %v4833_v19 }
 0xd19   : > { %4894 = vst.msk [vmem:[%s8127_s29 + $0x38] sm:$0xff] %vm219_vm0, %v4878_v52 }
 0xd1c   : > { %v4835_v44 = vpop.f32.mrf.mxu0 }
 0xd1d   : > { %v4836_v35 = vadd.f32 %v4835_v44, %v8118_v54 }
 0xd1f   : > { %v4879_v14 = vadd.f32 %v4863_v5, %v4836_v35 }
 0xd21   : > { %4895 = vst.msk [vmem:[%s8127_s29 + $0x40] sm:$0xff] %vm219_vm0, %v4879_v14 }
 0xd24   : > { %v4837_v49 = vpop.f32.mrf.mxu0 }
 0xd25   : > { %v4838_v30 = vadd.f32 %v4837_v49, %v8118_v54 }
 0xd27   : > { %v4880_v10 = vadd.f32 %v4864_v28, %v4838_v30 }
 0xd29   : > { %4896 = vst.msk [vmem:[%s8127_s29 + $0x48] sm:$0xff] %vm219_vm0, %v4880_v10 }
 0xd4f   : > { %v4840_v16 = vpop.f32.mrf.mxu0 }
 0xd50   : > { %v4841_v34 = vadd.f32 %v4840_v16, %v8118_v54 }
 0xd52   : > { %v4881_v39 = vadd.f32 %v4865_v9, %v4841_v34 }
 0xd54   : > { %4897 = vst.msk [vmem:[%s8127_s29 + $0x50] sm:$0xff] %vm219_vm0, %v4881_v39 }
 0xd57   : > { %v4842_v20 = vpop.f32.mrf.mxu0 }
 0xd58   : > { %v4843_v38 = vadd.f32 %v4842_v20, %v8118_v54 }
 0xd5a   : > { %v4882_v42 = vadd.f32 %v4866_v29, %v4843_v38 }
 0xd5c   : > { %4898 = vst.msk [vmem:[%s8127_s29 + $0x58] sm:$0xff] %vm219_vm0, %v4882_v42 }
 0xd5f   : > { %v4845_v63 = vpop.f32.mrf.mxu0 }
 0xd60   : > { %v4846_v21 = vadd.f32 %v4845_v63, %v8118_v54 }
 0xd62   : > { %v4883_v0 = vadd.f32 %v4867_v53, %v4846_v21 }
 0xd64   : > { %4899 = vst.msk [vmem:[%s8127_s29 + $0x60] sm:$0xff] %vm219_vm0, %v4883_v0 }
 0xd67   : > { %v4847_v51 = vpop.f32.mrf.mxu0 }
 0xd68   : > { %v4848_v36 = vadd.f32 %v4847_v51, %v8118_v54 }
 0xd6a   : > { %v4884_v11 = vadd.f32 %v4868_v46, %v4848_v36 }
 0xd6c   : > { %4900 = vst.msk [vmem:[%s8127_s29 + $0x68] sm:$0xff] %vm219_vm0, %v4884_v11 }
 0xd93   : > { %v4850_v26 = vpop.f32.mrf.mxu0 }
 0xd94   : > { %v4851_v3 = vadd.f32 %v4850_v26, %v8118_v54 }
 0xd96   : > { %v4885_v25 = vadd.f32 %v4869_v61, %v4851_v3 }
 0xd98   : > { %4901 = vst.msk [vmem:[%s8127_s29 + $0x70] sm:$0xff] %vm219_vm0, %v4885_v25 }
 0xd9b   : > { %v4852_v31 = vpop.f32.mrf.mxu0 }
 0xd9c   : > { %v4853_v15 = vadd.f32 %v4852_v31, %v8118_v54 }
 0xd9e   : > { %v4886_v50 = vadd.f32 %v4870_v18, %v4853_v15 }
 0xda0   : > { %4902 = vst.msk [vmem:[%s8127_s29 + $0x78] sm:$0xff] %vm219_vm0, %v4886_v50 }
 0xda1 PF: > { %s14_s15 = sadd.s32 1, %s5581_s15  }
 0xda2   : > { %p11_p4 = scmp.ge.s32.totalorder %s14_s15, 4  }
 0xda4   :  { %13 = sbr.rel (!%p11_p4) target bundleno = 1 (0x1), region = 66 }

</bundles_post_ra>
